<compile_context>
chip_gen: v7x
topology: tpu7x:2x2x1
jax: 0.10.0
libtpu: 0.0.40
codegen_flags: <defaults>
</compile_context>

<pallas_src>
import functools

import jax
import jax.numpy as jnp
from jax.experimental import pallas as pl
from jax.experimental.pallas import tpu as pltpu

INPUT_MEAN = jnp.array([0.2788, 0.2657, 0.2629], dtype=jnp.float32)
INPUT_STD = jnp.array([0.2064, 0.1944, 0.2252], dtype=jnp.float32)
BN_EPS = 1e-5
N_WAYPOINTS = 3

VMEM_LIMIT = 32 * 1024 * 1024    # explicit scoped-VMEM request (safe on v5e/v6e/v7x)
VMEM_BUDGET = 12 * 1024 * 1024   # conservative per-call working-set budget


# ----------------------------- Pallas kernels -----------------------------

def _matmul_bias_kernel(x_ref, w_ref, bias_ref, o_ref, *, apply_relu):
    """o = maybe_relu(x @ w + bias); bf16 MXU matmul, f32 accumulate/epilogue.

    BatchNorm scale is pre-folded into w, so the epilogue is bias+ReLU+cast only.
    """
    acc = jnp.dot(x_ref[...], w_ref[...], preferred_element_type=jnp.float32)
    y = acc + bias_ref[...]
    if apply_relu:
        y = jnp.maximum(y, 0.0)
    o_ref[...] = y.astype(o_ref.dtype)


def _regressor_kernel(x_ref, w1_ref, b1_ref, w2_ref, b2_ref, w3_ref, b3_ref, o_ref):
    """Fused Linear+ReLU -> Linear+ReLU -> Linear (all weights resident in VMEM).

    Intermediates (B,512)/(B,256) never leave VMEM; Dropout(0.3) is identity
    at inference.
    """
    h = jnp.dot(x_ref[...], w1_ref[...], preferred_element_type=jnp.float32)
    h = jnp.maximum(h + b1_ref[...], 0.0).astype(w2_ref.dtype)
    h = jnp.dot(h, w2_ref[...], preferred_element_type=jnp.float32)
    h = jnp.maximum(h + b2_ref[...], 0.0).astype(w3_ref.dtype)
    o_ref[...] = (jnp.dot(h, w3_ref[...], preferred_element_type=jnp.float32)
                  + b3_ref[...])


# ----------------------------- Pallas wrappers -----------------------------

def _pick_m_tile(M, K, N, x_bytes, w_bytes, out_bytes):
    """Pick an M tile giving ~4-8 pipelined grid steps when M is large.

    Budget accounts for double-buffered x and out blocks plus the (also
    double-buffered) weight/bias blocks, using the actual dtype byte widths.
    Only tiles that fit the budget are returned; tiny problems use one block.
    """
    if M <= 256:
        return M
    fixed = 2 * (K * N * w_bytes + N * 4)   # weights + f32 bias, double-buffered
    for steps in (8, 6, 4, 3, 2, 12, 16, 24, 32, 48, 64, 96):
        if M % steps:
            continue
        tm = M // steps
        if tm % 8 or tm < 128:
            continue
        need = fixed + 2 * tm * (K * x_bytes + N * out_bytes)
        if need <= VMEM_BUDGET:
            return tm
    return M


def matmul_bias(x, w, bias, *, relu, out_dtype=jnp.bfloat16):
    """y = maybe_relu(x @ w + bias). x:(M,K) bf16, w:(K,N) bf16, bias:(1,N) f32.

    K and N need not be 128-multiples: every block spans the full K / N extent.
    """
    M, K = x.shape
    K2, N = w.shape
    assert K == K2 and bias.shape == (1, N)
    tm = _pick_m_tile(M, K, N, x.dtype.itemsize, w.dtype.itemsize,
                      jnp.dtype(out_dtype).itemsize)
    grid = (M // tm,)
    return pl.pallas_call(
        functools.partial(_matmul_bias_kernel, apply_relu=relu),
        out_shape=jax.ShapeDtypeStruct((M, N), out_dtype),
        grid_spec=pltpu.PrefetchScalarGridSpec(
            num_scalar_prefetch=0,
            grid=grid,
            in_specs=[
                pl.BlockSpec((tm, K), lambda i: (i, 0)),
                pl.BlockSpec((K, N), lambda i: (0, 0)),
                pl.BlockSpec((1, N), lambda i: (0, 0)),
            ],
            out_specs=pl.BlockSpec((tm, N), lambda i: (i, 0)),
        ),
        compiler_params=pltpu.CompilerParams(
            dimension_semantics=("parallel",),
            vmem_limit_bytes=VMEM_LIMIT),
    )(x, w, bias)


def regressor(feats, fc):
    """Fused 3-layer MLP head. feats:(B, 3072) bf16 -> (B, 6) f32."""
    # TODO(synk): hide the ~3.5 MB w1/w2/w3 weight DMA behind the conv stack
    #             via a cross-call DMA future, or fuse the head into conv4.
    B = feats.shape[0]
    n_out = fc["w3"].shape[1]
    return pl.pallas_call(
        _regressor_kernel,
        out_shape=jax.ShapeDtypeStruct((B, n_out), jnp.float32),
        compiler_params=pltpu.CompilerParams(vmem_limit_bytes=VMEM_LIMIT),
    )(feats, fc["w1"], fc["b1"], fc["w2"], fc["b2"], fc["w3"], fc["b3"])


# ----------------------------- glue (plain JAX) -----------------------------

def maxpool2x2(x_nhwc):
    # Single XLA reshape+reduce.
    # TODO(synk): fuse into the preceding conv kernel's epilogue (block-local 2x2).
    B, H, W, C = x_nhwc.shape
    return x_nhwc.reshape(B, H // 2, 2, W // 2, 2, C).max(axis=(2, 4))


def adaptive_avgpool(x_nhwc, out_hw):
    """AdaptiveAvgPool2d: exact non-overlapping windows when sizes divide evenly
    (true for the module's 96x128 input -> 6x8 feature map -> (3,4))."""
    B, H, W, C = x_nhwc.shape
    oh, ow = out_hw
    # TODO(synk): general (non-divisible) adaptive pooling fallback.
    assert H % oh == 0 and W % ow == 0, "adaptive pool implemented for exact bins"
    kh, kw = H // oh, W // ow
    x = x_nhwc.astype(jnp.float32)
    return x.reshape(B, oh, kh, ow, kw, C).mean(axis=(2, 4))


def extract_patches(x_nhwc, k, stride, pad, pad_value=None):
    """im2col: (B,H,W,Cin) -> (B*Ho*Wo, k*k*Cin), tap order (kh, kw, cin).

    pad_value=None pads with zeros (standard conv padding). conv1 passes the
    per-channel input mean so that the normalization folded into its weights
    reproduces PyTorch's zero-padding of the *normalized* input exactly.
    """
    # TODO(synk): fold this into the conv Pallas kernel (per-tap shifted dots)
    #             so the k^2-inflated patch matrix never touches HBM.
    B, H, W, C = x_nhwc.shape
    if pad_value is None:
        xp = jnp.pad(x_nhwc, ((0, 0), (pad, pad), (pad, pad), (0, 0)))
    else:
        Hp, Wp = H + 2 * pad, W + 2 * pad
        xp = jnp.broadcast_to(pad_value.reshape(1, 1, 1, C).astype(x_nhwc.dtype),
                              (B, Hp, Wp, C))
        xp = jax.lax.dynamic_update_slice(xp, x_nhwc, (0, pad, pad, 0))
    Ho = (H + 2 * pad - k) // stride + 1
    Wo = (W + 2 * pad - k) // stride + 1
    cols = []
    for i in range(k):
        for j in range(k):
            cols.append(xp[:, i:i + stride * Ho:stride, j:j + stride * Wo:stride, :])
    patches = jnp.stack(cols, axis=3)            # (B, Ho, Wo, k*k, Cin)
    return patches.reshape(B * Ho * Wo, k * k * C), (B, Ho, Wo)


def conv_bn_relu(x_nhwc, p):
    """Conv2d + BatchNorm2d (eval, folded) + ReLU via im2col + Pallas matmul."""
    patches, (B, Ho, Wo) = extract_patches(x_nhwc, p["k"], p["stride"], p["pad"],
                                           pad_value=p["pad_value"])
    y = matmul_bias(patches.astype(jnp.bfloat16), p["w_mat"], p["bias"], relu=True)
    return y.reshape(B, Ho, Wo, p["w_mat"].shape[1])


# ------------------------- parameter preparation ---------------------------

def _prep_conv(w, b, bn, *, k, stride, pad, pad_value):
    """PyTorch (Cout,Cin,KH,KW) conv + BN(eval) -> bf16 (k*k*Cin, Cout) matmul
    weight with BN scale folded in, plus f32 (1, Cout) bias."""
    cout, cin = w.shape[0], w.shape[1]
    scale = bn["gamma"] / jnp.sqrt(bn["rvar"] + BN_EPS)            # (Cout,)
    bias = bn["beta"] + (b - bn["rmean"]) * scale                  # (Cout,)
    wt = jnp.transpose(w, (2, 3, 1, 0)).reshape(k * k * cin, cout)  # (kh,kw,cin,cout)
    w_mat = (wt * scale[None, :]).astype(jnp.bfloat16)
    return dict(
        w_mat=w_mat,
        bias=bias.astype(jnp.float32).reshape(1, cout),
        k=k, stride=stride, pad=pad, pad_value=pad_value,
    )


def _prep_fcs(fcs, pooled_hw=(3, 4), c=256):
    """fc weights -> bf16 (in, out); fc1 rows permuted from PyTorch's NCHW
    flatten order (c,h,w) to the NHWC flatten order (h,w,c) used here."""
    h, w = pooled_hw
    w1 = fcs[0]["w"].T                                             # (c*h*w, 512), (c,h,w) order
    w1 = w1.reshape(c, h, w, -1).transpose(1, 2, 0, 3).reshape(c * h * w, -1)
    return dict(
        w1=w1.astype(jnp.bfloat16),
        b1=fcs[0]["b"].astype(jnp.float32).reshape(1, -1),
        w2=fcs[1]["w"].T.astype(jnp.bfloat16),
        b2=fcs[1]["b"].astype(jnp.float32).reshape(1, -1),
        w3=fcs[2]["w"].T.astype(jnp.bfloat16),
        b3=fcs[2]["b"].astype(jnp.float32).reshape(1, -1),
    )


def prepare_params(convs, fcs):
    """One-time weight layout prep (runs once, outside the jitted forward)."""
    prepared = []
    # conv1: fold (x - mean) / std into the weights / bias (mean-padding trick).
    c0 = convs[0]
    w0 = c0["w"] / INPUT_STD[None, :, None, None]
    b0 = c0["b"] - jnp.einsum("ocij,c->o", w0, INPUT_MEAN)
    prepared.append(_prep_conv(w0, b0, c0, k=5, stride=2, pad=2,
                               pad_value=INPUT_MEAN))
    for c in convs[1:]:
        prepared.append(_prep_conv(c["w"], c["b"], c, k=3, stride=1, pad=1,
                                   pad_value=None))
    return dict(convs=prepared, fc=_prep_fcs(fcs))


def init_params(key, n_waypoints=N_WAYPOINTS):
    """Deterministic synthetic parameters matching the PyTorch module's shapes."""
    conv_defs = [  # (cin, cout, k, stride, pad)
        (3, 32, 5, 2, 2),
        (32, 64, 3, 1, 1),
        (64, 128, 3, 1, 1),
        (128, 256, 3, 1, 1),
    ]
    keys = jax.random.split(key, 32)
    ki = 0
    convs = []
    for cin, cout, k, s, pd in conv_defs:
        w = 0.05 * jax.random.normal(keys[ki], (cout, cin, k, k), jnp.float32); ki += 1
        b = 0.05 * jax.random.normal(keys[ki], (cout,), jnp.float32); ki += 1
        gamma = 1.0 + 0.1 * jax.random.normal(keys[ki], (cout,), jnp.float32); ki += 1
        beta = 0.1 * jax.random.normal(keys[ki], (cout,), jnp.float32); ki += 1
        rmean = 0.1 * jax.random.normal(keys[ki], (cout,), jnp.float32); ki += 1
        rvar = jax.random.uniform(keys[ki], (cout,), jnp.float32, 0.5, 1.5); ki += 1
        convs.append(dict(w=w, b=b, gamma=gamma, beta=beta, rmean=rmean, rvar=rvar,
                          stride=s, pad=pd))
    fc_defs = [(256 * 3 * 4, 512), (512, 256), (256, n_waypoints * 2)]
    fcs = []
    for fin, fout in fc_defs:
        w = jax.random.normal(keys[ki], (fout, fin), jnp.float32) / jnp.sqrt(float(fin)); ki += 1
        b = 0.05 * jax.random.normal(keys[ki], (fout,), jnp.float32); ki += 1
        fcs.append(dict(w=w, b=b))
    return convs, fcs


# ------------------------------- forward -----------------------------------

def cnn_planner_forward(image_nchw, params, n_waypoints=N_WAYPOINTS):
    """image: (B, 3, H, W) float32 in [0, 1] -> waypoints (B, n_waypoints, 2).

    Numerics note: weights/activations run in bf16 on the MXU (f32 accumulate),
    so results deviate from the f32 PyTorch reference by ~1e-2 relative.
    """
    B = image_nchw.shape[0]
    x = jnp.transpose(image_nchw, (0, 2, 3, 1)).astype(jnp.bfloat16)   # NCHW -> NHWC

    convs = params["convs"]
    x = conv_bn_relu(x, convs[0]); x = maxpool2x2(x)    # (B, 24, 32,  32)
    x = conv_bn_relu(x, convs[1]); x = maxpool2x2(x)    # (B, 12, 16,  64)
    x = conv_bn_relu(x, convs[2]); x = maxpool2x2(x)    # (B,  6,  8, 128)
    x = conv_bn_relu(x, convs[3])                       # (B,  6,  8, 256)

    x = adaptive_avgpool(x, (3, 4))                     # (B, 3, 4, 256) f32

    # NHWC flatten (h, w, c): fc1's rows were permuted at prep time to match,
    # so no NCHW-order transpose is needed here.
    feats = x.reshape(B, -1).astype(jnp.bfloat16)       # (B, 3072)

    out = regressor(feats, params["fc"])                # (B, 6) f32
    return out.reshape(B, n_waypoints, 2)


if __name__ == "__main__":
    key = jax.random.PRNGKey(0)
    pkey, xkey = jax.random.split(key)
    convs, fcs = init_params(pkey)
    params = prepare_params(convs, fcs)   # one-time layout / BN-scale fold / bf16 prep

    # Image consistent with the module: (batch=2, 3, 96, 128), values in [0, 1].
    image = jax.random.uniform(xkey, (2, 3, 96, 128), dtype=jnp.float32)

    fwd = jax.jit(lambda img: cnn_planner_forward(img, params))
    waypoints = jax.block_until_ready(fwd(image))

    assert waypoints.shape == (2, N_WAYPOINTS, 2), waypoints.shape
    assert bool(jnp.all(jnp.isfinite(waypoints)))
    print("KERNEL_OK")
</pallas_src>

<mosaic_0001>
module attributes {stable_mosaic.version = 11 : i64} {
  func.func @_matmul_bias_kernel(%arg0: i32, %arg1: memref<768x75xbf16, #tpu.memory_space<vmem>>, %arg2: memref<75x32xbf16, #tpu.memory_space<vmem>>, %arg3: memref<1x32xf32, #tpu.memory_space<vmem>>, %arg4: memref<768x32xbf16, #tpu.memory_space<vmem>>) attributes {dimension_semantics = [#tpu.dimension_semantics<parallel>], iteration_bounds = array<i64: 8>, scalar_prefetch = 0 : i64, scratch_operands = 0 : i64, tpu.core_type = #tpu.core_type<tc>, window_params = [{transform_indices = @transform_0, window_bounds = array<i64: 768, 75>}, {pipeline_mode = #tpu.pipeline_mode<synchronous>, transform_indices = @transform_1, window_bounds = array<i64: 75, 32>}, {pipeline_mode = #tpu.pipeline_mode<synchronous>, transform_indices = @transform_2, window_bounds = array<i64: 1, 32>}, {transform_indices = @transform_3, window_bounds = array<i64: 768, 32>}]} {
    %c0 = arith.constant 0 : index
    %c0_0 = arith.constant 0 : index
    %0 = vector.load %arg1[%c0, %c0_0] : memref<768x75xbf16, #tpu.memory_space<vmem>>, vector<768x75xbf16>
    %c0_1 = arith.constant 0 : index
    %c0_2 = arith.constant 0 : index
    %1 = vector.load %arg2[%c0_1, %c0_2] : memref<75x32xbf16, #tpu.memory_space<vmem>>, vector<75x32xbf16>
    %cst = arith.constant dense<0.000000e+00> : vector<768x32xf32>
    %2 = tpu.matmul %0, %1, %cst {dimension_numbers = #tpu.dot_dimension_numbers<[1], [0], [0], [1], [0, 0, 1, 1], [], []>} : vector<768x75xbf16>, vector<75x32xbf16>, vector<768x32xf32> -> vector<768x32xf32>
    %c0_3 = arith.constant 0 : index
    %c0_4 = arith.constant 0 : index
    %3 = vector.load %arg3[%c0_3, %c0_4] : memref<1x32xf32, #tpu.memory_space<vmem>>, vector<1x32xf32>
    %4 = vector.broadcast %3 : vector<1x32xf32> to vector<768x32xf32>
    %5 = arith.addf %2, %4 : vector<768x32xf32>
    %cst_5 = arith.constant 0.000000e+00 : f32
    %6 = vector.broadcast %cst_5 : f32 to vector<768x32xf32>
    %7 = arith.maximumf %5, %6 : vector<768x32xf32>
    %8 = arith.truncf %7 : vector<768x32xf32> to vector<768x32xbf16>
    %c0_6 = arith.constant 0 : index
    %c0_7 = arith.constant 0 : index
    %9 = vector.load %arg4[%c0_6, %c0_7] : memref<768x32xbf16, #tpu.memory_space<vmem>>, vector<768x32xbf16>
    tpu.vector_store %arg4[%c0_6, %c0_7], %8 {strides = array<i32>} : memref<768x32xbf16, #tpu.memory_space<vmem>>, vector<768x32xbf16>,
    return
  }
  func.func @transform_0(%arg0: i32) -> (i32, i32) {
    %c0_i32 = arith.constant 0 : i32
    %c0_i32_0 = arith.constant 0 : i32
    return %arg0, %c0_i32 : i32, i32
  }
  func.func @transform_1(%arg0: i32) -> (i32, i32) {
    %c0_i32 = arith.constant 0 : i32
    %c0_i32_0 = arith.constant 0 : i32
    %c0_i32_1 = arith.constant 0 : i32
    return %c0_i32, %c0_i32_0 : i32, i32
  }
  func.func @transform_2(%arg0: i32) -> (i32, i32) {
    %c0_i32 = arith.constant 0 : i32
    %c0_i32_0 = arith.constant 0 : i32
    %c0_i32_1 = arith.constant 0 : i32
    return %c0_i32, %c0_i32_0 : i32, i32
  }
  func.func @transform_3(%arg0: i32) -> (i32, i32) {
    %c0_i32 = arith.constant 0 : i32
    %c0_i32_0 = arith.constant 0 : i32
    return %arg0, %c0_i32 : i32, i32
  }
}

module attributes {stable_mosaic.version = 11 : i64} {
  func.func @_matmul_bias_kernel(%arg0: i32, %arg1: memref<192x288xbf16, #tpu.memory_space<vmem>>, %arg2: memref<288x64xbf16, #tpu.memory_space<vmem>>, %arg3: memref<1x64xf32, #tpu.memory_space<vmem>>, %arg4: memref<192x64xbf16, #tpu.memory_space<vmem>>) attributes {dimension_semantics = [#tpu.dimension_semantics<parallel>], iteration_bounds = array<i64: 8>, scalar_prefetch = 0 : i64, scratch_operands = 0 : i64, tpu.core_type = #tpu.core_type<tc>, window_params = [{transform_indices = @transform_0, window_bounds = array<i64: 192, 288>}, {pipeline_mode = #tpu.pipeline_mode<synchronous>, transform_indices = @transform_1, window_bounds = array<i64: 288, 64>}, {pipeline_mode = #tpu.pipeline_mode<synchronous>, transform_indices = @transform_2, window_bounds = array<i64: 1, 64>}, {transform_indices = @transform_3, window_bounds = array<i64: 192, 64>}]} {
    %c0 = arith.constant 0 : index
    %c0_0 = arith.constant 0 : index
    %0 = vector.load %arg1[%c0, %c0_0] : memref<192x288xbf16, #tpu.memory_space<vmem>>, vector<192x288xbf16>
    %c0_1 = arith.constant 0 : index
    %c0_2 = arith.constant 0 : index
    %1 = vector.load %arg2[%c0_1, %c0_2] : memref<288x64xbf16, #tpu.memory_space<vmem>>, vector<288x64xbf16>
    %cst = arith.constant dense<0.000000e+00> : vector<192x64xf32>
    %2 = tpu.matmul %0, %1, %cst {dimension_numbers = #tpu.dot_dimension_numbers<[1], [0], [0], [1], [0, 0, 1, 1], [], []>} : vector<192x288xbf16>, vector<288x64xbf16>, vector<192x64xf32> -> vector<192x64xf32>
    %c0_3 = arith.constant 0 : index
    %c0_4 = arith.constant 0 : index
    %3 = vector.load %arg3[%c0_3, %c0_4] : memref<1x64xf32, #tpu.memory_space<vmem>>, vector<1x64xf32>
    %4 = vector.broadcast %3 : vector<1x64xf32> to vector<192x64xf32>
    %5 = arith.addf %2, %4 : vector<192x64xf32>
    %cst_5 = arith.constant 0.000000e+00 : f32
    %6 = vector.broadcast %cst_5 : f32 to vector<192x64xf32>
    %7 = arith.maximumf %5, %6 : vector<192x64xf32>
    %8 = arith.truncf %7 : vector<192x64xf32> to vector<192x64xbf16>
    %c0_6 = arith.constant 0 : index
    %c0_7 = arith.constant 0 : index
    %9 = vector.load %arg4[%c0_6, %c0_7] : memref<192x64xbf16, #tpu.memory_space<vmem>>, vector<192x64xbf16>
    tpu.vector_store %arg4[%c0_6, %c0_7], %8 {strides = array<i32>} : memref<192x64xbf16, #tpu.memory_space<vmem>>, vector<192x64xbf16>,
    return
  }
  func.func @transform_0(%arg0: i32) -> (i32, i32) {
    %c0_i32 = arith.constant 0 : i32
    %c0_i32_0 = arith.constant 0 : i32
    return %arg0, %c0_i32 : i32, i32
  }
  func.func @transform_1(%arg0: i32) -> (i32, i32) {
    %c0_i32 = arith.constant 0 : i32
    %c0_i32_0 = arith.constant 0 : i32
    %c0_i32_1 = arith.constant 0 : i32
    return %c0_i32, %c0_i32_0 : i32, i32
  }
  func.func @transform_2(%arg0: i32) -> (i32, i32) {
    %c0_i32 = arith.constant 0 : i32
    %c0_i32_0 = arith.constant 0 : i32
    %c0_i32_1 = arith.constant 0 : i32
    return %c0_i32, %c0_i32_0 : i32, i32
  }
  func.func @transform_3(%arg0: i32) -> (i32, i32) {
    %c0_i32 = arith.constant 0 : i32
    %c0_i32_0 = arith.constant 0 : i32
    return %arg0, %c0_i32 : i32, i32
  }
}

module attributes {stable_mosaic.version = 11 : i64} {
  func.func @_matmul_bias_kernel(%arg0: i32, %arg1: memref<128x576xbf16, #tpu.memory_space<vmem>>, %arg2: memref<576x128xbf16, #tpu.memory_space<vmem>>, %arg3: memref<1x128xf32, #tpu.memory_space<vmem>>, %arg4: memref<128x128xbf16, #tpu.memory_space<vmem>>) attributes {dimension_semantics = [#tpu.dimension_semantics<parallel>], iteration_bounds = array<i64: 3>, scalar_prefetch = 0 : i64, scratch_operands = 0 : i64, tpu.core_type = #tpu.core_type<tc>, window_params = [{transform_indices = @transform_0, window_bounds = array<i64: 128, 576>}, {pipeline_mode = #tpu.pipeline_mode<synchronous>, transform_indices = @transform_1, window_bounds = array<i64: 576, 128>}, {pipeline_mode = #tpu.pipeline_mode<synchronous>, transform_indices = @transform_2, window_bounds = array<i64: 1, 128>}, {transform_indices = @transform_3, window_bounds = array<i64: 128, 128>}]} {
    %c0 = arith.constant 0 : index
    %c0_0 = arith.constant 0 : index
    %0 = vector.load %arg1[%c0, %c0_0] : memref<128x576xbf16, #tpu.memory_space<vmem>>, vector<128x576xbf16>
    %c0_1 = arith.constant 0 : index
    %c0_2 = arith.constant 0 : index
    %1 = vector.load %arg2[%c0_1, %c0_2] : memref<576x128xbf16, #tpu.memory_space<vmem>>, vector<576x128xbf16>
    %cst = arith.constant dense<0.000000e+00> : vector<128x128xf32>
    %2 = tpu.matmul %0, %1, %cst {dimension_numbers = #tpu.dot_dimension_numbers<[1], [0], [0], [1], [0, 0, 1, 1], [], []>} : vector<128x576xbf16>, vector<576x128xbf16>, vector<128x128xf32> -> vector<128x128xf32>
    %c0_3 = arith.constant 0 : index
    %c0_4 = arith.constant 0 : index
    %3 = vector.load %arg3[%c0_3, %c0_4] : memref<1x128xf32, #tpu.memory_space<vmem>>, vector<1x128xf32>
    %4 = vector.broadcast %3 : vector<1x128xf32> to vector<128x128xf32>
    %5 = arith.addf %2, %4 : vector<128x128xf32>
    %cst_5 = arith.constant 0.000000e+00 : f32
    %6 = vector.broadcast %cst_5 : f32 to vector<128x128xf32>
    %7 = arith.maximumf %5, %6 : vector<128x128xf32>
    %8 = arith.truncf %7 : vector<128x128xf32> to vector<128x128xbf16>
    %c0_6 = arith.constant 0 : index
    %c0_7 = arith.constant 0 : index
    %9 = vector.load %arg4[%c0_6, %c0_7] : memref<128x128xbf16, #tpu.memory_space<vmem>>, vector<128x128xbf16>
    tpu.vector_store %arg4[%c0_6, %c0_7], %8 {strides = array<i32>} : memref<128x128xbf16, #tpu.memory_space<vmem>>, vector<128x128xbf16>,
    return
  }
  func.func @transform_0(%arg0: i32) -> (i32, i32) {
    %c0_i32 = arith.constant 0 : i32
    %c0_i32_0 = arith.constant 0 : i32
    return %arg0, %c0_i32 : i32, i32
  }
  func.func @transform_1(%arg0: i32) -> (i32, i32) {
    %c0_i32 = arith.constant 0 : i32
    %c0_i32_0 = arith.constant 0 : i32
    %c0_i32_1 = arith.constant 0 : i32
    return %c0_i32, %c0_i32_0 : i32, i32
  }
  func.func @transform_2(%arg0: i32) -> (i32, i32) {
    %c0_i32 = arith.constant 0 : i32
    %c0_i32_0 = arith.constant 0 : i32
    %c0_i32_1 = arith.constant 0 : i32
    return %c0_i32, %c0_i32_0 : i32, i32
  }
  func.func @transform_3(%arg0: i32) -> (i32, i32) {
    %c0_i32 = arith.constant 0 : i32
    %c0_i32_0 = arith.constant 0 : i32
    return %arg0, %c0_i32 : i32, i32
  }
}

module attributes {stable_mosaic.version = 11 : i64} {
  func.func @_matmul_bias_kernel(%arg0: i32, %arg1: memref<96x1152xbf16, #tpu.memory_space<vmem>>, %arg2: memref<1152x256xbf16, #tpu.memory_space<vmem>>, %arg3: memref<1x256xf32, #tpu.memory_space<vmem>>, %arg4: memref<96x256xbf16, #tpu.memory_space<vmem>>) attributes {dimension_semantics = [#tpu.dimension_semantics<parallel>], iteration_bounds = array<i64: 1>, scalar_prefetch = 0 : i64, scratch_operands = 0 : i64, tpu.core_type = #tpu.core_type<tc>, window_params = [{transform_indices = @transform_0, window_bounds = array<i64: 96, 1152>}, {pipeline_mode = #tpu.pipeline_mode<synchronous>, transform_indices = @transform_1, window_bounds = array<i64: 1152, 256>}, {pipeline_mode = #tpu.pipeline_mode<synchronous>, transform_indices = @transform_2, window_bounds = array<i64: 1, 256>}, {transform_indices = @transform_3, window_bounds = array<i64: 96, 256>}]} {
    %c0 = arith.constant 0 : index
    %c0_0 = arith.constant 0 : index
    %0 = vector.load %arg1[%c0, %c0_0] : memref<96x1152xbf16, #tpu.memory_space<vmem>>, vector<96x1152xbf16>
    %c0_1 = arith.constant 0 : index
    %c0_2 = arith.constant 0 : index
    %1 = vector.load %arg2[%c0_1, %c0_2] : memref<1152x256xbf16, #tpu.memory_space<vmem>>, vector<1152x256xbf16>
    %cst = arith.constant dense<0.000000e+00> : vector<96x256xf32>
    %2 = tpu.matmul %0, %1, %cst {dimension_numbers = #tpu.dot_dimension_numbers<[1], [0], [0], [1], [0, 0, 1, 1], [], []>} : vector<96x1152xbf16>, vector<1152x256xbf16>, vector<96x256xf32> -> vector<96x256xf32>
    %c0_3 = arith.constant 0 : index
    %c0_4 = arith.constant 0 : index
    %3 = vector.load %arg3[%c0_3, %c0_4] : memref<1x256xf32, #tpu.memory_space<vmem>>, vector<1x256xf32>
    %4 = vector.broadcast %3 : vector<1x256xf32> to vector<96x256xf32>
    %5 = arith.addf %2, %4 : vector<96x256xf32>
    %cst_5 = arith.constant 0.000000e+00 : f32
    %6 = vector.broadcast %cst_5 : f32 to vector<96x256xf32>
    %7 = arith.maximumf %5, %6 : vector<96x256xf32>
    %8 = arith.truncf %7 : vector<96x256xf32> to vector<96x256xbf16>
    %c0_6 = arith.constant 0 : index
    %c0_7 = arith.constant 0 : index
    %9 = vector.load %arg4[%c0_6, %c0_7] : memref<96x256xbf16, #tpu.memory_space<vmem>>, vector<96x256xbf16>
    tpu.vector_store %arg4[%c0_6, %c0_7], %8 {strides = array<i32>} : memref<96x256xbf16, #tpu.memory_space<vmem>>, vector<96x256xbf16>,
    return
  }
  func.func @transform_0(%arg0: i32) -> (i32, i32) {
    %c0_i32 = arith.constant 0 : i32
    %c0_i32_0 = arith.constant 0 : i32
    return %arg0, %c0_i32 : i32, i32
  }
  func.func @transform_1(%arg0: i32) -> (i32, i32) {
    %c0_i32 = arith.constant 0 : i32
    %c0_i32_0 = arith.constant 0 : i32
    %c0_i32_1 = arith.constant 0 : i32
    return %c0_i32, %c0_i32_0 : i32, i32
  }
  func.func @transform_2(%arg0: i32) -> (i32, i32) {
    %c0_i32 = arith.constant 0 : i32
    %c0_i32_0 = arith.constant 0 : i32
    %c0_i32_1 = arith.constant 0 : i32
    return %c0_i32, %c0_i32_0 : i32, i32
  }
  func.func @transform_3(%arg0: i32) -> (i32, i32) {
    %c0_i32 = arith.constant 0 : i32
    %c0_i32_0 = arith.constant 0 : i32
    return %arg0, %c0_i32 : i32, i32
  }
}

module attributes {stable_mosaic.version = 11 : i64} {
  func.func @_regressor_kernel(%arg0: memref<2x3072xbf16, #tpu.memory_space<vmem>>, %arg1: memref<3072x512xbf16, #tpu.memory_space<vmem>>, %arg2: memref<1x512xf32, #tpu.memory_space<vmem>>, %arg3: memref<512x256xbf16, #tpu.memory_space<vmem>>, %arg4: memref<1x256xf32, #tpu.memory_space<vmem>>, %arg5: memref<256x6xbf16, #tpu.memory_space<vmem>>, %arg6: memref<1x6xf32, #tpu.memory_space<vmem>>, %arg7: memref<2x6xf32, #tpu.memory_space<vmem>>) attributes {dimension_semantics = [], scalar_prefetch = 0 : i64, scratch_operands = 0 : i64, tpu.core_type = #tpu.core_type<tc>} {
    %c0 = arith.constant 0 : index
    %c0_0 = arith.constant 0 : index
    %0 = vector.load %arg0[%c0, %c0_0] : memref<2x3072xbf16, #tpu.memory_space<vmem>>, vector<2x3072xbf16>
    %c0_1 = arith.constant 0 : index
    %c0_2 = arith.constant 0 : index
    %1 = vector.load %arg1[%c0_1, %c0_2] : memref<3072x512xbf16, #tpu.memory_space<vmem>>, vector<3072x512xbf16>
    %cst = arith.constant dense<0.000000e+00> : vector<2x512xf32>
    %2 = tpu.matmul %0, %1, %cst {dimension_numbers = #tpu.dot_dimension_numbers<[1], [0], [0], [1], [0, 0, 1, 1], [], []>} : vector<2x3072xbf16>, vector<3072x512xbf16>, vector<2x512xf32> -> vector<2x512xf32>
    %c0_3 = arith.constant 0 : index
    %c0_4 = arith.constant 0 : index
    %3 = vector.load %arg2[%c0_3, %c0_4] : memref<1x512xf32, #tpu.memory_space<vmem>>, vector<1x512xf32>
    %4 = vector.broadcast %3 : vector<1x512xf32> to vector<2x512xf32>
    %5 = arith.addf %2, %4 : vector<2x512xf32>
    %cst_5 = arith.constant 0.000000e+00 : f32
    %6 = vector.broadcast %cst_5 : f32 to vector<2x512xf32>
    %7 = arith.maximumf %5, %6 : vector<2x512xf32>
    %8 = arith.truncf %7 : vector<2x512xf32> to vector<2x512xbf16>
    %c0_6 = arith.constant 0 : index
    %c0_7 = arith.constant 0 : index
    %9 = vector.load %arg3[%c0_6, %c0_7] : memref<512x256xbf16, #tpu.memory_space<vmem>>, vector<512x256xbf16>
    %cst_8 = arith.constant dense<0.000000e+00> : vector<2x256xf32>
    %10 = tpu.matmul %8, %9, %cst_8 {dimension_numbers = #tpu.dot_dimension_numbers<[1], [0], [0], [1], [0, 0, 1, 1], [], []>} : vector<2x512xbf16>, vector<512x256xbf16>, vector<2x256xf32> -> vector<2x256xf32>
    %c0_9 = arith.constant 0 : index
    %c0_10 = arith.constant 0 : index
    %11 = vector.load %arg4[%c0_9, %c0_10] : memref<1x256xf32, #tpu.memory_space<vmem>>, vector<1x256xf32>
    %12 = vector.broadcast %11 : vector<1x256xf32> to vector<2x256xf32>
    %13 = arith.addf %10, %12 : vector<2x256xf32>
    %cst_11 = arith.constant 0.000000e+00 : f32
    %14 = vector.broadcast %cst_11 : f32 to vector<2x256xf32>
    %15 = arith.maximumf %13, %14 : vector<2x256xf32>
    %16 = arith.truncf %15 : vector<2x256xf32> to vector<2x256xbf16>
    %c0_12 = arith.constant 0 : index
    %c0_13 = arith.constant 0 : index
    %17 = vector.load %arg5[%c0_12, %c0_13] : memref<256x6xbf16, #tpu.memory_space<vmem>>, vector<256x6xbf16>
    %cst_14 = arith.constant dense<0.000000e+00> : vector<2x6xf32>
    %18 = tpu.matmul %16, %17, %cst_14 {dimension_numbers = #tpu.dot_dimension_numbers<[1], [0], [0], [1], [0, 0, 1, 1], [], []>} : vector<2x256xbf16>, vector<256x6xbf16>, vector<2x6xf32> -> vector<2x6xf32>
    %c0_15 = arith.constant 0 : index
    %c0_16 = arith.constant 0 : index
    %19 = vector.load %arg6[%c0_15, %c0_16] : memref<1x6xf32, #tpu.memory_space<vmem>>, vector<1x6xf32>
    %20 = vector.broadcast %19 : vector<1x6xf32> to vector<2x6xf32>
    %21 = arith.addf %18, %20 : vector<2x6xf32>
    %c0_17 = arith.constant 0 : index
    %c0_18 = arith.constant 0 : index
    %22 = vector.load %arg7[%c0_17, %c0_18] : memref<2x6xf32, #tpu.memory_space<vmem>>, vector<2x6xf32>
    tpu.vector_store %arg7[%c0_17, %c0_18], %21 {strides = array<i32>} : memref<2x6xf32, #tpu.memory_space<vmem>>, vector<2x6xf32>,
    return
  }
}

</mosaic_0001>

<bundles_post_ra>
// kernel: _lambda_.5
= control target key start
LH: loop header
LB: loop body
LE: loop exit
PB: predicated region body
PF: predicated region fallthrough
CT: control target
= control target key end

     0   :  { %s2322_s12 = smov 0   ;;  %s2754_s0 = inlined_call_operand.vmem [shape: bf16[6144,75], index: 0, kind: input, shape index: {}]   ;;  %s2755_s1 = inlined_call_operand.vmem [shape: bf16[75,32], index: 1, kind: input, shape index: {}]   ;;  %s2756_s2 = inlined_call_operand.vmem [shape: f32[1,32], index: 2, kind: input, shape index: {}]   ;;  %s2757_s3 = inlined_call_operand.vmem [shape: bf16[6144,32], index: 3, kind: output, shape index: {}]  }
   0x1 LB: > { %s1759_s13 = sadd.s32 4294967295, %s2299_s12   ;;  %p1763_p0 = scmp.ge.s32.totalorder %s2299_s12, 1  ;;  %s2299_s12 = sphi %s2322_s12, %s13_s12  }
   0x2   : > { %p138_p1 = scmp.lt.s32.totalorder %s2299_s12, 9 }
   0x4   : > { %p139_p2 = pnand %p1763_p0, %p138_p1 }
   0x5   : > { %v2240_v0 = vld [vmem:[%s2755_s1] sm:$0xff] (!%p139_p2)   ;;  %v2241_v1 = vld [vmem:[%s2755_s1 + $0x8] sm:$0xff] (!%p139_p2)   ;;  %vm702_vm0 = vcmask (!%p139_p2), 1044480   ;;  %v2242_v2 = vld [vmem:[%s2755_s1 + $0x10] sm:$0xff] (!%p139_p2)   ;;  %s162_s20 = smul.u32 (!%p139_p2), 96, %s1759_s13  ;;  %vm703_vm1 = vcmask (!%p139_p2), 1045504  }
   0x6   : > { %142 = sbr.rel (%p139_p2) target bundleno = 336 (0x150), region = 32  ;;  %2115 = vmatprep.subr.bf16.mxu0 (!%p139_p2), %v2240_v0  ;;  %2221 = vmatprep.subr.bf16.mxu1 (!%p139_p2), %v2240_v0  ;;  %v2301_v3 = vmov (!%p139_p2), 65535   ;;  %v2243_v5 = vld [vmem:[%s2755_s1 + $0x18] sm:$0xff] (!%p139_p2)   ;;  %v2244_v6 = vld [vmem:[%s2755_s1 + $0x20] sm:$0x3f] (!%p139_p2)   ;;  %vm557_vm2 = vcmask (!%p139_p2), 613376  }
   0x7   : > { %2116 = vmatpush3.bf16.msra.mxu0 (!%p139_p2), %v2240_v0  ;;  %2226 = vmatpush3.bf16.msra.mxu1 (!%p139_p2), %v2240_v0  ;;  %v704_v4 = vsel (!%p139_p2), %vm702_vm0, 4294967295, %v2301_v3  ;;  %p163_p3 = scmp.lt.s32.totalorder (!%p139_p2), %s162_s20, 767  ;;  %v2454_v57 = vld [vmem:[%s2756_s2] ss:$0 sm:$0xff] (!%p139_p2)  ;;  %vm1606_vm3 = vcmask (!%p139_p2), 257024  }
   0x8   : > { %2117 = vmatprep.subr.bf16.mxu0 (!%p139_p2), %v2241_v1  ;;  %2222 = vmatprep.subr.bf16.mxu1 (!%p139_p2), %v2241_v1  ;;  %v705_v7 = vsel (!%p139_p2), %vm703_vm1, %v704_v4, 0 }
   0x9   : > { %v707_v8 = vand.u32 (!%p139_p2), %v2244_v6, %v705_v7 }
   0xb   : > { %2118 = vmatpush3.bf16.msra.mxu0 (!%p139_p2), %v2241_v1  ;;  %2227 = vmatpush3.bf16.msra.mxu1 (!%p139_p2), %v2241_v1 }
   0xc   : > { %2119 = vmatprep.subr.bf16.mxu0 (!%p139_p2), %v2242_v2  ;;  %2223 = vmatprep.subr.bf16.mxu1 (!%p139_p2), %v2242_v2 }
   0xd   : > { %s2759_s20 = smov (!%p163_p3, %s162_s20), 767 }
   0xe   : > { %s1764_s25 = sshll.u32 %s2759_s20, 2 }
   0xf   : > { %2120 = vmatpush3.bf16.msra.mxu0 %v2242_v2  ;;  %2228 = vmatpush3.bf16.msra.mxu1 %v2242_v2  ;;  %s2353_s28 = scalar_lea.vmem %s2754_s0, %s1764_s25  ;;  %s2467_s6 = scalar_lea.vmem %s2757_s3, %s1764_s25 }
  0x10   : > { %2121 = vmatprep.subr.bf16.mxu0 %v2243_v5  ;;  %2224 = vmatprep.subr.bf16.mxu1 %v2243_v5  ;;  %v2245_v9 = vld [vmem:[%s2353_s28] sm:$0xff]   ;;  %v2247_v11 = vld [vmem:[%s2353_s28 + $0x8] sm:$0xff]   ;;  %v2249_v13 = vld [vmem:[%s2353_s28 + $0x10] sm:$0xff]  }
  0x11   : > { %v2246_v10 = vld [vmem:[%s2353_s28 + $0xc0] sm:$0xff]   ;;  %2125 = vmatprep.mubr.msk.bf16.mxu0 %vm557_vm2, %v2245_v9  ;;  %v2248_v12 = vld [vmem:[%s2353_s28 + $0xc8] sm:$0xff]   ;;  %v2250_v14 = vld [vmem:[%s2353_s28 + $0xd0] sm:$0xff]  }
  0x12   : > { %2173 = vmatprep.mubr.msk.bf16.mxu1 %vm557_vm2, %v2246_v10  ;;  %v2251_v15 = vld [vmem:[%s2353_s28 + $0x18] sm:$0xff]   ;;  %v2253_v17 = vld [vmem:[%s2353_s28 + $0x20] sm:$0xff]   ;;  %v2255_v19 = vld [vmem:[%s2353_s28 + $0x28] sm:$0xff]  }
  0x13   : > { %2122 = vmatpush3.bf16.msra.mxu0 %v2243_v5  ;;  %2229 = vmatpush3.bf16.msra.mxu1 %v2243_v5  ;;  %v2252_v16 = vld [vmem:[%s2353_s28 + $0xd8] sm:$0xff]   ;;  %v2254_v18 = vld [vmem:[%s2353_s28 + $0xe0] sm:$0xff]   ;;  %v2256_v20 = vld [vmem:[%s2353_s28 + $0xe8] sm:$0xff]  }
  0x14   : > { %2123 = vmatprep.subr.bf16.mxu0 %v707_v8  ;;  %2225 = vmatprep.subr.bf16.mxu1 %v707_v8  ;;  %v2257_v21 = vld [vmem:[%s2353_s28 + $0x30] sm:$0xff]   ;;  %v2259_v23 = vld [vmem:[%s2353_s28 + $0x38] sm:$0xff]   ;;  %v2261_v25 = vld [vmem:[%s2353_s28 + $0x40] sm:$0xff]  }
  0x15   : > { %v2258_v22 = vld [vmem:[%s2353_s28 + $0xf0] sm:$0xff]   ;;  %v2260_v24 = vld [vmem:[%s2353_s28 + $0xf8] sm:$0xff]   ;;  %v2262_v26 = vld [vmem:[%s2353_s28 + $0x100] sm:$0xff]  }
  0x16   : > { %v2263_v27 = vld [vmem:[%s2353_s28 + $0x48] sm:$0xff]   ;;  %v2265_v29 = vld [vmem:[%s2353_s28 + $0x50] sm:$0xff]   ;;  %v2267_v31 = vld [vmem:[%s2353_s28 + $0x58] sm:$0xff]  }
  0x17   : > { %2124 = vmatpush3.bf16.msra.mxu0 %v707_v8  ;;  %2230 = vmatpush3.bf16.msra.mxu1 %v707_v8  ;;  %v2264_v28 = vld [vmem:[%s2353_s28 + $0x108] sm:$0xff]   ;;  %v2266_v30 = vld [vmem:[%s2353_s28 + $0x110] sm:$0xff]   ;;  %v2268_v32 = vld [vmem:[%s2353_s28 + $0x118] sm:$0xff]  }
  0x18   : > { %v2269_v33 = vld [vmem:[%s2353_s28 + $0x60] sm:$0xff]   ;;  %v2271_v35 = vld [vmem:[%s2353_s28 + $0x68] sm:$0xff]   ;;  %v2273_v37 = vld [vmem:[%s2353_s28 + $0x70] sm:$0xff]  }
  0x19   : > { %v2270_v34 = vld [vmem:[%s2353_s28 + $0x120] sm:$0xff]   ;;  %v2272_v36 = vld [vmem:[%s2353_s28 + $0x128] sm:$0xff]   ;;  %v2274_v38 = vld [vmem:[%s2353_s28 + $0x130] sm:$0xff]  }
  0x1a   : > { %2126 = vmatmul.mubr.msk.bf16.vlgmr.msra.gmra.mrb[0].mxu0 %vm557_vm2, %v2247_v11  ;;  %2174 = vmatmul.mubr.msk.bf16.vlgmr.msra.gmra.mrb[0].mxu1 %vm557_vm2, %v2248_v12  ;;  %v2275_v39 = vld [vmem:[%s2353_s28 + $0x78] sm:$0xff]   ;;  %v2277_v41 = vld [vmem:[%s2353_s28 + $0x80] sm:$0xff]   ;;  %v2279_v43 = vld [vmem:[%s2353_s28 + $0x88] sm:$0xff]  }
  0x1b   : > { %2129 = vmatprep.mubr.msk.bf16.mxu0 %vm557_vm2, %v2249_v13  ;;  %2177 = vmatprep.mubr.msk.bf16.mxu1 %vm557_vm2, %v2250_v14  ;;  %v2276_v40 = vld [vmem:[%s2353_s28 + $0x138] sm:$0xff]   ;;  %v2278_v42 = vld [vmem:[%s2353_s28 + $0x140] sm:$0xff]   ;;  %v2280_v44 = vld [vmem:[%s2353_s28 + $0x148] sm:$0xff]  }
  0x1c   : > { %v2281_v45 = vld [vmem:[%s2353_s28 + $0x90] sm:$0xff]   ;;  %v2283_v47 = vld [vmem:[%s2353_s28 + $0x98] sm:$0xff]   ;;  %v2285_v49 = vld [vmem:[%s2353_s28 + $0xa0] sm:$0xff]  }
  0x1d   : > { %v2282_v46 = vld [vmem:[%s2353_s28 + $0x150] sm:$0xff]   ;;  %v2284_v48 = vld [vmem:[%s2353_s28 + $0x158] sm:$0xff]   ;;  %v2286_v50 = vld [vmem:[%s2353_s28 + $0x160] sm:$0xff]  }
  0x1e   : > { %v2287_v51 = vld [vmem:[%s2353_s28 + $0xa8] sm:$0xff]   ;;  %v2289_v53 = vld [vmem:[%s2353_s28 + $0xb0] sm:$0xff]   ;;  %v2291_v55 = vld [vmem:[%s2353_s28 + $0xb8] sm:$0xff]  }
  0x1f   : > { %v2288_v52 = vld [vmem:[%s2353_s28 + $0x168] sm:$0xff]   ;;  %v2290_v54 = vld [vmem:[%s2353_s28 + $0x170] sm:$0xff]   ;;  %v2292_v56 = vld [vmem:[%s2353_s28 + $0x178] sm:$0xff]  }
  0x22   : > { %2130 = vmatmul.mubr.msk.bf16.gmra.mrb[4].mxu0 %vm557_vm2, %v2251_v15  ;;  %2178 = vmatmul.mubr.msk.bf16.gmra.mrb[4].mxu1 %vm557_vm2, %v2252_v16 }
  0x23   : > { %2133 = vmatprep.mubr.msk.bf16.mxu0 %vm557_vm2, %v2253_v17  ;;  %2181 = vmatprep.mubr.msk.bf16.mxu1 %vm557_vm2, %v2254_v18 }
  0x2a   : > { %2134 = vmatmul.mubr.msk.bf16.gmra.mrb[8].mxu0 %vm557_vm2, %v2255_v19  ;;  %2182 = vmatmul.mubr.msk.bf16.gmra.mrb[8].mxu1 %vm557_vm2, %v2256_v20 }
  0x2b   : > { %2137 = vmatprep.mubr.msk.bf16.mxu0 %vm557_vm2, %v2257_v21  ;;  %2185 = vmatprep.mubr.msk.bf16.mxu1 %vm557_vm2, %v2258_v22 }
  0x32   : > { %2138 = vmatmul.mubr.msk.bf16.gmra.mrb[12].mxu0 %vm557_vm2, %v2259_v23  ;;  %2186 = vmatmul.mubr.msk.bf16.gmra.mrb[12].mxu1 %vm557_vm2, %v2260_v24 }
  0x33   : > { %2141 = vmatprep.mubr.msk.bf16.mxu0 %vm557_vm2, %v2261_v25  ;;  %2189 = vmatprep.mubr.msk.bf16.mxu1 %vm557_vm2, %v2262_v26 }
  0x3a   : > { %2142 = vmatmul.mubr.msk.bf16.gmra.mrb[16].mxu0 %vm557_vm2, %v2263_v27  ;;  %2190 = vmatmul.mubr.msk.bf16.gmra.mrb[16].mxu1 %vm557_vm2, %v2264_v28 }
  0x3b   : > { %2145 = vmatprep.mubr.msk.bf16.mxu0 %vm557_vm2, %v2265_v29  ;;  %2193 = vmatprep.mubr.msk.bf16.mxu1 %vm557_vm2, %v2266_v30 }
  0x42   : > { %2146 = vmatmul.mubr.msk.bf16.gmra.mrb[20].mxu0 %vm557_vm2, %v2267_v31  ;;  %2194 = vmatmul.mubr.msk.bf16.gmra.mrb[20].mxu1 %vm557_vm2, %v2268_v32 }
  0x43   : > { %2149 = vmatprep.mubr.msk.bf16.mxu0 %vm557_vm2, %v2269_v33  ;;  %2197 = vmatprep.mubr.msk.bf16.mxu1 %vm557_vm2, %v2270_v34 }
  0x4a   : > { %2150 = vmatmul.mubr.msk.bf16.gmra.mrb[24].mxu0 %vm557_vm2, %v2271_v35  ;;  %2198 = vmatmul.mubr.msk.bf16.gmra.mrb[24].mxu1 %vm557_vm2, %v2272_v36 }
  0x4b   : > { %2153 = vmatprep.mubr.msk.bf16.mxu0 %vm557_vm2, %v2273_v37  ;;  %2201 = vmatprep.mubr.msk.bf16.mxu1 %vm557_vm2, %v2274_v38 }
  0x52   : > { %2154 = vmatmul.mubr.msk.bf16.gmra.mrb[28].mxu0 %vm557_vm2, %v2275_v39  ;;  %2202 = vmatmul.mubr.msk.bf16.gmra.mrb[28].mxu1 %vm557_vm2, %v2276_v40 }
  0x53   : > { %2157 = vmatprep.mubr.msk.bf16.mxu0 %vm557_vm2, %v2277_v41  ;;  %2205 = vmatprep.mubr.msk.bf16.mxu1 %vm557_vm2, %v2278_v42 }
  0x5a   : > { %2158 = vmatmul.mubr.msk.bf16.gmra.mrb[32].mxu0 %vm557_vm2, %v2279_v43  ;;  %2206 = vmatmul.mubr.msk.bf16.gmra.mrb[32].mxu1 %vm557_vm2, %v2280_v44 }
  0x5b   : > { %2161 = vmatprep.mubr.msk.bf16.mxu0 %vm557_vm2, %v2281_v45  ;;  %2209 = vmatprep.mubr.msk.bf16.mxu1 %vm557_vm2, %v2282_v46 }
  0x62   : > { %2162 = vmatmul.mubr.msk.bf16.gmra.mrb[36].mxu0 %vm557_vm2, %v2283_v47  ;;  %2210 = vmatmul.mubr.msk.bf16.gmra.mrb[36].mxu1 %vm557_vm2, %v2284_v48 }
  0x63   : > { %2165 = vmatprep.mubr.msk.bf16.mxu0 %vm557_vm2, %v2285_v49  ;;  %2213 = vmatprep.mubr.msk.bf16.mxu1 %vm557_vm2, %v2286_v50 }
  0x6a   : > { %2166 = vmatmul.mubr.msk.bf16.gmra.mrb[40].mxu0 %vm557_vm2, %v2287_v51  ;;  %2214 = vmatmul.mubr.msk.bf16.gmra.mrb[40].mxu1 %vm557_vm2, %v2288_v52 }
  0x6b   : > { %2169 = vmatprep.mubr.msk.bf16.mxu0 %vm557_vm2, %v2289_v53  ;;  %2217 = vmatprep.mubr.msk.bf16.mxu1 %vm557_vm2, %v2290_v54 }
  0x72   : > { %2170 = vmatmul.mubr.msk.bf16.gmra.mrb[44].mxu0 %vm557_vm2, %v2291_v55  ;;  %2218 = vmatmul.mubr.msk.bf16.gmra.mrb[44].mxu1 %vm557_vm2, %v2292_v56 }
  0xed   : > { %v2127_v58 = vpop.f32.mrb[0].mxu0  ;;  %v2175_v59 = vpop.f32.mrb[0].mxu1 }
  0xee   : > { %v752_v60 = vadd.f32 %v2127_v58, %v2454_v57  ;;  %v944_v61 = vadd.f32 %v2175_v59, %v2454_v57  ;;  %v743_v62 = vpop.f32.mrb[1].mxu0  ;;  %v935_v63 = vpop.f32.mrb[1].mxu1 }
  0xef   : > { %v744_v0 = vadd.f32 %v2454_v57, %v743_v62  ;;  %v936_v1 = vadd.f32 %v2454_v57, %v935_v63  ;;  %v2128_v2 = vpop.f32.mrb[2].mxu0  ;;  %v2176_v3 = vpop.f32.mrb[2].mxu1 }
  0xf0   : > { %v1128_v4 = vmax.f32 %v752_v60, 0.0  ;;  %v1176_v5 = vmax.f32 %v944_v61, 0.0  ;;  %v755_v6 = vadd.f32 %v2128_v2, %v2454_v57  ;;  %v947_v7 = vadd.f32 %v2176_v3, %v2454_v57  ;;  %v746_v8 = vpop.f32.mrb[3].mxu0  ;;  %v938_v9 = vpop.f32.mrb[3].mxu1 }
  0xf1   : > { %v1126_v10 = vmax.f32 %v744_v0, 0.0  ;;  %v1174_v11 = vmax.f32 %v936_v1, 0.0  ;;  %v747_v12 = vadd.f32 %v2454_v57, %v746_v8  ;;  %v939_v13 = vadd.f32 %v2454_v57, %v938_v9 }
  0xf2   : > { %v1968_v14 = vpack.c.bf16 %v1128_v4, %v1128_v4  ;;  %v2016_v15 = vpack.c.bf16 %v1176_v5, %v1176_v5  ;;  %v1129_v16 = vmax.f32 %v755_v6, 0.0  ;;  %v1177_v17 = vmax.f32 %v947_v7, 0.0 }
  0xf3   : > { %v1966_v18 = vpack.c.bf16 %v1126_v10, %v1126_v10  ;;  %v2014_v19 = vpack.c.bf16 %v1174_v11, %v1174_v11  ;;  %v1127_v20 = vmax.f32 %v747_v12, 0.0  ;;  %v1175_v21 = vmax.f32 %v939_v13, 0.0 }
  0xf4   : > { %1609 = vst.msk [vmem:[%s2467_s6 + $0x8] sm:$0xf] %vm1606_vm3, %v1968_v14  ;;  %1657 = vst.msk [vmem:[%s2467_s6 + $0xc8] sm:$0xf] %vm1606_vm3, %v2016_v15  ;;  %v1969_v22 = vpack.c.bf16 %v1129_v16, %v1129_v16  ;;  %v2017_v23 = vpack.c.bf16 %v1177_v17, %v1177_v17 }
  0xf5   : > { %1607 = vst.msk [vmem:[%s2467_s6] sm:$0xf] %vm1606_vm3, %v1966_v18  ;;  %1655 = vst.msk [vmem:[%s2467_s6 + $0xc0] sm:$0xf] %vm1606_vm3, %v2014_v19  ;;  %v1967_v24 = vpack.c.bf16 %v1127_v20, %v1127_v20  ;;  %v2015_v25 = vpack.c.bf16 %v1175_v21, %v1175_v21  ;;  %v2131_v26 = vpop.f32.mrb[4].mxu0  ;;  %v2179_v27 = vpop.f32.mrb[4].mxu1 }
  0xf6   : > { %1610 = vst.msk [vmem:[%s2467_s6 + $0xc] sm:$0xf] %vm1606_vm3, %v1969_v22  ;;  %1658 = vst.msk [vmem:[%s2467_s6 + $0xcc] sm:$0xf] %vm1606_vm3, %v2017_v23  ;;  %v768_v28 = vadd.f32 %v2131_v26, %v2454_v57  ;;  %v960_v29 = vadd.f32 %v2179_v27, %v2454_v57  ;;  %v759_v30 = vpop.f32.mrb[5].mxu0  ;;  %v951_v31 = vpop.f32.mrb[5].mxu1 }
  0xf7   : > { %1608 = vst.msk [vmem:[%s2467_s6 + $0x4] sm:$0xf] %vm1606_vm3, %v1967_v24  ;;  %1656 = vst.msk [vmem:[%s2467_s6 + $0xc4] sm:$0xf] %vm1606_vm3, %v2015_v25  ;;  %v760_v32 = vadd.f32 %v2454_v57, %v759_v30  ;;  %v952_v33 = vadd.f32 %v2454_v57, %v951_v31  ;;  %v2132_v34 = vpop.f32.mrb[6].mxu0  ;;  %v2180_v35 = vpop.f32.mrb[6].mxu1 }
  0xf8   : > { %v1132_v36 = vmax.f32 %v768_v28, 0.0  ;;  %v1180_v37 = vmax.f32 %v960_v29, 0.0  ;;  %v771_v38 = vadd.f32 %v2132_v34, %v2454_v57  ;;  %v963_v39 = vadd.f32 %v2180_v35, %v2454_v57  ;;  %v762_v40 = vpop.f32.mrb[7].mxu0  ;;  %v954_v41 = vpop.f32.mrb[7].mxu1 }
  0xf9   : > { %v1130_v42 = vmax.f32 %v760_v32, 0.0  ;;  %v1178_v43 = vmax.f32 %v952_v33, 0.0  ;;  %v763_v44 = vadd.f32 %v2454_v57, %v762_v40  ;;  %v955_v45 = vadd.f32 %v2454_v57, %v954_v41 }
  0xfa   : > { %v1972_v46 = vpack.c.bf16 %v1132_v36, %v1132_v36  ;;  %v2020_v47 = vpack.c.bf16 %v1180_v37, %v1180_v37  ;;  %v1133_v48 = vmax.f32 %v771_v38, 0.0  ;;  %v1181_v49 = vmax.f32 %v963_v39, 0.0 }
  0xfb   : > { %v1970_v50 = vpack.c.bf16 %v1130_v42, %v1130_v42  ;;  %v2018_v51 = vpack.c.bf16 %v1178_v43, %v1178_v43  ;;  %v1131_v52 = vmax.f32 %v763_v44, 0.0  ;;  %v1179_v53 = vmax.f32 %v955_v45, 0.0 }
  0xfc   : > { %1613 = vst.msk [vmem:[%s2467_s6 + $0x18] sm:$0xf] %vm1606_vm3, %v1972_v46  ;;  %1661 = vst.msk [vmem:[%s2467_s6 + $0xd8] sm:$0xf] %vm1606_vm3, %v2020_v47  ;;  %v1973_v54 = vpack.c.bf16 %v1133_v48, %v1133_v48  ;;  %v2021_v55 = vpack.c.bf16 %v1181_v49, %v1181_v49 }
  0xfd   : > { %1611 = vst.msk [vmem:[%s2467_s6 + $0x10] sm:$0xf] %vm1606_vm3, %v1970_v50  ;;  %1659 = vst.msk [vmem:[%s2467_s6 + $0xd0] sm:$0xf] %vm1606_vm3, %v2018_v51  ;;  %v1971_v56 = vpack.c.bf16 %v1131_v52, %v1131_v52  ;;  %v2019_v58 = vpack.c.bf16 %v1179_v53, %v1179_v53  ;;  %v2135_v59 = vpop.f32.mrb[8].mxu0  ;;  %v2183_v60 = vpop.f32.mrb[8].mxu1 }
  0xfe   : > { %1614 = vst.msk [vmem:[%s2467_s6 + $0x1c] sm:$0xf] %vm1606_vm3, %v1973_v54  ;;  %1662 = vst.msk [vmem:[%s2467_s6 + $0xdc] sm:$0xf] %vm1606_vm3, %v2021_v55  ;;  %v784_v61 = vadd.f32 %v2135_v59, %v2454_v57  ;;  %v976_v62 = vadd.f32 %v2183_v60, %v2454_v57  ;;  %v775_v63 = vpop.f32.mrb[9].mxu0  ;;  %v967_v0 = vpop.f32.mrb[9].mxu1 }
  0xff   : > { %1612 = vst.msk [vmem:[%s2467_s6 + $0x14] sm:$0xf] %vm1606_vm3, %v1971_v56  ;;  %1660 = vst.msk [vmem:[%s2467_s6 + $0xd4] sm:$0xf] %vm1606_vm3, %v2019_v58  ;;  %v776_v1 = vadd.f32 %v2454_v57, %v775_v63  ;;  %v968_v2 = vadd.f32 %v2454_v57, %v967_v0  ;;  %v2136_v3 = vpop.f32.mrb[10].mxu0  ;;  %v2184_v4 = vpop.f32.mrb[10].mxu1 }
 0x100   : > { %v1136_v5 = vmax.f32 %v784_v61, 0.0  ;;  %v1184_v6 = vmax.f32 %v976_v62, 0.0  ;;  %v787_v7 = vadd.f32 %v2136_v3, %v2454_v57  ;;  %v979_v8 = vadd.f32 %v2184_v4, %v2454_v57  ;;  %v778_v9 = vpop.f32.mrb[11].mxu0  ;;  %v970_v10 = vpop.f32.mrb[11].mxu1 }
 0x101   : > { %v1134_v11 = vmax.f32 %v776_v1, 0.0  ;;  %v1182_v12 = vmax.f32 %v968_v2, 0.0  ;;  %v779_v13 = vadd.f32 %v2454_v57, %v778_v9  ;;  %v971_v14 = vadd.f32 %v2454_v57, %v970_v10 }
 0x102   : > { %v1976_v15 = vpack.c.bf16 %v1136_v5, %v1136_v5  ;;  %v2024_v16 = vpack.c.bf16 %v1184_v6, %v1184_v6  ;;  %v1137_v17 = vmax.f32 %v787_v7, 0.0  ;;  %v1185_v18 = vmax.f32 %v979_v8, 0.0 }
 0x103   : > { %v1974_v19 = vpack.c.bf16 %v1134_v11, %v1134_v11  ;;  %v2022_v20 = vpack.c.bf16 %v1182_v12, %v1182_v12  ;;  %v1135_v21 = vmax.f32 %v779_v13, 0.0  ;;  %v1183_v22 = vmax.f32 %v971_v14, 0.0 }
 0x104   : > { %1617 = vst.msk [vmem:[%s2467_s6 + $0x28] sm:$0xf] %vm1606_vm3, %v1976_v15  ;;  %1665 = vst.msk [vmem:[%s2467_s6 + $0xe8] sm:$0xf] %vm1606_vm3, %v2024_v16  ;;  %v1977_v23 = vpack.c.bf16 %v1137_v17, %v1137_v17  ;;  %v2025_v24 = vpack.c.bf16 %v1185_v18, %v1185_v18 }
 0x105   : > { %1615 = vst.msk [vmem:[%s2467_s6 + $0x20] sm:$0xf] %vm1606_vm3, %v1974_v19  ;;  %1663 = vst.msk [vmem:[%s2467_s6 + $0xe0] sm:$0xf] %vm1606_vm3, %v2022_v20  ;;  %v1975_v25 = vpack.c.bf16 %v1135_v21, %v1135_v21  ;;  %v2023_v26 = vpack.c.bf16 %v1183_v22, %v1183_v22  ;;  %v2139_v27 = vpop.f32.mrb[12].mxu0  ;;  %v2187_v28 = vpop.f32.mrb[12].mxu1 }
 0x106   : > { %1618 = vst.msk [vmem:[%s2467_s6 + $0x2c] sm:$0xf] %vm1606_vm3, %v1977_v23  ;;  %1666 = vst.msk [vmem:[%s2467_s6 + $0xec] sm:$0xf] %vm1606_vm3, %v2025_v24  ;;  %v800_v29 = vadd.f32 %v2139_v27, %v2454_v57  ;;  %v992_v30 = vadd.f32 %v2187_v28, %v2454_v57  ;;  %v791_v31 = vpop.f32.mrb[13].mxu0  ;;  %v983_v32 = vpop.f32.mrb[13].mxu1 }
 0x107   : > { %1616 = vst.msk [vmem:[%s2467_s6 + $0x24] sm:$0xf] %vm1606_vm3, %v1975_v25  ;;  %1664 = vst.msk [vmem:[%s2467_s6 + $0xe4] sm:$0xf] %vm1606_vm3, %v2023_v26  ;;  %v792_v33 = vadd.f32 %v2454_v57, %v791_v31  ;;  %v984_v34 = vadd.f32 %v2454_v57, %v983_v32  ;;  %v2140_v35 = vpop.f32.mrb[14].mxu0  ;;  %v2188_v36 = vpop.f32.mrb[14].mxu1 }
 0x108   : > { %v1140_v37 = vmax.f32 %v800_v29, 0.0  ;;  %v1188_v38 = vmax.f32 %v992_v30, 0.0  ;;  %v803_v39 = vadd.f32 %v2140_v35, %v2454_v57  ;;  %v995_v40 = vadd.f32 %v2188_v36, %v2454_v57  ;;  %v794_v41 = vpop.f32.mrb[15].mxu0  ;;  %v986_v42 = vpop.f32.mrb[15].mxu1 }
 0x109   : > { %v1138_v43 = vmax.f32 %v792_v33, 0.0  ;;  %v1186_v44 = vmax.f32 %v984_v34, 0.0  ;;  %v795_v45 = vadd.f32 %v2454_v57, %v794_v41  ;;  %v987_v46 = vadd.f32 %v2454_v57, %v986_v42 }
 0x10a   : > { %v1980_v47 = vpack.c.bf16 %v1140_v37, %v1140_v37  ;;  %v2028_v48 = vpack.c.bf16 %v1188_v38, %v1188_v38  ;;  %v1141_v49 = vmax.f32 %v803_v39, 0.0  ;;  %v1189_v50 = vmax.f32 %v995_v40, 0.0 }
 0x10b   : > { %v1978_v51 = vpack.c.bf16 %v1138_v43, %v1138_v43  ;;  %v2026_v52 = vpack.c.bf16 %v1186_v44, %v1186_v44  ;;  %v1139_v53 = vmax.f32 %v795_v45, 0.0  ;;  %v1187_v54 = vmax.f32 %v987_v46, 0.0 }
 0x10c   : > { %1621 = vst.msk [vmem:[%s2467_s6 + $0x38] sm:$0xf] %vm1606_vm3, %v1980_v47  ;;  %1669 = vst.msk [vmem:[%s2467_s6 + $0xf8] sm:$0xf] %vm1606_vm3, %v2028_v48  ;;  %v1981_v55 = vpack.c.bf16 %v1141_v49, %v1141_v49  ;;  %v2029_v56 = vpack.c.bf16 %v1189_v50, %v1189_v50 }
 0x10d   : > { %1619 = vst.msk [vmem:[%s2467_s6 + $0x30] sm:$0xf] %vm1606_vm3, %v1978_v51  ;;  %1667 = vst.msk [vmem:[%s2467_s6 + $0xf0] sm:$0xf] %vm1606_vm3, %v2026_v52  ;;  %v1979_v58 = vpack.c.bf16 %v1139_v53, %v1139_v53  ;;  %v2027_v59 = vpack.c.bf16 %v1187_v54, %v1187_v54  ;;  %v2143_v60 = vpop.f32.mrb[16].mxu0  ;;  %v2191_v61 = vpop.f32.mrb[16].mxu1 }
 0x10e   : > { %1622 = vst.msk [vmem:[%s2467_s6 + $0x3c] sm:$0xf] %vm1606_vm3, %v1981_v55  ;;  %1670 = vst.msk [vmem:[%s2467_s6 + $0xfc] sm:$0xf] %vm1606_vm3, %v2029_v56  ;;  %v816_v62 = vadd.f32 %v2143_v60, %v2454_v57  ;;  %v1008_v63 = vadd.f32 %v2191_v61, %v2454_v57  ;;  %v807_v0 = vpop.f32.mrb[17].mxu0  ;;  %v999_v1 = vpop.f32.mrb[17].mxu1 }
 0x10f   : > { %1620 = vst.msk [vmem:[%s2467_s6 + $0x34] sm:$0xf] %vm1606_vm3, %v1979_v58  ;;  %1668 = vst.msk [vmem:[%s2467_s6 + $0xf4] sm:$0xf] %vm1606_vm3, %v2027_v59  ;;  %v808_v2 = vadd.f32 %v2454_v57, %v807_v0  ;;  %v1000_v3 = vadd.f32 %v2454_v57, %v999_v1  ;;  %v2144_v4 = vpop.f32.mrb[18].mxu0  ;;  %v2192_v5 = vpop.f32.mrb[18].mxu1 }
 0x110   : > { %v1144_v6 = vmax.f32 %v816_v62, 0.0  ;;  %v1192_v7 = vmax.f32 %v1008_v63, 0.0  ;;  %v819_v8 = vadd.f32 %v2144_v4, %v2454_v57  ;;  %v1011_v9 = vadd.f32 %v2192_v5, %v2454_v57  ;;  %v810_v10 = vpop.f32.mrb[19].mxu0  ;;  %v1002_v11 = vpop.f32.mrb[19].mxu1 }
 0x111   : > { %v1142_v12 = vmax.f32 %v808_v2, 0.0  ;;  %v1190_v13 = vmax.f32 %v1000_v3, 0.0  ;;  %v811_v14 = vadd.f32 %v2454_v57, %v810_v10  ;;  %v1003_v15 = vadd.f32 %v2454_v57, %v1002_v11 }
 0x112   : > { %v1984_v16 = vpack.c.bf16 %v1144_v6, %v1144_v6  ;;  %v2032_v17 = vpack.c.bf16 %v1192_v7, %v1192_v7  ;;  %v1145_v18 = vmax.f32 %v819_v8, 0.0  ;;  %v1193_v19 = vmax.f32 %v1011_v9, 0.0 }
 0x113   : > { %v1982_v20 = vpack.c.bf16 %v1142_v12, %v1142_v12  ;;  %v2030_v21 = vpack.c.bf16 %v1190_v13, %v1190_v13  ;;  %v1143_v22 = vmax.f32 %v811_v14, 0.0  ;;  %v1191_v23 = vmax.f32 %v1003_v15, 0.0 }
 0x114   : > { %1625 = vst.msk [vmem:[%s2467_s6 + $0x48] sm:$0xf] %vm1606_vm3, %v1984_v16  ;;  %1673 = vst.msk [vmem:[%s2467_s6 + $0x108] sm:$0xf] %vm1606_vm3, %v2032_v17  ;;  %v1985_v24 = vpack.c.bf16 %v1145_v18, %v1145_v18  ;;  %v2033_v25 = vpack.c.bf16 %v1193_v19, %v1193_v19 }
 0x115   : > { %1623 = vst.msk [vmem:[%s2467_s6 + $0x40] sm:$0xf] %vm1606_vm3, %v1982_v20  ;;  %1671 = vst.msk [vmem:[%s2467_s6 + $0x100] sm:$0xf] %vm1606_vm3, %v2030_v21  ;;  %v1983_v26 = vpack.c.bf16 %v1143_v22, %v1143_v22  ;;  %v2031_v27 = vpack.c.bf16 %v1191_v23, %v1191_v23  ;;  %v2147_v28 = vpop.f32.mrb[20].mxu0  ;;  %v2195_v29 = vpop.f32.mrb[20].mxu1 }
 0x116   : > { %1626 = vst.msk [vmem:[%s2467_s6 + $0x4c] sm:$0xf] %vm1606_vm3, %v1985_v24  ;;  %1674 = vst.msk [vmem:[%s2467_s6 + $0x10c] sm:$0xf] %vm1606_vm3, %v2033_v25  ;;  %v832_v30 = vadd.f32 %v2147_v28, %v2454_v57  ;;  %v1024_v31 = vadd.f32 %v2195_v29, %v2454_v57  ;;  %v823_v32 = vpop.f32.mrb[21].mxu0  ;;  %v1015_v33 = vpop.f32.mrb[21].mxu1 }
 0x117   : > { %1624 = vst.msk [vmem:[%s2467_s6 + $0x44] sm:$0xf] %vm1606_vm3, %v1983_v26  ;;  %1672 = vst.msk [vmem:[%s2467_s6 + $0x104] sm:$0xf] %vm1606_vm3, %v2031_v27  ;;  %v824_v34 = vadd.f32 %v2454_v57, %v823_v32  ;;  %v1016_v35 = vadd.f32 %v2454_v57, %v1015_v33  ;;  %v2148_v36 = vpop.f32.mrb[22].mxu0  ;;  %v2196_v37 = vpop.f32.mrb[22].mxu1 }
 0x118   : > { %v1148_v38 = vmax.f32 %v832_v30, 0.0  ;;  %v1196_v39 = vmax.f32 %v1024_v31, 0.0  ;;  %v835_v40 = vadd.f32 %v2148_v36, %v2454_v57  ;;  %v1027_v41 = vadd.f32 %v2196_v37, %v2454_v57  ;;  %v826_v42 = vpop.f32.mrb[23].mxu0  ;;  %v1018_v43 = vpop.f32.mrb[23].mxu1 }
 0x119   : > { %v1146_v44 = vmax.f32 %v824_v34, 0.0  ;;  %v1194_v45 = vmax.f32 %v1016_v35, 0.0  ;;  %v827_v46 = vadd.f32 %v2454_v57, %v826_v42  ;;  %v1019_v47 = vadd.f32 %v2454_v57, %v1018_v43 }
 0x11a   : > { %v1988_v48 = vpack.c.bf16 %v1148_v38, %v1148_v38  ;;  %v2036_v49 = vpack.c.bf16 %v1196_v39, %v1196_v39  ;;  %v1149_v50 = vmax.f32 %v835_v40, 0.0  ;;  %v1197_v51 = vmax.f32 %v1027_v41, 0.0 }
 0x11b   : > { %v1986_v52 = vpack.c.bf16 %v1146_v44, %v1146_v44  ;;  %v2034_v53 = vpack.c.bf16 %v1194_v45, %v1194_v45  ;;  %v1147_v54 = vmax.f32 %v827_v46, 0.0  ;;  %v1195_v55 = vmax.f32 %v1019_v47, 0.0 }
 0x11c   : > { %1629 = vst.msk [vmem:[%s2467_s6 + $0x58] sm:$0xf] %vm1606_vm3, %v1988_v48  ;;  %1677 = vst.msk [vmem:[%s2467_s6 + $0x118] sm:$0xf] %vm1606_vm3, %v2036_v49  ;;  %v1989_v56 = vpack.c.bf16 %v1149_v50, %v1149_v50  ;;  %v2037_v58 = vpack.c.bf16 %v1197_v51, %v1197_v51 }
 0x11d   : > { %1627 = vst.msk [vmem:[%s2467_s6 + $0x50] sm:$0xf] %vm1606_vm3, %v1986_v52  ;;  %1675 = vst.msk [vmem:[%s2467_s6 + $0x110] sm:$0xf] %vm1606_vm3, %v2034_v53  ;;  %v1987_v59 = vpack.c.bf16 %v1147_v54, %v1147_v54  ;;  %v2035_v60 = vpack.c.bf16 %v1195_v55, %v1195_v55  ;;  %v2151_v61 = vpop.f32.mrb[24].mxu0  ;;  %v2199_v62 = vpop.f32.mrb[24].mxu1 }
 0x11e   : > { %1630 = vst.msk [vmem:[%s2467_s6 + $0x5c] sm:$0xf] %vm1606_vm3, %v1989_v56  ;;  %1678 = vst.msk [vmem:[%s2467_s6 + $0x11c] sm:$0xf] %vm1606_vm3, %v2037_v58  ;;  %v848_v63 = vadd.f32 %v2151_v61, %v2454_v57  ;;  %v1040_v0 = vadd.f32 %v2199_v62, %v2454_v57  ;;  %v839_v1 = vpop.f32.mrb[25].mxu0  ;;  %v1031_v2 = vpop.f32.mrb[25].mxu1 }
 0x11f   : > { %1628 = vst.msk [vmem:[%s2467_s6 + $0x54] sm:$0xf] %vm1606_vm3, %v1987_v59  ;;  %1676 = vst.msk [vmem:[%s2467_s6 + $0x114] sm:$0xf] %vm1606_vm3, %v2035_v60  ;;  %v840_v3 = vadd.f32 %v2454_v57, %v839_v1  ;;  %v1032_v4 = vadd.f32 %v2454_v57, %v1031_v2  ;;  %v2152_v5 = vpop.f32.mrb[26].mxu0  ;;  %v2200_v6 = vpop.f32.mrb[26].mxu1 }
 0x120   : > { %v1152_v7 = vmax.f32 %v848_v63, 0.0  ;;  %v1200_v8 = vmax.f32 %v1040_v0, 0.0  ;;  %v851_v9 = vadd.f32 %v2152_v5, %v2454_v57  ;;  %v1043_v10 = vadd.f32 %v2200_v6, %v2454_v57  ;;  %v842_v11 = vpop.f32.mrb[27].mxu0  ;;  %v1034_v12 = vpop.f32.mrb[27].mxu1 }
 0x121   : > { %v1150_v13 = vmax.f32 %v840_v3, 0.0  ;;  %v1198_v14 = vmax.f32 %v1032_v4, 0.0  ;;  %v843_v15 = vadd.f32 %v2454_v57, %v842_v11  ;;  %v1035_v16 = vadd.f32 %v2454_v57, %v1034_v12 }
 0x122   : > { %v1992_v17 = vpack.c.bf16 %v1152_v7, %v1152_v7  ;;  %v2040_v18 = vpack.c.bf16 %v1200_v8, %v1200_v8  ;;  %v1153_v19 = vmax.f32 %v851_v9, 0.0  ;;  %v1201_v20 = vmax.f32 %v1043_v10, 0.0 }
 0x123   : > { %v1990_v21 = vpack.c.bf16 %v1150_v13, %v1150_v13  ;;  %v2038_v22 = vpack.c.bf16 %v1198_v14, %v1198_v14  ;;  %v1151_v23 = vmax.f32 %v843_v15, 0.0  ;;  %v1199_v24 = vmax.f32 %v1035_v16, 0.0 }
 0x124   : > { %1633 = vst.msk [vmem:[%s2467_s6 + $0x68] sm:$0xf] %vm1606_vm3, %v1992_v17  ;;  %1681 = vst.msk [vmem:[%s2467_s6 + $0x128] sm:$0xf] %vm1606_vm3, %v2040_v18  ;;  %v1993_v25 = vpack.c.bf16 %v1153_v19, %v1153_v19  ;;  %v2041_v26 = vpack.c.bf16 %v1201_v20, %v1201_v20 }
 0x125   : > { %1631 = vst.msk [vmem:[%s2467_s6 + $0x60] sm:$0xf] %vm1606_vm3, %v1990_v21  ;;  %1679 = vst.msk [vmem:[%s2467_s6 + $0x120] sm:$0xf] %vm1606_vm3, %v2038_v22  ;;  %v1991_v27 = vpack.c.bf16 %v1151_v23, %v1151_v23  ;;  %v2039_v28 = vpack.c.bf16 %v1199_v24, %v1199_v24  ;;  %v2155_v29 = vpop.f32.mrb[28].mxu0  ;;  %v2203_v30 = vpop.f32.mrb[28].mxu1 }
 0x126   : > { %1634 = vst.msk [vmem:[%s2467_s6 + $0x6c] sm:$0xf] %vm1606_vm3, %v1993_v25  ;;  %1682 = vst.msk [vmem:[%s2467_s6 + $0x12c] sm:$0xf] %vm1606_vm3, %v2041_v26  ;;  %v864_v31 = vadd.f32 %v2155_v29, %v2454_v57  ;;  %v1056_v32 = vadd.f32 %v2203_v30, %v2454_v57  ;;  %v855_v33 = vpop.f32.mrb[29].mxu0  ;;  %v1047_v34 = vpop.f32.mrb[29].mxu1 }
 0x127   : > { %1632 = vst.msk [vmem:[%s2467_s6 + $0x64] sm:$0xf] %vm1606_vm3, %v1991_v27  ;;  %1680 = vst.msk [vmem:[%s2467_s6 + $0x124] sm:$0xf] %vm1606_vm3, %v2039_v28  ;;  %v856_v35 = vadd.f32 %v2454_v57, %v855_v33  ;;  %v1048_v36 = vadd.f32 %v2454_v57, %v1047_v34  ;;  %v2156_v37 = vpop.f32.mrb[30].mxu0  ;;  %v2204_v38 = vpop.f32.mrb[30].mxu1 }
 0x128   : > { %v1156_v39 = vmax.f32 %v864_v31, 0.0  ;;  %v1204_v40 = vmax.f32 %v1056_v32, 0.0  ;;  %v867_v41 = vadd.f32 %v2156_v37, %v2454_v57  ;;  %v1059_v42 = vadd.f32 %v2204_v38, %v2454_v57  ;;  %v858_v43 = vpop.f32.mrb[31].mxu0  ;;  %v1050_v44 = vpop.f32.mrb[31].mxu1 }
 0x129   : > { %v1154_v45 = vmax.f32 %v856_v35, 0.0  ;;  %v1202_v46 = vmax.f32 %v1048_v36, 0.0  ;;  %v859_v47 = vadd.f32 %v2454_v57, %v858_v43  ;;  %v1051_v48 = vadd.f32 %v2454_v57, %v1050_v44 }
 0x12a   : > { %v1996_v49 = vpack.c.bf16 %v1156_v39, %v1156_v39  ;;  %v2044_v50 = vpack.c.bf16 %v1204_v40, %v1204_v40  ;;  %v1157_v51 = vmax.f32 %v867_v41, 0.0  ;;  %v1205_v52 = vmax.f32 %v1059_v42, 0.0 }
 0x12b   : > { %v1994_v53 = vpack.c.bf16 %v1154_v45, %v1154_v45  ;;  %v2042_v54 = vpack.c.bf16 %v1202_v46, %v1202_v46  ;;  %v1155_v55 = vmax.f32 %v859_v47, 0.0  ;;  %v1203_v56 = vmax.f32 %v1051_v48, 0.0 }
 0x12c   : > { %1637 = vst.msk [vmem:[%s2467_s6 + $0x78] sm:$0xf] %vm1606_vm3, %v1996_v49  ;;  %1685 = vst.msk [vmem:[%s2467_s6 + $0x138] sm:$0xf] %vm1606_vm3, %v2044_v50  ;;  %v1997_v58 = vpack.c.bf16 %v1157_v51, %v1157_v51  ;;  %v2045_v59 = vpack.c.bf16 %v1205_v52, %v1205_v52 }
 0x12d   : > { %1635 = vst.msk [vmem:[%s2467_s6 + $0x70] sm:$0xf] %vm1606_vm3, %v1994_v53  ;;  %1683 = vst.msk [vmem:[%s2467_s6 + $0x130] sm:$0xf] %vm1606_vm3, %v2042_v54  ;;  %v1995_v60 = vpack.c.bf16 %v1155_v55, %v1155_v55  ;;  %v2043_v61 = vpack.c.bf16 %v1203_v56, %v1203_v56  ;;  %v2159_v62 = vpop.f32.mrb[32].mxu0  ;;  %v2207_v63 = vpop.f32.mrb[32].mxu1 }
 0x12e   : > { %1638 = vst.msk [vmem:[%s2467_s6 + $0x7c] sm:$0xf] %vm1606_vm3, %v1997_v58  ;;  %1686 = vst.msk [vmem:[%s2467_s6 + $0x13c] sm:$0xf] %vm1606_vm3, %v2045_v59  ;;  %v880_v0 = vadd.f32 %v2159_v62, %v2454_v57  ;;  %v1072_v1 = vadd.f32 %v2207_v63, %v2454_v57  ;;  %v871_v2 = vpop.f32.mrb[33].mxu0  ;;  %v1063_v3 = vpop.f32.mrb[33].mxu1 }
 0x12f   : > { %1636 = vst.msk [vmem:[%s2467_s6 + $0x74] sm:$0xf] %vm1606_vm3, %v1995_v60  ;;  %1684 = vst.msk [vmem:[%s2467_s6 + $0x134] sm:$0xf] %vm1606_vm3, %v2043_v61  ;;  %v872_v4 = vadd.f32 %v2454_v57, %v871_v2  ;;  %v1064_v5 = vadd.f32 %v2454_v57, %v1063_v3  ;;  %v2160_v6 = vpop.f32.mrb[34].mxu0  ;;  %v2208_v7 = vpop.f32.mrb[34].mxu1 }
 0x130   : > { %v1160_v8 = vmax.f32 %v880_v0, 0.0  ;;  %v1208_v9 = vmax.f32 %v1072_v1, 0.0  ;;  %v883_v10 = vadd.f32 %v2160_v6, %v2454_v57  ;;  %v1075_v11 = vadd.f32 %v2208_v7, %v2454_v57  ;;  %v874_v12 = vpop.f32.mrb[35].mxu0  ;;  %v1066_v13 = vpop.f32.mrb[35].mxu1 }
 0x131   : > { %v1158_v14 = vmax.f32 %v872_v4, 0.0  ;;  %v1206_v15 = vmax.f32 %v1064_v5, 0.0  ;;  %v875_v16 = vadd.f32 %v2454_v57, %v874_v12  ;;  %v1067_v17 = vadd.f32 %v2454_v57, %v1066_v13 }
 0x132   : > { %v2000_v18 = vpack.c.bf16 %v1160_v8, %v1160_v8  ;;  %v2048_v19 = vpack.c.bf16 %v1208_v9, %v1208_v9  ;;  %v1161_v20 = vmax.f32 %v883_v10, 0.0  ;;  %v1209_v21 = vmax.f32 %v1075_v11, 0.0 }
 0x133   : > { %v1998_v22 = vpack.c.bf16 %v1158_v14, %v1158_v14  ;;  %v2046_v23 = vpack.c.bf16 %v1206_v15, %v1206_v15  ;;  %v1159_v24 = vmax.f32 %v875_v16, 0.0  ;;  %v1207_v25 = vmax.f32 %v1067_v17, 0.0 }
 0x134   : > { %1641 = vst.msk [vmem:[%s2467_s6 + $0x88] sm:$0xf] %vm1606_vm3, %v2000_v18  ;;  %1689 = vst.msk [vmem:[%s2467_s6 + $0x148] sm:$0xf] %vm1606_vm3, %v2048_v19  ;;  %v2001_v26 = vpack.c.bf16 %v1161_v20, %v1161_v20  ;;  %v2049_v27 = vpack.c.bf16 %v1209_v21, %v1209_v21 }
 0x135   : > { %1639 = vst.msk [vmem:[%s2467_s6 + $0x80] sm:$0xf] %vm1606_vm3, %v1998_v22  ;;  %1687 = vst.msk [vmem:[%s2467_s6 + $0x140] sm:$0xf] %vm1606_vm3, %v2046_v23  ;;  %v1999_v28 = vpack.c.bf16 %v1159_v24, %v1159_v24  ;;  %v2047_v29 = vpack.c.bf16 %v1207_v25, %v1207_v25  ;;  %v2163_v30 = vpop.f32.mrb[36].mxu0  ;;  %v2211_v31 = vpop.f32.mrb[36].mxu1 }
 0x136   : > { %1642 = vst.msk [vmem:[%s2467_s6 + $0x8c] sm:$0xf] %vm1606_vm3, %v2001_v26  ;;  %1690 = vst.msk [vmem:[%s2467_s6 + $0x14c] sm:$0xf] %vm1606_vm3, %v2049_v27  ;;  %v896_v32 = vadd.f32 %v2163_v30, %v2454_v57  ;;  %v1088_v33 = vadd.f32 %v2211_v31, %v2454_v57  ;;  %v887_v34 = vpop.f32.mrb[37].mxu0  ;;  %v1079_v35 = vpop.f32.mrb[37].mxu1 }
 0x137   : > { %1640 = vst.msk [vmem:[%s2467_s6 + $0x84] sm:$0xf] %vm1606_vm3, %v1999_v28  ;;  %1688 = vst.msk [vmem:[%s2467_s6 + $0x144] sm:$0xf] %vm1606_vm3, %v2047_v29  ;;  %v888_v36 = vadd.f32 %v2454_v57, %v887_v34  ;;  %v1080_v37 = vadd.f32 %v2454_v57, %v1079_v35  ;;  %v2164_v38 = vpop.f32.mrb[38].mxu0  ;;  %v2212_v39 = vpop.f32.mrb[38].mxu1 }
 0x138   : > { %v1164_v40 = vmax.f32 %v896_v32, 0.0  ;;  %v1212_v41 = vmax.f32 %v1088_v33, 0.0  ;;  %v899_v42 = vadd.f32 %v2164_v38, %v2454_v57  ;;  %v1091_v43 = vadd.f32 %v2212_v39, %v2454_v57  ;;  %v890_v44 = vpop.f32.mrb[39].mxu0  ;;  %v1082_v45 = vpop.f32.mrb[39].mxu1 }
 0x139   : > { %v1162_v46 = vmax.f32 %v888_v36, 0.0  ;;  %v1210_v47 = vmax.f32 %v1080_v37, 0.0  ;;  %v891_v48 = vadd.f32 %v2454_v57, %v890_v44  ;;  %v1083_v49 = vadd.f32 %v2454_v57, %v1082_v45 }
 0x13a   : > { %v2004_v50 = vpack.c.bf16 %v1164_v40, %v1164_v40  ;;  %v2052_v51 = vpack.c.bf16 %v1212_v41, %v1212_v41  ;;  %v1165_v52 = vmax.f32 %v899_v42, 0.0  ;;  %v1213_v53 = vmax.f32 %v1091_v43, 0.0 }
 0x13b   : > { %v2002_v54 = vpack.c.bf16 %v1162_v46, %v1162_v46  ;;  %v2050_v55 = vpack.c.bf16 %v1210_v47, %v1210_v47  ;;  %v1163_v56 = vmax.f32 %v891_v48, 0.0  ;;  %v1211_v58 = vmax.f32 %v1083_v49, 0.0 }
 0x13c   : > { %1645 = vst.msk [vmem:[%s2467_s6 + $0x98] sm:$0xf] %vm1606_vm3, %v2004_v50  ;;  %1693 = vst.msk [vmem:[%s2467_s6 + $0x158] sm:$0xf] %vm1606_vm3, %v2052_v51  ;;  %v2005_v59 = vpack.c.bf16 %v1165_v52, %v1165_v52  ;;  %v2053_v60 = vpack.c.bf16 %v1213_v53, %v1213_v53 }
 0x13d   : > { %1643 = vst.msk [vmem:[%s2467_s6 + $0x90] sm:$0xf] %vm1606_vm3, %v2002_v54  ;;  %1691 = vst.msk [vmem:[%s2467_s6 + $0x150] sm:$0xf] %vm1606_vm3, %v2050_v55  ;;  %v2003_v61 = vpack.c.bf16 %v1163_v56, %v1163_v56  ;;  %v2051_v62 = vpack.c.bf16 %v1211_v58, %v1211_v58  ;;  %v2167_v63 = vpop.f32.mrb[40].mxu0  ;;  %v2215_v0 = vpop.f32.mrb[40].mxu1 }
 0x13e   : > { %1646 = vst.msk [vmem:[%s2467_s6 + $0x9c] sm:$0xf] %vm1606_vm3, %v2005_v59  ;;  %1694 = vst.msk [vmem:[%s2467_s6 + $0x15c] sm:$0xf] %vm1606_vm3, %v2053_v60  ;;  %v912_v1 = vadd.f32 %v2167_v63, %v2454_v57  ;;  %v1104_v2 = vadd.f32 %v2215_v0, %v2454_v57  ;;  %v903_v3 = vpop.f32.mrb[41].mxu0  ;;  %v1095_v4 = vpop.f32.mrb[41].mxu1 }
 0x13f   : > { %1644 = vst.msk [vmem:[%s2467_s6 + $0x94] sm:$0xf] %vm1606_vm3, %v2003_v61  ;;  %1692 = vst.msk [vmem:[%s2467_s6 + $0x154] sm:$0xf] %vm1606_vm3, %v2051_v62  ;;  %v904_v5 = vadd.f32 %v2454_v57, %v903_v3  ;;  %v1096_v6 = vadd.f32 %v2454_v57, %v1095_v4  ;;  %v2168_v7 = vpop.f32.mrb[42].mxu0  ;;  %v2216_v8 = vpop.f32.mrb[42].mxu1 }
 0x140   : > { %v1168_v9 = vmax.f32 %v912_v1, 0.0  ;;  %v1216_v10 = vmax.f32 %v1104_v2, 0.0  ;;  %v915_v11 = vadd.f32 %v2168_v7, %v2454_v57  ;;  %v1107_v12 = vadd.f32 %v2216_v8, %v2454_v57  ;;  %v906_v13 = vpop.f32.mrb[43].mxu0  ;;  %v1098_v14 = vpop.f32.mrb[43].mxu1 }
 0x141   : > { %v1166_v15 = vmax.f32 %v904_v5, 0.0  ;;  %v1214_v16 = vmax.f32 %v1096_v6, 0.0  ;;  %v907_v17 = vadd.f32 %v2454_v57, %v906_v13  ;;  %v1099_v18 = vadd.f32 %v2454_v57, %v1098_v14 }
 0x142   : > { %v2008_v19 = vpack.c.bf16 %v1168_v9, %v1168_v9  ;;  %v2056_v20 = vpack.c.bf16 %v1216_v10, %v1216_v10  ;;  %v1169_v21 = vmax.f32 %v915_v11, 0.0  ;;  %v1217_v22 = vmax.f32 %v1107_v12, 0.0 }
 0x143   : > { %v2006_v23 = vpack.c.bf16 %v1166_v15, %v1166_v15  ;;  %v2054_v24 = vpack.c.bf16 %v1214_v16, %v1214_v16  ;;  %v1167_v25 = vmax.f32 %v907_v17, 0.0  ;;  %v1215_v26 = vmax.f32 %v1099_v18, 0.0 }
 0x144   : > { %1649 = vst.msk [vmem:[%s2467_s6 + $0xa8] sm:$0xf] %vm1606_vm3, %v2008_v19  ;;  %1697 = vst.msk [vmem:[%s2467_s6 + $0x168] sm:$0xf] %vm1606_vm3, %v2056_v20  ;;  %v2009_v27 = vpack.c.bf16 %v1169_v21, %v1169_v21  ;;  %v2057_v28 = vpack.c.bf16 %v1217_v22, %v1217_v22 }
 0x145   : > { %1647 = vst.msk [vmem:[%s2467_s6 + $0xa0] sm:$0xf] %vm1606_vm3, %v2006_v23  ;;  %1695 = vst.msk [vmem:[%s2467_s6 + $0x160] sm:$0xf] %vm1606_vm3, %v2054_v24  ;;  %v2007_v29 = vpack.c.bf16 %v1167_v25, %v1167_v25  ;;  %v2055_v30 = vpack.c.bf16 %v1215_v26, %v1215_v26  ;;  %v2171_v31 = vpop.f32.mrb[44].mxu0  ;;  %v2219_v32 = vpop.f32.mrb[44].mxu1 }
 0x146   : > { %1650 = vst.msk [vmem:[%s2467_s6 + $0xac] sm:$0xf] %vm1606_vm3, %v2009_v27  ;;  %1698 = vst.msk [vmem:[%s2467_s6 + $0x16c] sm:$0xf] %vm1606_vm3, %v2057_v28  ;;  %v928_v33 = vadd.f32 %v2171_v31, %v2454_v57  ;;  %v1120_v34 = vadd.f32 %v2219_v32, %v2454_v57  ;;  %v919_v35 = vpop.f32.mrb[45].mxu0  ;;  %v1111_v36 = vpop.f32.mrb[45].mxu1 }
 0x147   : > { %1648 = vst.msk [vmem:[%s2467_s6 + $0xa4] sm:$0xf] %vm1606_vm3, %v2007_v29  ;;  %1696 = vst.msk [vmem:[%s2467_s6 + $0x164] sm:$0xf] %vm1606_vm3, %v2055_v30  ;;  %v920_v37 = vadd.f32 %v2454_v57, %v919_v35  ;;  %v1112_v38 = vadd.f32 %v2454_v57, %v1111_v36  ;;  %v2172_v39 = vpop.f32.mrb[46].mxu0  ;;  %v2220_v40 = vpop.f32.mrb[46].mxu1 }
 0x148   : > { %v1172_v41 = vmax.f32 %v928_v33, 0.0  ;;  %v1220_v42 = vmax.f32 %v1120_v34, 0.0  ;;  %v931_v43 = vadd.f32 %v2172_v39, %v2454_v57  ;;  %v1123_v44 = vadd.f32 %v2220_v40, %v2454_v57  ;;  %v922_v45 = vpop.f32.mrb[47].mxu0  ;;  %v1114_v46 = vpop.f32.mrb[47].mxu1 }
 0x149   : > { %v1170_v47 = vmax.f32 %v920_v37, 0.0  ;;  %v1218_v48 = vmax.f32 %v1112_v38, 0.0  ;;  %v923_v49 = vadd.f32 %v2454_v57, %v922_v45  ;;  %v1115_v50 = vadd.f32 %v2454_v57, %v1114_v46 }
 0x14a   : > { %v2012_v51 = vpack.c.bf16 %v1172_v41, %v1172_v41  ;;  %v2060_v52 = vpack.c.bf16 %v1220_v42, %v1220_v42  ;;  %v1173_v53 = vmax.f32 %v931_v43, 0.0  ;;  %v1221_v54 = vmax.f32 %v1123_v44, 0.0 }
 0x14b   : > { %v2010_v55 = vpack.c.bf16 %v1170_v47, %v1170_v47  ;;  %v2058_v56 = vpack.c.bf16 %v1218_v48, %v1218_v48  ;;  %v1171_v58 = vmax.f32 %v923_v49, 0.0  ;;  %v1219_v59 = vmax.f32 %v1115_v50, 0.0 }
 0x14c   : > { %1653 = vst.msk [vmem:[%s2467_s6 + $0xb8] sm:$0xf] %vm1606_vm3, %v2012_v51  ;;  %1701 = vst.msk [vmem:[%s2467_s6 + $0x178] sm:$0xf] %vm1606_vm3, %v2060_v52  ;;  %v2013_v60 = vpack.c.bf16 %v1173_v53, %v1173_v53  ;;  %v2061_v61 = vpack.c.bf16 %v1221_v54, %v1221_v54 }
 0x14d   : > { %1651 = vst.msk [vmem:[%s2467_s6 + $0xb0] sm:$0xf] %vm1606_vm3, %v2010_v55  ;;  %1699 = vst.msk [vmem:[%s2467_s6 + $0x170] sm:$0xf] %vm1606_vm3, %v2058_v56  ;;  %v2011_v57 = vpack.c.bf16 %v1171_v58, %v1171_v58  ;;  %v2059_v62 = vpack.c.bf16 %v1219_v59, %v1219_v59 }
 0x14e   : > { %1654 = vst.msk [vmem:[%s2467_s6 + $0xbc] sm:$0xf] %vm1606_vm3, %v2013_v60  ;;  %1702 = vst.msk [vmem:[%s2467_s6 + $0x17c] sm:$0xf] %vm1606_vm3, %v2061_v61 }
 0x14f   : > { %1652 = vst.msk [vmem:[%s2467_s6 + $0xb4] sm:$0xf] %vm1606_vm3, %v2011_v57  ;;  %1700 = vst.msk [vmem:[%s2467_s6 + $0x174] sm:$0xf] %vm1606_vm3, %v2059_v62 }
 0x150 PF: > { %s13_s12 = sadd.s32 1, %s2299_s12  }
 0x151   : > { %p10_p4 = scmp.ge.s32.totalorder %s13_s12, 10  }
 0x153   :  { %12 = sbr.rel (!%p10_p4) target bundleno = 1 (0x1), region = 62 }

// kernel: _lambda_.6
= control target key start
LH: loop header
LB: loop body
LE: loop exit
PB: predicated region body
PF: predicated region fallthrough
CT: control target
= control target key end

     0   :  { %s1426_s12 = smov 0   ;;  %s1648_s0 = inlined_call_operand.vmem [shape: bf16[1536,288], index: 0, kind: input, shape index: {}]   ;;  %s1649_s1 = inlined_call_operand.vmem [shape: bf16[288,64], index: 1, kind: input, shape index: {}]   ;;  %s1650_s2 = inlined_call_operand.vmem [shape: f32[1,64], index: 2, kind: input, shape index: {}]   ;;  %s1651_s3 = inlined_call_operand.vmem [shape: bf16[1536,64], index: 3, kind: output, shape index: {}]  }
   0x1 LB: > { %s1053_s13 = sadd.s32 4294967295, %s1404_s12   ;;  %p1057_p0 = scmp.ge.s32.totalorder %s1404_s12, 1  ;;  %s1404_s12 = sphi %s1426_s12, %s13_s12  }
   0x2   : > { %p139_p1 = scmp.lt.s32.totalorder %s1404_s12, 9 }
   0x4   : > { %p140_p2 = pnand %p1057_p0, %p139_p1 }
   0x5   : > { %v1332_v0 = vld [vmem:[%s1649_s1 + $0x40] sm:$0xff] (!%p140_p2)   ;;  %s164_s16 = smul.u32 (!%p140_p2), 24, %s1053_s13  ;;  %v1334_v2 = vld [vmem:[%s1649_s1 + $0x48] sm:$0xff] (!%p140_p2)   ;;  %v1336_v4 = vld [vmem:[%s1649_s1 + $0x50] sm:$0xff] (!%p140_p2)   ;;  %vm557_vm0 = vcmask (!%p140_p2), 261120   ;;  %vm972_vm1 = vcmask (!%p140_p2), 519168  }
   0x6   : > { %143 = sbr.rel (%p140_p2) target bundleno = 328 (0x148), region = 32  ;;  %v1333_v1 = vld [vmem:[%s1649_s1] sm:$0xff] (!%p140_p2)   ;;  %1177 = vmatprep.subr.bf16.mxu0 (!%p140_p2), %v1332_v0  ;;  %1307 = vmatprep.subr.bf16.mxu1 (!%p140_p2), %v1332_v0  ;;  %v1335_v3 = vld [vmem:[%s1649_s1 + $0x8] sm:$0xff] (!%p140_p2)   ;;  %v1337_v5 = vld [vmem:[%s1649_s1 + $0x10] sm:$0xff] (!%p140_p2)  }
   0x7   : > { %p165_p3 = scmp.lt.s32.totalorder (!%p140_p2), %s164_s16, 191  ;;  %1178 = vmatpush3.bf16.msra.mxu0 (!%p140_p2), %v1333_v1  ;;  %1315 = vmatpush3.bf16.msra.mxu1 (!%p140_p2), %v1333_v1  ;;  %v1338_v6 = vld [vmem:[%s1649_s1 + $0x58] sm:$0xff] (!%p140_p2)   ;;  %v1340_v8 = vld [vmem:[%s1649_s1 + $0x60] sm:$0xff] (!%p140_p2)   ;;  %v1342_v10 = vld [vmem:[%s1649_s1 + $0x68] sm:$0xff] (!%p140_p2)  }
   0x8   : > { %1179 = vmatprep.subr.bf16.mxu0 (!%p140_p2), %v1334_v2  ;;  %1308 = vmatprep.subr.bf16.mxu1 (!%p140_p2), %v1334_v2  ;;  %v1339_v7 = vld [vmem:[%s1649_s1 + $0x18] sm:$0xff] (!%p140_p2)   ;;  %v1341_v9 = vld [vmem:[%s1649_s1 + $0x20] sm:$0xff] (!%p140_p2)   ;;  %v1343_v13 = vld [vmem:[%s1649_s1 + $0x28] sm:$0xff] (!%p140_p2)  }
   0x9   : > { %v1344_v14 = vld [vmem:[%s1649_s1 + $0x70] sm:$0xff] (!%p140_p2)   ;;  %v1346_v16 = vld [vmem:[%s1649_s1 + $0x78] sm:$0xff] (!%p140_p2)   ;;  %v1354_v18 = vld [vmem:[%s1649_s1 + $0x80] sm:$0xff] (!%p140_p2)  }
   0xa   : > { %v1345_v15 = vld [vmem:[%s1649_s1 + $0x30] sm:$0xff] (!%p140_p2)   ;;  %v1347_v17 = vld [vmem:[%s1649_s1 + $0x38] sm:$0xff] (!%p140_p2)   ;;  %v1365_v23 = vld [vmem:[%s1649_s1 + $0x88] sm:$0xff] (!%p140_p2)  }
   0xb   : > { %1180 = vmatpush3.bf16.msra.mxu0 (!%p140_p2), %v1335_v3  ;;  %1316 = vmatpush3.bf16.msra.mxu1 (!%p140_p2), %v1335_v3 }
   0xc   : > { %1181 = vmatprep.subr.bf16.mxu0 (!%p140_p2), %v1336_v4  ;;  %1309 = vmatprep.subr.bf16.mxu1 (!%p140_p2), %v1336_v4 }
   0xd   : > { %s1653_s16 = smov (!%p165_p3, %s164_s16), 191 }
   0xe   : > { %s1323_s29 = smul.u32 12, %s1653_s16  ;;  %s1059_s5 = sshll.u32 %s1653_s16, 2 }
   0xf   : > { %1182 = vmatpush3.bf16.msra.mxu0 %v1337_v5  ;;  %1317 = vmatpush3.bf16.msra.mxu1 %v1337_v5  ;;  %s1569_s8 = scalar_lea.vmem %s1651_s3, %s1059_s5 }
  0x10   : > { %1183 = vmatprep.subr.bf16.mxu0 %v1338_v6  ;;  %1310 = vmatprep.subr.bf16.mxu1 %v1338_v6  ;;  %s1467_s9 = scalar_lea.vmem %s1648_s0, %s1323_s29 }
  0x11   : > { %v1350_v11 = vld [vmem:[%s1467_s9 + $0x4] ss:$12 sps:$4 sm:$0xff]   ;;  %v1353_v12 = vld [vmem:[%s1467_s9 + $0xdc] ss:$12 sps:$4 sm:$0xff]   ;;  %v1348_v19 = vld [vmem:[%s1467_s9] ss:$12 sps:$4 sm:$0xff]  }
  0x12   : > { %626 = vmatprep.mubr.bf16.mxu0 %v1350_v11  ;;  %698 = vmatprep.mubr.bf16.mxu1 %v1353_v12  ;;  %v1351_v20 = vld [vmem:[%s1467_s9 + $0xd8] ss:$12 sps:$4 sm:$0xff]   ;;  %v1355_v21 = vld [vmem:[%s1467_s9 + $0x1c] ss:$12 sps:$4 sm:$0xff]   ;;  %v1357_v22 = vld [vmem:[%s1467_s9 + $0xf4] ss:$12 sps:$4 sm:$0xff]  }
  0x13   : > { %1184 = vmatpush3.bf16.msra.mxu0 %v1339_v7  ;;  %1318 = vmatpush3.bf16.msra.mxu1 %v1339_v7  ;;  %v1359_v24 = vld [vmem:[%s1467_s9 + $0x18] ss:$12 sps:$4 sm:$0xff]   ;;  %v1360_v25 = vld [vmem:[%s1467_s9 + $0xf0] ss:$12 sps:$4 sm:$0xff]   ;;  %v1361_v26 = vld [vmem:[%s1467_s9 + $0x34] ss:$12 sps:$4 sm:$0xff]  }
  0x14   : > { %1185 = vmatprep.subr.bf16.mxu0 %v1340_v8  ;;  %1311 = vmatprep.subr.bf16.mxu1 %v1340_v8  ;;  %v1363_v27 = vld [vmem:[%s1467_s9 + $0x10c] ss:$12 sps:$4 sm:$0xff]   ;;  %v1366_v28 = vld [vmem:[%s1467_s9 + $0x30] ss:$12 sps:$4 sm:$0xff]   ;;  %v1367_v29 = vld [vmem:[%s1467_s9 + $0x108] ss:$12 sps:$4 sm:$0xff]  }
  0x15   : > { %v1368_v30 = vld [vmem:[%s1467_s9 + $0x4c] ss:$12 sps:$4 sm:$0xff]   ;;  %v1370_v31 = vld [vmem:[%s1467_s9 + $0x8] ss:$12 sps:$4 sm:$0xff]   ;;  %v1373_v34 = vld [vmem:[%s1467_s9 + $0x64] ss:$12 sps:$4 sm:$0xff]  }
  0x16   : > { %v1371_v32 = vld [vmem:[%s1467_s9 + $0x48] ss:$12 sps:$4 sm:$0xff]   ;;  %v1372_v33 = vld [vmem:[%s1467_s9 + $0x20] ss:$12 sps:$4 sm:$0xff]   ;;  %v1375_v35 = vld [vmem:[%s1467_s9 + $0x38] ss:$12 sps:$4 sm:$0xff]  }
  0x17   : > { %1186 = vmatpush3.bf16.msra.mxu0 %v1341_v9  ;;  %1319 = vmatpush3.bf16.msra.mxu1 %v1341_v9  ;;  %v1376_v36 = vld [vmem:[%s1467_s9 + $0x60] ss:$12 sps:$4 sm:$0xff]   ;;  %v1377_v37 = vld [vmem:[%s1467_s9 + $0x50] ss:$12 sps:$4 sm:$0xff]   ;;  %v1380_v39 = vld [vmem:[%s1467_s9 + $0x68] ss:$12 sps:$4 sm:$0xff]  }
  0x18   : > { %1187 = vmatprep.subr.bf16.mxu0 %v1342_v10  ;;  %1312 = vmatprep.subr.bf16.mxu1 %v1342_v10  ;;  %v1378_v38 = vld [vmem:[%s1467_s9 + $0x7c] ss:$12 sps:$4 sm:$0xff]   ;;  %v1381_v40 = vld [vmem:[%s1467_s9 + $0x78] ss:$12 sps:$4 sm:$0xff]   ;;  %v1382_v41 = vld [vmem:[%s1467_s9 + $0x80] ss:$12 sps:$4 sm:$0xff]  }
  0x19   : > { %v1383_v42 = vld [vmem:[%s1467_s9 + $0x94] ss:$12 sps:$4 sm:$0xff]   ;;  %v1385_v43 = vld [vmem:[%s1467_s9 + $0x98] ss:$12 sps:$4 sm:$0xff]   ;;  %v1386_v44 = vld [vmem:[%s1467_s9 + $0x90] ss:$12 sps:$4 sm:$0xff]  }
  0x1a   : > { %v1387_v45 = vld [vmem:[%s1467_s9 + $0xb0] ss:$12 sps:$4 sm:$0xff]   ;;  %v1388_v46 = vld [vmem:[%s1467_s9 + $0xac] ss:$12 sps:$4 sm:$0xff]   ;;  %v1390_v47 = vld [vmem:[%s1467_s9 + $0xc8] ss:$12 sps:$4 sm:$0xff]  }
  0x1b   : > { %1188 = vmatpush3.bf16.msra.mxu0 %v1343_v13  ;;  %1320 = vmatpush3.bf16.msra.mxu1 %v1343_v13  ;;  %v1391_v48 = vld [vmem:[%s1467_s9 + $0xa8] ss:$12 sps:$4 sm:$0xff]   ;;  %v1392_v49 = vld [vmem:[%s1467_s9 + $0xe0] ss:$12 sps:$4 sm:$0xff]   ;;  %v1393_v50 = vld [vmem:[%s1467_s9 + $0xc4] ss:$12 sps:$4 sm:$0xff]  }
  0x1c   : > { %1189 = vmatprep.subr.bf16.mxu0 %v1344_v14  ;;  %1313 = vmatprep.subr.bf16.mxu1 %v1344_v14  ;;  %v1395_v51 = vld [vmem:[%s1467_s9 + $0xf8] ss:$12 sps:$4 sm:$0xff]   ;;  %v1396_v52 = vld [vmem:[%s1467_s9 + $0xc0] ss:$12 sps:$4 sm:$0xff]   ;;  %v1397_v53 = vld [vmem:[%s1467_s9 + $0x110] ss:$12 sps:$4 sm:$0xff]  }
  0x1f   : > { %1190 = vmatpush3.bf16.msra.mxu0 %v1345_v15  ;;  %1321 = vmatpush3.bf16.msra.mxu1 %v1345_v15 }
  0x20   : > { %1191 = vmatprep.subr.bf16.mxu0 %v1346_v16  ;;  %1314 = vmatprep.subr.bf16.mxu1 %v1346_v16 }
  0x23   : > { %1192 = vmatpush3.bf16.msra.mxu0 %v1347_v17  ;;  %1322 = vmatpush3.bf16.msra.mxu1 %v1347_v17 }
  0x24   : > { %1279 = vmatprep.subr.bf16.mxu1 %v1354_v18 }
  0x26   : > { %627 = vmatmul.mubr.bf16.vlgmr.msra.gmra.mrb[0].mxu0 %v1348_v19  ;;  %699 = vmatmul.mubr.bf16.vlgmr.msra.gmra.mrb[0].mxu1 %v1351_v20 }
  0x27   : > { %1280 = vmatpush3.bf16.msra.mxu1 %v1354_v18  ;;  %634 = vmatprep.mubr.bf16.mxu0 %v1355_v21 }
  0x28   : > { %706 = vmatprep.mubr.bf16.mxu1 %v1357_v22  ;;  %1281 = vmatprep.subr.bf16.mxu1 %v1365_v23 }
  0x2b   : > { %1282 = vmatpush3.bf16.msra.mxu1 %v1365_v23 }
  0x2e   : > { %635 = vmatmul.mubr.bf16.gmra.mrb[4].mxu0 %v1359_v24  ;;  %707 = vmatmul.mubr.bf16.gmra.mrb[4].mxu1 %v1360_v25 }
  0x2f   : > { %642 = vmatprep.mubr.bf16.mxu0 %v1361_v26  ;;  %714 = vmatprep.mubr.bf16.mxu1 %v1363_v27  ;;  %v1559_v26 = vld [vmem:[%s1650_s2] ss:$0 sm:$0xff] }
  0x36   : > { %643 = vmatmul.mubr.bf16.gmra.mrb[8].mxu0 %v1366_v28  ;;  %715 = vmatmul.mubr.bf16.gmra.mrb[8].mxu1 %v1367_v29 }
  0x37   : > { %650 = vmatprep.mubr.bf16.mxu0 %v1368_v30  ;;  %1283 = vmatprep.mubr.msk.bf16.mxu1 %vm557_vm0, %v1370_v31 }
  0x3e   : > { %651 = vmatmul.mubr.bf16.gmra.mrb[12].mxu0 %v1371_v32  ;;  %1284 = vmatmul.mubr.msk.bf16.vlgmr.msra.gmra.mrb[12].mxu1 %vm557_vm0, %v1372_v33 }
  0x3f   : > { %658 = vmatprep.mubr.bf16.mxu0 %v1373_v34  ;;  %1287 = vmatprep.mubr.msk.bf16.mxu1 %vm557_vm0, %v1375_v35 }
  0x46   : > { %659 = vmatmul.mubr.bf16.gmra.mrb[16].mxu0 %v1376_v36  ;;  %1288 = vmatmul.mubr.msk.bf16.gmra.mrb[16].mxu1 %vm557_vm0, %v1377_v37 }
  0x47   : > { %666 = vmatprep.mubr.bf16.mxu0 %v1378_v38  ;;  %1291 = vmatprep.mubr.msk.bf16.mxu1 %vm557_vm0, %v1380_v39 }
  0x4e   : > { %667 = vmatmul.mubr.bf16.gmra.mrb[20].mxu0 %v1381_v40  ;;  %1292 = vmatmul.mubr.msk.bf16.gmra.mrb[20].mxu1 %vm557_vm0, %v1382_v41 }
  0x4f   : > { %674 = vmatprep.mubr.bf16.mxu0 %v1383_v42  ;;  %1295 = vmatprep.mubr.msk.bf16.mxu1 %vm557_vm0, %v1385_v43 }
  0x56   : > { %675 = vmatmul.mubr.bf16.gmra.mrb[24].mxu0 %v1386_v44  ;;  %1296 = vmatmul.mubr.msk.bf16.gmra.mrb[24].mxu1 %vm557_vm0, %v1387_v45 }
  0x57   : > { %682 = vmatprep.mubr.bf16.mxu0 %v1388_v46  ;;  %1299 = vmatprep.mubr.msk.bf16.mxu1 %vm557_vm0, %v1390_v47 }
  0x5e   : > { %683 = vmatmul.mubr.bf16.gmra.mrb[28].mxu0 %v1391_v48  ;;  %1300 = vmatmul.mubr.msk.bf16.gmra.mrb[28].mxu1 %vm557_vm0, %v1392_v49 }
  0x5f   : > { %690 = vmatprep.mubr.bf16.mxu0 %v1393_v50  ;;  %1303 = vmatprep.mubr.msk.bf16.mxu1 %vm557_vm0, %v1395_v51 }
  0x66   : > { %691 = vmatmul.mubr.bf16.gmra.mrb[32].mxu0 %v1396_v52  ;;  %1304 = vmatmul.mubr.msk.bf16.gmra.mrb[32].mxu1 %vm557_vm0, %v1397_v53 }
  0xf9   : > { %v1193_v54 = vpop.f32.mrb[0].mxu0  ;;  %v1247_v55 = vpop.f32.mrb[0].mxu1 }
  0xfa   : > { %v1194_v56 = vpop.f32.mrb[1].mxu0  ;;  %v1248_v57 = vpop.f32.mrb[1].mxu1 }
  0xfb   : > { %v1195_v58 = vadd.f32 %v1194_v56, %v1193_v54  ;;  %v1196_v59 = vpop.f32.mrb[2].mxu0  ;;  %v1544_v60 = vadd.f32 %v1248_v57, %v1247_v55  ;;  %v1250_v61 = vpop.f32.mrb[2].mxu1 }
  0xfc   : > { %v1197_v62 = vpop.f32.mrb[3].mxu0  ;;  %v1251_v63 = vpop.f32.mrb[3].mxu1 }
  0xfd   : > { %v1198_v0 = vadd.f32 %v1197_v62, %v1196_v59  ;;  %v1546_v1 = vadd.f32 %v1251_v63, %v1250_v61  ;;  %v629_v30 = vadd.f32 %v1195_v58, %v1559_v26 }
  0xff   : > { %v632_v39 = vadd.f32 %v1198_v0, %v1559_v26 }
 0x101   : > { %v1199_v2 = vpop.f32.mrb[4].mxu0  ;;  %v1253_v3 = vpop.f32.mrb[4].mxu1 }
 0x102   : > { %v1200_v4 = vpop.f32.mrb[5].mxu0  ;;  %v1254_v5 = vpop.f32.mrb[5].mxu1 }
 0x103   : > { %v1201_v6 = vadd.f32 %v1200_v4, %v1199_v2  ;;  %v1202_v7 = vpop.f32.mrb[6].mxu0  ;;  %v1548_v8 = vadd.f32 %v1254_v5, %v1253_v3  ;;  %v1256_v9 = vpop.f32.mrb[6].mxu1 }
 0x104   : > { %v1203_v10 = vpop.f32.mrb[7].mxu0  ;;  %v1257_v11 = vpop.f32.mrb[7].mxu1 }
 0x105   : > { %v1204_v12 = vadd.f32 %v1203_v10, %v1202_v7  ;;  %v1550_v13 = vadd.f32 %v1257_v11, %v1256_v9  ;;  %v637_v27 = vadd.f32 %v1201_v6, %v1559_v26 }
 0x107   : > { %v640_v34 = vadd.f32 %v1204_v12, %v1559_v26 }
 0x109   : > { %v1205_v14 = vpop.f32.mrb[8].mxu0  ;;  %v1259_v15 = vpop.f32.mrb[8].mxu1 }
 0x10a   : > { %v1206_v16 = vpop.f32.mrb[9].mxu0  ;;  %v1260_v17 = vpop.f32.mrb[9].mxu1 }
 0x10b   : > { %v1207_v18 = vadd.f32 %v1206_v16, %v1205_v14  ;;  %v1208_v19 = vpop.f32.mrb[10].mxu0  ;;  %v1552_v20 = vadd.f32 %v1260_v17, %v1259_v15  ;;  %v1262_v21 = vpop.f32.mrb[10].mxu1 }
 0x10c   : > { %v1209_v22 = vpop.f32.mrb[11].mxu0  ;;  %v1263_v23 = vpop.f32.mrb[11].mxu1 }
 0x10d   : > { %v1210_v24 = vadd.f32 %v1209_v22, %v1208_v19  ;;  %v1554_v25 = vadd.f32 %v1263_v23, %v1262_v21  ;;  %v645_v56 = vadd.f32 %v1207_v18, %v1559_v26 }
 0x10f   : > { %v648_v3 = vadd.f32 %v1210_v24, %v1559_v26 }
 0x111   : > { %v1211_v28 = vpop.f32.mrb[12].mxu0  ;;  %v1285_v29 = vpop.f32.mrb[12].mxu1 }
 0x112   : > { %v766_v31 = vadd.f32 %v1285_v29, %v637_v27  ;;  %v1212_v32 = vpop.f32.mrb[13].mxu0  ;;  %v757_v33 = vpop.f32.mrb[13].mxu1 }
 0x113   : > { %v1213_v35 = vadd.f32 %v1212_v32, %v1211_v28  ;;  %v758_v36 = vadd.f32 %v757_v33, %v629_v30  ;;  %v1214_v37 = vpop.f32.mrb[14].mxu0  ;;  %v1286_v38 = vpop.f32.mrb[14].mxu1 }
 0x114   : > { %v854_v40 = vmax.f32 %v766_v31, 0.0  ;;  %v769_v41 = vadd.f32 %v1286_v38, %v640_v34  ;;  %v1215_v42 = vpop.f32.mrb[15].mxu0  ;;  %v760_v43 = vpop.f32.mrb[15].mxu1 }
 0x115   : > { %v852_v44 = vmax.f32 %v758_v36, 0.0  ;;  %v1216_v45 = vadd.f32 %v1215_v42, %v1214_v37  ;;  %v761_v46 = vadd.f32 %v760_v43, %v632_v39  ;;  %v653_v52 = vadd.f32 %v1213_v35, %v1559_v26 }
 0x116   : > { %v1155_v47 = vpack.c.bf16 %v854_v40, %v854_v40  ;;  %v855_v48 = vmax.f32 %v769_v41, 0.0 }
 0x117   : > { %v1153_v49 = vpack.c.bf16 %v852_v44, %v852_v44  ;;  %v853_v50 = vmax.f32 %v761_v46, 0.0  ;;  %v656_v61 = vadd.f32 %v1216_v45, %v1559_v26 }
 0x118   : > { %975 = vst.msk [vmem:[%s1569_s8 + $0x8] sm:$0xf] %vm972_vm1, %v1155_v47  ;;  %v1156_v51 = vpack.c.bf16 %v855_v48, %v855_v48 }
 0x119   : > { %973 = vst.msk [vmem:[%s1569_s8] sm:$0xf] %vm972_vm1, %v1153_v49  ;;  %v1154_v53 = vpack.c.bf16 %v853_v50, %v853_v50  ;;  %v1217_v54 = vpop.f32.mrb[16].mxu0  ;;  %v1289_v55 = vpop.f32.mrb[16].mxu1 }
 0x11a   : > { %976 = vst.msk [vmem:[%s1569_s8 + $0xc] sm:$0xf] %vm972_vm1, %v1156_v51  ;;  %v782_v57 = vadd.f32 %v1289_v55, %v653_v52  ;;  %v1218_v58 = vpop.f32.mrb[17].mxu0  ;;  %v773_v59 = vpop.f32.mrb[17].mxu1 }
 0x11b   : > { %974 = vst.msk [vmem:[%s1569_s8 + $0x4] sm:$0xf] %vm972_vm1, %v1154_v53  ;;  %v1219_v62 = vadd.f32 %v1218_v58, %v1217_v54  ;;  %v774_v63 = vadd.f32 %v773_v59, %v645_v56  ;;  %v1220_v0 = vpop.f32.mrb[18].mxu0  ;;  %v1290_v2 = vpop.f32.mrb[18].mxu1 }
 0x11c   : > { %v858_v4 = vmax.f32 %v782_v57, 0.0  ;;  %v785_v5 = vadd.f32 %v1290_v2, %v656_v61  ;;  %v1221_v6 = vpop.f32.mrb[19].mxu0  ;;  %v776_v7 = vpop.f32.mrb[19].mxu1 }
 0x11d   : > { %v856_v9 = vmax.f32 %v774_v63, 0.0  ;;  %v1222_v10 = vadd.f32 %v1221_v6, %v1220_v0  ;;  %v777_v11 = vadd.f32 %v776_v7, %v648_v3  ;;  %v661_v22 = vadd.f32 %v1219_v62, %v1559_v26 }
 0x11e   : > { %v1159_v12 = vpack.c.bf16 %v858_v4, %v858_v4  ;;  %v859_v14 = vmax.f32 %v785_v5, 0.0  ;;  %v701_v62 = vadd.f32 %v1544_v60, %v1559_v26  ;;  %v704_v7 = vadd.f32 %v1546_v1, %v1559_v26 }
 0x11f   : > { %v1157_v15 = vpack.c.bf16 %v856_v9, %v856_v9  ;;  %v857_v16 = vmax.f32 %v777_v11, 0.0  ;;  %v664_v31 = vadd.f32 %v1222_v10, %v1559_v26 }
 0x120   : > { %979 = vst.msk [vmem:[%s1569_s8 + $0x18] sm:$0xf] %vm972_vm1, %v1159_v12  ;;  %v1160_v17 = vpack.c.bf16 %v859_v14, %v859_v14 }
 0x121   : > { %977 = vst.msk [vmem:[%s1569_s8 + $0x10] sm:$0xf] %vm972_vm1, %v1157_v15  ;;  %v1158_v18 = vpack.c.bf16 %v857_v16, %v857_v16  ;;  %v1223_v19 = vpop.f32.mrb[20].mxu0  ;;  %v1293_v21 = vpop.f32.mrb[20].mxu1 }
 0x122   : > { %980 = vst.msk [vmem:[%s1569_s8 + $0x1c] sm:$0xf] %vm972_vm1, %v1160_v17  ;;  %v1224_v23 = vpop.f32.mrb[21].mxu0  ;;  %v789_v24 = vpop.f32.mrb[21].mxu1 }
 0x123   : > { %978 = vst.msk [vmem:[%s1569_s8 + $0x14] sm:$0xf] %vm972_vm1, %v1158_v18  ;;  %v1225_v27 = vadd.f32 %v1224_v23, %v1223_v19  ;;  %v790_v28 = vadd.f32 %v789_v24, %v661_v22  ;;  %v1226_v29 = vpop.f32.mrb[22].mxu0  ;;  %v1294_v30 = vpop.f32.mrb[22].mxu1 }
 0x124   : > { %v1227_v32 = vpop.f32.mrb[23].mxu0  ;;  %v792_v33 = vpop.f32.mrb[23].mxu1 }
 0x125   : > { %v669_v34 = vadd.f32 %v1225_v27, %v1559_v26  ;;  %v860_v35 = vmax.f32 %v790_v28, 0.0  ;;  %v1228_v36 = vadd.f32 %v1227_v32, %v1226_v29  ;;  %v793_v37 = vadd.f32 %v792_v33, %v664_v31 }
 0x126   : > { %v717_v28 = vadd.f32 %v1552_v20, %v1559_v26  ;;  %v709_v33 = vadd.f32 %v1548_v8, %v1559_v26 }
 0x127   : > { %v798_v38 = vadd.f32 %v1293_v21, %v669_v34  ;;  %v1161_v39 = vpack.c.bf16 %v860_v35, %v860_v35  ;;  %v672_v40 = vadd.f32 %v1228_v36, %v1559_v26  ;;  %v861_v41 = vmax.f32 %v793_v37, 0.0 }
 0x128   : > { %v720_v37 = vadd.f32 %v1554_v25, %v1559_v26 }
 0x129   : > { %v862_v42 = vmax.f32 %v798_v38, 0.0  ;;  %981 = vst.msk [vmem:[%s1569_s8 + $0x20] sm:$0xf] %vm972_vm1, %v1161_v39  ;;  %v801_v43 = vadd.f32 %v1294_v30, %v672_v40  ;;  %v1162_v44 = vpack.c.bf16 %v861_v41, %v861_v41  ;;  %v1229_v45 = vpop.f32.mrb[24].mxu0  ;;  %v1297_v46 = vpop.f32.mrb[24].mxu1 }
 0x12a   : > { %v1230_v47 = vpop.f32.mrb[25].mxu0  ;;  %v805_v48 = vpop.f32.mrb[25].mxu1 }
 0x12b   : > { %v1163_v49 = vpack.c.bf16 %v862_v42, %v862_v42  ;;  %v863_v50 = vmax.f32 %v801_v43, 0.0  ;;  %982 = vst.msk [vmem:[%s1569_s8 + $0x24] sm:$0xf] %vm972_vm1, %v1162_v44  ;;  %v1231_v51 = vadd.f32 %v1230_v47, %v1229_v45  ;;  %v1232_v52 = vpop.f32.mrb[26].mxu0  ;;  %v1298_v53 = vpop.f32.mrb[26].mxu1  ;;  %v712_v45 = vadd.f32 %v1550_v13, %v1559_v26 }
 0x12c   : > { %v1233_v54 = vpop.f32.mrb[27].mxu0  ;;  %v808_v55 = vpop.f32.mrb[27].mxu1 }
 0x12d   : > { %983 = vst.msk [vmem:[%s1569_s8 + $0x28] sm:$0xf] %vm972_vm1, %v1163_v49  ;;  %v1164_v56 = vpack.c.bf16 %v863_v50, %v863_v50  ;;  %v677_v57 = vadd.f32 %v1231_v51, %v1559_v26  ;;  %v1234_v58 = vadd.f32 %v1233_v54, %v1232_v52 }
 0x12f   : > { %984 = vst.msk [vmem:[%s1569_s8 + $0x2c] sm:$0xf] %vm972_vm1, %v1164_v56  ;;  %v806_v59 = vadd.f32 %v805_v48, %v677_v57  ;;  %v680_v61 = vadd.f32 %v1234_v58, %v1559_v26 }
 0x131   : > { %v864_v63 = vmax.f32 %v806_v59, 0.0  ;;  %v809_v0 = vadd.f32 %v808_v55, %v680_v61  ;;  %v1235_v2 = vpop.f32.mrb[28].mxu0  ;;  %v1301_v3 = vpop.f32.mrb[28].mxu1 }
 0x132   : > { %v830_v4 = vadd.f32 %v1301_v3, %v701_v62  ;;  %v1236_v5 = vpop.f32.mrb[29].mxu0  ;;  %v821_v6 = vpop.f32.mrb[29].mxu1 }
 0x133   : > { %v1165_v9 = vpack.c.bf16 %v864_v63, %v864_v63  ;;  %v865_v10 = vmax.f32 %v809_v0, 0.0  ;;  %v1237_v11 = vadd.f32 %v1236_v5, %v1235_v2  ;;  %v1238_v12 = vpop.f32.mrb[30].mxu0  ;;  %v1302_v14 = vpop.f32.mrb[30].mxu1 }
 0x134   : > { %v870_v15 = vmax.f32 %v830_v4, 0.0  ;;  %v833_v60 = vadd.f32 %v1302_v14, %v704_v7  ;;  %v1239_v16 = vpop.f32.mrb[31].mxu0  ;;  %v824_v17 = vpop.f32.mrb[31].mxu1 }
 0x135   : > { %985 = vst.msk [vmem:[%s1569_s8 + $0x30] sm:$0xf] %vm972_vm1, %v1165_v9  ;;  %v1166_v18 = vpack.c.bf16 %v865_v10, %v865_v10  ;;  %v685_v19 = vadd.f32 %v1237_v11, %v1559_v26  ;;  %v1240_v21 = vadd.f32 %v1239_v16, %v1238_v12 }
 0x136   : > { %v1171_v22 = vpack.c.bf16 %v870_v15, %v870_v15  ;;  %v871_v1 = vmax.f32 %v833_v60, 0.0 }
 0x137   : > { %986 = vst.msk [vmem:[%s1569_s8 + $0x34] sm:$0xf] %vm972_vm1, %v1166_v18  ;;  %v814_v23 = vadd.f32 %v1297_v46, %v685_v19  ;;  %v688_v24 = vadd.f32 %v1240_v21, %v1559_v26 }
 0x138   : > { %991 = vst.msk [vmem:[%s1569_s8 + $0x48] sm:$0xf] %vm972_vm1, %v1171_v22  ;;  %v1172_v27 = vpack.c.bf16 %v871_v1, %v871_v1 }
 0x139   : > { %v866_v29 = vmax.f32 %v814_v23, 0.0  ;;  %v817_v30 = vadd.f32 %v1298_v53, %v688_v24  ;;  %v1241_v31 = vpop.f32.mrb[32].mxu0  ;;  %v1305_v32 = vpop.f32.mrb[32].mxu1 }
 0x13a   : > { %992 = vst.msk [vmem:[%s1569_s8 + $0x4c] sm:$0xf] %vm972_vm1, %v1172_v27  ;;  %v846_v34 = vadd.f32 %v1305_v32, %v717_v28  ;;  %v1242_v35 = vpop.f32.mrb[33].mxu0  ;;  %v837_v36 = vpop.f32.mrb[33].mxu1 }
 0x13b   : > { %v1167_v38 = vpack.c.bf16 %v866_v29, %v866_v29  ;;  %v867_v39 = vmax.f32 %v817_v30, 0.0  ;;  %v1243_v40 = vadd.f32 %v1242_v35, %v1241_v31  ;;  %v838_v20 = vadd.f32 %v837_v36, %v709_v33  ;;  %v1244_v41 = vpop.f32.mrb[34].mxu0  ;;  %v1306_v42 = vpop.f32.mrb[34].mxu1 }
 0x13c   : > { %v874_v43 = vmax.f32 %v846_v34, 0.0  ;;  %v849_v44 = vadd.f32 %v1306_v42, %v720_v37  ;;  %v1245_v8 = vpop.f32.mrb[35].mxu0  ;;  %v840_v46 = vpop.f32.mrb[35].mxu1 }
 0x13d   : > { %987 = vst.msk [vmem:[%s1569_s8 + $0x38] sm:$0xf] %vm972_vm1, %v1167_v38  ;;  %v1168_v47 = vpack.c.bf16 %v867_v39, %v867_v39  ;;  %v693_v25 = vadd.f32 %v1243_v40, %v1559_v26  ;;  %v872_v48 = vmax.f32 %v838_v20, 0.0  ;;  %v1246_v49 = vadd.f32 %v1245_v8, %v1244_v41 }
 0x13e   : > { %v1175_v50 = vpack.c.bf16 %v874_v43, %v874_v43  ;;  %v875_v51 = vmax.f32 %v849_v44, 0.0  ;;  %v841_v52 = vadd.f32 %v840_v46, %v712_v45 }
 0x13f   : > { %988 = vst.msk [vmem:[%s1569_s8 + $0x3c] sm:$0xf] %vm972_vm1, %v1168_v47  ;;  %v822_v53 = vadd.f32 %v821_v6, %v693_v25  ;;  %v1173_v13 = vpack.c.bf16 %v872_v48, %v872_v48  ;;  %v696_v54 = vadd.f32 %v1246_v49, %v1559_v26 }
 0x140   : > { %995 = vst.msk [vmem:[%s1569_s8 + $0x58] sm:$0xf] %vm972_vm1, %v1175_v50  ;;  %v1176_v55 = vpack.c.bf16 %v875_v51, %v875_v51  ;;  %v873_v56 = vmax.f32 %v841_v52, 0.0 }
 0x141   : > { %v868_v57 = vmax.f32 %v822_v53, 0.0  ;;  %993 = vst.msk [vmem:[%s1569_s8 + $0x50] sm:$0xf] %vm972_vm1, %v1173_v13  ;;  %v825_v58 = vadd.f32 %v824_v17, %v696_v54 }
 0x142   : > { %996 = vst.msk [vmem:[%s1569_s8 + $0x5c] sm:$0xf] %vm972_vm1, %v1176_v55  ;;  %v1174_v59 = vpack.c.bf16 %v873_v56, %v873_v56 }
 0x143   : > { %v1169_v61 = vpack.c.bf16 %v868_v57, %v868_v57  ;;  %v869_v62 = vmax.f32 %v825_v58, 0.0 }
 0x144   : > { %994 = vst.msk [vmem:[%s1569_s8 + $0x54] sm:$0xf] %vm972_vm1, %v1174_v59 }
 0x145   : > { %989 = vst.msk [vmem:[%s1569_s8 + $0x40] sm:$0xf] %vm972_vm1, %v1169_v61  ;;  %v1170_v63 = vpack.c.bf16 %v869_v62, %v869_v62 }
 0x147   : > { %990 = vst.msk [vmem:[%s1569_s8 + $0x44] sm:$0xf] %vm972_vm1, %v1170_v63 }
 0x148 PF: > { %s13_s12 = sadd.s32 1, %s1404_s12  }
 0x149   : > { %p10_p4 = scmp.ge.s32.totalorder %s13_s12, 10  }
 0x14b   :  { %12 = sbr.rel (!%p10_p4) target bundleno = 1 (0x1), region = 62 }

// kernel: _lambda_.7
= control target key start
LH: loop header
LB: loop body
LE: loop exit
PB: predicated region body
PF: predicated region fallthrough
CT: control target
= control target key end

     0   :  { %s1665_s12 = smov 0   ;;  %s1907_s0 = inlined_call_operand.vmem [shape: bf16[384,576], index: 0, kind: input, shape index: {}]   ;;  %s1908_s1 = inlined_call_operand.vmem [shape: bf16[576,128], index: 1, kind: input, shape index: {}]   ;;  %s1909_s2 = inlined_call_operand.vmem [shape: f32[1,128], index: 2, kind: input, shape index: {}]   ;;  %s1910_s3 = inlined_call_operand.vmem [shape: bf16[384,128], index: 3, kind: output, shape index: {}]  }
   0x1 LB: > { %s1189_s13 = sadd.s32 4294967295, %s1643_s12   ;;  %p1193_p0 = scmp.ge.s32.totalorder %s1643_s12, 1  ;;  %s1643_s12 = sphi %s1665_s12, %s13_s12  }
   0x2   : > { %p139_p1 = scmp.lt.s32.totalorder %s1643_s12, 4 }
   0x4   : > { %p140_p2 = pnand %p1193_p0, %p139_p1 }
   0x5   : > { %v1545_v0 = vld [vmem:[%s1908_s1 + $0x40] sm:$0xff] (!%p140_p2)   ;;  %v1549_v4 = vld [vmem:[%s1908_s1 + $0x48] sm:$0xff] (!%p140_p2)   ;;  %v1553_v8 = vld [vmem:[%s1908_s1 + $0x50] sm:$0xff] (!%p140_p2)   ;;  %s1194_s19 = sshll.u32 (!%p140_p2), %s1189_s13, 4  ;;  %vm721_vm0 = vcmask (!%p140_p2), 523264  }
   0x6   : > { %143 = sbr.rel (%p140_p2) target bundleno = 334 (0x14e), region = 32  ;;  %v1546_v1 = vld [vmem:[%s1908_s1 + $0xc0] sm:$0xff] (!%p140_p2)   ;;  %1364 = vmatprep.subr.bf16.mxu0 (!%p140_p2), %v1545_v0  ;;  %v1550_v5 = vld [vmem:[%s1908_s1 + $0xc8] sm:$0xff] (!%p140_p2)   ;;  %v1554_v9 = vld [vmem:[%s1908_s1 + $0xd0] sm:$0xff] (!%p140_p2)   ;;  %p165_p3 = scmp.lt.s32.totalorder (!%p140_p2), %s1194_s19, 47 }
   0x7   : > { %v1547_v2 = vld [vmem:[%s1908_s1] sm:$0xff] (!%p140_p2)   ;;  %1428 = vmatprep.subr.bf16.mxu1 (!%p140_p2), %v1546_v1  ;;  %v1551_v6 = vld [vmem:[%s1908_s1 + $0x8] sm:$0xff] (!%p140_p2)   ;;  %v1555_v10 = vld [vmem:[%s1908_s1 + $0x10] sm:$0xff] (!%p140_p2)  }
   0x8   : > { %v1548_v3 = vld [vmem:[%s1908_s1 + $0x80] sm:$0xff] (!%p140_p2)   ;;  %1365 = vmatpush3.bf16.msra.mxu0 (!%p140_p2), %v1547_v2  ;;  %v1552_v7 = vld [vmem:[%s1908_s1 + $0x88] sm:$0xff] (!%p140_p2)   ;;  %v1556_v11 = vld [vmem:[%s1908_s1 + $0x90] sm:$0xff] (!%p140_p2)  }
   0x9   : > { %1429 = vmatpush3.bf16.msra.mxu1 (!%p140_p2), %v1548_v3  ;;  %1366 = vmatprep.subr.bf16.mxu0 (!%p140_p2), %v1549_v4  ;;  %v1557_v12 = vld [vmem:[%s1908_s1 + $0x58] sm:$0xff] (!%p140_p2)   ;;  %v1561_v16 = vld [vmem:[%s1908_s1 + $0x60] sm:$0xff] (!%p140_p2)   ;;  %v1565_v20 = vld [vmem:[%s1908_s1 + $0x68] sm:$0xff] (!%p140_p2)  }
   0xa   : > { %1430 = vmatprep.subr.bf16.mxu1 (!%p140_p2), %v1550_v5  ;;  %v1558_v13 = vld [vmem:[%s1908_s1 + $0xd8] sm:$0xff] (!%p140_p2)   ;;  %v1562_v17 = vld [vmem:[%s1908_s1 + $0xe0] sm:$0xff] (!%p140_p2)   ;;  %v1566_v21 = vld [vmem:[%s1908_s1 + $0xe8] sm:$0xff] (!%p140_p2)  }
   0xb   : > { %v1559_v14 = vld [vmem:[%s1908_s1 + $0x18] sm:$0xff] (!%p140_p2)   ;;  %v1563_v18 = vld [vmem:[%s1908_s1 + $0x20] sm:$0xff] (!%p140_p2)   ;;  %v1567_v22 = vld [vmem:[%s1908_s1 + $0x28] sm:$0xff] (!%p140_p2)  }
   0xc   : > { %1367 = vmatpush3.bf16.msra.mxu0 (!%p140_p2), %v1551_v6  ;;  %v1560_v15 = vld [vmem:[%s1908_s1 + $0x98] sm:$0xff] (!%p140_p2)   ;;  %v1564_v19 = vld [vmem:[%s1908_s1 + $0xa0] sm:$0xff] (!%p140_p2)   ;;  %v1568_v23 = vld [vmem:[%s1908_s1 + $0xa8] sm:$0xff] (!%p140_p2)  }
   0xd   : > { %1431 = vmatpush3.bf16.msra.mxu1 %v1552_v7  ;;  %1368 = vmatprep.subr.bf16.mxu0 %v1553_v8  ;;  %s1912_s19 = smov (!%p165_p3, %s1194_s19), 47  ;;  %v1569_v24 = vld [vmem:[%s1908_s1 + $0x70] sm:$0xff]   ;;  %v1573_v28 = vld [vmem:[%s1908_s1 + $0x78] sm:$0xff]   ;;  %v1583_v36 = vld [vmem:[%s1908_s1 + $0x100] sm:$0xff]  }
   0xe   : > { %1432 = vmatprep.subr.bf16.mxu1 %v1554_v9  ;;  %v1570_v25 = vld [vmem:[%s1908_s1 + $0xf0] sm:$0xff]   ;;  %s1536_s16 = smul.u32 20, %s1912_s19  ;;  %v1574_v29 = vld [vmem:[%s1908_s1 + $0xf8] sm:$0xff]   ;;  %v1596_v42 = vld [vmem:[%s1908_s1 + $0x108] sm:$0xff]   ;;  %s1197_s17 = sshll.u32 %s1912_s19, 2 }
   0xf   : > { %v1571_v26 = vld [vmem:[%s1908_s1 + $0x30] sm:$0xff]   ;;  %v1575_v30 = vld [vmem:[%s1908_s1 + $0x38] sm:$0xff]   ;;  %s1889_s21 = scalar_lea.vmem %s1910_s3, %s1197_s17 }
  0x10   : > { %1369 = vmatpush3.bf16.msra.mxu0 %v1555_v10  ;;  %v1572_v27 = vld [vmem:[%s1908_s1 + $0xb0] sm:$0xff]   ;;  %s1771_s13 = scalar_lea.vmem %s1907_s0, %s1536_s16  ;;  %v1576_v31 = vld [vmem:[%s1908_s1 + $0xb8] sm:$0xff]  }
  0x11   : > { %1433 = vmatpush3.bf16.msra.mxu1 %v1556_v11  ;;  %1370 = vmatprep.subr.bf16.mxu0 %v1557_v12  ;;  %v1577_v32 = vld [vmem:[%s1771_s13] ss:$20 sps:$4 sm:$0xff]   ;;  %v1579_v33 = vld [vmem:[%s1771_s13 + $0x4] ss:$20 sps:$4 sm:$0xff]   ;;  %v1580_v34 = vld [vmem:[%s1771_s13 + $0x8] ss:$20 sps:$4 sm:$0xff]  }
  0x12   : > { %1434 = vmatprep.subr.bf16.mxu1 %v1558_v13  ;;  %v1582_v35 = vld [vmem:[%s1771_s13 + $0xc] ss:$20 sps:$4 sm:$0xff]   ;;  %778 = vmatprep.mubr.bf16.mxu0 %v1579_v33  ;;  %v1586_v38 = vld [vmem:[%s1771_s13 + $0x34] ss:$20 sps:$4 sm:$0xff]   ;;  %v1589_v40 = vld [vmem:[%s1771_s13 + $0x30] ss:$20 sps:$4 sm:$0xff]  }
  0x13   : > { %875 = vmatprep.mubr.bf16.mxu1 %v1582_v35  ;;  %v1584_v37 = vld [vmem:[%s1771_s13 + $0x2c] ss:$20 sps:$4 sm:$0xff]   ;;  %v1588_v39 = vld [vmem:[%s1771_s13 + $0x28] ss:$20 sps:$4 sm:$0xff]   ;;  %v1594_v44 = vld [vmem:[%s1771_s13 + $0x50] ss:$20 sps:$4 sm:$0xff]  }
  0x14   : > { %1371 = vmatpush3.bf16.msra.mxu0 %v1559_v14  ;;  %v1590_v41 = vld [vmem:[%s1771_s13 + $0x54] ss:$20 sps:$4 sm:$0xff]   ;;  %v1592_v43 = vld [vmem:[%s1771_s13 + $0x5c] ss:$20 sps:$4 sm:$0xff]   ;;  %v1595_v45 = vld [vmem:[%s1771_s13 + $0x58] ss:$20 sps:$4 sm:$0xff]  }
  0x15   : > { %1435 = vmatpush3.bf16.msra.mxu1 %v1560_v15  ;;  %1372 = vmatprep.subr.bf16.mxu0 %v1561_v16  ;;  %v1609_v46 = vld [vmem:[%s1908_s1 + $0x110] sm:$0xff]   ;;  %v1599_v48 = vld [vmem:[%s1771_s13 + $0x84] ss:$20 sps:$4 sm:$0xff]   ;;  %v1605_v53 = vld [vmem:[%s1771_s13 + $0xac] ss:$20 sps:$4 sm:$0xff]  }
  0x16   : > { %1436 = vmatprep.subr.bf16.mxu1 %v1562_v17  ;;  %v1597_v47 = vld [vmem:[%s1771_s13 + $0x7c] ss:$20 sps:$4 sm:$0xff]   ;;  %v1601_v50 = vld [vmem:[%s1771_s13 + $0x78] ss:$20 sps:$4 sm:$0xff]   ;;  %v1602_v51 = vld [vmem:[%s1771_s13 + $0x80] ss:$20 sps:$4 sm:$0xff]  }
  0x17   : > { %v1622_v49 = vld [vmem:[%s1908_s1 + $0x118] sm:$0xff]   ;;  %v1607_v54 = vld [vmem:[%s1771_s13 + $0xa0] ss:$20 sps:$4 sm:$0xff]   ;;  %v1615_v59 = vld [vmem:[%s1771_s13 + $0xd0] ss:$20 sps:$4 sm:$0xff]  }
  0x18   : > { %1373 = vmatpush3.bf16.msra.mxu0 %v1563_v18  ;;  %v1603_v52 = vld [vmem:[%s1771_s13 + $0xa4] ss:$20 sps:$4 sm:$0xff]   ;;  %v1608_v55 = vld [vmem:[%s1771_s13 + $0xa8] ss:$20 sps:$4 sm:$0xff]   ;;  %v1610_v56 = vld [vmem:[%s1771_s13 + $0xcc] ss:$20 sps:$4 sm:$0xff]  }
  0x19   : > { %1437 = vmatpush3.bf16.msra.mxu1 %v1564_v19  ;;  %1374 = vmatprep.subr.bf16.mxu0 %v1565_v20  ;;  %v1612_v57 = vld [vmem:[%s1771_s13 + $0xd4] ss:$20 sps:$4 sm:$0xff]   ;;  %v1618_v61 = vld [vmem:[%s1771_s13 + $0xfc] ss:$20 sps:$4 sm:$0xff]   ;;  %v1621_v63 = vld [vmem:[%s1771_s13 + $0xf8] ss:$20 sps:$4 sm:$0xff]  }
  0x1a   : > { %1438 = vmatprep.subr.bf16.mxu1 %v1566_v21  ;;  %v1614_v58 = vld [vmem:[%s1771_s13 + $0xc8] ss:$20 sps:$4 sm:$0xff]   ;;  %v1620_v62 = vld [vmem:[%s1771_s13 + $0xf0] ss:$20 sps:$4 sm:$0xff]   ;;  %v1627_v2 = vld [vmem:[%s1771_s13 + $0x118] ss:$20 sps:$4 sm:$0xff]  }
  0x1b   : > { %v1616_v60 = vld [vmem:[%s1771_s13 + $0xf4] ss:$20 sps:$4 sm:$0xff]   ;;  %v1623_v0 = vld [vmem:[%s1771_s13 + $0x11c] ss:$20 sps:$4 sm:$0xff]   ;;  %v1625_v1 = vld [vmem:[%s1771_s13 + $0x124] ss:$20 sps:$4 sm:$0xff]  }
  0x1c   : > { %1375 = vmatpush3.bf16.msra.mxu0 %v1567_v22  ;;  %v1628_v3 = vld [vmem:[%s1771_s13 + $0x120] ss:$20 sps:$4 sm:$0xff]   ;;  %v1629_v4 = vld [vmem:[%s1771_s13 + $0x10] ss:$20 sps:$4 sm:$0xff]   ;;  %v1631_v6 = vld [vmem:[%s1771_s13 + $0x38] ss:$20 sps:$4 sm:$0xff]  }
  0x1d   : > { %1439 = vmatpush3.bf16.msra.mxu1 %v1568_v23  ;;  %1376 = vmatprep.subr.bf16.mxu0 %v1569_v24  ;;  %v1630_v5 = vld [vmem:[%s1771_s13 + $0xb0] ss:$20 sps:$4 sm:$0xff]   ;;  %v1632_v7 = vld [vmem:[%s1771_s13 + $0xd8] ss:$20 sps:$4 sm:$0xff]   ;;  %v1633_v8 = vld [vmem:[%s1771_s13 + $0x60] ss:$20 sps:$4 sm:$0xff]  }
  0x1e   : > { %1440 = vmatprep.subr.bf16.mxu1 %v1570_v25  ;;  %v1634_v9 = vld [vmem:[%s1771_s13 + $0x100] ss:$20 sps:$4 sm:$0xff]   ;;  %v1635_v10 = vld [vmem:[%s1771_s13 + $0x88] ss:$20 sps:$4 sm:$0xff]  }
  0x1f   : > { %v1636_v11 = vld [vmem:[%s1771_s13 + $0x128] ss:$20 sps:$4 sm:$0xff]   ;;  %v1842_v14 = vld [vmem:[%s1909_s2] ss:$0 sm:$0xff] }
  0x20   : > { %1377 = vmatpush3.bf16.msra.mxu0 %v1571_v26 }
  0x21   : > { %1441 = vmatpush3.bf16.msra.mxu1 %v1572_v27  ;;  %1378 = vmatprep.subr.bf16.mxu0 %v1573_v28 }
  0x22   : > { %1442 = vmatprep.subr.bf16.mxu1 %v1574_v29 }
  0x24   : > { %1379 = vmatpush3.bf16.msra.mxu0 %v1575_v30 }
  0x25   : > { %1443 = vmatpush3.bf16.msra.mxu1 %v1576_v31  ;;  %1504 = vmatprep.subr.bf16.mxu0 %v1583_v36 }
  0x26   : > { %1528 = vmatprep.subr.bf16.mxu1 %v1583_v36 }
  0x27   : > { %779 = vmatmul.mubr.bf16.vlgmr.msra.gmra.mrb[0].mxu0 %v1577_v32 }
  0x28   : > { %876 = vmatmul.mubr.bf16.vlgmr.msra.gmra.mrb[0].mxu1 %v1580_v34  ;;  %1505 = vmatpush3.bf16.msra.mxu0 %v1583_v36 }
  0x29   : > { %1532 = vmatpush3.bf16.msra.mxu1 %v1583_v36  ;;  %786 = vmatprep.mubr.bf16.mxu0 %v1584_v37 }
  0x2a   : > { %883 = vmatprep.mubr.bf16.mxu1 %v1586_v38  ;;  %1506 = vmatprep.subr.bf16.mxu0 %v1596_v42 }
  0x2b   : > { %1529 = vmatprep.subr.bf16.mxu1 %v1596_v42 }
  0x2c   : > { %1507 = vmatpush3.bf16.msra.mxu0 %v1596_v42 }
  0x2d   : > { %1533 = vmatpush3.bf16.msra.mxu1 %v1596_v42  ;;  %1508 = vmatprep.subr.bf16.mxu0 %v1609_v46 }
  0x2e   : > { %1530 = vmatprep.subr.bf16.mxu1 %v1609_v46 }
  0x2f   : > { %787 = vmatmul.mubr.bf16.gmra.mrb[4].mxu0 %v1588_v39 }
  0x30   : > { %884 = vmatmul.mubr.bf16.gmra.mrb[4].mxu1 %v1589_v40  ;;  %794 = vmatprep.mubr.bf16.mxu0 %v1590_v41 }
  0x31   : > { %891 = vmatprep.mubr.bf16.mxu1 %v1592_v43  ;;  %1509 = vmatpush3.bf16.msra.mxu0 %v1609_v46 }
  0x32   : > { %1534 = vmatpush3.bf16.msra.mxu1 %v1609_v46  ;;  %1510 = vmatprep.subr.bf16.mxu0 %v1622_v49 }
  0x33   : > { %1531 = vmatprep.subr.bf16.mxu1 %v1622_v49 }
  0x35   : > { %1511 = vmatpush3.bf16.msra.mxu0 %v1622_v49 }
  0x36   : > { %1535 = vmatpush3.bf16.msra.mxu1 %v1622_v49 }
  0x37   : > { %795 = vmatmul.mubr.bf16.gmra.mrb[8].mxu0 %v1594_v44 }
  0x38   : > { %892 = vmatmul.mubr.bf16.gmra.mrb[8].mxu1 %v1595_v45  ;;  %802 = vmatprep.mubr.bf16.mxu0 %v1597_v47 }
  0x39   : > { %899 = vmatprep.mubr.bf16.mxu1 %v1599_v48 }
  0x3f   : > { %803 = vmatmul.mubr.bf16.gmra.mrb[12].mxu0 %v1601_v50 }
  0x40   : > { %900 = vmatmul.mubr.bf16.gmra.mrb[12].mxu1 %v1602_v51  ;;  %810 = vmatprep.mubr.bf16.mxu0 %v1603_v52 }
  0x41   : > { %907 = vmatprep.mubr.bf16.mxu1 %v1605_v53 }
  0x47   : > { %811 = vmatmul.mubr.bf16.gmra.mrb[16].mxu0 %v1607_v54 }
  0x48   : > { %908 = vmatmul.mubr.bf16.gmra.mrb[16].mxu1 %v1608_v55  ;;  %818 = vmatprep.mubr.bf16.mxu0 %v1610_v56 }
  0x49   : > { %915 = vmatprep.mubr.bf16.mxu1 %v1612_v57 }
  0x4f   : > { %819 = vmatmul.mubr.bf16.gmra.mrb[20].mxu0 %v1614_v58 }
  0x50   : > { %916 = vmatmul.mubr.bf16.gmra.mrb[20].mxu1 %v1615_v59  ;;  %826 = vmatprep.mubr.bf16.mxu0 %v1616_v60 }
  0x51   : > { %923 = vmatprep.mubr.bf16.mxu1 %v1618_v61 }
  0x57   : > { %827 = vmatmul.mubr.bf16.gmra.mrb[24].mxu0 %v1620_v62 }
  0x58   : > { %924 = vmatmul.mubr.bf16.gmra.mrb[24].mxu1 %v1621_v63  ;;  %834 = vmatprep.mubr.bf16.mxu0 %v1623_v0 }
  0x59   : > { %931 = vmatprep.mubr.bf16.mxu1 %v1625_v1 }
  0x5f   : > { %835 = vmatmul.mubr.bf16.gmra.mrb[28].mxu0 %v1627_v2 }
  0x60   : > { %932 = vmatmul.mubr.bf16.gmra.mrb[28].mxu1 %v1628_v3  ;;  %1512 = vmatprep.mubr.msk.bf16.mxu0 %vm721_vm0, %v1629_v4 }
  0x61   : > { %1520 = vmatprep.mubr.msk.bf16.mxu1 %vm721_vm0, %v1630_v5 }
  0x67   : > { %1513 = vmatmul.mubr.msk.bf16.vlgmr.msra.gmra.mrb[32].mxu0 %vm721_vm0, %v1631_v6 }
  0x68   : > { %1521 = vmatmul.mubr.msk.bf16.vlgmr.msra.gmra.mrb[32].mxu1 %vm721_vm0, %v1632_v7  ;;  %1516 = vmatprep.mubr.msk.bf16.mxu0 %vm721_vm0, %v1633_v8 }
  0x69   : > { %1524 = vmatprep.mubr.msk.bf16.mxu1 %vm721_vm0, %v1634_v9 }
  0x6f   : > { %1517 = vmatmul.mubr.msk.bf16.gmra.mrb[36].mxu0 %vm721_vm0, %v1635_v10 }
  0x70   : > { %1525 = vmatmul.mubr.msk.bf16.gmra.mrb[36].mxu1 %vm721_vm0, %v1636_v11 }
  0xfa   : > { %v1380_v12 = vpop.f32.mrb[0].mxu0 }
  0xfb   : > { %v1444_v13 = vpop.f32.mrb[0].mxu1  ;;  %v1381_v15 = vpop.f32.mrb[1].mxu0 }
  0xfc   : > { %v1382_v16 = vadd.f32 %v1381_v15, %v1380_v12  ;;  %v1445_v17 = vpop.f32.mrb[1].mxu1  ;;  %v1383_v18 = vpop.f32.mrb[2].mxu0 }
  0xfd   : > { %v1446_v19 = vadd.f32 %v1445_v17, %v1444_v13  ;;  %v1447_v20 = vpop.f32.mrb[2].mxu1  ;;  %v1384_v21 = vpop.f32.mrb[3].mxu0 }
  0xfe   : > { %v781_v22 = vadd.f32 %v1382_v16, %v1842_v14  ;;  %v1385_v23 = vadd.f32 %v1384_v21, %v1383_v18  ;;  %v1448_v24 = vpop.f32.mrb[3].mxu1 }
  0xff   : > { %v1449_v25 = vadd.f32 %v1448_v24, %v1447_v20 }
 0x100   : > { %v784_v26 = vadd.f32 %v1385_v23, %v1842_v14  ;;  %v1846_v27 = vadd.f32 %v1446_v19, %v781_v22 }
 0x102   : > { %v1386_v28 = vpop.f32.mrb[4].mxu0  ;;  %v1848_v29 = vadd.f32 %v1449_v25, %v784_v26 }
 0x103   : > { %v1450_v30 = vpop.f32.mrb[4].mxu1  ;;  %v1387_v31 = vpop.f32.mrb[5].mxu0 }
 0x104   : > { %v1388_v32 = vadd.f32 %v1387_v31, %v1386_v28  ;;  %v1451_v33 = vpop.f32.mrb[5].mxu1  ;;  %v1389_v34 = vpop.f32.mrb[6].mxu0 }
 0x105   : > { %v1452_v35 = vadd.f32 %v1451_v33, %v1450_v30  ;;  %v1453_v36 = vpop.f32.mrb[6].mxu1  ;;  %v1390_v37 = vpop.f32.mrb[7].mxu0 }
 0x106   : > { %v789_v38 = vadd.f32 %v1388_v32, %v1842_v14  ;;  %v1391_v39 = vadd.f32 %v1390_v37, %v1389_v34  ;;  %v1454_v40 = vpop.f32.mrb[7].mxu1 }
 0x107   : > { %v1455_v41 = vadd.f32 %v1454_v40, %v1453_v36 }
 0x108   : > { %v792_v42 = vadd.f32 %v1391_v39, %v1842_v14  ;;  %v1852_v43 = vadd.f32 %v1452_v35, %v789_v38 }
 0x10a   : > { %v1392_v44 = vpop.f32.mrb[8].mxu0  ;;  %v1854_v45 = vadd.f32 %v1455_v41, %v792_v42 }
 0x10b   : > { %v1456_v46 = vpop.f32.mrb[8].mxu1  ;;  %v1393_v47 = vpop.f32.mrb[9].mxu0 }
 0x10c   : > { %v1394_v48 = vadd.f32 %v1393_v47, %v1392_v44  ;;  %v1457_v49 = vpop.f32.mrb[9].mxu1  ;;  %v1395_v50 = vpop.f32.mrb[10].mxu0 }
 0x10d   : > { %v1458_v51 = vadd.f32 %v1457_v49, %v1456_v46  ;;  %v1459_v52 = vpop.f32.mrb[10].mxu1  ;;  %v1396_v53 = vpop.f32.mrb[11].mxu0 }
 0x10e   : > { %v797_v54 = vadd.f32 %v1394_v48, %v1842_v14  ;;  %v1397_v55 = vadd.f32 %v1396_v53, %v1395_v50  ;;  %v1460_v56 = vpop.f32.mrb[11].mxu1 }
 0x10f   : > { %v1461_v57 = vadd.f32 %v1460_v56, %v1459_v52 }
 0x110   : > { %v800_v58 = vadd.f32 %v1397_v55, %v1842_v14  ;;  %v1858_v59 = vadd.f32 %v1458_v51, %v797_v54 }
 0x112   : > { %v1398_v60 = vpop.f32.mrb[12].mxu0  ;;  %v1860_v61 = vadd.f32 %v1461_v57, %v800_v58 }
 0x113   : > { %v1462_v62 = vpop.f32.mrb[12].mxu1  ;;  %v1399_v63 = vpop.f32.mrb[13].mxu0 }
 0x114   : > { %v1400_v0 = vadd.f32 %v1399_v63, %v1398_v60  ;;  %v1463_v1 = vpop.f32.mrb[13].mxu1  ;;  %v1401_v2 = vpop.f32.mrb[14].mxu0 }
 0x115   : > { %v1464_v3 = vadd.f32 %v1463_v1, %v1462_v62  ;;  %v1465_v4 = vpop.f32.mrb[14].mxu1  ;;  %v1402_v5 = vpop.f32.mrb[15].mxu0 }
 0x116   : > { %v805_v6 = vadd.f32 %v1400_v0, %v1842_v14  ;;  %v1403_v7 = vadd.f32 %v1402_v5, %v1401_v2  ;;  %v1466_v8 = vpop.f32.mrb[15].mxu1 }
 0x117   : > { %v1467_v9 = vadd.f32 %v1466_v8, %v1465_v4 }
 0x118   : > { %v808_v10 = vadd.f32 %v1403_v7, %v1842_v14  ;;  %v1864_v11 = vadd.f32 %v1464_v3, %v805_v6 }
 0x11a   : > { %v1404_v12 = vpop.f32.mrb[16].mxu0  ;;  %v1866_v13 = vadd.f32 %v1467_v9, %v808_v10 }
 0x11b   : > { %v1468_v15 = vpop.f32.mrb[16].mxu1  ;;  %v1405_v16 = vpop.f32.mrb[17].mxu0 }
 0x11c   : > { %v1406_v17 = vadd.f32 %v1405_v16, %v1404_v12  ;;  %v1469_v18 = vpop.f32.mrb[17].mxu1  ;;  %v1407_v19 = vpop.f32.mrb[18].mxu0 }
 0x11d   : > { %v1470_v20 = vadd.f32 %v1469_v18, %v1468_v15  ;;  %v1471_v21 = vpop.f32.mrb[18].mxu1  ;;  %v1408_v22 = vpop.f32.mrb[19].mxu0 }
 0x11e   : > { %v813_v23 = vadd.f32 %v1406_v17, %v1842_v14  ;;  %v1409_v24 = vadd.f32 %v1408_v22, %v1407_v19  ;;  %v1472_v25 = vpop.f32.mrb[19].mxu1 }
 0x11f   : > { %v1473_v26 = vadd.f32 %v1472_v25, %v1471_v21 }
 0x120   : > { %v816_v28 = vadd.f32 %v1409_v24, %v1842_v14  ;;  %v910_v30 = vadd.f32 %v1470_v20, %v813_v23 }
 0x122   : > { %v1410_v31 = vpop.f32.mrb[20].mxu0  ;;  %v1870_v32 = vadd.f32 %v1473_v26, %v816_v28 }
 0x123   : > { %v1474_v33 = vpop.f32.mrb[20].mxu1  ;;  %v1411_v34 = vpop.f32.mrb[21].mxu0 }
 0x124   : > { %v1412_v35 = vadd.f32 %v1411_v34, %v1410_v31  ;;  %v1475_v36 = vpop.f32.mrb[21].mxu1  ;;  %v1413_v37 = vpop.f32.mrb[22].mxu0 }
 0x125   : > { %v1476_v38 = vadd.f32 %v1475_v36, %v1474_v33  ;;  %v1477_v39 = vpop.f32.mrb[22].mxu1  ;;  %v1414_v40 = vpop.f32.mrb[23].mxu0 }
 0x126   : > { %v821_v41 = vadd.f32 %v1412_v35, %v1842_v14  ;;  %v1415_v42 = vadd.f32 %v1414_v40, %v1413_v37  ;;  %v1478_v44 = vpop.f32.mrb[23].mxu1 }
 0x127   : > { %v1479_v46 = vadd.f32 %v1478_v44, %v1477_v39 }
 0x128   : > { %v824_v47 = vadd.f32 %v1415_v42, %v1842_v14  ;;  %v918_v48 = vadd.f32 %v1476_v38, %v821_v41 }
 0x12a   : > { %v1416_v49 = vpop.f32.mrb[24].mxu0  ;;  %v921_v50 = vadd.f32 %v1479_v46, %v824_v47 }
 0x12b   : > { %v1480_v51 = vpop.f32.mrb[24].mxu1  ;;  %v1417_v52 = vpop.f32.mrb[25].mxu0 }
 0x12c   : > { %v1418_v53 = vadd.f32 %v1417_v52, %v1416_v49  ;;  %v1481_v54 = vpop.f32.mrb[25].mxu1  ;;  %v1419_v55 = vpop.f32.mrb[26].mxu0 }
 0x12d   : > { %v1482_v56 = vadd.f32 %v1481_v54, %v1480_v51  ;;  %v1483_v57 = vpop.f32.mrb[26].mxu1  ;;  %v1420_v58 = vpop.f32.mrb[27].mxu0 }
 0x12e   : > { %v829_v60 = vadd.f32 %v1418_v53, %v1842_v14  ;;  %v1421_v62 = vadd.f32 %v1420_v58, %v1419_v55  ;;  %v1484_v63 = vpop.f32.mrb[27].mxu1 }
 0x12f   : > { %v1485_v0 = vadd.f32 %v1484_v63, %v1483_v57 }
 0x130   : > { %v832_v1 = vadd.f32 %v1421_v62, %v1842_v14  ;;  %v926_v2 = vadd.f32 %v1482_v56, %v829_v60 }
 0x132   : > { %v1422_v3 = vpop.f32.mrb[28].mxu0  ;;  %v1876_v4 = vadd.f32 %v1485_v0, %v832_v1 }
 0x133   : > { %v1486_v5 = vpop.f32.mrb[28].mxu1  ;;  %v1423_v6 = vpop.f32.mrb[29].mxu0 }
 0x134   : > { %v1424_v7 = vadd.f32 %v1423_v6, %v1422_v3  ;;  %v1487_v8 = vpop.f32.mrb[29].mxu1  ;;  %v1425_v9 = vpop.f32.mrb[30].mxu0 }
 0x135   : > { %v1488_v10 = vadd.f32 %v1487_v8, %v1486_v5  ;;  %v1489_v12 = vpop.f32.mrb[30].mxu1  ;;  %v1426_v15 = vpop.f32.mrb[31].mxu0 }
 0x136   : > { %v837_v16 = vadd.f32 %v1424_v7, %v1842_v14  ;;  %v1427_v17 = vadd.f32 %v1426_v15, %v1425_v9  ;;  %v1490_v18 = vpop.f32.mrb[31].mxu1 }
 0x137   : > { %v1491_v19 = vadd.f32 %v1490_v18, %v1489_v12 }
 0x138   : > { %v840_v20 = vadd.f32 %v1427_v17, %v1842_v14  ;;  %v934_v21 = vadd.f32 %v1488_v10, %v837_v16 }
 0x13a   : > { %v1514_v22 = vpop.f32.mrb[32].mxu0  ;;  %v937_v23 = vadd.f32 %v1491_v19, %v840_v20 }
 0x13b   : > { %v983_v24 = vadd.f32 %v1514_v22, %v1852_v43  ;;  %v1522_v25 = vpop.f32.mrb[32].mxu1  ;;  %v974_v26 = vpop.f32.mrb[33].mxu0 }
 0x13c   : > { %v1015_v28 = vadd.f32 %v1522_v25, %v918_v48  ;;  %v975_v31 = vadd.f32 %v974_v26, %v1846_v27  ;;  %v1006_v33 = vpop.f32.mrb[33].mxu1  ;;  %v1515_v34 = vpop.f32.mrb[34].mxu0 }
 0x13d   : > { %v1007_v35 = vadd.f32 %v1006_v33, %v910_v30  ;;  %v986_v36 = vadd.f32 %v1515_v34, %v1854_v45  ;;  %v1523_v37 = vpop.f32.mrb[34].mxu1  ;;  %v977_v38 = vpop.f32.mrb[35].mxu0  ;;  %v1039_v41 = vmax.f32 %v983_v24, 0.0 }
 0x13e   : > { %v1018_v39 = vadd.f32 %v1523_v37, %v921_v50  ;;  %v978_v14 = vadd.f32 %v977_v38, %v1848_v29  ;;  %v1009_v40 = vpop.f32.mrb[35].mxu1  ;;  %v1047_v44 = vmax.f32 %v1015_v28, 0.0  ;;  %v1037_v46 = vmax.f32 %v975_v31, 0.0 }
 0x13f   : > { %v1040_v42 = vmax.f32 %v986_v36, 0.0  ;;  %v1010_v43 = vadd.f32 %v1009_v40, %v1870_v32  ;;  %v1045_v30 = vmax.f32 %v1007_v35, 0.0 }
 0x140   : > { %v1048_v27 = vmax.f32 %v1018_v39, 0.0  ;;  %v1038_v45 = vmax.f32 %v978_v14, 0.0 }
 0x141   : > { %v1325_v47 = vpack.c.bf16 %v1040_v42, %v1039_v41  ;;  %v1046_v29 = vmax.f32 %v1010_v43, 0.0 }
 0x142   : > { %v1345_v48 = vpack.c.bf16 %v1048_v27, %v1047_v44  ;;  %v1320_v49 = vpack.c.bf16 %v1038_v45, %v1037_v46  ;;  %v1518_v50 = vpop.f32.mrb[36].mxu0 }
 0x143   : > { %1357 = vst [vmem:[%s1889_s21 + $0x8] sm:$0xff] %v1325_v47   ;;  %v1340_v32 = vpack.c.bf16 %v1046_v29, %v1045_v30  ;;  %v999_v51 = vadd.f32 %v1518_v50, %v1864_v11  ;;  %v1526_v52 = vpop.f32.mrb[36].mxu1  ;;  %v990_v53 = vpop.f32.mrb[37].mxu0 }
 0x144   : > { %1361 = vst [vmem:[%s1889_s21 + $0x28] sm:$0xff] %v1345_v48   ;;  %1321 = vst [vmem:[%s1889_s21] sm:$0xff] %v1320_v49   ;;  %v1031_v54 = vadd.f32 %v1526_v52, %v934_v21  ;;  %v991_v55 = vadd.f32 %v990_v53, %v1858_v59  ;;  %v1022_v56 = vpop.f32.mrb[37].mxu1  ;;  %v1519_v57 = vpop.f32.mrb[38].mxu0 }
 0x145   : > { %1360 = vst [vmem:[%s1889_s21 + $0x20] sm:$0xff] %v1340_v32   ;;  %v1023_v58 = vadd.f32 %v1022_v56, %v926_v2  ;;  %v1002_v60 = vadd.f32 %v1519_v57, %v1866_v13  ;;  %v1527_v62 = vpop.f32.mrb[38].mxu1  ;;  %v993_v63 = vpop.f32.mrb[39].mxu0  ;;  %v1043_v3 = vmax.f32 %v999_v51, 0.0 }
 0x146   : > { %v1034_v0 = vadd.f32 %v1527_v62, %v937_v23  ;;  %v994_v1 = vadd.f32 %v993_v63, %v1860_v61  ;;  %v1025_v11 = vpop.f32.mrb[39].mxu1  ;;  %v1051_v6 = vmax.f32 %v1031_v54, 0.0  ;;  %v1041_v7 = vmax.f32 %v991_v55, 0.0 }
 0x147   : > { %v1044_v5 = vmax.f32 %v1002_v60, 0.0  ;;  %v1026_v59 = vadd.f32 %v1025_v11, %v1876_v4  ;;  %v1049_v9 = vmax.f32 %v1023_v58, 0.0 }
 0x148   : > { %v1052_v8 = vmax.f32 %v1034_v0, 0.0  ;;  %v1042_v2 = vmax.f32 %v994_v1, 0.0 }
 0x149   : > { %v1335_v13 = vpack.c.bf16 %v1044_v5, %v1043_v3  ;;  %v1050_v10 = vmax.f32 %v1026_v59, 0.0 }
 0x14a   : > { %v1355_v12 = vpack.c.bf16 %v1052_v8, %v1051_v6  ;;  %v1330_v15 = vpack.c.bf16 %v1042_v2, %v1041_v7 }
 0x14b   : > { %1359 = vst [vmem:[%s1889_s21 + $0x18] sm:$0xff] %v1335_v13   ;;  %v1350_v16 = vpack.c.bf16 %v1050_v10, %v1049_v9 }
 0x14c   : > { %1363 = vst [vmem:[%s1889_s21 + $0x38] sm:$0xff] %v1355_v12   ;;  %1358 = vst [vmem:[%s1889_s21 + $0x10] sm:$0xff] %v1330_v15  }
 0x14d   : > { %1362 = vst [vmem:[%s1889_s21 + $0x30] sm:$0xff] %v1350_v16  }
 0x14e PF: > { %s13_s12 = sadd.s32 1, %s1643_s12  }
 0x14f   : > { %p10_p4 = scmp.ge.s32.totalorder %s13_s12, 5  }
 0x151   :  { %12 = sbr.rel (!%p10_p4) target bundleno = 1 (0x1), region = 62 }

// kernel: _lambda_.8
= control target key start
LH: loop header
LB: loop body
LE: loop exit
PB: predicated region body
PF: predicated region fallthrough
CT: control target
= control target key end

     0   :  { %s3199_s1 = inlined_call_operand.vmem [shape: bf16[1152,256], index: 1, kind: input, shape index: {}]   ;;  %s3200_s0 = inlined_call_operand.vmem [shape: bf16[96,1152], index: 0, kind: input, shape index: {}]   ;;  %s3201_s2 = inlined_call_operand.vmem [shape: f32[1,256], index: 2, kind: input, shape index: {}]   ;;  %s3202_s3 = inlined_call_operand.vmem [shape: bf16[96,256], index: 3, kind: output, shape index: {}]  }
   0x1   :  { %v2163_v0 = vld [vmem:[%s3199_s1 + $0x4] ss:$8 sps:$4 sm:$0xff]   ;;  %v2167_v2 = vld [vmem:[%s3199_s1] ss:$8 sps:$4 sm:$0xff]   ;;  %v2169_v4 = vld [vmem:[%s3199_s1 + $0x14] ss:$8 sps:$4 sm:$0xff]  }
   0x2   :  { %v2165_v1 = vld [vmem:[%s3199_s1 + $0x204] ss:$8 sps:$4 sm:$0xff]   ;;  %1227 = vmatprep.subr.bf16.mxu1 %v2163_v0  ;;  %v2168_v3 = vld [vmem:[%s3199_s1 + $0x200] ss:$8 sps:$4 sm:$0xff]   ;;  %v2171_v5 = vld [vmem:[%s3199_s1 + $0x214] ss:$8 sps:$4 sm:$0xff]  }
   0x3   :  { %1413 = vmatprep.subr.bf16.mxu0 %v2165_v1  ;;  %1228 = vmatpush1.bf16.msra.mxu1 %v2167_v2  ;;  %v2173_v6 = vld [vmem:[%s3199_s1 + $0x10] ss:$8 sps:$4 sm:$0xff]   ;;  %v2175_v8 = vld [vmem:[%s3199_s1 + $0x24] ss:$8 sps:$4 sm:$0xff]   ;;  %v2179_v10 = vld [vmem:[%s3199_s1 + $0x20] ss:$8 sps:$4 sm:$0xff]  }
   0x4   :  { %1414 = vmatpush1.bf16.msra.mxu0 %v2168_v3  ;;  %1229 = vmatprep.subr.bf16.mxu1 %v2169_v4  ;;  %v2174_v7 = vld [vmem:[%s3199_s1 + $0x210] ss:$8 sps:$4 sm:$0xff]   ;;  %v2177_v9 = vld [vmem:[%s3199_s1 + $0x224] ss:$8 sps:$4 sm:$0xff]   ;;  %v2180_v11 = vld [vmem:[%s3199_s1 + $0x220] ss:$8 sps:$4 sm:$0xff]  }
   0x5   :  { %1415 = vmatprep.subr.bf16.mxu0 %v2171_v5  ;;  %v2181_v12 = vld [vmem:[%s3199_s1 + $0x34] ss:$8 sps:$4 sm:$0xff]   ;;  %v2185_v14 = vld [vmem:[%s3199_s1 + $0x30] ss:$8 sps:$4 sm:$0xff]   ;;  %v2187_v16 = vld [vmem:[%s3199_s1 + $0x44] ss:$8 sps:$4 sm:$0xff]  }
   0x6   :  { %v2183_v13 = vld [vmem:[%s3199_s1 + $0x234] ss:$8 sps:$4 sm:$0xff]   ;;  %v2186_v15 = vld [vmem:[%s3199_s1 + $0x230] ss:$8 sps:$4 sm:$0xff]   ;;  %v2189_v17 = vld [vmem:[%s3199_s1 + $0x244] ss:$8 sps:$4 sm:$0xff]  }
   0x7   :  { %1230 = vmatpush1.bf16.msra.mxu1 %v2173_v6  ;;  %v2191_v18 = vld [vmem:[%s3199_s1 + $0x40] ss:$8 sps:$4 sm:$0xff]   ;;  %v2193_v20 = vld [vmem:[%s3199_s1 + $0x54] ss:$8 sps:$4 sm:$0xff]   ;;  %v2197_v22 = vld [vmem:[%s3199_s1 + $0x50] ss:$8 sps:$4 sm:$0xff]  }
   0x8   :  { %1416 = vmatpush1.bf16.msra.mxu0 %v2174_v7  ;;  %1231 = vmatprep.subr.bf16.mxu1 %v2175_v8  ;;  %v2192_v19 = vld [vmem:[%s3199_s1 + $0x240] ss:$8 sps:$4 sm:$0xff]   ;;  %v2195_v21 = vld [vmem:[%s3199_s1 + $0x254] ss:$8 sps:$4 sm:$0xff]   ;;  %v2198_v23 = vld [vmem:[%s3199_s1 + $0x250] ss:$8 sps:$4 sm:$0xff]  }
   0x9   :  { %1417 = vmatprep.subr.bf16.mxu0 %v2177_v9  ;;  %v2199_v24 = vld [vmem:[%s3199_s1 + $0x64] ss:$8 sps:$4 sm:$0xff]   ;;  %v2203_v26 = vld [vmem:[%s3199_s1 + $0x60] ss:$8 sps:$4 sm:$0xff]   ;;  %v2205_v28 = vld [vmem:[%s3199_s1 + $0x74] ss:$8 sps:$4 sm:$0xff]  }
   0xa   :  { %v2201_v25 = vld [vmem:[%s3199_s1 + $0x264] ss:$8 sps:$4 sm:$0xff]   ;;  %v2204_v27 = vld [vmem:[%s3199_s1 + $0x260] ss:$8 sps:$4 sm:$0xff]   ;;  %v2207_v29 = vld [vmem:[%s3199_s1 + $0x274] ss:$8 sps:$4 sm:$0xff]  }
   0xb   :  { %1232 = vmatpush1.bf16.msra.mxu1 %v2179_v10  ;;  %v2209_v30 = vld [vmem:[%s3199_s1 + $0x70] ss:$8 sps:$4 sm:$0xff]   ;;  %v2211_v32 = vld [vmem:[%s3199_s1 + $0x84] ss:$8 sps:$4 sm:$0xff]   ;;  %v2215_v34 = vld [vmem:[%s3199_s1 + $0x80] ss:$8 sps:$4 sm:$0xff]  }
   0xc   :  { %1418 = vmatpush1.bf16.msra.mxu0 %v2180_v11  ;;  %1233 = vmatprep.subr.bf16.mxu1 %v2181_v12  ;;  %v2210_v31 = vld [vmem:[%s3199_s1 + $0x270] ss:$8 sps:$4 sm:$0xff]   ;;  %v2213_v33 = vld [vmem:[%s3199_s1 + $0x284] ss:$8 sps:$4 sm:$0xff]   ;;  %v2216_v35 = vld [vmem:[%s3199_s1 + $0x280] ss:$8 sps:$4 sm:$0xff]  }
   0xd   :  { %1419 = vmatprep.subr.bf16.mxu0 %v2183_v13  ;;  %v2217_v36 = vld [vmem:[%s3199_s1 + $0x94] ss:$8 sps:$4 sm:$0xff]   ;;  %v2221_v38 = vld [vmem:[%s3199_s1 + $0x90] ss:$8 sps:$4 sm:$0xff]   ;;  %v2223_v40 = vld [vmem:[%s3199_s1 + $0xa4] ss:$8 sps:$4 sm:$0xff]  }
   0xe   :  { %v2219_v37 = vld [vmem:[%s3199_s1 + $0x294] ss:$8 sps:$4 sm:$0xff]   ;;  %v2222_v39 = vld [vmem:[%s3199_s1 + $0x290] ss:$8 sps:$4 sm:$0xff]   ;;  %v2225_v41 = vld [vmem:[%s3199_s1 + $0x2a4] ss:$8 sps:$4 sm:$0xff]  }
   0xf   :  { %1234 = vmatpush1.bf16.msra.mxu1 %v2185_v14  ;;  %v2227_v42 = vld [vmem:[%s3199_s1 + $0xa0] ss:$8 sps:$4 sm:$0xff]   ;;  %v2229_v44 = vld [vmem:[%s3199_s1 + $0xb4] ss:$8 sps:$4 sm:$0xff]   ;;  %v2233_v46 = vld [vmem:[%s3199_s1 + $0xb0] ss:$8 sps:$4 sm:$0xff]  }
  0x10   :  { %1420 = vmatpush1.bf16.msra.mxu0 %v2186_v15  ;;  %1235 = vmatprep.subr.bf16.mxu1 %v2187_v16  ;;  %v2228_v43 = vld [vmem:[%s3199_s1 + $0x2a0] ss:$8 sps:$4 sm:$0xff]   ;;  %v2231_v45 = vld [vmem:[%s3199_s1 + $0x2b4] ss:$8 sps:$4 sm:$0xff]   ;;  %v2234_v47 = vld [vmem:[%s3199_s1 + $0x2b0] ss:$8 sps:$4 sm:$0xff]  }
  0x11   :  { %1421 = vmatprep.subr.bf16.mxu0 %v2189_v17  ;;  %v2261_v48 = vld [vmem:[%s3200_s0 + $0x4] ss:$36 sps:$4 sm:$0xff]   ;;  %v2267_v51 = vld [vmem:[%s3200_s0 + $0x14] ss:$36 sps:$4 sm:$0xff]   ;;  %v2301_v10 = vld [vmem:[%s3200_s0 + $0x4c] ss:$36 sps:$4 sm:$0xff]  }
  0x12   :  { %v2235_v49 = vld [vmem:[%s3199_s1 + $0xc4] ss:$8 sps:$4 sm:$0xff]   ;;  %1259 = vmatprep.mubr.bf16.mxu1 %v2261_v48  ;;  %v2239_v52 = vld [vmem:[%s3199_s1 + $0xc0] ss:$8 sps:$4 sm:$0xff]   ;;  %v2241_v54 = vld [vmem:[%s3199_s1 + $0xd4] ss:$8 sps:$4 sm:$0xff]   ;;  %1445 = vmatprep.mubr.bf16.mxu0 %v2267_v51 }
  0x13   :  { %1236 = vmatpush1.bf16.msra.mxu1 %v2191_v18  ;;  %v2237_v50 = vld [vmem:[%s3199_s1 + $0x2c4] ss:$8 sps:$4 sm:$0xff]   ;;  %v2240_v53 = vld [vmem:[%s3199_s1 + $0x2c0] ss:$8 sps:$4 sm:$0xff]   ;;  %v2243_v55 = vld [vmem:[%s3199_s1 + $0x2d4] ss:$8 sps:$4 sm:$0xff]  }
  0x14   :  { %1422 = vmatpush1.bf16.msra.mxu0 %v2192_v19  ;;  %1237 = vmatprep.subr.bf16.mxu1 %v2193_v20  ;;  %v2245_v56 = vld [vmem:[%s3199_s1 + $0xd0] ss:$8 sps:$4 sm:$0xff]   ;;  %v2247_v58 = vld [vmem:[%s3199_s1 + $0xe4] ss:$8 sps:$4 sm:$0xff]   ;;  %v2251_v60 = vld [vmem:[%s3199_s1 + $0xe0] ss:$8 sps:$4 sm:$0xff]  }
  0x15   :  { %1423 = vmatprep.subr.bf16.mxu0 %v2195_v21  ;;  %v2246_v57 = vld [vmem:[%s3199_s1 + $0x2d0] ss:$8 sps:$4 sm:$0xff]   ;;  %v2249_v59 = vld [vmem:[%s3199_s1 + $0x2e4] ss:$8 sps:$4 sm:$0xff]   ;;  %v2252_v61 = vld [vmem:[%s3199_s1 + $0x2e0] ss:$8 sps:$4 sm:$0xff]  }
  0x16   :  { %v2253_v62 = vld [vmem:[%s3199_s1 + $0xf4] ss:$8 sps:$4 sm:$0xff]   ;;  %v2257_v0 = vld [vmem:[%s3199_s1 + $0xf0] ss:$8 sps:$4 sm:$0xff]   ;;  %v2264_v2 = vld [vmem:[%s3199_s1 + $0x104] ss:$8 sps:$4 sm:$0xff]  }
  0x17   :  { %1238 = vmatpush1.bf16.msra.mxu1 %v2197_v22  ;;  %v2255_v63 = vld [vmem:[%s3199_s1 + $0x2f4] ss:$8 sps:$4 sm:$0xff]   ;;  %v2258_v1 = vld [vmem:[%s3199_s1 + $0x2f0] ss:$8 sps:$4 sm:$0xff]   ;;  %v2270_v3 = vld [vmem:[%s3199_s1 + $0x304] ss:$8 sps:$4 sm:$0xff]  }
  0x18   :  { %1424 = vmatpush1.bf16.msra.mxu0 %v2198_v23  ;;  %1239 = vmatprep.subr.bf16.mxu1 %v2199_v24  ;;  %v2259_v4 = vld [vmem:[%s3200_s0] ss:$36 sps:$4 sm:$0xff]   ;;  %v2265_v6 = vld [vmem:[%s3200_s0 + $0x10] ss:$36 sps:$4 sm:$0xff]   ;;  %v2305_v17 = vld [vmem:[%s3200_s0 + $0x48] ss:$36 sps:$4 sm:$0xff]  }
  0x19   :  { %1425 = vmatprep.subr.bf16.mxu0 %v2201_v25  ;;  %v2262_v5 = vld [vmem:[%s3199_s1 + $0x100] ss:$8 sps:$4 sm:$0xff]   ;;  %v2273_v8 = vld [vmem:[%s3199_s1 + $0x114] ss:$8 sps:$4 sm:$0xff]   ;;  %v2271_v12 = vld [vmem:[%s3199_s1 + $0x110] ss:$8 sps:$4 sm:$0xff]  }
  0x1a   :  { %v2268_v7 = vld [vmem:[%s3199_s1 + $0x300] ss:$8 sps:$4 sm:$0xff]   ;;  %v2276_v9 = vld [vmem:[%s3199_s1 + $0x314] ss:$8 sps:$4 sm:$0xff]   ;;  %v2274_v13 = vld [vmem:[%s3199_s1 + $0x310] ss:$8 sps:$4 sm:$0xff]  }
  0x1b   :  { %1240 = vmatpush1.bf16.msra.mxu1 %v2203_v26  ;;  %v2303_v11 = vld [vmem:[%s3200_s0 + $0x5c] ss:$36 sps:$4 sm:$0xff]   ;;  %v2279_v14 = vld [vmem:[%s3199_s1 + $0x124] ss:$8 sps:$4 sm:$0xff]   ;;  %v2319_v22 = vld [vmem:[%s3200_s0 + $0x94] ss:$36 sps:$4 sm:$0xff]  }
  0x1c   :  { %1426 = vmatpush1.bf16.msra.mxu0 %v2204_v27  ;;  %1241 = vmatprep.subr.bf16.mxu1 %v2205_v28  ;;  %v2282_v15 = vld [vmem:[%s3199_s1 + $0x324] ss:$8 sps:$4 sm:$0xff]   ;;  %v2277_v16 = vld [vmem:[%s3199_s1 + $0x120] ss:$8 sps:$4 sm:$0xff]   ;;  %v2309_v18 = vld [vmem:[%s3200_s0 + $0x58] ss:$36 sps:$4 sm:$0xff]  }
  0x1d   :  { %1427 = vmatprep.subr.bf16.mxu0 %v2207_v29  ;;  %v2280_v19 = vld [vmem:[%s3199_s1 + $0x320] ss:$8 sps:$4 sm:$0xff]   ;;  %v2285_v20 = vld [vmem:[%s3199_s1 + $0x134] ss:$8 sps:$4 sm:$0xff]   ;;  %v2283_v24 = vld [vmem:[%s3199_s1 + $0x130] ss:$8 sps:$4 sm:$0xff]  }
  0x1e   :  { %v2288_v21 = vld [vmem:[%s3199_s1 + $0x334] ss:$8 sps:$4 sm:$0xff]   ;;  %v2321_v23 = vld [vmem:[%s3200_s0 + $0xa4] ss:$36 sps:$4 sm:$0xff]   ;;  %v2286_v25 = vld [vmem:[%s3199_s1 + $0x330] ss:$8 sps:$4 sm:$0xff]  }
  0x1f   :  { %1242 = vmatpush1.bf16.msra.mxu1 %v2209_v30  ;;  %v2291_v26 = vld [vmem:[%s3199_s1 + $0x144] ss:$8 sps:$4 sm:$0xff]   ;;  %v2289_v28 = vld [vmem:[%s3199_s1 + $0x140] ss:$8 sps:$4 sm:$0xff]   ;;  %v2323_v29 = vld [vmem:[%s3200_s0 + $0x90] ss:$36 sps:$4 sm:$0xff]  }
  0x20   :  { %1428 = vmatpush1.bf16.msra.mxu0 %v2210_v31  ;;  %1243 = vmatprep.subr.bf16.mxu1 %v2211_v32  ;;  %v2294_v27 = vld [vmem:[%s3199_s1 + $0x344] ss:$8 sps:$4 sm:$0xff]   ;;  %v2292_v31 = vld [vmem:[%s3199_s1 + $0x340] ss:$8 sps:$4 sm:$0xff]   ;;  %v2297_v32 = vld [vmem:[%s3199_s1 + $0x154] ss:$8 sps:$4 sm:$0xff]  }
  0x21   :  { %1429 = vmatprep.subr.bf16.mxu0 %v2213_v33  ;;  %v2327_v30 = vld [vmem:[%s3200_s0 + $0xa0] ss:$36 sps:$4 sm:$0xff]   ;;  %v2300_v33 = vld [vmem:[%s3199_s1 + $0x354] ss:$8 sps:$4 sm:$0xff]   ;;  %v2313_v48 = vld [vmem:[%s3199_s1 + $0x170] ss:$8 sps:$4 sm:$0xff]  }
  0x22   :  { %v2330_v51 = vld [vmem:[%s3199_s1 + $0x384] ss:$8 sps:$4 sm:$0xff]  }
  0x23   :  { %1244 = vmatpush1.bf16.msra.mxu1 %v2215_v34  ;;  %v2337_v34 = vld [vmem:[%s3200_s0 + $0xdc] ss:$36 sps:$4 sm:$0xff]  }
  0x24   :  { %1430 = vmatpush1.bf16.msra.mxu0 %v2216_v35  ;;  %1245 = vmatprep.subr.bf16.mxu1 %v2217_v36  ;;  %v2339_v35 = vld [vmem:[%s3200_s0 + $0xec] ss:$36 sps:$4 sm:$0xff]  }
  0x25   :  { %1431 = vmatprep.subr.bf16.mxu0 %v2219_v37  ;;  %v2295_v36 = vld [vmem:[%s3199_s1 + $0x150] ss:$8 sps:$4 sm:$0xff]  }
  0x26   :  { %v2298_v37 = vld [vmem:[%s3199_s1 + $0x350] ss:$8 sps:$4 sm:$0xff]  }
  0x27   :  { %1246 = vmatpush1.bf16.msra.mxu1 %v2221_v38  ;;  %v2308_v38 = vld [vmem:[%s3199_s1 + $0x164] ss:$8 sps:$4 sm:$0xff]  }
  0x28   :  { %1432 = vmatpush1.bf16.msra.mxu0 %v2222_v39  ;;  %1247 = vmatprep.subr.bf16.mxu1 %v2223_v40  ;;  %v2312_v39 = vld [vmem:[%s3199_s1 + $0x364] ss:$8 sps:$4 sm:$0xff]   ;;  %v2306_v40 = vld [vmem:[%s3199_s1 + $0x160] ss:$8 sps:$4 sm:$0xff]  }
  0x29   :  { %1433 = vmatprep.subr.bf16.mxu0 %v2225_v41  ;;  %v2341_v41 = vld [vmem:[%s3200_s0 + $0xd8] ss:$36 sps:$4 sm:$0xff]  }
  0x2b   :  { %1248 = vmatpush1.bf16.msra.mxu1 %v2227_v42  ;;  %v2345_v42 = vld [vmem:[%s3200_s0 + $0xe8] ss:$36 sps:$4 sm:$0xff]  }
  0x2c   :  { %1434 = vmatpush1.bf16.msra.mxu0 %v2228_v43  ;;  %1249 = vmatprep.subr.bf16.mxu1 %v2229_v44  ;;  %v2310_v43 = vld [vmem:[%s3199_s1 + $0x360] ss:$8 sps:$4 sm:$0xff]   ;;  %v2315_v44 = vld [vmem:[%s3199_s1 + $0x174] ss:$8 sps:$4 sm:$0xff]  }
  0x2d   :  { %1435 = vmatprep.subr.bf16.mxu0 %v2231_v45  ;;  %v2318_v45 = vld [vmem:[%s3199_s1 + $0x374] ss:$8 sps:$4 sm:$0xff]  }
  0x2f   :  { %1250 = vmatpush1.bf16.msra.mxu1 %v2233_v46  ;;  %v2355_v46 = vld [vmem:[%s3200_s0 + $0x124] ss:$36 sps:$4 sm:$0xff]  }
  0x30   :  { %1436 = vmatpush1.bf16.msra.mxu0 %v2234_v47  ;;  %1251 = vmatprep.subr.bf16.mxu1 %v2235_v49  ;;  %v2357_v47 = vld [vmem:[%s3200_s0 + $0x134] ss:$36 sps:$4 sm:$0xff]  }
  0x31   :  { %1437 = vmatprep.subr.bf16.mxu0 %v2237_v50  ;;  %v2316_v49 = vld [vmem:[%s3199_s1 + $0x370] ss:$8 sps:$4 sm:$0xff]   ;;  %v2326_v50 = vld [vmem:[%s3199_s1 + $0x184] ss:$8 sps:$4 sm:$0xff]  }
  0x33   :  { %1252 = vmatpush1.bf16.msra.mxu1 %v2239_v52  ;;  %v2324_v52 = vld [vmem:[%s3199_s1 + $0x180] ss:$8 sps:$4 sm:$0xff]  }
  0x34   :  { %1438 = vmatpush1.bf16.msra.mxu0 %v2240_v53  ;;  %1253 = vmatprep.subr.bf16.mxu1 %v2241_v54  ;;  %v2359_v53 = vld [vmem:[%s3200_s0 + $0x120] ss:$36 sps:$4 sm:$0xff]   ;;  %v2363_v54 = vld [vmem:[%s3200_s0 + $0x130] ss:$36 sps:$4 sm:$0xff]  }
  0x35   :  { %1439 = vmatprep.subr.bf16.mxu0 %v2243_v55  ;;  %v2328_v55 = vld [vmem:[%s3199_s1 + $0x380] ss:$8 sps:$4 sm:$0xff]  }
  0x37   :  { %1254 = vmatpush1.bf16.msra.mxu1 %v2245_v56  ;;  %v2333_v56 = vld [vmem:[%s3199_s1 + $0x194] ss:$8 sps:$4 sm:$0xff]  }
  0x38   :  { %1440 = vmatpush1.bf16.msra.mxu0 %v2246_v57  ;;  %1255 = vmatprep.subr.bf16.mxu1 %v2247_v58  ;;  %v2336_v57 = vld [vmem:[%s3199_s1 + $0x394] ss:$8 sps:$4 sm:$0xff]   ;;  %v2373_v58 = vld [vmem:[%s3200_s0 + $0x16c] ss:$36 sps:$4 sm:$0xff]  }
  0x39   :  { %1441 = vmatprep.subr.bf16.mxu0 %v2249_v59  ;;  %v2375_v59 = vld [vmem:[%s3200_s0 + $0x17c] ss:$36 sps:$4 sm:$0xff]  }
  0x3b   :  { %1256 = vmatpush1.bf16.msra.mxu1 %v2251_v60  ;;  %v2331_v60 = vld [vmem:[%s3199_s1 + $0x190] ss:$8 sps:$4 sm:$0xff]  }
  0x3c   :  { %1442 = vmatpush1.bf16.msra.mxu0 %v2252_v61  ;;  %1257 = vmatprep.subr.bf16.mxu1 %v2253_v62  ;;  %v2334_v61 = vld [vmem:[%s3199_s1 + $0x390] ss:$8 sps:$4 sm:$0xff]   ;;  %v2344_v62 = vld [vmem:[%s3199_s1 + $0x1a4] ss:$8 sps:$4 sm:$0xff]  }
  0x3d   :  { %1443 = vmatprep.subr.bf16.mxu0 %v2255_v63  ;;  %v2348_v63 = vld [vmem:[%s3199_s1 + $0x3a4] ss:$8 sps:$4 sm:$0xff]  }
  0x3f   :  { %1258 = vmatpush1.bf16.msra.mxu1 %v2257_v0  ;;  %v2342_v0 = vld [vmem:[%s3199_s1 + $0x1a0] ss:$8 sps:$4 sm:$0xff]  }
  0x40   :  { %1444 = vmatpush1.bf16.msra.mxu0 %v2258_v1  ;;  %1320 = vmatprep.subr.bf16.mxu1 %v2264_v2  ;;  %v2346_v1 = vld [vmem:[%s3199_s1 + $0x3a0] ss:$8 sps:$4 sm:$0xff]  }
  0x41   :  { %1506 = vmatprep.subr.bf16.mxu0 %v2270_v3  ;;  %v2377_v2 = vld [vmem:[%s3200_s0 + $0x168] ss:$36 sps:$4 sm:$0xff]   ;;  %v2381_v3 = vld [vmem:[%s3200_s0 + $0x178] ss:$36 sps:$4 sm:$0xff]  }
  0x42   :  { %1260 = vmatmul.mubr.bf16.vlgmr.msra.gmra.mrb[0].mxu1 %v2259_v4  ;;  %v2351_v4 = vld [vmem:[%s3199_s1 + $0x1b4] ss:$8 sps:$4 sm:$0xff]  }
  0x43   :  { %1446 = vmatmul.mubr.bf16.vlgmr.msra.gmra.mrb[0].mxu0 %v2265_v6  ;;  %1321 = vmatpush1.bf16.msra.mxu1 %v2262_v5  ;;  %v2354_v5 = vld [vmem:[%s3199_s1 + $0x3b4] ss:$8 sps:$4 sm:$0xff]   ;;  %v2393_v6 = vld [vmem:[%s3200_s0 + $0xc] ss:$36 sps:$4 sm:$0xff]  }
  0x44   :  { %1507 = vmatpush1.bf16.msra.mxu0 %v2268_v7  ;;  %1322 = vmatprep.subr.bf16.mxu1 %v2273_v8  ;;  %v2396_v7 = vld [vmem:[%s3200_s0 + $0x1c] ss:$36 sps:$4 sm:$0xff]   ;;  %v2349_v8 = vld [vmem:[%s3199_s1 + $0x1b0] ss:$8 sps:$4 sm:$0xff]  }
  0x45   :  { %1508 = vmatprep.subr.bf16.mxu0 %v2276_v9  ;;  %1269 = vmatprep.mubr.bf16.mxu1 %v2301_v10  ;;  %v2352_v9 = vld [vmem:[%s3199_s1 + $0x3b0] ss:$8 sps:$4 sm:$0xff]   ;;  %v2362_v10 = vld [vmem:[%s3199_s1 + $0x1c4] ss:$8 sps:$4 sm:$0xff]  }
  0x46   :  { %1455 = vmatprep.mubr.bf16.mxu0 %v2303_v11  ;;  %v2366_v11 = vld [vmem:[%s3199_s1 + $0x3c4] ss:$8 sps:$4 sm:$0xff]  }
  0x47   :  { %1323 = vmatpush1.bf16.msra.mxu1 %v2271_v12  ;;  %v2360_v12 = vld [vmem:[%s3199_s1 + $0x1c0] ss:$8 sps:$4 sm:$0xff]  }
  0x48   :  { %1509 = vmatpush1.bf16.msra.mxu0 %v2274_v13  ;;  %1324 = vmatprep.subr.bf16.mxu1 %v2279_v14  ;;  %v2364_v13 = vld [vmem:[%s3199_s1 + $0x3c0] ss:$8 sps:$4 sm:$0xff]   ;;  %v2369_v14 = vld [vmem:[%s3199_s1 + $0x1d4] ss:$8 sps:$4 sm:$0xff]  }
  0x49   :  { %1510 = vmatprep.subr.bf16.mxu0 %v2282_v15  ;;  %v2372_v15 = vld [vmem:[%s3199_s1 + $0x3d4] ss:$8 sps:$4 sm:$0xff]  }
  0x4a   :  { %1270 = vmatmul.mubr.bf16.gmra.mrb[4].mxu1 %v2305_v17  ;;  %v2370_v17 = vld [vmem:[%s3199_s1 + $0x3d0] ss:$8 sps:$4 sm:$0xff]  }
  0x4b   :  { %1456 = vmatmul.mubr.bf16.gmra.mrb[4].mxu0 %v2309_v18  ;;  %1325 = vmatpush1.bf16.msra.mxu1 %v2277_v16  ;;  %v2367_v16 = vld [vmem:[%s3199_s1 + $0x1d0] ss:$8 sps:$4 sm:$0xff]   ;;  %v2380_v18 = vld [vmem:[%s3199_s1 + $0x1e4] ss:$8 sps:$4 sm:$0xff]  }
  0x4c   :  { %1511 = vmatpush1.bf16.msra.mxu0 %v2280_v19  ;;  %1326 = vmatprep.subr.bf16.mxu1 %v2285_v20  ;;  %v2384_v19 = vld [vmem:[%s3199_s1 + $0x3e4] ss:$8 sps:$4 sm:$0xff]   ;;  %v2378_v20 = vld [vmem:[%s3199_s1 + $0x1e0] ss:$8 sps:$4 sm:$0xff]  }
  0x4d   :  { %1512 = vmatprep.subr.bf16.mxu0 %v2288_v21  ;;  %1279 = vmatprep.mubr.bf16.mxu1 %v2319_v22  ;;  %v2382_v21 = vld [vmem:[%s3199_s1 + $0x3e0] ss:$8 sps:$4 sm:$0xff]   ;;  %v2387_v22 = vld [vmem:[%s3199_s1 + $0x1f4] ss:$8 sps:$4 sm:$0xff]  }
  0x4e   :  { %1465 = vmatprep.mubr.bf16.mxu0 %v2321_v23  ;;  %v2390_v23 = vld [vmem:[%s3199_s1 + $0x3f4] ss:$8 sps:$4 sm:$0xff]  }
  0x4f   :  { %1327 = vmatpush1.bf16.msra.mxu1 %v2283_v24  ;;  %v2385_v24 = vld [vmem:[%s3199_s1 + $0x1f0] ss:$8 sps:$4 sm:$0xff]  }
  0x50   :  { %1513 = vmatpush1.bf16.msra.mxu0 %v2286_v25  ;;  %1328 = vmatprep.subr.bf16.mxu1 %v2291_v26  ;;  %v2388_v25 = vld [vmem:[%s3199_s1 + $0x3f0] ss:$8 sps:$4 sm:$0xff]   ;;  %v2399_v26 = vld [vmem:[%s3199_s1 + $0x404] ss:$8 sps:$4 sm:$0xff]  }
  0x51   :  { %1514 = vmatprep.subr.bf16.mxu0 %v2294_v27  ;;  %v2391_v27 = vld [vmem:[%s3200_s0 + $0x8] ss:$36 sps:$4 sm:$0xff]  }
  0x52   :  { %1280 = vmatmul.mubr.bf16.gmra.mrb[8].mxu1 %v2323_v29  ;;  %v2397_v29 = vld [vmem:[%s3199_s1 + $0x400] ss:$8 sps:$4 sm:$0xff]  }
  0x53   :  { %1466 = vmatmul.mubr.bf16.gmra.mrb[8].mxu0 %v2327_v30  ;;  %1329 = vmatpush1.bf16.msra.mxu1 %v2289_v28  ;;  %v2394_v28 = vld [vmem:[%s3200_s0 + $0x18] ss:$36 sps:$4 sm:$0xff]  }
  0x54   :  { %1515 = vmatpush1.bf16.msra.mxu0 %v2292_v31  ;;  %1330 = vmatprep.subr.bf16.mxu1 %v2297_v32  ;;  %v2402_v30 = vld [vmem:[%s3199_s1 + $0x414] ss:$8 sps:$4 sm:$0xff]   ;;  %v2405_v32 = vld [vmem:[%s3200_s0 + $0x64] ss:$36 sps:$4 sm:$0xff]  }
  0x55   :  { %1516 = vmatprep.subr.bf16.mxu0 %v2300_v33  ;;  %1289 = vmatprep.mubr.bf16.mxu1 %v2337_v34  ;;  %v2403_v31 = vld [vmem:[%s3200_s0 + $0x54] ss:$36 sps:$4 sm:$0xff]   ;;  %v2411_v34 = vld [vmem:[%s3199_s1 + $0x424] ss:$8 sps:$4 sm:$0xff]  }
  0x56   :  { %1475 = vmatprep.mubr.bf16.mxu0 %v2339_v35  ;;  %v2400_v33 = vld [vmem:[%s3199_s1 + $0x410] ss:$8 sps:$4 sm:$0xff]  }
  0x57   :  { %1331 = vmatpush1.bf16.msra.mxu1 %v2295_v36  ;;  %v2407_v35 = vld [vmem:[%s3200_s0 + $0x50] ss:$36 sps:$4 sm:$0xff]   ;;  %v2408_v36 = vld [vmem:[%s3200_s0 + $0x60] ss:$36 sps:$4 sm:$0xff]  }
  0x58   :  { %1517 = vmatpush1.bf16.msra.mxu0 %v2298_v37  ;;  %1332 = vmatprep.subr.bf16.mxu1 %v2308_v38  ;;  %v2409_v37 = vld [vmem:[%s3199_s1 + $0x420] ss:$8 sps:$4 sm:$0xff]  }
  0x59   :  { %1518 = vmatprep.subr.bf16.mxu0 %v2312_v39  ;;  %v2412_v38 = vld [vmem:[%s3200_s0 + $0x9c] ss:$36 sps:$4 sm:$0xff]   ;;  %v2414_v39 = vld [vmem:[%s3200_s0 + $0xac] ss:$36 sps:$4 sm:$0xff]  }
  0x5a   :  { %1290 = vmatmul.mubr.bf16.gmra.mrb[12].mxu1 %v2341_v41  ;;  %v2418_v41 = vld [vmem:[%s3199_s1 + $0x430] ss:$8 sps:$4 sm:$0xff]  }
  0x5b   :  { %1476 = vmatmul.mubr.bf16.gmra.mrb[12].mxu0 %v2345_v42  ;;  %1333 = vmatpush1.bf16.msra.mxu1 %v2306_v40  ;;  %v2420_v40 = vld [vmem:[%s3199_s1 + $0x434] ss:$8 sps:$4 sm:$0xff]   ;;  %v2429_v42 = vld [vmem:[%s3199_s1 + $0x444] ss:$8 sps:$4 sm:$0xff]  }
  0x5c   :  { %1519 = vmatpush1.bf16.msra.mxu0 %v2310_v43  ;;  %1334 = vmatprep.subr.bf16.mxu1 %v2315_v44  ;;  %v2416_v43 = vld [vmem:[%s3200_s0 + $0x98] ss:$36 sps:$4 sm:$0xff]   ;;  %v2417_v44 = vld [vmem:[%s3200_s0 + $0xa8] ss:$36 sps:$4 sm:$0xff]  }
  0x5d   :  { %1520 = vmatprep.subr.bf16.mxu0 %v2318_v45  ;;  %1299 = vmatprep.mubr.bf16.mxu1 %v2355_v46  ;;  %v2421_v45 = vld [vmem:[%s3200_s0 + $0xe4] ss:$36 sps:$4 sm:$0xff]   ;;  %v2423_v46 = vld [vmem:[%s3200_s0 + $0xf4] ss:$36 sps:$4 sm:$0xff]  }
  0x5e   :  { %1485 = vmatprep.mubr.bf16.mxu0 %v2357_v47  ;;  %v2427_v47 = vld [vmem:[%s3199_s1 + $0x440] ss:$8 sps:$4 sm:$0xff]  }
  0x5f   :  { %1335 = vmatpush1.bf16.msra.mxu1 %v2313_v48  ;;  %v2432_v48 = vld [vmem:[%s3199_s1 + $0x454] ss:$8 sps:$4 sm:$0xff]  }
  0x60   :  { %1521 = vmatpush1.bf16.msra.mxu0 %v2316_v49  ;;  %1336 = vmatprep.subr.bf16.mxu1 %v2326_v50  ;;  %v2430_v49 = vld [vmem:[%s3199_s1 + $0x450] ss:$8 sps:$4 sm:$0xff]   ;;  %v2441_v50 = vld [vmem:[%s3199_s1 + $0x464] ss:$8 sps:$4 sm:$0xff]  }
  0x61   :  { %1522 = vmatprep.subr.bf16.mxu0 %v2330_v51  ;;  %v2425_v51 = vld [vmem:[%s3200_s0 + $0xe0] ss:$36 sps:$4 sm:$0xff]  }
  0x62   :  { %1300 = vmatmul.mubr.bf16.gmra.mrb[16].mxu1 %v2359_v53  ;;  %v2433_v53 = vld [vmem:[%s3200_s0 + $0x12c] ss:$36 sps:$4 sm:$0xff]  }
  0x63   :  { %1486 = vmatmul.mubr.bf16.gmra.mrb[16].mxu0 %v2363_v54  ;;  %1337 = vmatpush1.bf16.msra.mxu1 %v2324_v52  ;;  %v2426_v52 = vld [vmem:[%s3200_s0 + $0xf0] ss:$36 sps:$4 sm:$0xff]   ;;  %v2435_v54 = vld [vmem:[%s3200_s0 + $0x13c] ss:$36 sps:$4 sm:$0xff]  }
  0x64   :  { %1523 = vmatpush1.bf16.msra.mxu0 %v2328_v55  ;;  %1338 = vmatprep.subr.bf16.mxu1 %v2333_v56  ;;  %v2439_v55 = vld [vmem:[%s3199_s1 + $0x460] ss:$8 sps:$4 sm:$0xff]   ;;  %v2450_v56 = vld [vmem:[%s3199_s1 + $0x474] ss:$8 sps:$4 sm:$0xff]  }
  0x65   :  { %1524 = vmatprep.subr.bf16.mxu0 %v2336_v57  ;;  %1309 = vmatprep.mubr.bf16.mxu1 %v2373_v58  ;;  %v2448_v57 = vld [vmem:[%s3199_s1 + $0x470] ss:$8 sps:$4 sm:$0xff]   ;;  %v2437_v58 = vld [vmem:[%s3200_s0 + $0x128] ss:$36 sps:$4 sm:$0xff]  }
  0x66   :  { %1495 = vmatprep.mubr.bf16.mxu0 %v2375_v59  ;;  %v2438_v59 = vld [vmem:[%s3200_s0 + $0x138] ss:$36 sps:$4 sm:$0xff]  }
  0x67   :  { %1339 = vmatpush1.bf16.msra.mxu1 %v2331_v60  ;;  %v2442_v60 = vld [vmem:[%s3200_s0 + $0x174] ss:$36 sps:$4 sm:$0xff]  }
  0x68   :  { %1525 = vmatpush1.bf16.msra.mxu0 %v2334_v61  ;;  %1340 = vmatprep.subr.bf16.mxu1 %v2344_v62  ;;  %v2444_v61 = vld [vmem:[%s3200_s0 + $0x184] ss:$36 sps:$4 sm:$0xff]   ;;  %v2446_v62 = vld [vmem:[%s3200_s0 + $0x170] ss:$36 sps:$4 sm:$0xff]  }
  0x69   :  { %1526 = vmatprep.subr.bf16.mxu0 %v2348_v63  ;;  %v2447_v63 = vld [vmem:[%s3200_s0 + $0x180] ss:$36 sps:$4 sm:$0xff]  }
  0x6a   :  { %1310 = vmatmul.mubr.bf16.gmra.mrb[20].mxu1 %v2377_v2  ;;  %v2452_v2 = vld [vmem:[%s3200_s0 + $0xf8] ss:$36 sps:$4 sm:$0xff]  }
  0x6b   :  { %1496 = vmatmul.mubr.bf16.gmra.mrb[20].mxu0 %v2381_v3  ;;  %1341 = vmatpush1.bf16.msra.mxu1 %v2342_v0  ;;  %v2457_v0 = vmov 0   ;;  %v2453_v3 = vld [vmem:[%s3200_s0 + $0x68] ss:$36 sps:$4 sm:$0xff]  }
  0x6c   :  { %1527 = vmatpush1.bf16.msra.mxu0 %v2346_v1  ;;  %1342 = vmatprep.subr.bf16.mxu1 %v2351_v4  ;;  %v2451_v1 = vld [vmem:[%s3200_s0 + $0x20] ss:$36 sps:$4 sm:$0xff]  }
  0x6d   :  { %1528 = vmatprep.subr.bf16.mxu0 %v2354_v5  ;;  %1352 = vmatprep.mubr.bf16.mxu1 %v2393_v6  ;;  %v2454_v4 = vld [vmem:[%s3200_s0 + $0x140] ss:$36 sps:$4 sm:$0xff]   ;;  %v2455_v5 = vld [vmem:[%s3200_s0 + $0xb0] ss:$36 sps:$4 sm:$0xff]   ;;  %v2456_v6 = vld [vmem:[%s3200_s0 + $0x188] ss:$36 sps:$4 sm:$0xff]  }
  0x6e   :  { %1538 = vmatprep.mubr.bf16.mxu0 %v2396_v7 }
  0x6f   :  { %1343 = vmatpush1.bf16.msra.mxu1 %v2349_v8 }
  0x70   :  { %1529 = vmatpush1.bf16.msra.mxu0 %v2352_v9  ;;  %1344 = vmatprep.subr.bf16.mxu1 %v2362_v10 }
  0x71   :  { %1530 = vmatprep.subr.bf16.mxu0 %v2366_v11 }
  0x73   :  { %1345 = vmatpush1.bf16.msra.mxu1 %v2360_v12 }
  0x74   :  { %1531 = vmatpush1.bf16.msra.mxu0 %v2364_v13  ;;  %1346 = vmatprep.subr.bf16.mxu1 %v2369_v14  ;;  %v221_v14 = vlaneseq }
  0x75   :  { %1532 = vmatprep.subr.bf16.mxu0 %v2372_v15 }
  0x77   :  { %1347 = vmatpush1.bf16.msra.mxu1 %v2367_v16  ;;  %v222_v16 = vshrl.u32 %v221_v14, 7 }
  0x78   :  { %1533 = vmatpush1.bf16.msra.mxu0 %v2370_v17  ;;  %1348 = vmatprep.subr.bf16.mxu1 %v2380_v18 }
  0x79   :  { %1534 = vmatprep.subr.bf16.mxu0 %v2384_v19 }
  0x7b   :  { %1349 = vmatpush1.bf16.msra.mxu1 %v2378_v20  ;;  %v223_v20 = vsub.s32 0, %v222_v16 }
  0x7c   :  { %1535 = vmatpush1.bf16.msra.mxu0 %v2382_v21  ;;  %1350 = vmatprep.subr.bf16.mxu1 %v2387_v22  ;;  %v219_v22 = vld [vmem:[%s3201_s2] sm:$0x3] }
  0x7d   :  { %1536 = vmatprep.subr.bf16.mxu0 %v2390_v23  ;;  %v227_v23 = vsub.s32 1, %v222_v16 }
  0x7f   :  { %1351 = vmatpush1.bf16.msra.mxu1 %v2385_v24  ;;  %v3099_v24 = vrot.slane %v219_v22, %v223_v20 }
  0x80   :  { %1537 = vmatpush1.bf16.msra.mxu0 %v2388_v25  ;;  %2026 = vmatprep.subr.bf16.mxu1 %v2399_v26  ;;  %v3101_v25 = vrot.slane %v219_v22, %v227_v23 }
  0x81   :  { %1599 = vmatprep.subr.bf16.mxu0 %v2399_v26 }
  0x82   :  { %1353 = vmatmul.mubr.bf16.vlgmr.msra.gmra.mrb[0].mxu1 %v2391_v27 }
  0x83   :  { %1539 = vmatmul.mubr.bf16.vlgmr.msra.gmra.mrb[0].mxu0 %v2394_v28  ;;  %2034 = vmatpush1.bf16.msra.mxu1 %v2397_v29 }
  0x84   :  { %1600 = vmatpush1.bf16.msra.mxu0 %v2397_v29  ;;  %2027 = vmatprep.subr.bf16.mxu1 %v2402_v30 }
  0x85   :  { %1601 = vmatprep.subr.bf16.mxu0 %v2402_v30  ;;  %1362 = vmatprep.mubr.bf16.mxu1 %v2403_v31 }
  0x86   :  { %1548 = vmatprep.mubr.bf16.mxu0 %v2405_v32 }
  0x87   :  { %2035 = vmatpush1.bf16.msra.mxu1 %v2400_v33 }
  0x88   :  { %1602 = vmatpush1.bf16.msra.mxu0 %v2400_v33  ;;  %2028 = vmatprep.subr.bf16.mxu1 %v2411_v34 }
  0x89   :  { %1603 = vmatprep.subr.bf16.mxu0 %v2411_v34 }
  0x8a   :  { %1363 = vmatmul.mubr.bf16.gmra.mrb[4].mxu1 %v2407_v35 }
  0x8b   :  { %1549 = vmatmul.mubr.bf16.gmra.mrb[4].mxu0 %v2408_v36  ;;  %2036 = vmatpush1.bf16.msra.mxu1 %v2409_v37 }
  0x8c   :  { %1604 = vmatpush1.bf16.msra.mxu0 %v2409_v37  ;;  %1372 = vmatprep.mubr.bf16.mxu1 %v2412_v38 }
  0x8d   :  { %1558 = vmatprep.mubr.bf16.mxu0 %v2414_v39  ;;  %1605 = vmatprep.subr.bf16.mxu0 %v2420_v40 }
  0x8e   :  { %2029 = vmatprep.subr.bf16.mxu1 %v2420_v40 }
  0x8f   :  { %2037 = vmatpush1.bf16.msra.mxu1 %v2418_v41 }
  0x90   :  { %1606 = vmatpush1.bf16.msra.mxu0 %v2418_v41  ;;  %2030 = vmatprep.subr.bf16.mxu1 %v2429_v42 }
  0x91   :  { %1607 = vmatprep.subr.bf16.mxu0 %v2429_v42 }
  0x92   :  { %1373 = vmatmul.mubr.bf16.gmra.mrb[8].mxu1 %v2416_v43 }
  0x93   :  { %1559 = vmatmul.mubr.bf16.gmra.mrb[8].mxu0 %v2417_v44  ;;  %1382 = vmatprep.mubr.bf16.mxu1 %v2421_v45 }
  0x94   :  { %1568 = vmatprep.mubr.bf16.mxu0 %v2423_v46  ;;  %1608 = vmatpush1.bf16.msra.mxu0 %v2427_v47 }
  0x95   :  { %2038 = vmatpush1.bf16.msra.mxu1 %v2427_v47  ;;  %1609 = vmatprep.subr.bf16.mxu0 %v2432_v48 }
  0x96   :  { %2031 = vmatprep.subr.bf16.mxu1 %v2432_v48 }
  0x98   :  { %1610 = vmatpush1.bf16.msra.mxu0 %v2430_v49 }
  0x99   :  { %2039 = vmatpush1.bf16.msra.mxu1 %v2430_v49  ;;  %1611 = vmatprep.subr.bf16.mxu0 %v2441_v50 }
  0x9a   :  { %2032 = vmatprep.subr.bf16.mxu1 %v2441_v50  ;;  %1383 = vmatmul.mubr.bf16.gmra.mrb[12].mxu1 %v2425_v51 }
  0x9b   :  { %1569 = vmatmul.mubr.bf16.gmra.mrb[12].mxu0 %v2426_v52  ;;  %1392 = vmatprep.mubr.bf16.mxu1 %v2433_v53 }
  0x9c   :  { %1578 = vmatprep.mubr.bf16.mxu0 %v2435_v54  ;;  %1612 = vmatpush1.bf16.msra.mxu0 %v2439_v55 }
  0x9d   :  { %2040 = vmatpush1.bf16.msra.mxu1 %v2439_v55  ;;  %1613 = vmatprep.subr.bf16.mxu0 %v2450_v56 }
  0x9e   :  { %2033 = vmatprep.subr.bf16.mxu1 %v2450_v56 }
  0xa0   :  { %1614 = vmatpush1.bf16.msra.mxu0 %v2448_v57 }
  0xa1   :  { %2041 = vmatpush1.bf16.msra.mxu1 %v2448_v57 }
  0xa2   :  { %1393 = vmatmul.mubr.bf16.gmra.mrb[16].mxu1 %v2437_v58 }
  0xa3   :  { %1579 = vmatmul.mubr.bf16.gmra.mrb[16].mxu0 %v2438_v59  ;;  %1402 = vmatprep.mubr.bf16.mxu1 %v2442_v60 }
  0xa4   :  { %1588 = vmatprep.mubr.bf16.mxu0 %v2444_v61 }
  0xaa   :  { %1403 = vmatmul.mubr.bf16.gmra.mrb[20].mxu1 %v2446_v62 }
  0xab   :  { %1589 = vmatmul.mubr.bf16.gmra.mrb[20].mxu0 %v2447_v63  ;;  %1661 = vmatprep.mubr.bf16.mxu1 %v2457_v0 }
  0xac   :  { %1631 = vmatprep.mubr.bf16.mxu0 %v2457_v0 }
  0xb2   :  { %1662 = vmatmul.mubr.bf16.vlgmr.msra.gmra.mrb[24].mxu1 %v2452_v2 }
  0xb3   :  { %1632 = vmatmul.mubr.bf16.vlgmr.msra.gmra.mrb[0].mxu0 %v2451_v1  ;;  %1671 = vmatprep.mubr.bf16.mxu1 %v2457_v0 }
  0xb4   :  { %1641 = vmatprep.mubr.bf16.mxu0 %v2457_v0 }
  0xba   :  { %1672 = vmatmul.mubr.bf16.gmra.mrb[28].mxu1 %v2454_v4 }
  0xbb   :  { %1642 = vmatmul.mubr.bf16.gmra.mrb[4].mxu0 %v2453_v3  ;;  %1681 = vmatprep.mubr.bf16.mxu1 %v2457_v0 }
  0xbc   :  { %1651 = vmatprep.mubr.bf16.mxu0 %v2457_v0 }
  0xc2   :  { %1682 = vmatmul.mubr.bf16.gmra.mrb[32].mxu1 %v2456_v6 }
  0xc3   :  { %1652 = vmatmul.mubr.bf16.gmra.mrb[8].mxu0 %v2455_v5 }
 0x155   :  { %v3072_v7 = vpop.f32.mrb[0].mxu1 }
 0x156   :  { %v3074_v8 = vpop.f32.mrb[1].mxu1  ;;  %v2042_v22 = vadd.f32 %v3072_v7, %v3099_v24 }
 0x157   :  { %v3076_v9 = vpop.f32.mrb[2].mxu1  ;;  %v2044_v23 = vadd.f32 %v3074_v8, %v3101_v25 }
 0x158   :  { %v3078_v10 = vpop.f32.mrb[3].mxu1 }
 0x15d   :  { %v3080_v11 = vpop.f32.mrb[4].mxu1 }
 0x15e   :  { %v3082_v12 = vpop.f32.mrb[5].mxu1 }
 0x15f   :  { %v3084_v13 = vpop.f32.mrb[6].mxu1 }
 0x160   :  { %v3086_v15 = vpop.f32.mrb[7].mxu1 }
 0x165   :  { %v3088_v17 = vpop.f32.mrb[8].mxu1 }
 0x166   :  { %v3090_v18 = vpop.f32.mrb[9].mxu1 }
 0x167   :  { %v3092_v19 = vpop.f32.mrb[10].mxu1 }
 0x168   :  { %v3094_v21 = vpop.f32.mrb[11].mxu1 }
 0x16d   :  { %v1384_v26 = vpop.f32.mrb[12].mxu1 }
 0x16e   :  { %v1570_v27 = vpop.f32.mrb[12].mxu0  ;;  %v2066_v28 = vadd.f32 %v1384_v26, %v3099_v24  ;;  %v1386_v29 = vpop.f32.mrb[13].mxu1 }
 0x16f   :  { %v1572_v30 = vpop.f32.mrb[13].mxu0  ;;  %v2069_v31 = vadd.f32 %v1386_v29, %v3101_v25  ;;  %v1388_v32 = vpop.f32.mrb[14].mxu1 }
 0x170   :  { %v1574_v33 = vpop.f32.mrb[14].mxu0  ;;  %v2067_v34 = vadd.f32 %v2066_v28, %v1570_v27  ;;  %v2072_v35 = vadd.f32 %v1388_v32, %v3099_v24  ;;  %v1390_v36 = vpop.f32.mrb[15].mxu1  ;;  %v2046_v28 = vadd.f32 %v3076_v9, %v3099_v24 }
 0x171   :  { %v1576_v37 = vpop.f32.mrb[15].mxu0  ;;  %v2070_v38 = vadd.f32 %v2069_v31, %v1572_v30  ;;  %v2075_v39 = vadd.f32 %v1390_v36, %v3101_v25 }
 0x172   :  { %v2073_v40 = vadd.f32 %v2072_v35, %v1574_v33  ;;  %v2048_v33 = vadd.f32 %v3078_v10, %v3101_v25 }
 0x173   :  { %v2076_v41 = vadd.f32 %v2075_v39, %v1576_v37 }
 0x175   :  { %v1394_v42 = vpop.f32.mrb[16].mxu1 }
 0x176   :  { %v1580_v43 = vpop.f32.mrb[16].mxu0  ;;  %v2078_v44 = vadd.f32 %v1394_v42, %v3099_v24  ;;  %v1396_v45 = vpop.f32.mrb[17].mxu1 }
 0x177   :  { %v1582_v46 = vpop.f32.mrb[17].mxu0  ;;  %v2081_v47 = vadd.f32 %v1396_v45, %v3101_v25  ;;  %v1398_v48 = vpop.f32.mrb[18].mxu1 }
 0x178   :  { %v1584_v49 = vpop.f32.mrb[18].mxu0  ;;  %v3109_v50 = vadd.f32 %v2078_v44, %v1580_v43  ;;  %v2084_v51 = vadd.f32 %v1398_v48, %v3099_v24  ;;  %v1400_v52 = vpop.f32.mrb[19].mxu1 }
 0x179   :  { %v1586_v53 = vpop.f32.mrb[19].mxu0  ;;  %v3112_v54 = vadd.f32 %v2081_v47, %v1582_v46  ;;  %v2087_v55 = vadd.f32 %v1400_v52, %v3101_v25 }
 0x17a   :  { %v3115_v56 = vadd.f32 %v2084_v51, %v1584_v49 }
 0x17b   :  { %v3117_v57 = vadd.f32 %v2087_v55, %v1586_v53  ;;  %v2052_v55 = vadd.f32 %v3082_v12, %v3101_v25 }
 0x17d   :  { %v1404_v58 = vpop.f32.mrb[20].mxu1 }
 0x17e   :  { %v1590_v59 = vpop.f32.mrb[20].mxu0  ;;  %v2090_v60 = vadd.f32 %v1404_v58, %v3099_v24  ;;  %v1406_v61 = vpop.f32.mrb[21].mxu1 }
 0x17f   :  { %v1592_v62 = vpop.f32.mrb[21].mxu0  ;;  %v2093_v63 = vadd.f32 %v1406_v61, %v3101_v25  ;;  %v1408_v0 = vpop.f32.mrb[22].mxu1 }
 0x180   :  { %v1594_v1 = vpop.f32.mrb[22].mxu0  ;;  %v3121_v2 = vadd.f32 %v2090_v60, %v1590_v59  ;;  %v2096_v3 = vadd.f32 %v1408_v0, %v3099_v24  ;;  %v1410_v4 = vpop.f32.mrb[23].mxu1  ;;  %v2054_v60 = vadd.f32 %v3084_v13, %v3099_v24 }
 0x181   :  { %v1596_v5 = vpop.f32.mrb[23].mxu0  ;;  %v3124_v6 = vadd.f32 %v2093_v63, %v1592_v62  ;;  %v2099_v14 = vadd.f32 %v1410_v4, %v3101_v25  ;;  %v2056_v63 = vadd.f32 %v3086_v15, %v3101_v25 }
 0x182   :  { %v3127_v16 = vadd.f32 %v2096_v3, %v1594_v1 }
 0x183   :  { %v3129_v20 = vadd.f32 %v2099_v14, %v1596_v5 }
 0x185   :  { %v1663_v27 = vpop.f32.mrb[24].mxu1 }
 0x186   :  { %v1633_v26 = vpop.f32.mrb[0].mxu0  ;;  %v2068_v30 = vadd.f32 %v2067_v34, %v1663_v27  ;;  %v1665_v32 = vpop.f32.mrb[25].mxu1 }
 0x187   :  { %v2043_v29 = vadd.f32 %v2042_v22, %v1633_v26  ;;  %v1635_v31 = vpop.f32.mrb[1].mxu0  ;;  %v2071_v36 = vadd.f32 %v2070_v38, %v1665_v32  ;;  %v1667_v39 = vpop.f32.mrb[26].mxu1  ;;  %v2050_v38 = vadd.f32 %v3080_v11, %v3099_v24 }
 0x188   :  { %v2045_v35 = vadd.f32 %v2044_v23, %v1635_v31  ;;  %v1637_v37 = vpop.f32.mrb[2].mxu0  ;;  %v1704_v42 = vmax.f32 %v2068_v30, 0.0  ;;  %v2074_v8 = vadd.f32 %v2073_v40, %v1667_v39  ;;  %v1669_v45 = vpop.f32.mrb[27].mxu1 }
 0x189   :  { %v1692_v7 = vmax.f32 %v2043_v29, 0.0  ;;  %v2047_v43 = vadd.f32 %v2046_v28, %v1637_v37  ;;  %v1639_v44 = vpop.f32.mrb[3].mxu0  ;;  %v1705_v47 = vmax.f32 %v2071_v36, 0.0  ;;  %v2077_v48 = vadd.f32 %v2076_v41, %v1669_v45 }
 0x18a   :  { %v1693_v46 = vmax.f32 %v2045_v35, 0.0  ;;  %v2049_v9 = vadd.f32 %v2048_v33, %v1639_v44  ;;  %v1706_v49 = vmax.f32 %v2074_v8, 0.0  ;;  %v2058_v35 = vadd.f32 %v3088_v17, %v3099_v24 }
 0x18b   :  { %v1694_v34 = vmax.f32 %v2047_v43, 0.0  ;;  %v2020_v52 = vpack.c.bf16 %v1705_v47, %v1704_v42  ;;  %v1707_v10 = vmax.f32 %v2077_v48, 0.0  ;;  %v2060_v36 = vadd.f32 %v3090_v18, %v3101_v25 }
 0x18c   :  { %v2014_v51 = vpack.c.bf16 %v1693_v46, %v1692_v7  ;;  %v1695_v53 = vmax.f32 %v2049_v9, 0.0  ;;  %v2062_v7 = vadd.f32 %v3092_v19, %v3099_v24  ;;  %v2064_v8 = vadd.f32 %v3094_v21, %v3101_v25 }
 0x18d   :  { %1794 = vst [vmem:[%s3202_s3 + $0x30] sm:$0xff] %v2020_v52  ;;  %v2021_v41 = vpack.c.bf16 %v1707_v10, %v1706_v49  ;;  %v1673_v59 = vpop.f32.mrb[28].mxu1 }
 0x18e   :  { %1788 = vst [vmem:[%s3202_s3] sm:$0xff] %v2014_v51  ;;  %v2015_v40 = vpack.c.bf16 %v1695_v53, %v1694_v34  ;;  %v1643_v58 = vpop.f32.mrb[4].mxu0  ;;  %v2080_v11 = vadd.f32 %v3109_v50, %v1673_v59  ;;  %v1675_v12 = vpop.f32.mrb[29].mxu1 }
 0x18f   :  { %v2051_v61 = vadd.f32 %v2050_v38, %v1643_v58  ;;  %v1645_v62 = vpop.f32.mrb[5].mxu0  ;;  %1795 = vst [vmem:[%s3202_s3 + $0x38] sm:$0xff] %v2021_v41  ;;  %v2083_v1 = vadd.f32 %v3112_v54, %v1675_v12  ;;  %v1677_v3 = vpop.f32.mrb[30].mxu1 }
 0x190   :  { %1789 = vst [vmem:[%s3202_s3 + $0x8] sm:$0xff] %v2015_v40  ;;  %v2053_v0 = vadd.f32 %v2052_v55, %v1645_v62  ;;  %v1647_v13 = vpop.f32.mrb[6].mxu0  ;;  %v1708_v50 = vmax.f32 %v2080_v11, 0.0  ;;  %v2086_v14 = vadd.f32 %v3115_v56, %v1677_v3  ;;  %v1679_v15 = vpop.f32.mrb[31].mxu1 }
 0x191   :  { %v1696_v4 = vmax.f32 %v2051_v61, 0.0  ;;  %v2055_v5 = vadd.f32 %v2054_v60, %v1647_v13  ;;  %v1649_v22 = vpop.f32.mrb[7].mxu0  ;;  %v1709_v26 = vmax.f32 %v2083_v1, 0.0  ;;  %v2089_v28 = vadd.f32 %v3117_v57, %v1679_v15 }
 0x192   :  { %v1697_v23 = vmax.f32 %v2053_v0, 0.0  ;;  %v2057_v27 = vadd.f32 %v2056_v63, %v1649_v22  ;;  %v1710_v30 = vmax.f32 %v2086_v14, 0.0 }
 0x193   :  { %v1698_v29 = vmax.f32 %v2055_v5, 0.0  ;;  %v2022_v32 = vpack.c.bf16 %v1709_v26, %v1708_v50  ;;  %v1711_v54 = vmax.f32 %v2089_v28, 0.0 }
 0x194   :  { %v2016_v31 = vpack.c.bf16 %v1697_v23, %v1696_v4  ;;  %v1699_v33 = vmax.f32 %v2057_v27, 0.0 }
 0x195   :  { %1796 = vst [vmem:[%s3202_s3 + $0x40] sm:$0xff] %v2022_v32  ;;  %v2023_v57 = vpack.c.bf16 %v1711_v54, %v1710_v30  ;;  %v1683_v39 = vpop.f32.mrb[32].mxu1 }
 0x196   :  { %1790 = vst [vmem:[%s3202_s3 + $0x10] sm:$0xff] %v2016_v31  ;;  %v2017_v56 = vpack.c.bf16 %v1699_v33, %v1698_v29  ;;  %v1653_v37 = vpop.f32.mrb[8].mxu0  ;;  %v2092_v17 = vadd.f32 %v3121_v2, %v1683_v39  ;;  %v1685_v18 = vpop.f32.mrb[33].mxu1 }
 0x197   :  { %v2059_v42 = vadd.f32 %v2058_v35, %v1653_v37  ;;  %v1655_v43 = vpop.f32.mrb[9].mxu0  ;;  %1797 = vst [vmem:[%s3202_s3 + $0x48] sm:$0xff] %v2023_v57  ;;  %v2095_v45 = vadd.f32 %v3124_v6, %v1685_v18  ;;  %v1687_v24 = vpop.f32.mrb[34].mxu1 }
 0x198   :  { %1791 = vst [vmem:[%s3202_s3 + $0x18] sm:$0xff] %v2017_v56  ;;  %v2061_v44 = vadd.f32 %v2060_v36, %v1655_v43  ;;  %v1657_v19 = vpop.f32.mrb[10].mxu0  ;;  %v1712_v2 = vmax.f32 %v2092_v17, 0.0  ;;  %v2098_v9 = vadd.f32 %v3127_v16, %v1687_v24  ;;  %v1689_v21 = vpop.f32.mrb[35].mxu1 }
 0x199   :  { %v1700_v46 = vmax.f32 %v2059_v42, 0.0  ;;  %v2063_v47 = vadd.f32 %v2062_v7, %v1657_v19  ;;  %v1659_v48 = vpop.f32.mrb[11].mxu0  ;;  %v1713_v34 = vmax.f32 %v2095_v45, 0.0  ;;  %v2101_v51 = vadd.f32 %v3129_v20, %v1689_v21 }
 0x19a   :  { %v1701_v25 = vmax.f32 %v2061_v44, 0.0  ;;  %v2065_v49 = vadd.f32 %v2064_v8, %v1659_v48  ;;  %v1714_v53 = vmax.f32 %v2098_v9, 0.0 }
 0x19b   :  { %v1702_v52 = vmax.f32 %v2063_v47, 0.0  ;;  %v2024_v38 = vpack.c.bf16 %v1713_v34, %v1712_v2  ;;  %v1715_v6 = vmax.f32 %v2101_v51, 0.0 }
 0x19c   :  { %v2018_v10 = vpack.c.bf16 %v1701_v25, %v1700_v46  ;;  %v1703_v55 = vmax.f32 %v2065_v49, 0.0 }
 0x19d   :  { %1798 = vst [vmem:[%s3202_s3 + $0x50] sm:$0xff] %v2024_v38  ;;  %v2025_v40 = vpack.c.bf16 %v1715_v6, %v1714_v53 }
 0x19e   :  { %1792 = vst [vmem:[%s3202_s3 + $0x20] sm:$0xff] %v2018_v10  ;;  %v2019_v16 = vpack.c.bf16 %v1703_v55, %v1702_v52 }
 0x19f   :  { %1799 = vst [vmem:[%s3202_s3 + $0x58] sm:$0xff] %v2025_v40 }
 0x1a0   :  { %1793 = vst [vmem:[%s3202_s3 + $0x28] sm:$0xff] %v2019_v16 }

// kernel: _lambda_.9
= control target key start
LH: loop header
LB: loop body
LE: loop exit
PB: predicated region body
PF: predicated region fallthrough
CT: control target
= control target key end

     0   :  { %v800_v36 = vlaneseq  ;;  %v8724_v37 = vmov 1966171168   ;;  %vm6483_vm0 = vcmask 41984   ;;  %s11526_s1 = inlined_call_operand.vmem [shape: bf16[3072,512], index: 1, kind: input, shape index: {}]   ;;  %s11527_s0 = inlined_call_operand.vmem [shape: bf16[2,3072], index: 0, kind: input, shape index: {}]   ;;  %s11528_s3 = inlined_call_operand.vmem [shape: bf16[512,256], index: 3, kind: input, shape index: {}]   ;;  %s11529_s2 = inlined_call_operand.vmem [shape: f32[1,512], index: 2, kind: input, shape index: {}]   ;;  %s11530_s5 = inlined_call_operand.vmem [shape: bf16[256,6], index: 5, kind: input, shape index: {}]   ;;  %s11531_s4 = inlined_call_operand.vmem [shape: f32[1,256], index: 4, kind: input, shape index: {}]   ;;  %s11532_s6 = inlined_call_operand.vmem [shape: f32[1,6], index: 6, kind: input, shape index: {}]   ;;  %s11533_s7 = inlined_call_operand.vmem [shape: f32[2,6], index: 7, kind: output, shape index: {}]  }
   0x1   :  { %v7457_v0 = vld [vmem:[%s11526_s1 + $0x4] ss:$16 sps:$4 sm:$0xff]   ;;  %v7461_v2 = vld [vmem:[%s11526_s1] ss:$16 sps:$4 sm:$0xff]   ;;  %v825_v38 = vunpack.c.l.s4 %v8724_v37 }
   0x2   :  { %v7459_v1 = vld [vmem:[%s11526_s1 + $0x204] ss:$16 sps:$4 sm:$0xff]   ;;  %4834 = vmatprep.subr.bf16.mxu1 %v7457_v0  ;;  %v7462_v3 = vld [vmem:[%s11526_s1 + $0x200] ss:$16 sps:$4 sm:$0xff]   ;;  %v8882_v42 = vshrl.u32 %v800_v36, 7 }
   0x3   :  { %4875 = vmatprep.subr.bf16.mxu0 %v7459_v1  ;;  %v7463_v4 = vld [vmem:[%s11526_s1 + $0x24] ss:$16 sps:$4 sm:$0xff]   ;;  %4835 = vmatpush1.bf16.msra.mxu1 %v7461_v2  ;;  %v7467_v6 = vld [vmem:[%s11526_s1 + $0x20] ss:$16 sps:$4 sm:$0xff]   ;;  %v826_v43 = vunpack.c.0.s8 %v825_v38  ;;  %v7580_v36 = vld [vmem:[%s11526_s1 + $0x88] ss:$16 sps:$4 sm:$0xff]  }
   0x4   :  { %4876 = vmatpush1.bf16.msra.mxu0 %v7462_v3  ;;  %v7465_v5 = vld [vmem:[%s11526_s1 + $0x224] ss:$16 sps:$4 sm:$0xff]   ;;  %4836 = vmatprep.subr.bf16.mxu1 %v7463_v4  ;;  %v7468_v7 = vld [vmem:[%s11526_s1 + $0x220] ss:$16 sps:$4 sm:$0xff]   ;;  %v7588_v38 = vld [vmem:[%s11526_s1 + $0xac] ss:$16 sps:$4 sm:$0xff]  }
   0x5   :  { %4877 = vmatprep.subr.bf16.mxu0 %v7465_v5  ;;  %v7469_v8 = vld [vmem:[%s11526_s1 + $0x44] ss:$16 sps:$4 sm:$0xff]   ;;  %v7473_v10 = vld [vmem:[%s11526_s1 + $0x40] ss:$16 sps:$4 sm:$0xff]   ;;  %v8900_v49 = vsub.s32 %v826_v43, %v8882_v42  ;;  %v7594_v43 = vld [vmem:[%s11526_s1 + $0xcc] ss:$16 sps:$4 sm:$0xff]  }
   0x6   :  { %v7471_v9 = vld [vmem:[%s11526_s1 + $0x244] ss:$16 sps:$4 sm:$0xff]   ;;  %v7474_v11 = vld [vmem:[%s11526_s1 + $0x240] ss:$16 sps:$4 sm:$0xff]  }
   0x7   :  { %4837 = vmatpush1.bf16.msra.mxu1 %v7467_v6  ;;  %v7475_v12 = vld [vmem:[%s11526_s1 + $0x64] ss:$16 sps:$4 sm:$0xff]   ;;  %v7479_v14 = vld [vmem:[%s11526_s1 + $0x60] ss:$16 sps:$4 sm:$0xff]  }
   0x8   :  { %4878 = vmatpush1.bf16.msra.mxu0 %v7468_v7  ;;  %4838 = vmatprep.subr.bf16.mxu1 %v7469_v8  ;;  %v7477_v13 = vld [vmem:[%s11526_s1 + $0x264] ss:$16 sps:$4 sm:$0xff]   ;;  %v7480_v15 = vld [vmem:[%s11526_s1 + $0x260] ss:$16 sps:$4 sm:$0xff]  }
   0x9   :  { %4879 = vmatprep.subr.bf16.mxu0 %v7471_v9  ;;  %v7481_v16 = vld [vmem:[%s11526_s1 + $0x84] ss:$16 sps:$4 sm:$0xff]   ;;  %v7485_v18 = vld [vmem:[%s11526_s1 + $0x80] ss:$16 sps:$4 sm:$0xff]  }
   0xa   :  { %v7483_v17 = vld [vmem:[%s11526_s1 + $0x284] ss:$16 sps:$4 sm:$0xff]   ;;  %v7486_v19 = vld [vmem:[%s11526_s1 + $0x280] ss:$16 sps:$4 sm:$0xff]  }
   0xb   :  { %4839 = vmatpush1.bf16.msra.mxu1 %v7473_v10  ;;  %v7487_v20 = vld [vmem:[%s11526_s1 + $0xa4] ss:$16 sps:$4 sm:$0xff]   ;;  %v7491_v22 = vld [vmem:[%s11526_s1 + $0xa0] ss:$16 sps:$4 sm:$0xff]  }
   0xc   :  { %4880 = vmatpush1.bf16.msra.mxu0 %v7474_v11  ;;  %4840 = vmatprep.subr.bf16.mxu1 %v7475_v12  ;;  %v7489_v21 = vld [vmem:[%s11526_s1 + $0x2a4] ss:$16 sps:$4 sm:$0xff]   ;;  %v7492_v23 = vld [vmem:[%s11526_s1 + $0x2a0] ss:$16 sps:$4 sm:$0xff]  }
   0xd   :  { %4881 = vmatprep.subr.bf16.mxu0 %v7477_v13  ;;  %v7493_v24 = vld [vmem:[%s11526_s1 + $0xc4] ss:$16 sps:$4 sm:$0xff]   ;;  %v7497_v26 = vld [vmem:[%s11526_s1 + $0xc0] ss:$16 sps:$4 sm:$0xff]  }
   0xe   :  { %v7495_v25 = vld [vmem:[%s11526_s1 + $0x2c4] ss:$16 sps:$4 sm:$0xff]   ;;  %v7498_v27 = vld [vmem:[%s11526_s1 + $0x2c0] ss:$16 sps:$4 sm:$0xff]  }
   0xf   :  { %4841 = vmatpush1.bf16.msra.mxu1 %v7479_v14  ;;  %v7499_v28 = vld [vmem:[%s11526_s1 + $0xe4] ss:$16 sps:$4 sm:$0xff]   ;;  %v7503_v30 = vld [vmem:[%s11526_s1 + $0xe0] ss:$16 sps:$4 sm:$0xff]  }
  0x10   :  { %4882 = vmatpush1.bf16.msra.mxu0 %v7480_v15  ;;  %4842 = vmatprep.subr.bf16.mxu1 %v7481_v16  ;;  %v7501_v29 = vld [vmem:[%s11526_s1 + $0x2e4] ss:$16 sps:$4 sm:$0xff]   ;;  %v7504_v31 = vld [vmem:[%s11526_s1 + $0x2e0] ss:$16 sps:$4 sm:$0xff]   ;;  %v7558_v15 = vld [vmem:[%s11526_s1 + $0xc] ss:$16 sps:$4 sm:$0xff]  }
  0x11   :  { %4883 = vmatprep.subr.bf16.mxu0 %v7483_v17  ;;  %v7505_v32 = vld [vmem:[%s11526_s1 + $0x104] ss:$16 sps:$4 sm:$0xff]   ;;  %v7509_v34 = vld [vmem:[%s11526_s1 + $0x100] ss:$16 sps:$4 sm:$0xff]  }
  0x12   :  { %v7507_v33 = vld [vmem:[%s11526_s1 + $0x304] ss:$16 sps:$4 sm:$0xff]   ;;  %v7510_v35 = vld [vmem:[%s11526_s1 + $0x300] ss:$16 sps:$4 sm:$0xff]  }
  0x13   :  { %4843 = vmatpush1.bf16.msra.mxu1 %v7485_v18  ;;  %v7511_v39 = vld [vmem:[%s11526_s1 + $0x124] ss:$16 sps:$4 sm:$0xff]   ;;  %v7515_v41 = vld [vmem:[%s11526_s1 + $0x120] ss:$16 sps:$4 sm:$0xff]  }
  0x14   :  { %4884 = vmatpush1.bf16.msra.mxu0 %v7486_v19  ;;  %4844 = vmatprep.subr.bf16.mxu1 %v7487_v20  ;;  %v7513_v40 = vld [vmem:[%s11526_s1 + $0x324] ss:$16 sps:$4 sm:$0xff]   ;;  %v7516_v44 = vld [vmem:[%s11526_s1 + $0x320] ss:$16 sps:$4 sm:$0xff]   ;;  %v7556_v19 = vld [vmem:[%s11526_s1 + $0x8] ss:$16 sps:$4 sm:$0xff]  }
  0x15   :  { %4885 = vmatprep.subr.bf16.mxu0 %v7489_v21  ;;  %v7517_v45 = vld [vmem:[%s11526_s1 + $0x144] ss:$16 sps:$4 sm:$0xff]   ;;  %v7521_v47 = vld [vmem:[%s11526_s1 + $0x140] ss:$16 sps:$4 sm:$0xff]   ;;  %v7564_v21 = vld [vmem:[%s11526_s1 + $0x2c] ss:$16 sps:$4 sm:$0xff]  }
  0x16   :  { %v7519_v46 = vld [vmem:[%s11526_s1 + $0x344] ss:$16 sps:$4 sm:$0xff]   ;;  %v7522_v48 = vld [vmem:[%s11526_s1 + $0x340] ss:$16 sps:$4 sm:$0xff]  }
  0x17   :  { %4845 = vmatpush1.bf16.msra.mxu1 %v7491_v22  ;;  %v7523_v50 = vld [vmem:[%s11526_s1 + $0x164] ss:$16 sps:$4 sm:$0xff]   ;;  %v7527_v53 = vld [vmem:[%s11526_s1 + $0x160] ss:$16 sps:$4 sm:$0xff]  }
  0x18   :  { %4886 = vmatpush1.bf16.msra.mxu0 %v7492_v23  ;;  %4846 = vmatprep.subr.bf16.mxu1 %v7493_v24  ;;  %v7525_v51 = vld [vmem:[%s11526_s1 + $0x364] ss:$16 sps:$4 sm:$0xff]   ;;  %v7528_v55 = vld [vmem:[%s11526_s1 + $0x360] ss:$16 sps:$4 sm:$0xff]   ;;  %v7562_v24 = vld [vmem:[%s11526_s1 + $0x28] ss:$16 sps:$4 sm:$0xff]  }
  0x19   :  { %4887 = vmatprep.subr.bf16.mxu0 %v7495_v25  ;;  %v27_v52 = vld [vmem:[%s11527_s0] sm:$0xff] }
  0x1a   :  { %v830_v54 = vrot.slane %v27_v52, %v8900_v49  ;;  %v7529_v56 = vld [vmem:[%s11526_s1 + $0x184] ss:$16 sps:$4 sm:$0xff]   ;;  %v7533_v59 = vld [vmem:[%s11526_s1 + $0x180] ss:$16 sps:$4 sm:$0xff]   ;;  %v823_v5 = vcombine.high %v27_v52, %v27_v52  ;;  %v7606_v52 = vld [vmem:[%s11526_s1 + $0x10c] ss:$16 sps:$4 sm:$0xff]  }
  0x1b   :  { %4847 = vmatpush1.bf16.msra.mxu1 %v7497_v26  ;;  %v7531_v57 = vld [vmem:[%s11526_s1 + $0x384] ss:$16 sps:$4 sm:$0xff]   ;;  %v7534_v61 = vld [vmem:[%s11526_s1 + $0x380] ss:$16 sps:$4 sm:$0xff]   ;;  %v7570_v26 = vld [vmem:[%s11526_s1 + $0x4c] ss:$16 sps:$4 sm:$0xff]  }
  0x1c   :  { %4888 = vmatpush1.bf16.msra.mxu0 %v7498_v27  ;;  %4848 = vmatprep.subr.bf16.mxu1 %v7499_v28  ;;  %v838_v58 = vcombine.high %v830_v54, %v830_v54  ;;  %v7535_v62 = vld [vmem:[%s11526_s1 + $0x1a4] ss:$16 sps:$4 sm:$0xff]   ;;  %v7539_v1 = vld [vmem:[%s11526_s1 + $0x1a0] ss:$16 sps:$4 sm:$0xff]   ;;  %v8965_v10 = vrot.slane %v823_v5, %v8900_v49  ;;  %v8971_v12 = vrot.slane %v830_v54, %v8900_v49  ;;  %v7568_v28 = vld [vmem:[%s11526_s1 + $0x48] ss:$16 sps:$4 sm:$0xff]  }
  0x1d   :  { %4889 = vmatprep.subr.bf16.mxu0 %v7501_v29  ;;  %v7537_v63 = vld [vmem:[%s11526_s1 + $0x3a4] ss:$16 sps:$4 sm:$0xff]   ;;  %v7540_v2 = vld [vmem:[%s11526_s1 + $0x3a0] ss:$16 sps:$4 sm:$0xff]   ;;  %v7604_v54 = vld [vmem:[%s11526_s1 + $0x108] ss:$16 sps:$4 sm:$0xff]  }
  0x1e   :  { %v860_v60 = vrot.slane %v838_v58, %v8900_v49  ;;  %v7541_v3 = vld [vmem:[%s11526_s1 + $0x1c4] ss:$16 sps:$4 sm:$0xff]   ;;  %v7545_v6 = vld [vmem:[%s11526_s1 + $0x1c0] ss:$16 sps:$4 sm:$0xff]   ;;  %v839_v16 = vcombine.high %v8965_v10, %v8965_v10  ;;  %v8989_v18 = vcombine.high %v8971_v12, %v8971_v12  ;;  %v7610_v58 = vld [vmem:[%s11526_s1 + $0x128] ss:$16 sps:$4 sm:$0xff]  }
  0x1f   :  { %4849 = vmatpush1.bf16.msra.mxu1 %v7503_v30  ;;  %v7543_v4 = vld [vmem:[%s11526_s1 + $0x3c4] ss:$16 sps:$4 sm:$0xff]   ;;  %v7546_v7 = vld [vmem:[%s11526_s1 + $0x3c0] ss:$16 sps:$4 sm:$0xff]   ;;  %v7576_v30 = vld [vmem:[%s11526_s1 + $0x6c] ss:$16 sps:$4 sm:$0xff]  }
  0x20   :  { %4890 = vmatpush1.bf16.msra.mxu0 %v7504_v31  ;;  %4850 = vmatprep.subr.bf16.mxu1 %v7505_v32  ;;  %v8937_v0 = vcombine.high %v860_v60, %v860_v60  ;;  %v7547_v8 = vld [vmem:[%s11526_s1 + $0x1e4] ss:$16 sps:$4 sm:$0xff]   ;;  %v7551_v11 = vld [vmem:[%s11526_s1 + $0x1e0] ss:$16 sps:$4 sm:$0xff]   ;;  %v9001_v22 = vrot.slane %v839_v16, %v8900_v49  ;;  %v7574_v32 = vld [vmem:[%s11526_s1 + $0x68] ss:$16 sps:$4 sm:$0xff]  }
  0x21   :  { %4891 = vmatprep.subr.bf16.mxu0 %v7507_v33  ;;  %4866 = vmatprep.mubr.bf16.mxu1 %v860_v60  ;;  %v7549_v9 = vld [vmem:[%s11526_s1 + $0x3e4] ss:$16 sps:$4 sm:$0xff]   ;;  %v7552_v13 = vld [vmem:[%s11526_s1 + $0x3e0] ss:$16 sps:$4 sm:$0xff]   ;;  %v7630_v5 = vld [vmem:[%s11526_s1 + $0x18c] ss:$16 sps:$4 sm:$0xff]  }
  0x22   :  { %4907 = vmatprep.mubr.bf16.mxu0 %v8937_v0  ;;  %v7555_v14 = vld [vmem:[%s11526_s1 + $0x404] ss:$16 sps:$4 sm:$0xff]   ;;  %v7553_v17 = vld [vmem:[%s11526_s1 + $0x400] ss:$16 sps:$4 sm:$0xff]  }
  0x23   :  { %4851 = vmatpush1.bf16.msra.mxu1 %v7509_v34  ;;  %v7561_v20 = vld [vmem:[%s11526_s1 + $0x424] ss:$16 sps:$4 sm:$0xff]   ;;  %v7559_v23 = vld [vmem:[%s11526_s1 + $0x420] ss:$16 sps:$4 sm:$0xff]   ;;  %v7582_v34 = vld [vmem:[%s11526_s1 + $0x8c] ss:$16 sps:$4 sm:$0xff]  }
  0x24   :  { %4892 = vmatpush1.bf16.msra.mxu0 %v7510_v35  ;;  %4852 = vmatprep.subr.bf16.mxu1 %v7511_v39  ;;  %v7567_v25 = vld [vmem:[%s11526_s1 + $0x444] ss:$16 sps:$4 sm:$0xff]   ;;  %v7565_v27 = vld [vmem:[%s11526_s1 + $0x440] ss:$16 sps:$4 sm:$0xff]  }
  0x25   :  { %4893 = vmatprep.subr.bf16.mxu0 %v7513_v40  ;;  %v7573_v29 = vld [vmem:[%s11526_s1 + $0x464] ss:$16 sps:$4 sm:$0xff]   ;;  %v7571_v31 = vld [vmem:[%s11526_s1 + $0x460] ss:$16 sps:$4 sm:$0xff]   ;;  %v7586_v40 = vld [vmem:[%s11526_s1 + $0xa8] ss:$16 sps:$4 sm:$0xff]  }
  0x26   :  { %v7579_v33 = vld [vmem:[%s11526_s1 + $0x484] ss:$16 sps:$4 sm:$0xff]   ;;  %v7577_v35 = vld [vmem:[%s11526_s1 + $0x480] ss:$16 sps:$4 sm:$0xff]  }
  0x27   :  { %4853 = vmatpush1.bf16.msra.mxu1 %v7515_v41  ;;  %v7585_v37 = vld [vmem:[%s11526_s1 + $0x4a4] ss:$16 sps:$4 sm:$0xff]   ;;  %v7583_v39 = vld [vmem:[%s11526_s1 + $0x4a0] ss:$16 sps:$4 sm:$0xff]  }
  0x28   :  { %4894 = vmatpush1.bf16.msra.mxu0 %v7516_v44  ;;  %4854 = vmatprep.subr.bf16.mxu1 %v7517_v45  ;;  %v7591_v41 = vld [vmem:[%s11526_s1 + $0x4c4] ss:$16 sps:$4 sm:$0xff]   ;;  %v7589_v44 = vld [vmem:[%s11526_s1 + $0x4c0] ss:$16 sps:$4 sm:$0xff]   ;;  %v7592_v45 = vld [vmem:[%s11526_s1 + $0xc8] ss:$16 sps:$4 sm:$0xff]  }
  0x29   :  { %4895 = vmatprep.subr.bf16.mxu0 %v7519_v46  ;;  %v7597_v46 = vld [vmem:[%s11526_s1 + $0x4e4] ss:$16 sps:$4 sm:$0xff]   ;;  %v7637_v16 = vld [vmem:[%s11526_s1 + $0x5c0] ss:$16 sps:$4 sm:$0xff]  }
  0x2b   :  { %4855 = vmatpush1.bf16.msra.mxu1 %v7521_v47  ;;  %v7600_v47 = vld [vmem:[%s11526_s1 + $0xec] ss:$16 sps:$4 sm:$0xff]  }
  0x2c   :  { %4896 = vmatpush1.bf16.msra.mxu0 %v7522_v48  ;;  %4856 = vmatprep.subr.bf16.mxu1 %v7523_v50  ;;  %v7595_v48 = vld [vmem:[%s11526_s1 + $0x4e0] ss:$16 sps:$4 sm:$0xff]   ;;  %v7598_v50 = vld [vmem:[%s11526_s1 + $0xe8] ss:$16 sps:$4 sm:$0xff]  }
  0x2d   :  { %4897 = vmatprep.subr.bf16.mxu0 %v7525_v51  ;;  %v7603_v51 = vld [vmem:[%s11526_s1 + $0x504] ss:$16 sps:$4 sm:$0xff]  }
  0x2f   :  { %4857 = vmatpush1.bf16.msra.mxu1 %v7527_v53  ;;  %v7601_v53 = vld [vmem:[%s11526_s1 + $0x500] ss:$16 sps:$4 sm:$0xff]  }
  0x30   :  { %4898 = vmatpush1.bf16.msra.mxu0 %v7528_v55  ;;  %4858 = vmatprep.subr.bf16.mxu1 %v7529_v56  ;;  %v7609_v55 = vld [vmem:[%s11526_s1 + $0x524] ss:$16 sps:$4 sm:$0xff]   ;;  %v7612_v56 = vld [vmem:[%s11526_s1 + $0x12c] ss:$16 sps:$4 sm:$0xff]  }
  0x31   :  { %4899 = vmatprep.subr.bf16.mxu0 %v7531_v57  ;;  %v7607_v57 = vld [vmem:[%s11526_s1 + $0x520] ss:$16 sps:$4 sm:$0xff]  }
  0x33   :  { %4859 = vmatpush1.bf16.msra.mxu1 %v7533_v59  ;;  %v7615_v59 = vld [vmem:[%s11526_s1 + $0x544] ss:$16 sps:$4 sm:$0xff]  }
  0x34   :  { %4900 = vmatpush1.bf16.msra.mxu0 %v7534_v61  ;;  %4860 = vmatprep.subr.bf16.mxu1 %v7535_v62  ;;  %v7613_v61 = vld [vmem:[%s11526_s1 + $0x540] ss:$16 sps:$4 sm:$0xff]   ;;  %v7616_v62 = vld [vmem:[%s11526_s1 + $0x148] ss:$16 sps:$4 sm:$0xff]  }
  0x35   :  { %4901 = vmatprep.subr.bf16.mxu0 %v7537_v63  ;;  %v7621_v63 = vld [vmem:[%s11526_s1 + $0x564] ss:$16 sps:$4 sm:$0xff]  }
  0x37   :  { %4861 = vmatpush1.bf16.msra.mxu1 %v7539_v1  ;;  %v7624_v1 = vld [vmem:[%s11526_s1 + $0x16c] ss:$16 sps:$4 sm:$0xff]  }
  0x38   :  { %4902 = vmatpush1.bf16.msra.mxu0 %v7540_v2  ;;  %4862 = vmatprep.subr.bf16.mxu1 %v7541_v3  ;;  %v7619_v2 = vld [vmem:[%s11526_s1 + $0x560] ss:$16 sps:$4 sm:$0xff]   ;;  %v7622_v3 = vld [vmem:[%s11526_s1 + $0x168] ss:$16 sps:$4 sm:$0xff]  }
  0x39   :  { %4903 = vmatprep.subr.bf16.mxu0 %v7543_v4  ;;  %v7627_v4 = vld [vmem:[%s11526_s1 + $0x584] ss:$16 sps:$4 sm:$0xff]  }
  0x3b   :  { %4863 = vmatpush1.bf16.msra.mxu1 %v7545_v6  ;;  %v7625_v6 = vld [vmem:[%s11526_s1 + $0x580] ss:$16 sps:$4 sm:$0xff]  }
  0x3c   :  { %4904 = vmatpush1.bf16.msra.mxu0 %v7546_v7  ;;  %4864 = vmatprep.subr.bf16.mxu1 %v7547_v8  ;;  %v7628_v7 = vld [vmem:[%s11526_s1 + $0x188] ss:$16 sps:$4 sm:$0xff]   ;;  %v7633_v8 = vld [vmem:[%s11526_s1 + $0x5a4] ss:$16 sps:$4 sm:$0xff]  }
  0x3d   :  { %4905 = vmatprep.subr.bf16.mxu0 %v7549_v9  ;;  %v7636_v9 = vld [vmem:[%s11526_s1 + $0x1ac] ss:$16 sps:$4 sm:$0xff]  }
  0x3f   :  { %4865 = vmatpush1.bf16.msra.mxu1 %v7551_v11  ;;  %v7631_v11 = vld [vmem:[%s11526_s1 + $0x5a0] ss:$16 sps:$4 sm:$0xff]  }
  0x40   :  { %4906 = vmatpush1.bf16.msra.mxu0 %v7552_v13  ;;  %5326 = vmatprep.subr.bf16.mxu1 %v7558_v15  ;;  %v7634_v13 = vld [vmem:[%s11526_s1 + $0x1a8] ss:$16 sps:$4 sm:$0xff]   ;;  %v7642_v15 = vld [vmem:[%s11526_s1 + $0x1cc] ss:$16 sps:$4 sm:$0xff]  }
  0x41   :  { %4916 = vmatprep.subr.bf16.mxu0 %v7555_v14  ;;  %v7639_v14 = vld [vmem:[%s11526_s1 + $0x5c4] ss:$16 sps:$4 sm:$0xff]  }
  0x42   :  { %4867 = vmatmul.mubr.bf16.vlgmr.msra.gmra.mrb[0].mxu1 %v8971_v12 }
  0x43   :  { %4908 = vmatmul.mubr.bf16.vlgmr.msra.gmra.mrb[0].mxu0 %v8989_v18  ;;  %5327 = vmatpush1.bf16.msra.mxu1 %v7556_v19  ;;  %v7645_v19 = vld [vmem:[%s11526_s1 + $0x5e4] ss:$16 sps:$4 sm:$0xff]  }
  0x44   :  { %4917 = vmatpush1.bf16.msra.mxu0 %v7553_v17  ;;  %5328 = vmatprep.subr.bf16.mxu1 %v7564_v21  ;;  %v7640_v17 = vld [vmem:[%s11526_s1 + $0x1c8] ss:$16 sps:$4 sm:$0xff]   ;;  %v7643_v21 = vld [vmem:[%s11526_s1 + $0x5e0] ss:$16 sps:$4 sm:$0xff]  }
  0x45   :  { %4918 = vmatprep.subr.bf16.mxu0 %v7561_v20  ;;  %4948 = vmatprep.mubr.bf16.mxu0 %v9001_v22  ;;  %v7648_v20 = vld [vmem:[%s11526_s1 + $0x1ec] ss:$16 sps:$4 sm:$0xff]  }
  0x46   :  { %5358 = vmatprep.mubr.bf16.mxu1 %v860_v60  ;;  %v7618_v60 = vld [vmem:[%s11526_s1 + $0x14c] ss:$16 sps:$4 sm:$0xff]  }
  0x47   :  { %5329 = vmatpush1.bf16.msra.mxu1 %v7562_v24  ;;  %v7652_v24 = vld [vmem:[%s11526_s1 + $0x604] ss:$16 sps:$4 sm:$0xff]  }
  0x48   :  { %4919 = vmatpush1.bf16.msra.mxu0 %v7559_v23  ;;  %5330 = vmatprep.subr.bf16.mxu1 %v7570_v26  ;;  %v7646_v23 = vld [vmem:[%s11526_s1 + $0x1e8] ss:$16 sps:$4 sm:$0xff]   ;;  %v7650_v26 = vld [vmem:[%s11526_s1 + $0x600] ss:$16 sps:$4 sm:$0xff]  }
  0x49   :  { %4920 = vmatprep.subr.bf16.mxu0 %v7567_v25  ;;  %v7655_v25 = vld [vmem:[%s11526_s1 + $0x20c] ss:$16 sps:$4 sm:$0xff]  }
  0x4b   :  { %5331 = vmatpush1.bf16.msra.mxu1 %v7568_v28  ;;  %v7653_v28 = vld [vmem:[%s11526_s1 + $0x208] ss:$16 sps:$4 sm:$0xff]  }
  0x4c   :  { %4921 = vmatpush1.bf16.msra.mxu0 %v7565_v27  ;;  %5332 = vmatprep.subr.bf16.mxu1 %v7576_v30  ;;  %v9191_v27 = vrot.slane %v8965_v10, %v8900_v49  ;;  %v7661_v30 = vld [vmem:[%s11526_s1 + $0x22c] ss:$16 sps:$4 sm:$0xff]   ;;  %v9204_v10 = vcombine.high %v9001_v22, %v9001_v22 }
  0x4d   :  { %4922 = vmatprep.subr.bf16.mxu0 %v7573_v29  ;;  %v7658_v29 = vld [vmem:[%s11526_s1 + $0x624] ss:$16 sps:$4 sm:$0xff]  }
  0x4f   :  { %5333 = vmatpush1.bf16.msra.mxu1 %v7574_v32  ;;  %v7659_v32 = vld [vmem:[%s11526_s1 + $0x228] ss:$16 sps:$4 sm:$0xff]  }
  0x50   :  { %4923 = vmatpush1.bf16.msra.mxu0 %v7571_v31  ;;  %5334 = vmatprep.subr.bf16.mxu1 %v7582_v34  ;;  %v7656_v31 = vld [vmem:[%s11526_s1 + $0x620] ss:$16 sps:$4 sm:$0xff]  }
  0x51   :  { %4924 = vmatprep.subr.bf16.mxu0 %v7579_v33  ;;  %v7664_v33 = vld [vmem:[%s11526_s1 + $0x644] ss:$16 sps:$4 sm:$0xff]   ;;  %v7662_v34 = vld [vmem:[%s11526_s1 + $0x640] ss:$16 sps:$4 sm:$0xff]  }
  0x53   :  { %5335 = vmatpush1.bf16.msra.mxu1 %v7580_v36  ;;  %v7670_v36 = vld [vmem:[%s11526_s1 + $0x664] ss:$16 sps:$4 sm:$0xff]  }
  0x54   :  { %4925 = vmatpush1.bf16.msra.mxu0 %v7577_v35  ;;  %5336 = vmatprep.subr.bf16.mxu1 %v7588_v38  ;;  %v7665_v35 = vld [vmem:[%s11526_s1 + $0x248] ss:$16 sps:$4 sm:$0xff]  }
  0x55   :  { %4926 = vmatprep.subr.bf16.mxu0 %v7585_v37  ;;  %v7668_v37 = vld [vmem:[%s11526_s1 + $0x660] ss:$16 sps:$4 sm:$0xff]   ;;  %v7671_v38 = vld [vmem:[%s11526_s1 + $0x268] ss:$16 sps:$4 sm:$0xff]  }
  0x57   :  { %5337 = vmatpush1.bf16.msra.mxu1 %v7586_v40  ;;  %v7679_v40 = vld [vmem:[%s11526_s1 + $0x28c] ss:$16 sps:$4 sm:$0xff]  }
  0x58   :  { %4927 = vmatpush1.bf16.msra.mxu0 %v7583_v39  ;;  %5338 = vmatprep.subr.bf16.mxu1 %v7594_v43  ;;  %v7676_v39 = vld [vmem:[%s11526_s1 + $0x684] ss:$16 sps:$4 sm:$0xff]   ;;  %v7677_v43 = vld [vmem:[%s11526_s1 + $0x288] ss:$16 sps:$4 sm:$0xff]  }
  0x59   :  { %4928 = vmatprep.subr.bf16.mxu0 %v7591_v41  ;;  %v7674_v41 = vld [vmem:[%s11526_s1 + $0x680] ss:$16 sps:$4 sm:$0xff]  }
  0x5b   :  { %5339 = vmatpush1.bf16.msra.mxu1 %v7592_v45  ;;  %v7685_v45 = vld [vmem:[%s11526_s1 + $0x2ac] ss:$16 sps:$4 sm:$0xff]  }
  0x5c   :  { %4929 = vmatpush1.bf16.msra.mxu0 %v7589_v44  ;;  %5340 = vmatprep.subr.bf16.mxu1 %v7600_v47  ;;  %v7682_v44 = vld [vmem:[%s11526_s1 + $0x6a4] ss:$16 sps:$4 sm:$0xff]   ;;  %v7683_v47 = vld [vmem:[%s11526_s1 + $0x2a8] ss:$16 sps:$4 sm:$0xff]  }
  0x5d   :  { %4930 = vmatprep.subr.bf16.mxu0 %v7597_v46  ;;  %v7680_v46 = vld [vmem:[%s11526_s1 + $0x6a0] ss:$16 sps:$4 sm:$0xff]  }
  0x5f   :  { %5341 = vmatpush1.bf16.msra.mxu1 %v7598_v50  ;;  %v7691_v50 = vld [vmem:[%s11526_s1 + $0x2cc] ss:$16 sps:$4 sm:$0xff]  }
  0x60   :  { %4931 = vmatpush1.bf16.msra.mxu0 %v7595_v48  ;;  %5342 = vmatprep.subr.bf16.mxu1 %v7606_v52  ;;  %v7688_v48 = vld [vmem:[%s11526_s1 + $0x6c4] ss:$16 sps:$4 sm:$0xff]   ;;  %v7689_v52 = vld [vmem:[%s11526_s1 + $0x2c8] ss:$16 sps:$4 sm:$0xff]  }
  0x61   :  { %4932 = vmatprep.subr.bf16.mxu0 %v7603_v51  ;;  %v7686_v51 = vld [vmem:[%s11526_s1 + $0x6c0] ss:$16 sps:$4 sm:$0xff]  }
  0x63   :  { %5343 = vmatpush1.bf16.msra.mxu1 %v7604_v54  ;;  %v7697_v54 = vld [vmem:[%s11526_s1 + $0x2ec] ss:$16 sps:$4 sm:$0xff]  }
  0x64   :  { %4933 = vmatpush1.bf16.msra.mxu0 %v7601_v53  ;;  %5344 = vmatprep.subr.bf16.mxu1 %v7612_v56  ;;  %v7694_v53 = vld [vmem:[%s11526_s1 + $0x6e4] ss:$16 sps:$4 sm:$0xff]   ;;  %v7695_v56 = vld [vmem:[%s11526_s1 + $0x2e8] ss:$16 sps:$4 sm:$0xff]  }
  0x65   :  { %4934 = vmatprep.subr.bf16.mxu0 %v7609_v55  ;;  %v7692_v55 = vld [vmem:[%s11526_s1 + $0x6e0] ss:$16 sps:$4 sm:$0xff]  }
  0x67   :  { %5345 = vmatpush1.bf16.msra.mxu1 %v7610_v58  ;;  %v7703_v58 = vld [vmem:[%s11526_s1 + $0x30c] ss:$16 sps:$4 sm:$0xff]  }
  0x68   :  { %4935 = vmatpush1.bf16.msra.mxu0 %v7607_v57  ;;  %5346 = vmatprep.subr.bf16.mxu1 %v7618_v60  ;;  %v7700_v57 = vld [vmem:[%s11526_s1 + $0x704] ss:$16 sps:$4 sm:$0xff]   ;;  %v7701_v60 = vld [vmem:[%s11526_s1 + $0x308] ss:$16 sps:$4 sm:$0xff]  }
  0x69   :  { %4936 = vmatprep.subr.bf16.mxu0 %v7615_v59  ;;  %v7698_v59 = vld [vmem:[%s11526_s1 + $0x700] ss:$16 sps:$4 sm:$0xff]  }
  0x6b   :  { %5347 = vmatpush1.bf16.msra.mxu1 %v7616_v62  ;;  %v7709_v62 = vld [vmem:[%s11526_s1 + $0x32c] ss:$16 sps:$4 sm:$0xff]  }
  0x6c   :  { %4937 = vmatpush1.bf16.msra.mxu0 %v7613_v61  ;;  %5348 = vmatprep.subr.bf16.mxu1 %v7624_v1  ;;  %v7706_v61 = vld [vmem:[%s11526_s1 + $0x724] ss:$16 sps:$4 sm:$0xff]   ;;  %v7707_v1 = vld [vmem:[%s11526_s1 + $0x328] ss:$16 sps:$4 sm:$0xff]  }
  0x6d   :  { %4938 = vmatprep.subr.bf16.mxu0 %v7621_v63  ;;  %v7704_v63 = vld [vmem:[%s11526_s1 + $0x720] ss:$16 sps:$4 sm:$0xff]  }
  0x6f   :  { %5349 = vmatpush1.bf16.msra.mxu1 %v7622_v3  ;;  %v7715_v3 = vld [vmem:[%s11526_s1 + $0x34c] ss:$16 sps:$4 sm:$0xff]  }
  0x70   :  { %4939 = vmatpush1.bf16.msra.mxu0 %v7619_v2  ;;  %5350 = vmatprep.subr.bf16.mxu1 %v7630_v5  ;;  %v7712_v2 = vld [vmem:[%s11526_s1 + $0x744] ss:$16 sps:$4 sm:$0xff]   ;;  %v7713_v5 = vld [vmem:[%s11526_s1 + $0x348] ss:$16 sps:$4 sm:$0xff]  }
  0x71   :  { %4940 = vmatprep.subr.bf16.mxu0 %v7627_v4  ;;  %v7710_v4 = vld [vmem:[%s11526_s1 + $0x740] ss:$16 sps:$4 sm:$0xff]  }
  0x73   :  { %5351 = vmatpush1.bf16.msra.mxu1 %v7628_v7  ;;  %v7721_v7 = vld [vmem:[%s11526_s1 + $0x36c] ss:$16 sps:$4 sm:$0xff]  }
  0x74   :  { %4941 = vmatpush1.bf16.msra.mxu0 %v7625_v6  ;;  %5352 = vmatprep.subr.bf16.mxu1 %v7636_v9  ;;  %v7718_v6 = vld [vmem:[%s11526_s1 + $0x764] ss:$16 sps:$4 sm:$0xff]   ;;  %v7719_v9 = vld [vmem:[%s11526_s1 + $0x368] ss:$16 sps:$4 sm:$0xff]  }
  0x75   :  { %4942 = vmatprep.subr.bf16.mxu0 %v7633_v8  ;;  %v7716_v8 = vld [vmem:[%s11526_s1 + $0x760] ss:$16 sps:$4 sm:$0xff]  }
  0x77   :  { %5353 = vmatpush1.bf16.msra.mxu1 %v7634_v13  ;;  %v7727_v13 = vld [vmem:[%s11526_s1 + $0x38c] ss:$16 sps:$4 sm:$0xff]  }
  0x78   :  { %4943 = vmatpush1.bf16.msra.mxu0 %v7631_v11  ;;  %5354 = vmatprep.subr.bf16.mxu1 %v7642_v15  ;;  %v7724_v11 = vld [vmem:[%s11526_s1 + $0x784] ss:$16 sps:$4 sm:$0xff]   ;;  %v7725_v15 = vld [vmem:[%s11526_s1 + $0x388] ss:$16 sps:$4 sm:$0xff]  }
  0x79   :  { %4944 = vmatprep.subr.bf16.mxu0 %v7639_v14  ;;  %v7722_v14 = vld [vmem:[%s11526_s1 + $0x780] ss:$16 sps:$4 sm:$0xff]  }
  0x7b   :  { %5355 = vmatpush1.bf16.msra.mxu1 %v7640_v17  ;;  %v7733_v17 = vld [vmem:[%s11526_s1 + $0x3ac] ss:$16 sps:$4 sm:$0xff]  }
  0x7c   :  { %4945 = vmatpush1.bf16.msra.mxu0 %v7637_v16  ;;  %5356 = vmatprep.subr.bf16.mxu1 %v7648_v20  ;;  %v7730_v16 = vld [vmem:[%s11526_s1 + $0x7a4] ss:$16 sps:$4 sm:$0xff]   ;;  %v7731_v20 = vld [vmem:[%s11526_s1 + $0x3a8] ss:$16 sps:$4 sm:$0xff]  }
  0x7d   :  { %4946 = vmatprep.subr.bf16.mxu0 %v7645_v19  ;;  %v7728_v19 = vld [vmem:[%s11526_s1 + $0x7a0] ss:$16 sps:$4 sm:$0xff]  }
  0x7f   :  { %5357 = vmatpush1.bf16.msra.mxu1 %v7646_v23  ;;  %v7739_v23 = vld [vmem:[%s11526_s1 + $0x3cc] ss:$16 sps:$4 sm:$0xff]  }
  0x80   :  { %4947 = vmatpush1.bf16.msra.mxu0 %v7643_v21  ;;  %5367 = vmatprep.subr.bf16.mxu1 %v7655_v25  ;;  %v7736_v21 = vld [vmem:[%s11526_s1 + $0x7c4] ss:$16 sps:$4 sm:$0xff]   ;;  %v7734_v25 = vld [vmem:[%s11526_s1 + $0x7c0] ss:$16 sps:$4 sm:$0xff]  }
  0x81   :  { %4957 = vmatprep.subr.bf16.mxu0 %v7652_v24  ;;  %v9369_v24 = vld [vmem:[%s11527_s0 + $0x8] sm:$0xff] }
  0x82   :  { %5359 = vmatmul.mubr.bf16.vlgmr.msra.gmra.mrb[4].mxu1 %v8971_v12  ;;  %v7667_v12 = vld [vmem:[%s11526_s1 + $0x24c] ss:$16 sps:$4 sm:$0xff]  }
  0x83   :  { %4949 = vmatmul.mubr.bf16.vlgmr.msra.gmra.mrb[0].mxu0 %v9191_v27  ;;  %5368 = vmatpush1.bf16.msra.mxu1 %v7653_v28  ;;  %v7742_v28 = vld [vmem:[%s11526_s1 + $0x7e4] ss:$16 sps:$4 sm:$0xff]  }
  0x84   :  { %4958 = vmatpush1.bf16.msra.mxu0 %v7650_v26  ;;  %5369 = vmatprep.subr.bf16.mxu1 %v7661_v30  ;;  %v7737_v26 = vld [vmem:[%s11526_s1 + $0x3c8] ss:$16 sps:$4 sm:$0xff]   ;;  %v9385_v30 = vrot.slane %v9369_v24, %v8900_v49 }
  0x85   :  { %4959 = vmatprep.subr.bf16.mxu0 %v7658_v29  ;;  %4989 = vmatprep.mubr.bf16.mxu0 %v9204_v10  ;;  %v7745_v29 = vld [vmem:[%s11526_s1 + $0x3ec] ss:$16 sps:$4 sm:$0xff]  }
  0x86   :  { %5399 = vmatprep.mubr.bf16.mxu1 %v8937_v0  ;;  %v7673_v0 = vld [vmem:[%s11526_s1 + $0x26c] ss:$16 sps:$4 sm:$0xff]  }
  0x87   :  { %5370 = vmatpush1.bf16.msra.mxu1 %v7659_v32  ;;  %v7743_v32 = vld [vmem:[%s11526_s1 + $0x3e8] ss:$16 sps:$4 sm:$0xff]  }
  0x88   :  { %4960 = vmatpush1.bf16.msra.mxu0 %v7656_v31  ;;  %5371 = vmatprep.subr.bf16.mxu1 %v7667_v12  ;;  %v7740_v31 = vld [vmem:[%s11526_s1 + $0x7e0] ss:$16 sps:$4 sm:$0xff]   ;;  %v7751_v12 = vld [vmem:[%s11526_s1 + $0x40c] ss:$16 sps:$4 sm:$0xff]  }
  0x89   :  { %4961 = vmatprep.subr.bf16.mxu0 %v7664_v33  ;;  %v7748_v33 = vld [vmem:[%s11526_s1 + $0x804] ss:$16 sps:$4 sm:$0xff]  }
  0x8b   :  { %5372 = vmatpush1.bf16.msra.mxu1 %v7665_v35  ;;  %v7746_v35 = vld [vmem:[%s11526_s1 + $0x800] ss:$16 sps:$4 sm:$0xff]  }
  0x8c   :  { %4962 = vmatpush1.bf16.msra.mxu0 %v7662_v34  ;;  %5373 = vmatprep.subr.bf16.mxu1 %v7673_v0  ;;  %v887_v34 = vcombine.high %v9385_v30, %v9385_v30  ;;  %v7749_v0 = vld [vmem:[%s11526_s1 + $0x408] ss:$16 sps:$4 sm:$0xff]  }
  0x8d   :  { %4963 = vmatprep.subr.bf16.mxu0 %v7670_v36  ;;  %v9406_v36 = vcombine.high %v9191_v27, %v9191_v27 }
  0x8f   :  { %5374 = vmatpush1.bf16.msra.mxu1 %v7671_v38  ;;  %v7757_v38 = vld [vmem:[%s11526_s1 + $0x42c] ss:$16 sps:$4 sm:$0xff]  }
  0x90   :  { %4964 = vmatpush1.bf16.msra.mxu0 %v7668_v37  ;;  %5375 = vmatprep.subr.bf16.mxu1 %v7679_v40  ;;  %v7754_v37 = vld [vmem:[%s11526_s1 + $0x824] ss:$16 sps:$4 sm:$0xff]   ;;  %v7752_v40 = vld [vmem:[%s11526_s1 + $0x820] ss:$16 sps:$4 sm:$0xff]  }
  0x91   :  { %4965 = vmatprep.subr.bf16.mxu0 %v7676_v39  ;;  %v9418_v39 = vrot.slane %v887_v34, %v8900_v49  ;;  %v7835_v34 = vld [vmem:[%s11526_s1 + $0x5cc] ss:$16 sps:$4 sm:$0xff]  }
  0x93   :  { %5376 = vmatpush1.bf16.msra.mxu1 %v7677_v43  ;;  %v7760_v43 = vld [vmem:[%s11526_s1 + $0x844] ss:$16 sps:$4 sm:$0xff]  }
  0x94   :  { %4966 = vmatpush1.bf16.msra.mxu0 %v7674_v41  ;;  %5377 = vmatprep.subr.bf16.mxu1 %v7685_v45  ;;  %v7755_v41 = vld [vmem:[%s11526_s1 + $0x428] ss:$16 sps:$4 sm:$0xff]  }
  0x95   :  { %4967 = vmatprep.subr.bf16.mxu0 %v7682_v44  ;;  %v7758_v44 = vld [vmem:[%s11526_s1 + $0x840] ss:$16 sps:$4 sm:$0xff]   ;;  %v7761_v45 = vld [vmem:[%s11526_s1 + $0x448] ss:$16 sps:$4 sm:$0xff]  }
  0x97   :  { %5378 = vmatpush1.bf16.msra.mxu1 %v7683_v47  ;;  %v7764_v47 = vld [vmem:[%s11526_s1 + $0x860] ss:$16 sps:$4 sm:$0xff]  }
  0x98   :  { %4968 = vmatpush1.bf16.msra.mxu0 %v7680_v46  ;;  %5379 = vmatprep.subr.bf16.mxu1 %v7691_v50  ;;  %v7766_v46 = vld [vmem:[%s11526_s1 + $0x864] ss:$16 sps:$4 sm:$0xff]  }
  0x99   :  { %4969 = vmatprep.subr.bf16.mxu0 %v7688_v48  ;;  %v7767_v48 = vld [vmem:[%s11526_s1 + $0x468] ss:$16 sps:$4 sm:$0xff]   ;;  %v7772_v50 = vld [vmem:[%s11526_s1 + $0x884] ss:$16 sps:$4 sm:$0xff]  }
  0x9b   :  { %5380 = vmatpush1.bf16.msra.mxu1 %v7689_v52  ;;  %v7770_v52 = vld [vmem:[%s11526_s1 + $0x880] ss:$16 sps:$4 sm:$0xff]  }
  0x9c   :  { %4970 = vmatpush1.bf16.msra.mxu0 %v7686_v51  ;;  %5381 = vmatprep.subr.bf16.mxu1 %v7697_v54  ;;  %v7775_v51 = vld [vmem:[%s11526_s1 + $0x48c] ss:$16 sps:$4 sm:$0xff]   ;;  %v7778_v54 = vld [vmem:[%s11526_s1 + $0x8a4] ss:$16 sps:$4 sm:$0xff]  }
  0x9d   :  { %4971 = vmatprep.subr.bf16.mxu0 %v7694_v53  ;;  %v7773_v53 = vld [vmem:[%s11526_s1 + $0x488] ss:$16 sps:$4 sm:$0xff]  }
  0x9f   :  { %5382 = vmatpush1.bf16.msra.mxu1 %v7695_v56  ;;  %v7776_v56 = vld [vmem:[%s11526_s1 + $0x8a0] ss:$16 sps:$4 sm:$0xff]  }
  0xa0   :  { %4972 = vmatpush1.bf16.msra.mxu0 %v7692_v55  ;;  %5383 = vmatprep.subr.bf16.mxu1 %v7703_v58  ;;  %v7781_v55 = vld [vmem:[%s11526_s1 + $0x4ac] ss:$16 sps:$4 sm:$0xff]   ;;  %v7784_v58 = vld [vmem:[%s11526_s1 + $0x8c4] ss:$16 sps:$4 sm:$0xff]  }
  0xa1   :  { %4973 = vmatprep.subr.bf16.mxu0 %v7700_v57  ;;  %v7779_v57 = vld [vmem:[%s11526_s1 + $0x4a8] ss:$16 sps:$4 sm:$0xff]  }
  0xa3   :  { %5384 = vmatpush1.bf16.msra.mxu1 %v7701_v60  ;;  %v7782_v60 = vld [vmem:[%s11526_s1 + $0x8c0] ss:$16 sps:$4 sm:$0xff]  }
  0xa4   :  { %4974 = vmatpush1.bf16.msra.mxu0 %v7698_v59  ;;  %5385 = vmatprep.subr.bf16.mxu1 %v7709_v62  ;;  %v7787_v59 = vld [vmem:[%s11526_s1 + $0x4cc] ss:$16 sps:$4 sm:$0xff]   ;;  %v7790_v62 = vld [vmem:[%s11526_s1 + $0x8e4] ss:$16 sps:$4 sm:$0xff]  }
  0xa5   :  { %4975 = vmatprep.subr.bf16.mxu0 %v7706_v61  ;;  %v7785_v61 = vld [vmem:[%s11526_s1 + $0x4c8] ss:$16 sps:$4 sm:$0xff]  }
  0xa7   :  { %5386 = vmatpush1.bf16.msra.mxu1 %v7707_v1  ;;  %v7788_v1 = vld [vmem:[%s11526_s1 + $0x8e0] ss:$16 sps:$4 sm:$0xff]  }
  0xa8   :  { %4976 = vmatpush1.bf16.msra.mxu0 %v7704_v63  ;;  %5387 = vmatprep.subr.bf16.mxu1 %v7715_v3  ;;  %v7793_v63 = vld [vmem:[%s11526_s1 + $0x4ec] ss:$16 sps:$4 sm:$0xff]   ;;  %v7796_v3 = vld [vmem:[%s11526_s1 + $0x904] ss:$16 sps:$4 sm:$0xff]  }
  0xa9   :  { %4977 = vmatprep.subr.bf16.mxu0 %v7712_v2  ;;  %v7791_v2 = vld [vmem:[%s11526_s1 + $0x4e8] ss:$16 sps:$4 sm:$0xff]  }
  0xab   :  { %5388 = vmatpush1.bf16.msra.mxu1 %v7713_v5  ;;  %v7794_v5 = vld [vmem:[%s11526_s1 + $0x900] ss:$16 sps:$4 sm:$0xff]  }
  0xac   :  { %4978 = vmatpush1.bf16.msra.mxu0 %v7710_v4  ;;  %5389 = vmatprep.subr.bf16.mxu1 %v7721_v7  ;;  %v7799_v4 = vld [vmem:[%s11526_s1 + $0x50c] ss:$16 sps:$4 sm:$0xff]   ;;  %v7802_v7 = vld [vmem:[%s11526_s1 + $0x924] ss:$16 sps:$4 sm:$0xff]  }
  0xad   :  { %4979 = vmatprep.subr.bf16.mxu0 %v7718_v6  ;;  %v7797_v6 = vld [vmem:[%s11526_s1 + $0x508] ss:$16 sps:$4 sm:$0xff]  }
  0xaf   :  { %5390 = vmatpush1.bf16.msra.mxu1 %v7719_v9  ;;  %v7800_v9 = vld [vmem:[%s11526_s1 + $0x920] ss:$16 sps:$4 sm:$0xff]  }
  0xb0   :  { %4980 = vmatpush1.bf16.msra.mxu0 %v7716_v8  ;;  %5391 = vmatprep.subr.bf16.mxu1 %v7727_v13  ;;  %v7805_v8 = vld [vmem:[%s11526_s1 + $0x52c] ss:$16 sps:$4 sm:$0xff]   ;;  %v7808_v13 = vld [vmem:[%s11526_s1 + $0x944] ss:$16 sps:$4 sm:$0xff]  }
  0xb1   :  { %4981 = vmatprep.subr.bf16.mxu0 %v7724_v11  ;;  %v7803_v11 = vld [vmem:[%s11526_s1 + $0x528] ss:$16 sps:$4 sm:$0xff]  }
  0xb3   :  { %5392 = vmatpush1.bf16.msra.mxu1 %v7725_v15  ;;  %v7806_v15 = vld [vmem:[%s11526_s1 + $0x940] ss:$16 sps:$4 sm:$0xff]  }
  0xb4   :  { %4982 = vmatpush1.bf16.msra.mxu0 %v7722_v14  ;;  %5393 = vmatprep.subr.bf16.mxu1 %v7733_v17  ;;  %v7811_v14 = vld [vmem:[%s11526_s1 + $0x54c] ss:$16 sps:$4 sm:$0xff]   ;;  %v7814_v17 = vld [vmem:[%s11526_s1 + $0x964] ss:$16 sps:$4 sm:$0xff]  }
  0xb5   :  { %4983 = vmatprep.subr.bf16.mxu0 %v7730_v16  ;;  %v7809_v16 = vld [vmem:[%s11526_s1 + $0x548] ss:$16 sps:$4 sm:$0xff]  }
  0xb7   :  { %5394 = vmatpush1.bf16.msra.mxu1 %v7731_v20  ;;  %v7812_v20 = vld [vmem:[%s11526_s1 + $0x960] ss:$16 sps:$4 sm:$0xff]  }
  0xb8   :  { %4984 = vmatpush1.bf16.msra.mxu0 %v7728_v19  ;;  %5395 = vmatprep.subr.bf16.mxu1 %v7739_v23  ;;  %v7817_v19 = vld [vmem:[%s11526_s1 + $0x56c] ss:$16 sps:$4 sm:$0xff]   ;;  %v7820_v23 = vld [vmem:[%s11526_s1 + $0x984] ss:$16 sps:$4 sm:$0xff]  }
  0xb9   :  { %4985 = vmatprep.subr.bf16.mxu0 %v7736_v21  ;;  %v7815_v21 = vld [vmem:[%s11526_s1 + $0x568] ss:$16 sps:$4 sm:$0xff]  }
  0xbb   :  { %5396 = vmatpush1.bf16.msra.mxu1 %v7737_v26  ;;  %v7818_v26 = vld [vmem:[%s11526_s1 + $0x980] ss:$16 sps:$4 sm:$0xff]  }
  0xbc   :  { %4986 = vmatpush1.bf16.msra.mxu0 %v7734_v25  ;;  %5397 = vmatprep.subr.bf16.mxu1 %v7745_v29  ;;  %v7823_v25 = vld [vmem:[%s11526_s1 + $0x58c] ss:$16 sps:$4 sm:$0xff]   ;;  %v7826_v29 = vld [vmem:[%s11526_s1 + $0x9a4] ss:$16 sps:$4 sm:$0xff]  }
  0xbd   :  { %4987 = vmatprep.subr.bf16.mxu0 %v7742_v28  ;;  %v7821_v28 = vld [vmem:[%s11526_s1 + $0x588] ss:$16 sps:$4 sm:$0xff]  }
  0xbf   :  { %5398 = vmatpush1.bf16.msra.mxu1 %v7743_v32  ;;  %v7824_v32 = vld [vmem:[%s11526_s1 + $0x9a0] ss:$16 sps:$4 sm:$0xff]  }
  0xc0   :  { %4988 = vmatpush1.bf16.msra.mxu0 %v7740_v31  ;;  %5408 = vmatprep.subr.bf16.mxu1 %v7751_v12  ;;  %v7829_v31 = vld [vmem:[%s11526_s1 + $0x5ac] ss:$16 sps:$4 sm:$0xff]   ;;  %v7832_v12 = vld [vmem:[%s11526_s1 + $0x9c4] ss:$16 sps:$4 sm:$0xff]  }
  0xc1   :  { %4998 = vmatprep.subr.bf16.mxu0 %v7748_v33  ;;  %v7827_v33 = vld [vmem:[%s11526_s1 + $0x5a8] ss:$16 sps:$4 sm:$0xff]  }
  0xc2   :  { %5400 = vmatmul.mubr.bf16.vlgmr.msra.gmra.mrb[4].mxu1 %v8989_v18  ;;  %v7763_v18 = vld [vmem:[%s11526_s1 + $0x44c] ss:$16 sps:$4 sm:$0xff]  }
  0xc3   :  { %4990 = vmatmul.mubr.bf16.vlgmr.msra.gmra.mrb[0].mxu0 %v9406_v36  ;;  %5409 = vmatpush1.bf16.msra.mxu1 %v7749_v0  ;;  %v7833_v0 = vld [vmem:[%s11526_s1 + $0x5c8] ss:$16 sps:$4 sm:$0xff]  }
  0xc4   :  { %4999 = vmatpush1.bf16.msra.mxu0 %v7746_v35  ;;  %5410 = vmatprep.subr.bf16.mxu1 %v7757_v38  ;;  %v7830_v35 = vld [vmem:[%s11526_s1 + $0x9c0] ss:$16 sps:$4 sm:$0xff]   ;;  %v7841_v38 = vld [vmem:[%s11526_s1 + $0x5ec] ss:$16 sps:$4 sm:$0xff]  }
  0xc5   :  { %5000 = vmatprep.subr.bf16.mxu0 %v7754_v37  ;;  %5030 = vmatprep.mubr.bf16.mxu0 %v9418_v39  ;;  %v7838_v37 = vld [vmem:[%s11526_s1 + $0x9e4] ss:$16 sps:$4 sm:$0xff]  }
  0xc6   :  { %5440 = vmatprep.mubr.bf16.mxu1 %v9001_v22  ;;  %v7769_v22 = vld [vmem:[%s11526_s1 + $0x46c] ss:$16 sps:$4 sm:$0xff]  }
  0xc7   :  { %5411 = vmatpush1.bf16.msra.mxu1 %v7755_v41  ;;  %v7839_v41 = vld [vmem:[%s11526_s1 + $0x5e8] ss:$16 sps:$4 sm:$0xff]  }
  0xc8   :  { %5001 = vmatpush1.bf16.msra.mxu0 %v7752_v40  ;;  %5412 = vmatprep.subr.bf16.mxu1 %v7763_v18  ;;  %v7836_v40 = vld [vmem:[%s11526_s1 + $0x9e0] ss:$16 sps:$4 sm:$0xff]   ;;  %v7847_v18 = vld [vmem:[%s11526_s1 + $0x60c] ss:$16 sps:$4 sm:$0xff]  }
  0xc9   :  { %5002 = vmatprep.subr.bf16.mxu0 %v7760_v43  ;;  %v7844_v43 = vld [vmem:[%s11526_s1 + $0xa04] ss:$16 sps:$4 sm:$0xff]  }
  0xcb   :  { %5413 = vmatpush1.bf16.msra.mxu1 %v7761_v45  ;;  %v9609_v45 = vrot.slane %v9385_v30, %v8900_v49  ;;  %v9622_v30 = vcombine.high %v9418_v39, %v9418_v39 }
  0xcc   :  { %5003 = vmatpush1.bf16.msra.mxu0 %v7758_v44  ;;  %5414 = vmatprep.subr.bf16.mxu1 %v7769_v22  ;;  %v7842_v44 = vld [vmem:[%s11526_s1 + $0xa00] ss:$16 sps:$4 sm:$0xff]   ;;  %v7850_v22 = vld [vmem:[%s11526_s1 + $0xa24] ss:$16 sps:$4 sm:$0xff]  }
  0xcd   :  { %5004 = vmatprep.subr.bf16.mxu0 %v7766_v46  ;;  %v7845_v46 = vld [vmem:[%s11526_s1 + $0x608] ss:$16 sps:$4 sm:$0xff]  }
  0xcf   :  { %5415 = vmatpush1.bf16.msra.mxu1 %v7767_v48  ;;  %v7848_v48 = vld [vmem:[%s11526_s1 + $0xa20] ss:$16 sps:$4 sm:$0xff]  }
  0xd0   :  { %5005 = vmatpush1.bf16.msra.mxu0 %v7764_v47  ;;  %5416 = vmatprep.subr.bf16.mxu1 %v7775_v51  ;;  %v7853_v47 = vld [vmem:[%s11526_s1 + $0x62c] ss:$16 sps:$4 sm:$0xff]   ;;  %v7856_v51 = vld [vmem:[%s11526_s1 + $0xa44] ss:$16 sps:$4 sm:$0xff]  }
  0xd1   :  { %5006 = vmatprep.subr.bf16.mxu0 %v7772_v50  ;;  %v7851_v50 = vld [vmem:[%s11526_s1 + $0x628] ss:$16 sps:$4 sm:$0xff]  }
  0xd3   :  { %5417 = vmatpush1.bf16.msra.mxu1 %v7773_v53  ;;  %v7857_v53 = vld [vmem:[%s11526_s1 + $0x648] ss:$16 sps:$4 sm:$0xff]  }
  0xd4   :  { %5007 = vmatpush1.bf16.msra.mxu0 %v7770_v52  ;;  %5418 = vmatprep.subr.bf16.mxu1 %v7781_v55  ;;  %v7854_v52 = vld [vmem:[%s11526_s1 + $0xa40] ss:$16 sps:$4 sm:$0xff]  }
  0xd5   :  { %5008 = vmatprep.subr.bf16.mxu0 %v7778_v54  ;;  %v7862_v54 = vld [vmem:[%s11526_s1 + $0xa64] ss:$16 sps:$4 sm:$0xff]   ;;  %v7860_v55 = vld [vmem:[%s11526_s1 + $0xa60] ss:$16 sps:$4 sm:$0xff]  }
  0xd7   :  { %5419 = vmatpush1.bf16.msra.mxu1 %v7779_v57  ;;  %v7868_v57 = vld [vmem:[%s11526_s1 + $0xa84] ss:$16 sps:$4 sm:$0xff]  }
  0xd8   :  { %5009 = vmatpush1.bf16.msra.mxu0 %v7776_v56  ;;  %5420 = vmatprep.subr.bf16.mxu1 %v7787_v59  ;;  %v7863_v56 = vld [vmem:[%s11526_s1 + $0x668] ss:$16 sps:$4 sm:$0xff]   ;;  %v7866_v59 = vld [vmem:[%s11526_s1 + $0xa80] ss:$16 sps:$4 sm:$0xff]  }
  0xd9   :  { %5010 = vmatprep.subr.bf16.mxu0 %v7784_v58  ;;  %v7871_v58 = vld [vmem:[%s11526_s1 + $0x68c] ss:$16 sps:$4 sm:$0xff]  }
  0xdb   :  { %5421 = vmatpush1.bf16.msra.mxu1 %v7785_v61  ;;  %v7874_v61 = vld [vmem:[%s11526_s1 + $0xaa4] ss:$16 sps:$4 sm:$0xff]  }
  0xdc   :  { %5011 = vmatpush1.bf16.msra.mxu0 %v7782_v60  ;;  %5422 = vmatprep.subr.bf16.mxu1 %v7793_v63  ;;  %v7869_v60 = vld [vmem:[%s11526_s1 + $0x688] ss:$16 sps:$4 sm:$0xff]   ;;  %v7872_v63 = vld [vmem:[%s11526_s1 + $0xaa0] ss:$16 sps:$4 sm:$0xff]  }
  0xdd   :  { %5012 = vmatprep.subr.bf16.mxu0 %v7790_v62  ;;  %v7877_v62 = vld [vmem:[%s11526_s1 + $0x6ac] ss:$16 sps:$4 sm:$0xff]  }
  0xdf   :  { %5423 = vmatpush1.bf16.msra.mxu1 %v7791_v2  ;;  %v7880_v2 = vld [vmem:[%s11526_s1 + $0xac4] ss:$16 sps:$4 sm:$0xff]  }
  0xe0   :  { %5013 = vmatpush1.bf16.msra.mxu0 %v7788_v1  ;;  %5424 = vmatprep.subr.bf16.mxu1 %v7799_v4  ;;  %v7875_v1 = vld [vmem:[%s11526_s1 + $0x6a8] ss:$16 sps:$4 sm:$0xff]  }
  0xe1   :  { %5014 = vmatprep.subr.bf16.mxu0 %v7796_v3  ;;  %v7883_v3 = vld [vmem:[%s11526_s1 + $0x6cc] ss:$16 sps:$4 sm:$0xff]  }
  0xe3   :  { %5425 = vmatpush1.bf16.msra.mxu1 %v7797_v6 }
  0xe4   :  { %5015 = vmatpush1.bf16.msra.mxu0 %v7794_v5  ;;  %5426 = vmatprep.subr.bf16.mxu1 %v7805_v8  ;;  %v7881_v8 = vld [vmem:[%s11526_s1 + $0x6c8] ss:$16 sps:$4 sm:$0xff]  }
  0xe5   :  { %5016 = vmatprep.subr.bf16.mxu0 %v7802_v7  ;;  %v7878_v7 = vld [vmem:[%s11526_s1 + $0xac0] ss:$16 sps:$4 sm:$0xff]  }
  0xe7   :  { %5427 = vmatpush1.bf16.msra.mxu1 %v7803_v11  ;;  %v7886_v11 = vld [vmem:[%s11526_s1 + $0xae4] ss:$16 sps:$4 sm:$0xff]  }
  0xe8   :  { %5017 = vmatpush1.bf16.msra.mxu0 %v7800_v9  ;;  %5428 = vmatprep.subr.bf16.mxu1 %v7811_v14  ;;  %v7884_v14 = vld [vmem:[%s11526_s1 + $0xae0] ss:$16 sps:$4 sm:$0xff]  }
  0xe9   :  { %5018 = vmatprep.subr.bf16.mxu0 %v7808_v13  ;;  %v7889_v13 = vld [vmem:[%s11526_s1 + $0x6ec] ss:$16 sps:$4 sm:$0xff]  }
  0xeb   :  { %5429 = vmatpush1.bf16.msra.mxu1 %v7809_v16  ;;  %v7892_v16 = vld [vmem:[%s11526_s1 + $0xb04] ss:$16 sps:$4 sm:$0xff]  }
  0xec   :  { %5019 = vmatpush1.bf16.msra.mxu0 %v7806_v15  ;;  %5430 = vmatprep.subr.bf16.mxu1 %v7817_v19  ;;  %v7887_v15 = vld [vmem:[%s11526_s1 + $0x6e8] ss:$16 sps:$4 sm:$0xff]   ;;  %v7890_v19 = vld [vmem:[%s11526_s1 + $0xb00] ss:$16 sps:$4 sm:$0xff]  }
  0xed   :  { %5020 = vmatprep.subr.bf16.mxu0 %v7814_v17  ;;  %v7895_v17 = vld [vmem:[%s11526_s1 + $0x70c] ss:$16 sps:$4 sm:$0xff]  }
  0xef   :  { %5431 = vmatpush1.bf16.msra.mxu1 %v7815_v21  ;;  %v7898_v21 = vld [vmem:[%s11526_s1 + $0xb24] ss:$16 sps:$4 sm:$0xff]  }
  0xf0   :  { %5021 = vmatpush1.bf16.msra.mxu0 %v7812_v20  ;;  %5432 = vmatprep.subr.bf16.mxu1 %v7823_v25  ;;  %v7893_v20 = vld [vmem:[%s11526_s1 + $0x708] ss:$16 sps:$4 sm:$0xff]   ;;  %v7896_v25 = vld [vmem:[%s11526_s1 + $0xb20] ss:$16 sps:$4 sm:$0xff]  }
  0xf1   :  { %5022 = vmatprep.subr.bf16.mxu0 %v7820_v23  ;;  %v7901_v23 = vld [vmem:[%s11526_s1 + $0x72c] ss:$16 sps:$4 sm:$0xff]  }
  0xf3   :  { %5433 = vmatpush1.bf16.msra.mxu1 %v7821_v28  ;;  %v7904_v28 = vld [vmem:[%s11526_s1 + $0xb44] ss:$16 sps:$4 sm:$0xff]  }
  0xf4   :  { %5023 = vmatpush1.bf16.msra.mxu0 %v7818_v26  ;;  %5434 = vmatprep.subr.bf16.mxu1 %v7829_v31  ;;  %v7899_v26 = vld [vmem:[%s11526_s1 + $0x728] ss:$16 sps:$4 sm:$0xff]   ;;  %v7902_v31 = vld [vmem:[%s11526_s1 + $0xb40] ss:$16 sps:$4 sm:$0xff]  }
  0xf5   :  { %5024 = vmatprep.subr.bf16.mxu0 %v7826_v29  ;;  %v7907_v29 = vld [vmem:[%s11526_s1 + $0x74c] ss:$16 sps:$4 sm:$0xff]  }
  0xf7   :  { %5435 = vmatpush1.bf16.msra.mxu1 %v7827_v33  ;;  %v7910_v33 = vld [vmem:[%s11526_s1 + $0xb64] ss:$16 sps:$4 sm:$0xff]  }
  0xf8   :  { %5025 = vmatpush1.bf16.msra.mxu0 %v7824_v32  ;;  %5436 = vmatprep.subr.bf16.mxu1 %v7835_v34  ;;  %v7905_v32 = vld [vmem:[%s11526_s1 + $0x748] ss:$16 sps:$4 sm:$0xff]   ;;  %v7908_v34 = vld [vmem:[%s11526_s1 + $0xb60] ss:$16 sps:$4 sm:$0xff]  }
  0xf9   :  { %5026 = vmatprep.subr.bf16.mxu0 %v7832_v12  ;;  %v7913_v12 = vld [vmem:[%s11526_s1 + $0x76c] ss:$16 sps:$4 sm:$0xff]  }
  0xfb   :  { %5437 = vmatpush1.bf16.msra.mxu1 %v7833_v0  ;;  %v7916_v0 = vld [vmem:[%s11526_s1 + $0xb84] ss:$16 sps:$4 sm:$0xff]  }
  0xfc   :  { %5027 = vmatpush1.bf16.msra.mxu0 %v7830_v35  ;;  %5438 = vmatprep.subr.bf16.mxu1 %v7841_v38  ;;  %v7911_v35 = vld [vmem:[%s11526_s1 + $0x768] ss:$16 sps:$4 sm:$0xff]   ;;  %v7914_v38 = vld [vmem:[%s11526_s1 + $0xb80] ss:$16 sps:$4 sm:$0xff]  }
  0xfd   :  { %5028 = vmatprep.subr.bf16.mxu0 %v7838_v37  ;;  %v7919_v37 = vld [vmem:[%s11526_s1 + $0x78c] ss:$16 sps:$4 sm:$0xff]  }
  0xff   :  { %5439 = vmatpush1.bf16.msra.mxu1 %v7839_v41  ;;  %v7922_v41 = vld [vmem:[%s11526_s1 + $0xba4] ss:$16 sps:$4 sm:$0xff]  }
 0x100   :  { %5029 = vmatpush1.bf16.msra.mxu0 %v7836_v40  ;;  %5449 = vmatprep.subr.bf16.mxu1 %v7847_v18  ;;  %v7917_v40 = vld [vmem:[%s11526_s1 + $0x788] ss:$16 sps:$4 sm:$0xff]   ;;  %v7920_v18 = vld [vmem:[%s11526_s1 + $0xba0] ss:$16 sps:$4 sm:$0xff]  }
 0x101   :  { %5039 = vmatprep.subr.bf16.mxu0 %v7844_v43  ;;  %v7925_v43 = vld [vmem:[%s11526_s1 + $0x7ac] ss:$16 sps:$4 sm:$0xff]  }
 0x102   :  { %5441 = vmatmul.mubr.bf16.vlgmr.msra.gmra.mrb[4].mxu1 %v9191_v27  ;;  %v7859_v27 = vld [vmem:[%s11526_s1 + $0x64c] ss:$16 sps:$4 sm:$0xff]  }
 0x103   :  { %5031 = vmatmul.mubr.bf16.vlgmr.msra.gmra.mrb[0].mxu0 %v9609_v45  ;;  %5450 = vmatpush1.bf16.msra.mxu1 %v7845_v46  ;;  %v7928_v46 = vld [vmem:[%s11526_s1 + $0xbc4] ss:$16 sps:$4 sm:$0xff]  }
 0x104   :  { %5040 = vmatpush1.bf16.msra.mxu0 %v7842_v44  ;;  %5451 = vmatprep.subr.bf16.mxu1 %v7853_v47  ;;  %v7923_v44 = vld [vmem:[%s11526_s1 + $0x7a8] ss:$16 sps:$4 sm:$0xff]   ;;  %v872_v47 = vcombine.high %v9369_v24, %v9369_v24  ;;  %v7937_v24 = vld [vmem:[%s11526_s1 + $0x7ec] ss:$16 sps:$4 sm:$0xff]  }
 0x105   :  { %5041 = vmatprep.subr.bf16.mxu0 %v7850_v22  ;;  %5071 = vmatprep.mubr.bf16.mxu0 %v9622_v30  ;;  %v7931_v22 = vld [vmem:[%s11526_s1 + $0x7cc] ss:$16 sps:$4 sm:$0xff]  }
 0x106   :  { %5481 = vmatprep.mubr.bf16.mxu1 %v9204_v10  ;;  %v7865_v10 = vld [vmem:[%s11526_s1 + $0x66c] ss:$16 sps:$4 sm:$0xff]  }
 0x107   :  { %5452 = vmatpush1.bf16.msra.mxu1 %v7851_v50  ;;  %v7929_v50 = vld [vmem:[%s11526_s1 + $0x7c8] ss:$16 sps:$4 sm:$0xff]  }
 0x108   :  { %5042 = vmatpush1.bf16.msra.mxu0 %v7848_v48  ;;  %5453 = vmatprep.subr.bf16.mxu1 %v7859_v27  ;;  %v7926_v48 = vld [vmem:[%s11526_s1 + $0xbc0] ss:$16 sps:$4 sm:$0xff]   ;;  %v9803_v27 = vrot.slane %v872_v47, %v8900_v49  ;;  %v8007_v47 = vld [vmem:[%s11526_s1 + $0x968] ss:$16 sps:$4 sm:$0xff]  }
 0x109   :  { %5043 = vmatprep.subr.bf16.mxu0 %v7856_v51  ;;  %v7934_v51 = vld [vmem:[%s11526_s1 + $0xbe4] ss:$16 sps:$4 sm:$0xff]  }
 0x10b   :  { %5454 = vmatpush1.bf16.msra.mxu1 %v7857_v53  ;;  %v7935_v53 = vld [vmem:[%s11526_s1 + $0x7e8] ss:$16 sps:$4 sm:$0xff]  }
 0x10c   :  { %5044 = vmatpush1.bf16.msra.mxu0 %v7854_v52  ;;  %5455 = vmatprep.subr.bf16.mxu1 %v7865_v10  ;;  %v7932_v52 = vld [vmem:[%s11526_s1 + $0xbe0] ss:$16 sps:$4 sm:$0xff]   ;;  %v7943_v10 = vld [vmem:[%s11526_s1 + $0x80c] ss:$16 sps:$4 sm:$0xff]  }
 0x10d   :  { %5045 = vmatprep.subr.bf16.mxu0 %v7862_v54  ;;  %v7940_v54 = vld [vmem:[%s11526_s1 + $0xc04] ss:$16 sps:$4 sm:$0xff]  }
 0x10f   :  { %5456 = vmatpush1.bf16.msra.mxu1 %v7863_v56  ;;  %v9821_v56 = vcombine.high %v9609_v45, %v9609_v45 }
 0x110   :  { %5046 = vmatpush1.bf16.msra.mxu0 %v7860_v55  ;;  %5457 = vmatprep.subr.bf16.mxu1 %v7871_v58  ;;  %v888_v55 = vcombine.high %v9803_v27, %v9803_v27  ;;  %v7941_v58 = vld [vmem:[%s11526_s1 + $0x808] ss:$16 sps:$4 sm:$0xff]  }
 0x111   :  { %5047 = vmatprep.subr.bf16.mxu0 %v7868_v57  ;;  %v7938_v57 = vld [vmem:[%s11526_s1 + $0xc00] ss:$16 sps:$4 sm:$0xff]  }
 0x113   :  { %5458 = vmatpush1.bf16.msra.mxu1 %v7869_v60  ;;  %v7949_v60 = vld [vmem:[%s11526_s1 + $0x82c] ss:$16 sps:$4 sm:$0xff]  }
 0x114   :  { %5048 = vmatpush1.bf16.msra.mxu0 %v7866_v59  ;;  %5459 = vmatprep.subr.bf16.mxu1 %v7877_v62  ;;  %v7946_v59 = vld [vmem:[%s11526_s1 + $0xc24] ss:$16 sps:$4 sm:$0xff]   ;;  %v7944_v62 = vld [vmem:[%s11526_s1 + $0xc20] ss:$16 sps:$4 sm:$0xff]  }
 0x115   :  { %5049 = vmatprep.subr.bf16.mxu0 %v7874_v61  ;;  %v9688_v4 = vpop.f32.mrb[0].mxu1  ;;  %v9836_v61 = vrot.slane %v888_v55, %v8900_v49  ;;  %v8024_v55 = vld [vmem:[%s11526_s1 + $0xdc4] ss:$16 sps:$4 sm:$0xff]  }
 0x116   :  { %v9690_v5 = vpop.f32.mrb[1].mxu1 }
 0x117   :  { %v4872_v6 = vpop.f32.mrb[2].mxu1  ;;  %5460 = vmatpush1.bf16.msra.mxu1 %v7875_v1  ;;  %v7952_v1 = vld [vmem:[%s11526_s1 + $0xc44] ss:$16 sps:$4 sm:$0xff]  }
 0x118   :  { %5050 = vmatpush1.bf16.msra.mxu0 %v7872_v63  ;;  %v4873_v9 = vpop.f32.mrb[3].mxu1  ;;  %5461 = vmatprep.subr.bf16.mxu1 %v7883_v3  ;;  %v7947_v63 = vld [vmem:[%s11526_s1 + $0x828] ss:$16 sps:$4 sm:$0xff]   ;;  %v7958_v6 = vld [vmem:[%s11526_s1 + $0xc64] ss:$16 sps:$4 sm:$0xff]  }
 0x119   :  { %5051 = vmatprep.subr.bf16.mxu0 %v7880_v2  ;;  %v7950_v2 = vld [vmem:[%s11526_s1 + $0xc40] ss:$16 sps:$4 sm:$0xff]   ;;  %v7953_v3 = vld [vmem:[%s11526_s1 + $0x848] ss:$16 sps:$4 sm:$0xff]   ;;  %v7964_v9 = vld [vmem:[%s11526_s1 + $0xc84] ss:$16 sps:$4 sm:$0xff]  }
 0x11b   :  { %5462 = vmatpush1.bf16.msra.mxu1 %v7881_v8  ;;  %v7959_v8 = vld [vmem:[%s11526_s1 + $0x868] ss:$16 sps:$4 sm:$0xff]  }
 0x11c   :  { %5052 = vmatpush1.bf16.msra.mxu0 %v7878_v7  ;;  %5463 = vmatprep.subr.bf16.mxu1 %v7889_v13  ;;  %v7956_v7 = vld [vmem:[%s11526_s1 + $0xc60] ss:$16 sps:$4 sm:$0xff]  }
 0x11d   :  { %5053 = vmatprep.subr.bf16.mxu0 %v7886_v11  ;;  %v7967_v11 = vld [vmem:[%s11526_s1 + $0x88c] ss:$16 sps:$4 sm:$0xff]   ;;  %v7962_v13 = vld [vmem:[%s11526_s1 + $0xc80] ss:$16 sps:$4 sm:$0xff]  }
 0x11f   :  { %5464 = vmatpush1.bf16.msra.mxu1 %v7887_v15  ;;  %v7970_v15 = vld [vmem:[%s11526_s1 + $0xca4] ss:$16 sps:$4 sm:$0xff]  }
 0x120   :  { %5054 = vmatpush1.bf16.msra.mxu0 %v7884_v14  ;;  %5465 = vmatprep.subr.bf16.mxu1 %v7895_v17  ;;  %v7965_v14 = vld [vmem:[%s11526_s1 + $0x888] ss:$16 sps:$4 sm:$0xff]   ;;  %v7968_v17 = vld [vmem:[%s11526_s1 + $0xca0] ss:$16 sps:$4 sm:$0xff]  }
 0x121   :  { %5055 = vmatprep.subr.bf16.mxu0 %v7892_v16  ;;  %v7973_v16 = vld [vmem:[%s11526_s1 + $0x8ac] ss:$16 sps:$4 sm:$0xff]  }
 0x123   :  { %5466 = vmatpush1.bf16.msra.mxu1 %v7893_v20  ;;  %v7976_v20 = vld [vmem:[%s11526_s1 + $0xcc4] ss:$16 sps:$4 sm:$0xff]  }
 0x124   :  { %5056 = vmatpush1.bf16.msra.mxu0 %v7890_v19  ;;  %5467 = vmatprep.subr.bf16.mxu1 %v7901_v23  ;;  %v7971_v19 = vld [vmem:[%s11526_s1 + $0x8a8] ss:$16 sps:$4 sm:$0xff]   ;;  %v7974_v23 = vld [vmem:[%s11526_s1 + $0xcc0] ss:$16 sps:$4 sm:$0xff]  }
 0x125   :  { %5057 = vmatprep.subr.bf16.mxu0 %v7898_v21  ;;  %v7979_v21 = vld [vmem:[%s11526_s1 + $0x8cc] ss:$16 sps:$4 sm:$0xff]  }
 0x127   :  { %5468 = vmatpush1.bf16.msra.mxu1 %v7899_v26  ;;  %v7982_v26 = vld [vmem:[%s11526_s1 + $0xce4] ss:$16 sps:$4 sm:$0xff]  }
 0x128   :  { %5058 = vmatpush1.bf16.msra.mxu0 %v7896_v25  ;;  %5469 = vmatprep.subr.bf16.mxu1 %v7907_v29  ;;  %v7977_v25 = vld [vmem:[%s11526_s1 + $0x8c8] ss:$16 sps:$4 sm:$0xff]   ;;  %v7980_v29 = vld [vmem:[%s11526_s1 + $0xce0] ss:$16 sps:$4 sm:$0xff]  }
 0x129   :  { %5059 = vmatprep.subr.bf16.mxu0 %v7904_v28  ;;  %v7985_v28 = vld [vmem:[%s11526_s1 + $0x8ec] ss:$16 sps:$4 sm:$0xff]  }
 0x12b   :  { %5470 = vmatpush1.bf16.msra.mxu1 %v7905_v32  ;;  %v7988_v32 = vld [vmem:[%s11526_s1 + $0xd04] ss:$16 sps:$4 sm:$0xff]  }
 0x12c   :  { %5060 = vmatpush1.bf16.msra.mxu0 %v7902_v31  ;;  %5471 = vmatprep.subr.bf16.mxu1 %v7913_v12  ;;  %v7983_v31 = vld [vmem:[%s11526_s1 + $0x8e8] ss:$16 sps:$4 sm:$0xff]   ;;  %v7986_v12 = vld [vmem:[%s11526_s1 + $0xd00] ss:$16 sps:$4 sm:$0xff]  }
 0x12d   :  { %5061 = vmatprep.subr.bf16.mxu0 %v7910_v33  ;;  %v7991_v33 = vld [vmem:[%s11526_s1 + $0x90c] ss:$16 sps:$4 sm:$0xff]  }
 0x12f   :  { %5472 = vmatpush1.bf16.msra.mxu1 %v7911_v35  ;;  %v7994_v35 = vld [vmem:[%s11526_s1 + $0xd24] ss:$16 sps:$4 sm:$0xff]  }
 0x130   :  { %5062 = vmatpush1.bf16.msra.mxu0 %v7908_v34  ;;  %5473 = vmatprep.subr.bf16.mxu1 %v7919_v37  ;;  %v7989_v34 = vld [vmem:[%s11526_s1 + $0x908] ss:$16 sps:$4 sm:$0xff]   ;;  %v7992_v37 = vld [vmem:[%s11526_s1 + $0xd20] ss:$16 sps:$4 sm:$0xff]  }
 0x131   :  { %5063 = vmatprep.subr.bf16.mxu0 %v7916_v0  ;;  %v7997_v0 = vld [vmem:[%s11526_s1 + $0x92c] ss:$16 sps:$4 sm:$0xff]  }
 0x133   :  { %5474 = vmatpush1.bf16.msra.mxu1 %v7917_v40  ;;  %v8000_v40 = vld [vmem:[%s11526_s1 + $0xd44] ss:$16 sps:$4 sm:$0xff]  }
 0x134   :  { %5064 = vmatpush1.bf16.msra.mxu0 %v7914_v38  ;;  %5475 = vmatprep.subr.bf16.mxu1 %v7925_v43  ;;  %v7995_v38 = vld [vmem:[%s11526_s1 + $0x928] ss:$16 sps:$4 sm:$0xff]   ;;  %v7998_v43 = vld [vmem:[%s11526_s1 + $0xd40] ss:$16 sps:$4 sm:$0xff]  }
 0x135   :  { %5065 = vmatprep.subr.bf16.mxu0 %v7922_v41  ;;  %v8003_v41 = vld [vmem:[%s11526_s1 + $0x94c] ss:$16 sps:$4 sm:$0xff]  }
 0x137   :  { %5476 = vmatpush1.bf16.msra.mxu1 %v7923_v44  ;;  %v8006_v44 = vld [vmem:[%s11526_s1 + $0xd64] ss:$16 sps:$4 sm:$0xff]  }
 0x138   :  { %5066 = vmatpush1.bf16.msra.mxu0 %v7920_v18  ;;  %5477 = vmatprep.subr.bf16.mxu1 %v7931_v22  ;;  %v8001_v18 = vld [vmem:[%s11526_s1 + $0x948] ss:$16 sps:$4 sm:$0xff]   ;;  %v8004_v22 = vld [vmem:[%s11526_s1 + $0xd60] ss:$16 sps:$4 sm:$0xff]  }
 0x139   :  { %5067 = vmatprep.subr.bf16.mxu0 %v7928_v46  ;;  %v8009_v46 = vld [vmem:[%s11526_s1 + $0x96c] ss:$16 sps:$4 sm:$0xff]  }
 0x13b   :  { %5478 = vmatpush1.bf16.msra.mxu1 %v7929_v50  ;;  %v8015_v50 = vld [vmem:[%s11526_s1 + $0x98c] ss:$16 sps:$4 sm:$0xff]  }
 0x13c   :  { %5068 = vmatpush1.bf16.msra.mxu0 %v7926_v48  ;;  %5479 = vmatprep.subr.bf16.mxu1 %v7937_v24  ;;  %v8012_v48 = vld [vmem:[%s11526_s1 + $0xd84] ss:$16 sps:$4 sm:$0xff]   ;;  %v8013_v24 = vld [vmem:[%s11526_s1 + $0x988] ss:$16 sps:$4 sm:$0xff]  }
 0x13d   :  { %5069 = vmatprep.subr.bf16.mxu0 %v7934_v51  ;;  %v8010_v51 = vld [vmem:[%s11526_s1 + $0xd80] ss:$16 sps:$4 sm:$0xff]  }
 0x13f   :  { %5480 = vmatpush1.bf16.msra.mxu1 %v7935_v53  ;;  %v8021_v53 = vld [vmem:[%s11526_s1 + $0x9ac] ss:$16 sps:$4 sm:$0xff]  }
 0x140   :  { %5070 = vmatpush1.bf16.msra.mxu0 %v7932_v52  ;;  %5490 = vmatprep.subr.bf16.mxu1 %v7943_v10  ;;  %v8018_v52 = vld [vmem:[%s11526_s1 + $0xda4] ss:$16 sps:$4 sm:$0xff]   ;;  %v8019_v10 = vld [vmem:[%s11526_s1 + $0x9a8] ss:$16 sps:$4 sm:$0xff]  }
 0x141   :  { %5080 = vmatprep.subr.bf16.mxu0 %v7940_v54  ;;  %v8016_v54 = vld [vmem:[%s11526_s1 + $0xda0] ss:$16 sps:$4 sm:$0xff]  }
 0x142   :  { %5482 = vmatmul.mubr.bf16.vlgmr.msra.gmra.mrb[4].mxu1 %v9406_v36  ;;  %v7955_v36 = vld [vmem:[%s11526_s1 + $0x84c] ss:$16 sps:$4 sm:$0xff]  }
 0x143   :  { %5072 = vmatmul.mubr.bf16.vlgmr.msra.gmra.mrb[0].mxu0 %v9821_v56  ;;  %5491 = vmatpush1.bf16.msra.mxu1 %v7941_v58  ;;  %v8022_v58 = vld [vmem:[%s11526_s1 + $0xdc0] ss:$16 sps:$4 sm:$0xff]  }
 0x144   :  { %5081 = vmatpush1.bf16.msra.mxu0 %v7938_v57  ;;  %5492 = vmatprep.subr.bf16.mxu1 %v7949_v60  ;;  %v8027_v57 = vld [vmem:[%s11526_s1 + $0x9cc] ss:$16 sps:$4 sm:$0xff]   ;;  %v8030_v60 = vld [vmem:[%s11526_s1 + $0xde4] ss:$16 sps:$4 sm:$0xff]  }
 0x145   :  { %5082 = vmatprep.subr.bf16.mxu0 %v7946_v59  ;;  %5112 = vmatprep.mubr.bf16.mxu0 %v9836_v61  ;;  %v8025_v59 = vld [vmem:[%s11526_s1 + $0x9c8] ss:$16 sps:$4 sm:$0xff]  }
 0x146   :  { %5522 = vmatprep.mubr.bf16.mxu1 %v9418_v39  ;;  %v7961_v39 = vld [vmem:[%s11526_s1 + $0x86c] ss:$16 sps:$4 sm:$0xff]  }
 0x147   :  { %5493 = vmatpush1.bf16.msra.mxu1 %v7947_v63  ;;  %v8028_v63 = vld [vmem:[%s11526_s1 + $0xde0] ss:$16 sps:$4 sm:$0xff]  }
 0x148   :  { %5083 = vmatpush1.bf16.msra.mxu0 %v7944_v62  ;;  %5494 = vmatprep.subr.bf16.mxu1 %v7955_v36  ;;  %v8033_v62 = vld [vmem:[%s11526_s1 + $0x9ec] ss:$16 sps:$4 sm:$0xff]   ;;  %v8037_v36 = vld [vmem:[%s11526_s1 + $0xe04] ss:$16 sps:$4 sm:$0xff]  }
 0x149   :  { %5084 = vmatprep.subr.bf16.mxu0 %v7952_v1  ;;  %v8031_v1 = vld [vmem:[%s11526_s1 + $0x9e8] ss:$16 sps:$4 sm:$0xff]  }
 0x14b   :  { %5495 = vmatpush1.bf16.msra.mxu1 %v7953_v3  ;;  %v10024_v3 = vrot.slane %v9803_v27, %v8900_v49  ;;  %v8046_v27 = vld [vmem:[%s11526_s1 + $0xa2c] ss:$16 sps:$4 sm:$0xff]  }
 0x14c   :  { %5085 = vmatpush1.bf16.msra.mxu0 %v7950_v2  ;;  %5496 = vmatprep.subr.bf16.mxu1 %v7961_v39  ;;  %v8040_v2 = vld [vmem:[%s11526_s1 + $0xa0c] ss:$16 sps:$4 sm:$0xff]   ;;  %v8038_v39 = vld [vmem:[%s11526_s1 + $0xa08] ss:$16 sps:$4 sm:$0xff]  }
 0x14d   :  { %5086 = vmatprep.subr.bf16.mxu0 %v7958_v6  ;;  %v8035_v6 = vld [vmem:[%s11526_s1 + $0xe00] ss:$16 sps:$4 sm:$0xff]  }
 0x14f   :  { %5497 = vmatpush1.bf16.msra.mxu1 %v7959_v8  ;;  %v10040_v8 = vcombine.high %v9836_v61, %v9836_v61 }
 0x150   :  { %5087 = vmatpush1.bf16.msra.mxu0 %v7956_v7  ;;  %5498 = vmatprep.subr.bf16.mxu1 %v7967_v11  ;;  %v8043_v7 = vld [vmem:[%s11526_s1 + $0xe24] ss:$16 sps:$4 sm:$0xff]   ;;  %v8044_v11 = vld [vmem:[%s11526_s1 + $0xa28] ss:$16 sps:$4 sm:$0xff]  }
 0x151   :  { %5088 = vmatprep.subr.bf16.mxu0 %v7964_v9  ;;  %v8041_v9 = vld [vmem:[%s11526_s1 + $0xe20] ss:$16 sps:$4 sm:$0xff]  }
 0x153   :  { %5499 = vmatpush1.bf16.msra.mxu1 %v7965_v14  ;;  %v8047_v14 = vld [vmem:[%s11526_s1 + $0xe40] ss:$16 sps:$4 sm:$0xff]  }
 0x154   :  { %5089 = vmatpush1.bf16.msra.mxu0 %v7962_v13  ;;  %5500 = vmatprep.subr.bf16.mxu1 %v7973_v16  ;;  %v8049_v13 = vld [vmem:[%s11526_s1 + $0xe44] ss:$16 sps:$4 sm:$0xff]  }
 0x155   :  { %5090 = vmatprep.subr.bf16.mxu0 %v7970_v15  ;;  %v8050_v15 = vld [vmem:[%s11526_s1 + $0xa48] ss:$16 sps:$4 sm:$0xff]   ;;  %v8055_v16 = vld [vmem:[%s11526_s1 + $0xe64] ss:$16 sps:$4 sm:$0xff]  }
 0x157   :  { %5501 = vmatpush1.bf16.msra.mxu1 %v7971_v19  ;;  %v8056_v19 = vld [vmem:[%s11526_s1 + $0xa68] ss:$16 sps:$4 sm:$0xff]  }
 0x158   :  { %5091 = vmatpush1.bf16.msra.mxu0 %v7968_v17  ;;  %5502 = vmatprep.subr.bf16.mxu1 %v7979_v21  ;;  %v8053_v17 = vld [vmem:[%s11526_s1 + $0xe60] ss:$16 sps:$4 sm:$0xff]   ;;  %v8064_v21 = vld [vmem:[%s11526_s1 + $0xa8c] ss:$16 sps:$4 sm:$0xff]  }
 0x159   :  { %5092 = vmatprep.subr.bf16.mxu0 %v7976_v20  ;;  %v8061_v20 = vld [vmem:[%s11526_s1 + $0xe84] ss:$16 sps:$4 sm:$0xff]  }
 0x15b   :  { %5503 = vmatpush1.bf16.msra.mxu1 %v7977_v25  ;;  %v8062_v25 = vld [vmem:[%s11526_s1 + $0xa88] ss:$16 sps:$4 sm:$0xff]  }
 0x15c   :  { %5093 = vmatpush1.bf16.msra.mxu0 %v7974_v23  ;;  %5504 = vmatprep.subr.bf16.mxu1 %v7985_v28  ;;  %v8059_v23 = vld [vmem:[%s11526_s1 + $0xe80] ss:$16 sps:$4 sm:$0xff]   ;;  %v8070_v28 = vld [vmem:[%s11526_s1 + $0xaac] ss:$16 sps:$4 sm:$0xff]  }
 0x15d   :  { %5094 = vmatprep.subr.bf16.mxu0 %v7982_v26  ;;  %v8067_v26 = vld [vmem:[%s11526_s1 + $0xea4] ss:$16 sps:$4 sm:$0xff]  }
 0x15f   :  { %5505 = vmatpush1.bf16.msra.mxu1 %v7983_v31  ;;  %v8068_v31 = vld [vmem:[%s11526_s1 + $0xaa8] ss:$16 sps:$4 sm:$0xff]  }
 0x160   :  { %5095 = vmatpush1.bf16.msra.mxu0 %v7980_v29  ;;  %5506 = vmatprep.subr.bf16.mxu1 %v7991_v33  ;;  %v8065_v29 = vld [vmem:[%s11526_s1 + $0xea0] ss:$16 sps:$4 sm:$0xff]   ;;  %v8076_v33 = vld [vmem:[%s11526_s1 + $0xacc] ss:$16 sps:$4 sm:$0xff]  }
 0x161   :  { %5096 = vmatprep.subr.bf16.mxu0 %v7988_v32  ;;  %v8073_v32 = vld [vmem:[%s11526_s1 + $0xec4] ss:$16 sps:$4 sm:$0xff]  }
 0x163   :  { %5507 = vmatpush1.bf16.msra.mxu1 %v7989_v34  ;;  %v8074_v34 = vld [vmem:[%s11526_s1 + $0xac8] ss:$16 sps:$4 sm:$0xff]  }
 0x164   :  { %5097 = vmatpush1.bf16.msra.mxu0 %v7986_v12  ;;  %5508 = vmatprep.subr.bf16.mxu1 %v7997_v0  ;;  %v8071_v12 = vld [vmem:[%s11526_s1 + $0xec0] ss:$16 sps:$4 sm:$0xff]   ;;  %v8082_v0 = vld [vmem:[%s11526_s1 + $0xaec] ss:$16 sps:$4 sm:$0xff]  }
 0x165   :  { %5098 = vmatprep.subr.bf16.mxu0 %v7994_v35  ;;  %v8079_v35 = vld [vmem:[%s11526_s1 + $0xee4] ss:$16 sps:$4 sm:$0xff]  }
 0x167   :  { %5509 = vmatpush1.bf16.msra.mxu1 %v7995_v38  ;;  %v8080_v38 = vld [vmem:[%s11526_s1 + $0xae8] ss:$16 sps:$4 sm:$0xff]  }
 0x168   :  { %5099 = vmatpush1.bf16.msra.mxu0 %v7992_v37  ;;  %5510 = vmatprep.subr.bf16.mxu1 %v8003_v41  ;;  %v8077_v37 = vld [vmem:[%s11526_s1 + $0xee0] ss:$16 sps:$4 sm:$0xff]   ;;  %v8088_v41 = vld [vmem:[%s11526_s1 + $0xb0c] ss:$16 sps:$4 sm:$0xff]  }
 0x169   :  { %5100 = vmatprep.subr.bf16.mxu0 %v8000_v40  ;;  %v8085_v40 = vld [vmem:[%s11526_s1 + $0xf04] ss:$16 sps:$4 sm:$0xff]  }
 0x16b   :  { %5511 = vmatpush1.bf16.msra.mxu1 %v8001_v18  ;;  %v8086_v18 = vld [vmem:[%s11526_s1 + $0xb08] ss:$16 sps:$4 sm:$0xff]  }
 0x16c   :  { %5101 = vmatpush1.bf16.msra.mxu0 %v7998_v43  ;;  %5512 = vmatprep.subr.bf16.mxu1 %v8009_v46  ;;  %v8083_v43 = vld [vmem:[%s11526_s1 + $0xf00] ss:$16 sps:$4 sm:$0xff]   ;;  %v8094_v46 = vld [vmem:[%s11526_s1 + $0xb2c] ss:$16 sps:$4 sm:$0xff]  }
 0x16d   :  { %5102 = vmatprep.subr.bf16.mxu0 %v8006_v44  ;;  %v8091_v44 = vld [vmem:[%s11526_s1 + $0xf24] ss:$16 sps:$4 sm:$0xff]  }
 0x16f   :  { %5513 = vmatpush1.bf16.msra.mxu1 %v8007_v47  ;;  %v8092_v47 = vld [vmem:[%s11526_s1 + $0xb28] ss:$16 sps:$4 sm:$0xff]  }
 0x170   :  { %5103 = vmatpush1.bf16.msra.mxu0 %v8004_v22  ;;  %5514 = vmatprep.subr.bf16.mxu1 %v8015_v50  ;;  %v8089_v22 = vld [vmem:[%s11526_s1 + $0xf20] ss:$16 sps:$4 sm:$0xff]   ;;  %v8100_v50 = vld [vmem:[%s11526_s1 + $0xb4c] ss:$16 sps:$4 sm:$0xff]  }
 0x171   :  { %5104 = vmatprep.subr.bf16.mxu0 %v8012_v48  ;;  %v8097_v48 = vld [vmem:[%s11526_s1 + $0xf44] ss:$16 sps:$4 sm:$0xff]  }
 0x173   :  { %5515 = vmatpush1.bf16.msra.mxu1 %v8013_v24  ;;  %v8098_v24 = vld [vmem:[%s11526_s1 + $0xb48] ss:$16 sps:$4 sm:$0xff]  }
 0x174   :  { %5105 = vmatpush1.bf16.msra.mxu0 %v8010_v51  ;;  %5516 = vmatprep.subr.bf16.mxu1 %v8021_v53  ;;  %v8095_v51 = vld [vmem:[%s11526_s1 + $0xf40] ss:$16 sps:$4 sm:$0xff]   ;;  %v8106_v53 = vld [vmem:[%s11526_s1 + $0xb6c] ss:$16 sps:$4 sm:$0xff]  }
 0x175   :  { %5106 = vmatprep.subr.bf16.mxu0 %v8018_v52  ;;  %v8103_v52 = vld [vmem:[%s11526_s1 + $0xf64] ss:$16 sps:$4 sm:$0xff]  }
 0x177   :  { %5517 = vmatpush1.bf16.msra.mxu1 %v8019_v10  ;;  %v8104_v10 = vld [vmem:[%s11526_s1 + $0xb68] ss:$16 sps:$4 sm:$0xff]  }
 0x178   :  { %5107 = vmatpush1.bf16.msra.mxu0 %v8016_v54  ;;  %5518 = vmatprep.subr.bf16.mxu1 %v8027_v57  ;;  %v8101_v54 = vld [vmem:[%s11526_s1 + $0xf60] ss:$16 sps:$4 sm:$0xff]   ;;  %v8112_v57 = vld [vmem:[%s11526_s1 + $0xb8c] ss:$16 sps:$4 sm:$0xff]  }
 0x179   :  { %5108 = vmatprep.subr.bf16.mxu0 %v8024_v55  ;;  %v8109_v55 = vld [vmem:[%s11526_s1 + $0xf84] ss:$16 sps:$4 sm:$0xff]  }
 0x17b   :  { %5519 = vmatpush1.bf16.msra.mxu1 %v8025_v59  ;;  %v8110_v59 = vld [vmem:[%s11526_s1 + $0xb88] ss:$16 sps:$4 sm:$0xff]  }
 0x17c   :  { %5109 = vmatpush1.bf16.msra.mxu0 %v8022_v58  ;;  %5520 = vmatprep.subr.bf16.mxu1 %v8033_v62  ;;  %v8107_v58 = vld [vmem:[%s11526_s1 + $0xf80] ss:$16 sps:$4 sm:$0xff]   ;;  %v8118_v62 = vld [vmem:[%s11526_s1 + $0xbac] ss:$16 sps:$4 sm:$0xff]  }
 0x17d   :  { %5110 = vmatprep.subr.bf16.mxu0 %v8030_v60  ;;  %v8115_v60 = vld [vmem:[%s11526_s1 + $0xfa4] ss:$16 sps:$4 sm:$0xff]  }
 0x17f   :  { %5521 = vmatpush1.bf16.msra.mxu1 %v8031_v1  ;;  %v8116_v1 = vld [vmem:[%s11526_s1 + $0xba8] ss:$16 sps:$4 sm:$0xff]  }
 0x180   :  { %5111 = vmatpush1.bf16.msra.mxu0 %v8028_v63  ;;  %5531 = vmatprep.subr.bf16.mxu1 %v8040_v2  ;;  %v8113_v63 = vld [vmem:[%s11526_s1 + $0xfa0] ss:$16 sps:$4 sm:$0xff]   ;;  %v8124_v2 = vld [vmem:[%s11526_s1 + $0xbcc] ss:$16 sps:$4 sm:$0xff]  }
 0x181   :  { %5121 = vmatprep.subr.bf16.mxu0 %v8037_v36  ;;  %v8121_v36 = vld [vmem:[%s11526_s1 + $0xfc4] ss:$16 sps:$4 sm:$0xff]  }
 0x182   :  { %5523 = vmatmul.mubr.bf16.vlgmr.msra.gmra.mrb[4].mxu1 %v9609_v45  ;;  %v8052_v45 = vld [vmem:[%s11526_s1 + $0xa4c] ss:$16 sps:$4 sm:$0xff]  }
 0x183   :  { %5113 = vmatmul.mubr.bf16.vlgmr.msra.gmra.mrb[0].mxu0 %v10024_v3  ;;  %5532 = vmatpush1.bf16.msra.mxu1 %v8038_v39  ;;  %v8119_v39 = vld [vmem:[%s11526_s1 + $0xfc0] ss:$16 sps:$4 sm:$0xff]  }
 0x184   :  { %5122 = vmatpush1.bf16.msra.mxu0 %v8035_v6  ;;  %5533 = vmatprep.subr.bf16.mxu1 %v8046_v27  ;;  %v10205_v6 = vld [vmem:[%s11527_s0 + $0x10] sm:$0xff] }
 0x185   :  { %5123 = vmatprep.subr.bf16.mxu0 %v8043_v7  ;;  %5153 = vmatprep.mubr.bf16.mxu0 %v10040_v8  ;;  %v8122_v7 = vld [vmem:[%s11526_s1 + $0xbc8] ss:$16 sps:$4 sm:$0xff]   ;;  %v8127_v27 = vld [vmem:[%s11526_s1 + $0xfe4] ss:$16 sps:$4 sm:$0xff]  }
 0x186   :  { %5563 = vmatprep.mubr.bf16.mxu1 %v9622_v30  ;;  %v8058_v30 = vld [vmem:[%s11526_s1 + $0xa6c] ss:$16 sps:$4 sm:$0xff]  }
 0x187   :  { %5534 = vmatpush1.bf16.msra.mxu1 %v8044_v11  ;;  %v10221_v11 = vrot.slane %v10205_v6, %v8900_v49 }
 0x188   :  { %5124 = vmatpush1.bf16.msra.mxu0 %v8041_v9  ;;  %5535 = vmatprep.subr.bf16.mxu1 %v8052_v45  ;;  %v8130_v9 = vld [vmem:[%s11526_s1 + $0xbec] ss:$16 sps:$4 sm:$0xff]   ;;  %v8128_v45 = vld [vmem:[%s11526_s1 + $0xbe8] ss:$16 sps:$4 sm:$0xff]  }
 0x189   :  { %5125 = vmatprep.subr.bf16.mxu0 %v8049_v13  ;;  %v8125_v13 = vld [vmem:[%s11526_s1 + $0xfe0] ss:$16 sps:$4 sm:$0xff]  }
 0x18b   :  { %5536 = vmatpush1.bf16.msra.mxu1 %v8050_v15  ;;  %v8136_v15 = vld [vmem:[%s11526_s1 + $0xc0c] ss:$16 sps:$4 sm:$0xff]  }
 0x18c   :  { %5126 = vmatpush1.bf16.msra.mxu0 %v8047_v14  ;;  %5537 = vmatprep.subr.bf16.mxu1 %v8058_v30  ;;  %v8133_v14 = vld [vmem:[%s11526_s1 + $0x1004] ss:$16 sps:$4 sm:$0xff]   ;;  %v10239_v30 = vcombine.high %v10024_v3, %v10024_v3 }
 0x18d   :  { %5127 = vmatprep.subr.bf16.mxu0 %v8055_v16  ;;  %v936_v16 = vcombine.high %v10221_v11, %v10221_v11 }
 0x18f   :  { %5538 = vmatpush1.bf16.msra.mxu1 %v8056_v19  ;;  %v8134_v19 = vld [vmem:[%s11526_s1 + $0xc08] ss:$16 sps:$4 sm:$0xff]  }
 0x190   :  { %5128 = vmatpush1.bf16.msra.mxu0 %v8053_v17  ;;  %5539 = vmatprep.subr.bf16.mxu1 %v8064_v21  ;;  %v8131_v17 = vld [vmem:[%s11526_s1 + $0x1000] ss:$16 sps:$4 sm:$0xff]   ;;  %v8142_v21 = vld [vmem:[%s11526_s1 + $0xc2c] ss:$16 sps:$4 sm:$0xff]  }
 0x191   :  { %5129 = vmatprep.subr.bf16.mxu0 %v8061_v20  ;;  %v8139_v20 = vld [vmem:[%s11526_s1 + $0x1024] ss:$16 sps:$4 sm:$0xff]  }
 0x193   :  { %5540 = vmatpush1.bf16.msra.mxu1 %v8062_v25  ;;  %v8137_v25 = vld [vmem:[%s11526_s1 + $0x1020] ss:$16 sps:$4 sm:$0xff]  }
 0x194   :  { %5130 = vmatpush1.bf16.msra.mxu0 %v8059_v23  ;;  %5541 = vmatprep.subr.bf16.mxu1 %v8070_v28  ;;  %v10254_v23 = vrot.slane %v936_v16, %v8900_v49  ;;  %v8145_v28 = vld [vmem:[%s11526_s1 + $0x1044] ss:$16 sps:$4 sm:$0xff]   ;;  %v8212_v16 = vld [vmem:[%s11526_s1 + $0xda8] ss:$16 sps:$4 sm:$0xff]  }
 0x195   :  { %5131 = vmatprep.subr.bf16.mxu0 %v8067_v26  ;;  %v8140_v26 = vld [vmem:[%s11526_s1 + $0xc28] ss:$16 sps:$4 sm:$0xff]  }
 0x197   :  { %5542 = vmatpush1.bf16.msra.mxu1 %v8068_v31  ;;  %v8146_v31 = vld [vmem:[%s11526_s1 + $0xc48] ss:$16 sps:$4 sm:$0xff]  }
 0x198   :  { %5132 = vmatpush1.bf16.msra.mxu0 %v8065_v29  ;;  %5543 = vmatprep.subr.bf16.mxu1 %v8076_v33  ;;  %v8143_v29 = vld [vmem:[%s11526_s1 + $0x1040] ss:$16 sps:$4 sm:$0xff]  }
 0x199   :  { %5133 = vmatprep.subr.bf16.mxu0 %v8073_v32  ;;  %v8151_v32 = vld [vmem:[%s11526_s1 + $0x1064] ss:$16 sps:$4 sm:$0xff]   ;;  %v8149_v33 = vld [vmem:[%s11526_s1 + $0x1060] ss:$16 sps:$4 sm:$0xff]  }
 0x19b   :  { %5544 = vmatpush1.bf16.msra.mxu1 %v8074_v34  ;;  %v8157_v34 = vld [vmem:[%s11526_s1 + $0x1084] ss:$16 sps:$4 sm:$0xff]  }
 0x19c   :  { %5134 = vmatpush1.bf16.msra.mxu0 %v8071_v12  ;;  %5545 = vmatprep.subr.bf16.mxu1 %v8082_v0  ;;  %v8152_v12 = vld [vmem:[%s11526_s1 + $0xc68] ss:$16 sps:$4 sm:$0xff]   ;;  %v8155_v0 = vld [vmem:[%s11526_s1 + $0x1080] ss:$16 sps:$4 sm:$0xff]  }
 0x19d   :  { %5135 = vmatprep.subr.bf16.mxu0 %v8079_v35  ;;  %v8160_v35 = vld [vmem:[%s11526_s1 + $0xc8c] ss:$16 sps:$4 sm:$0xff]  }
 0x19f   :  { %5546 = vmatpush1.bf16.msra.mxu1 %v8080_v38  ;;  %v8163_v38 = vld [vmem:[%s11526_s1 + $0x10a4] ss:$16 sps:$4 sm:$0xff]  }
 0x1a0   :  { %5136 = vmatpush1.bf16.msra.mxu0 %v8077_v37  ;;  %5547 = vmatprep.subr.bf16.mxu1 %v8088_v41  ;;  %v8158_v37 = vld [vmem:[%s11526_s1 + $0xc88] ss:$16 sps:$4 sm:$0xff]   ;;  %v8161_v41 = vld [vmem:[%s11526_s1 + $0x10a0] ss:$16 sps:$4 sm:$0xff]  }
 0x1a1   :  { %5137 = vmatprep.subr.bf16.mxu0 %v8085_v40  ;;  %v8166_v40 = vld [vmem:[%s11526_s1 + $0xcac] ss:$16 sps:$4 sm:$0xff]  }
 0x1a3   :  { %5548 = vmatpush1.bf16.msra.mxu1 %v8086_v18  ;;  %v8169_v18 = vld [vmem:[%s11526_s1 + $0x10c4] ss:$16 sps:$4 sm:$0xff]  }
 0x1a4   :  { %5138 = vmatpush1.bf16.msra.mxu0 %v8083_v43  ;;  %5549 = vmatprep.subr.bf16.mxu1 %v8094_v46  ;;  %v8164_v43 = vld [vmem:[%s11526_s1 + $0xca8] ss:$16 sps:$4 sm:$0xff]   ;;  %v8167_v46 = vld [vmem:[%s11526_s1 + $0x10c0] ss:$16 sps:$4 sm:$0xff]  }
 0x1a5   :  { %5139 = vmatprep.subr.bf16.mxu0 %v8091_v44  ;;  %v8172_v44 = vld [vmem:[%s11526_s1 + $0xccc] ss:$16 sps:$4 sm:$0xff]  }
 0x1a7   :  { %5550 = vmatpush1.bf16.msra.mxu1 %v8092_v47  ;;  %v8175_v47 = vld [vmem:[%s11526_s1 + $0x10e4] ss:$16 sps:$4 sm:$0xff]  }
 0x1a8   :  { %5140 = vmatpush1.bf16.msra.mxu0 %v8089_v22  ;;  %5551 = vmatprep.subr.bf16.mxu1 %v8100_v50  ;;  %v8170_v22 = vld [vmem:[%s11526_s1 + $0xcc8] ss:$16 sps:$4 sm:$0xff]   ;;  %v8173_v50 = vld [vmem:[%s11526_s1 + $0x10e0] ss:$16 sps:$4 sm:$0xff]  }
 0x1a9   :  { %5141 = vmatprep.subr.bf16.mxu0 %v8097_v48  ;;  %v8178_v48 = vld [vmem:[%s11526_s1 + $0xcec] ss:$16 sps:$4 sm:$0xff]  }
 0x1ab   :  { %5552 = vmatpush1.bf16.msra.mxu1 %v8098_v24  ;;  %v8181_v24 = vld [vmem:[%s11526_s1 + $0x1104] ss:$16 sps:$4 sm:$0xff]  }
 0x1ac   :  { %5142 = vmatpush1.bf16.msra.mxu0 %v8095_v51  ;;  %5553 = vmatprep.subr.bf16.mxu1 %v8106_v53  ;;  %v8176_v51 = vld [vmem:[%s11526_s1 + $0xce8] ss:$16 sps:$4 sm:$0xff]   ;;  %v8179_v53 = vld [vmem:[%s11526_s1 + $0x1100] ss:$16 sps:$4 sm:$0xff]  }
 0x1ad   :  { %5143 = vmatprep.subr.bf16.mxu0 %v8103_v52  ;;  %v8184_v52 = vld [vmem:[%s11526_s1 + $0xd0c] ss:$16 sps:$4 sm:$0xff]  }
 0x1af   :  { %5554 = vmatpush1.bf16.msra.mxu1 %v8104_v10  ;;  %v8187_v10 = vld [vmem:[%s11526_s1 + $0x1124] ss:$16 sps:$4 sm:$0xff]  }
 0x1b0   :  { %5144 = vmatpush1.bf16.msra.mxu0 %v8101_v54  ;;  %5555 = vmatprep.subr.bf16.mxu1 %v8112_v57  ;;  %v8182_v54 = vld [vmem:[%s11526_s1 + $0xd08] ss:$16 sps:$4 sm:$0xff]   ;;  %v8185_v57 = vld [vmem:[%s11526_s1 + $0x1120] ss:$16 sps:$4 sm:$0xff]  }
 0x1b1   :  { %5145 = vmatprep.subr.bf16.mxu0 %v8109_v55  ;;  %v8190_v55 = vld [vmem:[%s11526_s1 + $0xd2c] ss:$16 sps:$4 sm:$0xff]  }
 0x1b3   :  { %5556 = vmatpush1.bf16.msra.mxu1 %v8110_v59  ;;  %v8193_v59 = vld [vmem:[%s11526_s1 + $0x1144] ss:$16 sps:$4 sm:$0xff]  }
 0x1b4   :  { %5146 = vmatpush1.bf16.msra.mxu0 %v8107_v58  ;;  %5557 = vmatprep.subr.bf16.mxu1 %v8118_v62  ;;  %v8188_v58 = vld [vmem:[%s11526_s1 + $0xd28] ss:$16 sps:$4 sm:$0xff]   ;;  %v8191_v62 = vld [vmem:[%s11526_s1 + $0x1140] ss:$16 sps:$4 sm:$0xff]  }
 0x1b5   :  { %5147 = vmatprep.subr.bf16.mxu0 %v8115_v60  ;;  %v8196_v60 = vld [vmem:[%s11526_s1 + $0xd4c] ss:$16 sps:$4 sm:$0xff]  }
 0x1b7   :  { %5558 = vmatpush1.bf16.msra.mxu1 %v8116_v1  ;;  %v8199_v1 = vld [vmem:[%s11526_s1 + $0x1164] ss:$16 sps:$4 sm:$0xff]  }
 0x1b8   :  { %5148 = vmatpush1.bf16.msra.mxu0 %v8113_v63  ;;  %5559 = vmatprep.subr.bf16.mxu1 %v8124_v2  ;;  %v8194_v63 = vld [vmem:[%s11526_s1 + $0xd48] ss:$16 sps:$4 sm:$0xff]   ;;  %v8197_v2 = vld [vmem:[%s11526_s1 + $0x1160] ss:$16 sps:$4 sm:$0xff]  }
 0x1b9   :  { %5149 = vmatprep.subr.bf16.mxu0 %v8121_v36  ;;  %v8202_v36 = vld [vmem:[%s11526_s1 + $0xd6c] ss:$16 sps:$4 sm:$0xff]  }
 0x1bb   :  { %5560 = vmatpush1.bf16.msra.mxu1 %v8122_v7  ;;  %v8205_v7 = vld [vmem:[%s11526_s1 + $0x1184] ss:$16 sps:$4 sm:$0xff]  }
 0x1bc   :  { %5150 = vmatpush1.bf16.msra.mxu0 %v8119_v39  ;;  %5561 = vmatprep.subr.bf16.mxu1 %v8130_v9  ;;  %v8200_v39 = vld [vmem:[%s11526_s1 + $0xd68] ss:$16 sps:$4 sm:$0xff]   ;;  %v8203_v9 = vld [vmem:[%s11526_s1 + $0x1180] ss:$16 sps:$4 sm:$0xff]  }
 0x1bd   :  { %5151 = vmatprep.subr.bf16.mxu0 %v8127_v27  ;;  %v8208_v27 = vld [vmem:[%s11526_s1 + $0xd8c] ss:$16 sps:$4 sm:$0xff]  }
 0x1bf   :  { %5562 = vmatpush1.bf16.msra.mxu1 %v8128_v45  ;;  %v8211_v45 = vld [vmem:[%s11526_s1 + $0x11a4] ss:$16 sps:$4 sm:$0xff]  }
 0x1c0   :  { %5152 = vmatpush1.bf16.msra.mxu0 %v8125_v13  ;;  %5572 = vmatprep.subr.bf16.mxu1 %v8136_v15  ;;  %v8206_v13 = vld [vmem:[%s11526_s1 + $0xd88] ss:$16 sps:$4 sm:$0xff]   ;;  %v8209_v15 = vld [vmem:[%s11526_s1 + $0x11a0] ss:$16 sps:$4 sm:$0xff]  }
 0x1c1   :  { %5162 = vmatprep.subr.bf16.mxu0 %v8133_v14  ;;  %v8214_v14 = vld [vmem:[%s11526_s1 + $0xdac] ss:$16 sps:$4 sm:$0xff]  }
 0x1c2   :  { %5564 = vmatmul.mubr.bf16.vlgmr.msra.gmra.mrb[4].mxu1 %v9821_v56  ;;  %v8148_v56 = vld [vmem:[%s11526_s1 + $0xc4c] ss:$16 sps:$4 sm:$0xff]  }
 0x1c3   :  { %5154 = vmatmul.mubr.bf16.vlgmr.msra.gmra.mrb[0].mxu0 %v10239_v30  ;;  %5573 = vmatpush1.bf16.msra.mxu1 %v8134_v19  ;;  %v8220_v19 = vld [vmem:[%s11526_s1 + $0xdcc] ss:$16 sps:$4 sm:$0xff]  }
 0x1c4   :  { %5163 = vmatpush1.bf16.msra.mxu0 %v8131_v17  ;;  %5574 = vmatprep.subr.bf16.mxu1 %v8142_v21  ;;  %v8217_v17 = vld [vmem:[%s11526_s1 + $0x11c4] ss:$16 sps:$4 sm:$0xff]   ;;  %v8218_v21 = vld [vmem:[%s11526_s1 + $0xdc8] ss:$16 sps:$4 sm:$0xff]  }
 0x1c5   :  { %5164 = vmatprep.subr.bf16.mxu0 %v8139_v20  ;;  %5194 = vmatprep.mubr.bf16.mxu0 %v10254_v23  ;;  %v8215_v20 = vld [vmem:[%s11526_s1 + $0x11c0] ss:$16 sps:$4 sm:$0xff]  }
 0x1c6   :  { %5604 = vmatprep.mubr.bf16.mxu1 %v9836_v61  ;;  %v8154_v61 = vld [vmem:[%s11526_s1 + $0xc6c] ss:$16 sps:$4 sm:$0xff]  }
 0x1c7   :  { %5575 = vmatpush1.bf16.msra.mxu1 %v8140_v26  ;;  %v8226_v26 = vld [vmem:[%s11526_s1 + $0xdec] ss:$16 sps:$4 sm:$0xff]  }
 0x1c8   :  { %5165 = vmatpush1.bf16.msra.mxu0 %v8137_v25  ;;  %5576 = vmatprep.subr.bf16.mxu1 %v8148_v56  ;;  %v8223_v25 = vld [vmem:[%s11526_s1 + $0x11e4] ss:$16 sps:$4 sm:$0xff]   ;;  %v8224_v56 = vld [vmem:[%s11526_s1 + $0xde8] ss:$16 sps:$4 sm:$0xff]  }
 0x1c9   :  { %5166 = vmatprep.subr.bf16.mxu0 %v8145_v28  ;;  %v8221_v28 = vld [vmem:[%s11526_s1 + $0x11e0] ss:$16 sps:$4 sm:$0xff]  }
 0x1cb   :  { %5577 = vmatpush1.bf16.msra.mxu1 %v8146_v31  ;;  %v8232_v31 = vld [vmem:[%s11526_s1 + $0xe0c] ss:$16 sps:$4 sm:$0xff]  }
 0x1cc   :  { %5167 = vmatpush1.bf16.msra.mxu0 %v8143_v29  ;;  %5578 = vmatprep.subr.bf16.mxu1 %v8154_v61  ;;  %v8229_v29 = vld [vmem:[%s11526_s1 + $0x1204] ss:$16 sps:$4 sm:$0xff]   ;;  %v8227_v61 = vld [vmem:[%s11526_s1 + $0x1200] ss:$16 sps:$4 sm:$0xff]  }
 0x1cd   :  { %5168 = vmatprep.subr.bf16.mxu0 %v8151_v32  ;;  %v10442_v32 = vrot.slane %v10221_v11, %v8900_v49  ;;  %v8238_v11 = vld [vmem:[%s11526_s1 + $0xe2c] ss:$16 sps:$4 sm:$0xff]  }
 0x1cf   :  { %5579 = vmatpush1.bf16.msra.mxu1 %v8152_v12  ;;  %v8235_v12 = vld [vmem:[%s11526_s1 + $0x1224] ss:$16 sps:$4 sm:$0xff]  }
 0x1d0   :  { %5169 = vmatpush1.bf16.msra.mxu0 %v8149_v33  ;;  %5580 = vmatprep.subr.bf16.mxu1 %v8160_v35  ;;  %v8230_v33 = vld [vmem:[%s11526_s1 + $0xe08] ss:$16 sps:$4 sm:$0xff]   ;;  %v8233_v35 = vld [vmem:[%s11526_s1 + $0x1220] ss:$16 sps:$4 sm:$0xff]  }
 0x1d1   :  { %5170 = vmatprep.subr.bf16.mxu0 %v8157_v34  ;;  %v10458_v34 = vcombine.high %v10254_v23, %v10254_v23 }
 0x1d3   :  { %5581 = vmatpush1.bf16.msra.mxu1 %v8158_v37  ;;  %v8241_v37 = vld [vmem:[%s11526_s1 + $0x1244] ss:$16 sps:$4 sm:$0xff]  }
 0x1d4   :  { %5171 = vmatpush1.bf16.msra.mxu0 %v8155_v0  ;;  %5582 = vmatprep.subr.bf16.mxu1 %v8166_v40  ;;  %v8236_v0 = vld [vmem:[%s11526_s1 + $0xe28] ss:$16 sps:$4 sm:$0xff]  }
 0x1d5   :  { %5172 = vmatprep.subr.bf16.mxu0 %v8163_v38  ;;  %v8239_v38 = vld [vmem:[%s11526_s1 + $0x1240] ss:$16 sps:$4 sm:$0xff]   ;;  %v8242_v40 = vld [vmem:[%s11526_s1 + $0xe48] ss:$16 sps:$4 sm:$0xff]  }
 0x1d7   :  { %5583 = vmatpush1.bf16.msra.mxu1 %v8164_v43  ;;  %v8245_v43 = vld [vmem:[%s11526_s1 + $0x1260] ss:$16 sps:$4 sm:$0xff]  }
 0x1d8   :  { %5173 = vmatpush1.bf16.msra.mxu0 %v8161_v41  ;;  %5584 = vmatprep.subr.bf16.mxu1 %v8172_v44  ;;  %v8247_v41 = vld [vmem:[%s11526_s1 + $0x1264] ss:$16 sps:$4 sm:$0xff]  }
 0x1d9   :  { %5174 = vmatprep.subr.bf16.mxu0 %v8169_v18  ;;  %v8248_v18 = vld [vmem:[%s11526_s1 + $0xe68] ss:$16 sps:$4 sm:$0xff]   ;;  %v8253_v44 = vld [vmem:[%s11526_s1 + $0x1284] ss:$16 sps:$4 sm:$0xff]  }
 0x1db   :  { %5585 = vmatpush1.bf16.msra.mxu1 %v8170_v22  ;;  %v8251_v22 = vld [vmem:[%s11526_s1 + $0x1280] ss:$16 sps:$4 sm:$0xff]  }
 0x1dc   :  { %5175 = vmatpush1.bf16.msra.mxu0 %v8167_v46  ;;  %5586 = vmatprep.subr.bf16.mxu1 %v8178_v48  ;;  %v8256_v46 = vld [vmem:[%s11526_s1 + $0xe8c] ss:$16 sps:$4 sm:$0xff]   ;;  %v8259_v48 = vld [vmem:[%s11526_s1 + $0x12a4] ss:$16 sps:$4 sm:$0xff]  }
 0x1dd   :  { %5176 = vmatprep.subr.bf16.mxu0 %v8175_v47  ;;  %v8254_v47 = vld [vmem:[%s11526_s1 + $0xe88] ss:$16 sps:$4 sm:$0xff]  }
 0x1df   :  { %5587 = vmatpush1.bf16.msra.mxu1 %v8176_v51  ;;  %v8257_v51 = vld [vmem:[%s11526_s1 + $0x12a0] ss:$16 sps:$4 sm:$0xff]  }
 0x1e0   :  { %5177 = vmatpush1.bf16.msra.mxu0 %v8173_v50  ;;  %5588 = vmatprep.subr.bf16.mxu1 %v8184_v52  ;;  %v8262_v50 = vld [vmem:[%s11526_s1 + $0xeac] ss:$16 sps:$4 sm:$0xff]   ;;  %v8265_v52 = vld [vmem:[%s11526_s1 + $0x12c4] ss:$16 sps:$4 sm:$0xff]  }
 0x1e1   :  { %5178 = vmatprep.subr.bf16.mxu0 %v8181_v24  ;;  %v8260_v24 = vld [vmem:[%s11526_s1 + $0xea8] ss:$16 sps:$4 sm:$0xff]  }
 0x1e3   :  { %5589 = vmatpush1.bf16.msra.mxu1 %v8182_v54  ;;  %v8263_v54 = vld [vmem:[%s11526_s1 + $0x12c0] ss:$16 sps:$4 sm:$0xff]  }
 0x1e4   :  { %5179 = vmatpush1.bf16.msra.mxu0 %v8179_v53  ;;  %5590 = vmatprep.subr.bf16.mxu1 %v8190_v55  ;;  %v8268_v53 = vld [vmem:[%s11526_s1 + $0xecc] ss:$16 sps:$4 sm:$0xff]   ;;  %v8271_v55 = vld [vmem:[%s11526_s1 + $0x12e4] ss:$16 sps:$4 sm:$0xff]  }
 0x1e5   :  { %5180 = vmatprep.subr.bf16.mxu0 %v8187_v10  ;;  %v8266_v10 = vld [vmem:[%s11526_s1 + $0xec8] ss:$16 sps:$4 sm:$0xff]  }
 0x1e7   :  { %5591 = vmatpush1.bf16.msra.mxu1 %v8188_v58  ;;  %v8269_v58 = vld [vmem:[%s11526_s1 + $0x12e0] ss:$16 sps:$4 sm:$0xff]  }
 0x1e8   :  { %5181 = vmatpush1.bf16.msra.mxu0 %v8185_v57  ;;  %5592 = vmatprep.subr.bf16.mxu1 %v8196_v60  ;;  %v8274_v57 = vld [vmem:[%s11526_s1 + $0xeec] ss:$16 sps:$4 sm:$0xff]   ;;  %v8277_v60 = vld [vmem:[%s11526_s1 + $0x1304] ss:$16 sps:$4 sm:$0xff]  }
 0x1e9   :  { %5182 = vmatprep.subr.bf16.mxu0 %v8193_v59  ;;  %v8272_v59 = vld [vmem:[%s11526_s1 + $0xee8] ss:$16 sps:$4 sm:$0xff]  }
 0x1eb   :  { %5593 = vmatpush1.bf16.msra.mxu1 %v8194_v63  ;;  %v8275_v63 = vld [vmem:[%s11526_s1 + $0x1300] ss:$16 sps:$4 sm:$0xff]  }
 0x1ec   :  { %5183 = vmatpush1.bf16.msra.mxu0 %v8191_v62  ;;  %5594 = vmatprep.subr.bf16.mxu1 %v8202_v36  ;;  %v8280_v62 = vld [vmem:[%s11526_s1 + $0xf0c] ss:$16 sps:$4 sm:$0xff]   ;;  %v8283_v36 = vld [vmem:[%s11526_s1 + $0x1324] ss:$16 sps:$4 sm:$0xff]  }
 0x1ed   :  { %5184 = vmatprep.subr.bf16.mxu0 %v8199_v1  ;;  %v8278_v1 = vld [vmem:[%s11526_s1 + $0xf08] ss:$16 sps:$4 sm:$0xff]  }
 0x1ef   :  { %5595 = vmatpush1.bf16.msra.mxu1 %v8200_v39  ;;  %v8281_v39 = vld [vmem:[%s11526_s1 + $0x1320] ss:$16 sps:$4 sm:$0xff]  }
 0x1f0   :  { %5185 = vmatpush1.bf16.msra.mxu0 %v8197_v2  ;;  %5596 = vmatprep.subr.bf16.mxu1 %v8208_v27  ;;  %v8286_v2 = vld [vmem:[%s11526_s1 + $0xf2c] ss:$16 sps:$4 sm:$0xff]   ;;  %v8289_v27 = vld [vmem:[%s11526_s1 + $0x1344] ss:$16 sps:$4 sm:$0xff]  }
 0x1f1   :  { %5186 = vmatprep.subr.bf16.mxu0 %v8205_v7  ;;  %v8284_v7 = vld [vmem:[%s11526_s1 + $0xf28] ss:$16 sps:$4 sm:$0xff]  }
 0x1f3   :  { %5597 = vmatpush1.bf16.msra.mxu1 %v8206_v13  ;;  %v8287_v13 = vld [vmem:[%s11526_s1 + $0x1340] ss:$16 sps:$4 sm:$0xff]  }
 0x1f4   :  { %5187 = vmatpush1.bf16.msra.mxu0 %v8203_v9  ;;  %5598 = vmatprep.subr.bf16.mxu1 %v8214_v14  ;;  %v8292_v9 = vld [vmem:[%s11526_s1 + $0xf4c] ss:$16 sps:$4 sm:$0xff]   ;;  %v8295_v14 = vld [vmem:[%s11526_s1 + $0x1364] ss:$16 sps:$4 sm:$0xff]  }
 0x1f5   :  { %5188 = vmatprep.subr.bf16.mxu0 %v8211_v45  ;;  %v8290_v45 = vld [vmem:[%s11526_s1 + $0xf48] ss:$16 sps:$4 sm:$0xff]  }
 0x1f7   :  { %5599 = vmatpush1.bf16.msra.mxu1 %v8212_v16  ;;  %v8293_v16 = vld [vmem:[%s11526_s1 + $0x1360] ss:$16 sps:$4 sm:$0xff]  }
 0x1f8   :  { %5189 = vmatpush1.bf16.msra.mxu0 %v8209_v15  ;;  %5600 = vmatprep.subr.bf16.mxu1 %v8220_v19  ;;  %v8298_v15 = vld [vmem:[%s11526_s1 + $0xf6c] ss:$16 sps:$4 sm:$0xff]   ;;  %v8301_v19 = vld [vmem:[%s11526_s1 + $0x1384] ss:$16 sps:$4 sm:$0xff]  }
 0x1f9   :  { %5190 = vmatprep.subr.bf16.mxu0 %v8217_v17  ;;  %v8296_v17 = vld [vmem:[%s11526_s1 + $0xf68] ss:$16 sps:$4 sm:$0xff]  }
 0x1fb   :  { %5601 = vmatpush1.bf16.msra.mxu1 %v8218_v21  ;;  %v8299_v21 = vld [vmem:[%s11526_s1 + $0x1380] ss:$16 sps:$4 sm:$0xff]  }
 0x1fc   :  { %5191 = vmatpush1.bf16.msra.mxu0 %v8215_v20  ;;  %5602 = vmatprep.subr.bf16.mxu1 %v8226_v26  ;;  %v8304_v20 = vld [vmem:[%s11526_s1 + $0xf8c] ss:$16 sps:$4 sm:$0xff]   ;;  %v8307_v26 = vld [vmem:[%s11526_s1 + $0x13a4] ss:$16 sps:$4 sm:$0xff]  }
 0x1fd   :  { %5192 = vmatprep.subr.bf16.mxu0 %v8223_v25  ;;  %v8302_v25 = vld [vmem:[%s11526_s1 + $0xf88] ss:$16 sps:$4 sm:$0xff]  }
 0x1ff   :  { %5603 = vmatpush1.bf16.msra.mxu1 %v8224_v56  ;;  %v8305_v56 = vld [vmem:[%s11526_s1 + $0x13a0] ss:$16 sps:$4 sm:$0xff]  }
 0x200   :  { %5193 = vmatpush1.bf16.msra.mxu0 %v8221_v28  ;;  %5613 = vmatprep.subr.bf16.mxu1 %v8232_v31  ;;  %v8310_v28 = vld [vmem:[%s11526_s1 + $0xfac] ss:$16 sps:$4 sm:$0xff]   ;;  %v8313_v31 = vld [vmem:[%s11526_s1 + $0x13c4] ss:$16 sps:$4 sm:$0xff]  }
 0x201   :  { %5203 = vmatprep.subr.bf16.mxu0 %v8229_v29  ;;  %v8308_v29 = vld [vmem:[%s11526_s1 + $0xfa8] ss:$16 sps:$4 sm:$0xff]  }
 0x202   :  { %5605 = vmatmul.mubr.bf16.vlgmr.msra.gmra.mrb[4].mxu1 %v10024_v3  ;;  %v8244_v3 = vld [vmem:[%s11526_s1 + $0xe4c] ss:$16 sps:$4 sm:$0xff]  }
 0x203   :  { %5195 = vmatmul.mubr.bf16.vlgmr.msra.gmra.mrb[0].mxu0 %v10442_v32  ;;  %5614 = vmatpush1.bf16.msra.mxu1 %v8230_v33  ;;  %v921_v33 = vcombine.high %v10205_v6, %v10205_v6  ;;  %v8322_v6 = vld [vmem:[%s11526_s1 + $0xfec] ss:$16 sps:$4 sm:$0xff]  }
 0x204   :  { %5204 = vmatpush1.bf16.msra.mxu0 %v8227_v61  ;;  %5615 = vmatprep.subr.bf16.mxu1 %v8238_v11  ;;  %v8316_v61 = vld [vmem:[%s11526_s1 + $0xfcc] ss:$16 sps:$4 sm:$0xff]   ;;  %v8314_v11 = vld [vmem:[%s11526_s1 + $0xfc8] ss:$16 sps:$4 sm:$0xff]  }
 0x205   :  { %5205 = vmatprep.subr.bf16.mxu0 %v8235_v12  ;;  %5235 = vmatprep.mubr.bf16.mxu0 %v10458_v34  ;;  %v8311_v12 = vld [vmem:[%s11526_s1 + $0x13c0] ss:$16 sps:$4 sm:$0xff]  }
 0x206   :  { %5645 = vmatprep.mubr.bf16.mxu1 %v10040_v8  ;;  %v8250_v8 = vld [vmem:[%s11526_s1 + $0xe6c] ss:$16 sps:$4 sm:$0xff]  }
 0x207   :  { %5616 = vmatpush1.bf16.msra.mxu1 %v8236_v0  ;;  %v10635_v0 = vrot.slane %v921_v33, %v8900_v49  ;;  %v8392_v33 = vld [vmem:[%s11526_s1 + $0x1168] ss:$16 sps:$4 sm:$0xff]  }
 0x208   :  { %5206 = vmatpush1.bf16.msra.mxu0 %v8233_v35  ;;  %5617 = vmatprep.subr.bf16.mxu1 %v8244_v3  ;;  %v8319_v35 = vld [vmem:[%s11526_s1 + $0x13e4] ss:$16 sps:$4 sm:$0xff]   ;;  %v8320_v3 = vld [vmem:[%s11526_s1 + $0xfe8] ss:$16 sps:$4 sm:$0xff]  }
 0x209   :  { %5207 = vmatprep.subr.bf16.mxu0 %v8241_v37  ;;  %v8317_v37 = vld [vmem:[%s11526_s1 + $0x13e0] ss:$16 sps:$4 sm:$0xff]  }
 0x20b   :  { %5618 = vmatpush1.bf16.msra.mxu1 %v8242_v40  ;;  %v8328_v40 = vld [vmem:[%s11526_s1 + $0x100c] ss:$16 sps:$4 sm:$0xff]  }
 0x20c   :  { %5208 = vmatpush1.bf16.msra.mxu0 %v8239_v38  ;;  %5619 = vmatprep.subr.bf16.mxu1 %v8250_v8  ;;  %v8325_v38 = vld [vmem:[%s11526_s1 + $0x1404] ss:$16 sps:$4 sm:$0xff]   ;;  %v10653_v8 = vcombine.high %v10442_v32, %v10442_v32 }
 0x20d   :  { %5209 = vmatprep.subr.bf16.mxu0 %v8247_v41  ;;  %v937_v41 = vcombine.high %v10635_v0, %v10635_v0 }
 0x20f   :  { %5620 = vmatpush1.bf16.msra.mxu1 %v8248_v18  ;;  %v8326_v18 = vld [vmem:[%s11526_s1 + $0x1008] ss:$16 sps:$4 sm:$0xff]  }
 0x210   :  { %5210 = vmatpush1.bf16.msra.mxu0 %v8245_v43  ;;  %5621 = vmatprep.subr.bf16.mxu1 %v8256_v46  ;;  %v8323_v43 = vld [vmem:[%s11526_s1 + $0x1400] ss:$16 sps:$4 sm:$0xff]   ;;  %v8334_v46 = vld [vmem:[%s11526_s1 + $0x102c] ss:$16 sps:$4 sm:$0xff]  }
 0x211   :  { %5211 = vmatprep.subr.bf16.mxu0 %v8253_v44  ;;  %v8331_v44 = vld [vmem:[%s11526_s1 + $0x1424] ss:$16 sps:$4 sm:$0xff]  }
 0x213   :  { %5622 = vmatpush1.bf16.msra.mxu1 %v8254_v47  ;;  %v8329_v47 = vld [vmem:[%s11526_s1 + $0x1420] ss:$16 sps:$4 sm:$0xff]  }
 0x214   :  { %5212 = vmatpush1.bf16.msra.mxu0 %v8251_v22  ;;  %5623 = vmatprep.subr.bf16.mxu1 %v8262_v50  ;;  %v10668_v22 = vrot.slane %v937_v41, %v8900_v49  ;;  %v8337_v50 = vld [vmem:[%s11526_s1 + $0x1444] ss:$16 sps:$4 sm:$0xff]  }
 0x215   :  { %5213 = vmatprep.subr.bf16.mxu0 %v8259_v48  ;;  %v8332_v48 = vld [vmem:[%s11526_s1 + $0x1028] ss:$16 sps:$4 sm:$0xff]   ;;  %v8409_v41 = vld [vmem:[%s11526_s1 + $0x15c4] ss:$16 sps:$4 sm:$0xff]  }
 0x217   :  { %5624 = vmatpush1.bf16.msra.mxu1 %v8260_v24  ;;  %v8338_v24 = vld [vmem:[%s11526_s1 + $0x1048] ss:$16 sps:$4 sm:$0xff]  }
 0x218   :  { %5214 = vmatpush1.bf16.msra.mxu0 %v8257_v51  ;;  %5625 = vmatprep.subr.bf16.mxu1 %v8268_v53  ;;  %v8335_v51 = vld [vmem:[%s11526_s1 + $0x1440] ss:$16 sps:$4 sm:$0xff]  }
 0x219   :  { %5215 = vmatprep.subr.bf16.mxu0 %v8265_v52  ;;  %v8343_v52 = vld [vmem:[%s11526_s1 + $0x1464] ss:$16 sps:$4 sm:$0xff]   ;;  %v8341_v53 = vld [vmem:[%s11526_s1 + $0x1460] ss:$16 sps:$4 sm:$0xff]  }
 0x21b   :  { %5626 = vmatpush1.bf16.msra.mxu1 %v8266_v10  ;;  %v8349_v10 = vld [vmem:[%s11526_s1 + $0x1484] ss:$16 sps:$4 sm:$0xff]  }
 0x21c   :  { %5216 = vmatpush1.bf16.msra.mxu0 %v8263_v54  ;;  %5627 = vmatprep.subr.bf16.mxu1 %v8274_v57  ;;  %v8344_v54 = vld [vmem:[%s11526_s1 + $0x1068] ss:$16 sps:$4 sm:$0xff]   ;;  %v8347_v57 = vld [vmem:[%s11526_s1 + $0x1480] ss:$16 sps:$4 sm:$0xff]  }
 0x21d   :  { %5217 = vmatprep.subr.bf16.mxu0 %v8271_v55  ;;  %v8352_v55 = vld [vmem:[%s11526_s1 + $0x108c] ss:$16 sps:$4 sm:$0xff]  }
 0x21f   :  { %5628 = vmatpush1.bf16.msra.mxu1 %v8272_v59  ;;  %v8355_v59 = vld [vmem:[%s11526_s1 + $0x14a4] ss:$16 sps:$4 sm:$0xff]  }
 0x220   :  { %5218 = vmatpush1.bf16.msra.mxu0 %v8269_v58  ;;  %5629 = vmatprep.subr.bf16.mxu1 %v8280_v62  ;;  %v8350_v58 = vld [vmem:[%s11526_s1 + $0x1088] ss:$16 sps:$4 sm:$0xff]   ;;  %v8353_v62 = vld [vmem:[%s11526_s1 + $0x14a0] ss:$16 sps:$4 sm:$0xff]  }
 0x221   :  { %5219 = vmatprep.subr.bf16.mxu0 %v8277_v60  ;;  %v8358_v60 = vld [vmem:[%s11526_s1 + $0x10ac] ss:$16 sps:$4 sm:$0xff]  }
 0x223   :  { %5630 = vmatpush1.bf16.msra.mxu1 %v8278_v1  ;;  %v8361_v1 = vld [vmem:[%s11526_s1 + $0x14c4] ss:$16 sps:$4 sm:$0xff]  }
 0x224   :  { %5220 = vmatpush1.bf16.msra.mxu0 %v8275_v63  ;;  %5631 = vmatprep.subr.bf16.mxu1 %v8286_v2  ;;  %v8356_v63 = vld [vmem:[%s11526_s1 + $0x10a8] ss:$16 sps:$4 sm:$0xff]   ;;  %v8359_v2 = vld [vmem:[%s11526_s1 + $0x14c0] ss:$16 sps:$4 sm:$0xff]  }
 0x225   :  { %5221 = vmatprep.subr.bf16.mxu0 %v8283_v36  ;;  %v8364_v36 = vld [vmem:[%s11526_s1 + $0x10cc] ss:$16 sps:$4 sm:$0xff]  }
 0x227   :  { %5632 = vmatpush1.bf16.msra.mxu1 %v8284_v7  ;;  %v8367_v7 = vld [vmem:[%s11526_s1 + $0x14e4] ss:$16 sps:$4 sm:$0xff]  }
 0x228   :  { %5222 = vmatpush1.bf16.msra.mxu0 %v8281_v39  ;;  %5633 = vmatprep.subr.bf16.mxu1 %v8292_v9  ;;  %v8362_v39 = vld [vmem:[%s11526_s1 + $0x10c8] ss:$16 sps:$4 sm:$0xff]   ;;  %v8365_v9 = vld [vmem:[%s11526_s1 + $0x14e0] ss:$16 sps:$4 sm:$0xff]  }
 0x229   :  { %5223 = vmatprep.subr.bf16.mxu0 %v8289_v27  ;;  %v8370_v27 = vld [vmem:[%s11526_s1 + $0x10ec] ss:$16 sps:$4 sm:$0xff]  }
 0x22b   :  { %5634 = vmatpush1.bf16.msra.mxu1 %v8290_v45  ;;  %v8373_v45 = vld [vmem:[%s11526_s1 + $0x1504] ss:$16 sps:$4 sm:$0xff]  }
 0x22c   :  { %5224 = vmatpush1.bf16.msra.mxu0 %v8287_v13  ;;  %5635 = vmatprep.subr.bf16.mxu1 %v8298_v15  ;;  %v8368_v13 = vld [vmem:[%s11526_s1 + $0x10e8] ss:$16 sps:$4 sm:$0xff]   ;;  %v8371_v15 = vld [vmem:[%s11526_s1 + $0x1500] ss:$16 sps:$4 sm:$0xff]  }
 0x22d   :  { %5225 = vmatprep.subr.bf16.mxu0 %v8295_v14  ;;  %v8376_v14 = vld [vmem:[%s11526_s1 + $0x110c] ss:$16 sps:$4 sm:$0xff]  }
 0x22f   :  { %5636 = vmatpush1.bf16.msra.mxu1 %v8296_v17  ;;  %v8379_v17 = vld [vmem:[%s11526_s1 + $0x1524] ss:$16 sps:$4 sm:$0xff]  }
 0x230   :  { %5226 = vmatpush1.bf16.msra.mxu0 %v8293_v16  ;;  %5637 = vmatprep.subr.bf16.mxu1 %v8304_v20  ;;  %v8374_v16 = vld [vmem:[%s11526_s1 + $0x1108] ss:$16 sps:$4 sm:$0xff]   ;;  %v8377_v20 = vld [vmem:[%s11526_s1 + $0x1520] ss:$16 sps:$4 sm:$0xff]  }
 0x231   :  { %5227 = vmatprep.subr.bf16.mxu0 %v8301_v19  ;;  %v8382_v19 = vld [vmem:[%s11526_s1 + $0x112c] ss:$16 sps:$4 sm:$0xff]  }
 0x233   :  { %5638 = vmatpush1.bf16.msra.mxu1 %v8302_v25  ;;  %v8385_v25 = vld [vmem:[%s11526_s1 + $0x1544] ss:$16 sps:$4 sm:$0xff]  }
 0x234   :  { %5228 = vmatpush1.bf16.msra.mxu0 %v8299_v21  ;;  %5639 = vmatprep.subr.bf16.mxu1 %v8310_v28  ;;  %v8380_v21 = vld [vmem:[%s11526_s1 + $0x1128] ss:$16 sps:$4 sm:$0xff]   ;;  %v8383_v28 = vld [vmem:[%s11526_s1 + $0x1540] ss:$16 sps:$4 sm:$0xff]  }
 0x235   :  { %5229 = vmatprep.subr.bf16.mxu0 %v8307_v26  ;;  %v8388_v26 = vld [vmem:[%s11526_s1 + $0x114c] ss:$16 sps:$4 sm:$0xff]  }
 0x237   :  { %5640 = vmatpush1.bf16.msra.mxu1 %v8308_v29  ;;  %v8391_v29 = vld [vmem:[%s11526_s1 + $0x1564] ss:$16 sps:$4 sm:$0xff]  }
 0x238   :  { %5230 = vmatpush1.bf16.msra.mxu0 %v8305_v56  ;;  %5641 = vmatprep.subr.bf16.mxu1 %v8316_v61  ;;  %v8386_v56 = vld [vmem:[%s11526_s1 + $0x1148] ss:$16 sps:$4 sm:$0xff]   ;;  %v8389_v61 = vld [vmem:[%s11526_s1 + $0x1560] ss:$16 sps:$4 sm:$0xff]  }
 0x239   :  { %5231 = vmatprep.subr.bf16.mxu0 %v8313_v31  ;;  %v8394_v31 = vld [vmem:[%s11526_s1 + $0x116c] ss:$16 sps:$4 sm:$0xff]  }
 0x23b   :  { %5642 = vmatpush1.bf16.msra.mxu1 %v8314_v11  ;;  %v8400_v11 = vld [vmem:[%s11526_s1 + $0x118c] ss:$16 sps:$4 sm:$0xff]  }
 0x23c   :  { %5232 = vmatpush1.bf16.msra.mxu0 %v8311_v12  ;;  %5643 = vmatprep.subr.bf16.mxu1 %v8322_v6  ;;  %v8397_v12 = vld [vmem:[%s11526_s1 + $0x1584] ss:$16 sps:$4 sm:$0xff]   ;;  %v8398_v6 = vld [vmem:[%s11526_s1 + $0x1188] ss:$16 sps:$4 sm:$0xff]  }
 0x23d   :  { %5233 = vmatprep.subr.bf16.mxu0 %v8319_v35  ;;  %v8395_v35 = vld [vmem:[%s11526_s1 + $0x1580] ss:$16 sps:$4 sm:$0xff]  }
 0x23f   :  { %5644 = vmatpush1.bf16.msra.mxu1 %v8320_v3  ;;  %v8406_v3 = vld [vmem:[%s11526_s1 + $0x11ac] ss:$16 sps:$4 sm:$0xff]  }
 0x240   :  { %5234 = vmatpush1.bf16.msra.mxu0 %v8317_v37  ;;  %5654 = vmatprep.subr.bf16.mxu1 %v8328_v40  ;;  %v8403_v37 = vld [vmem:[%s11526_s1 + $0x15a4] ss:$16 sps:$4 sm:$0xff]   ;;  %v8404_v40 = vld [vmem:[%s11526_s1 + $0x11a8] ss:$16 sps:$4 sm:$0xff]  }
 0x241   :  { %5244 = vmatprep.subr.bf16.mxu0 %v8325_v38  ;;  %v8401_v38 = vld [vmem:[%s11526_s1 + $0x15a0] ss:$16 sps:$4 sm:$0xff]  }
 0x242   :  { %5646 = vmatmul.mubr.bf16.vlgmr.msra.gmra.mrb[4].mxu1 %v10239_v30  ;;  %v8340_v30 = vld [vmem:[%s11526_s1 + $0x104c] ss:$16 sps:$4 sm:$0xff]  }
 0x243   :  { %5236 = vmatmul.mubr.bf16.vlgmr.msra.gmra.mrb[0].mxu0 %v10653_v8  ;;  %5655 = vmatpush1.bf16.msra.mxu1 %v8326_v18  ;;  %v8407_v18 = vld [vmem:[%s11526_s1 + $0x15c0] ss:$16 sps:$4 sm:$0xff]  }
 0x244   :  { %5245 = vmatpush1.bf16.msra.mxu0 %v8323_v43  ;;  %5656 = vmatprep.subr.bf16.mxu1 %v8334_v46  ;;  %v8412_v43 = vld [vmem:[%s11526_s1 + $0x11cc] ss:$16 sps:$4 sm:$0xff]   ;;  %v8415_v46 = vld [vmem:[%s11526_s1 + $0x15e4] ss:$16 sps:$4 sm:$0xff]  }
 0x245   :  { %5246 = vmatprep.subr.bf16.mxu0 %v8331_v44  ;;  %5276 = vmatprep.mubr.bf16.mxu0 %v10668_v22  ;;  %v8410_v44 = vld [vmem:[%s11526_s1 + $0x11c8] ss:$16 sps:$4 sm:$0xff]  }
 0x246   :  { %5686 = vmatprep.mubr.bf16.mxu1 %v10254_v23  ;;  %v8346_v23 = vld [vmem:[%s11526_s1 + $0x106c] ss:$16 sps:$4 sm:$0xff]  }
 0x247   :  { %5657 = vmatpush1.bf16.msra.mxu1 %v8332_v48  ;;  %v8413_v48 = vld [vmem:[%s11526_s1 + $0x15e0] ss:$16 sps:$4 sm:$0xff]  }
 0x248   :  { %5247 = vmatpush1.bf16.msra.mxu0 %v8329_v47  ;;  %5658 = vmatprep.subr.bf16.mxu1 %v8340_v30  ;;  %v8418_v47 = vld [vmem:[%s11526_s1 + $0x11ec] ss:$16 sps:$4 sm:$0xff]   ;;  %v8422_v30 = vld [vmem:[%s11526_s1 + $0x1604] ss:$16 sps:$4 sm:$0xff]  }
 0x249   :  { %5248 = vmatprep.subr.bf16.mxu0 %v8337_v50  ;;  %v8416_v50 = vld [vmem:[%s11526_s1 + $0x11e8] ss:$16 sps:$4 sm:$0xff]  }
 0x24b   :  { %5659 = vmatpush1.bf16.msra.mxu1 %v8338_v24  ;;  %v10856_v24 = vrot.slane %v10635_v0, %v8900_v49  ;;  %v8431_v49 = vld [vmem:[%s11526_s1 + $0x122c] ss:$16 sps:$4 sm:$0xff]   ;;  %v10872_v0 = vcombine.high %v10668_v22, %v10668_v22 }
 0x24c   :  { %5249 = vmatpush1.bf16.msra.mxu0 %v8335_v51  ;;  %5660 = vmatprep.subr.bf16.mxu1 %v8346_v23  ;;  %v8425_v51 = vld [vmem:[%s11526_s1 + $0x120c] ss:$16 sps:$4 sm:$0xff]   ;;  %v8423_v23 = vld [vmem:[%s11526_s1 + $0x1208] ss:$16 sps:$4 sm:$0xff]  }
 0x24d   :  { %5250 = vmatprep.subr.bf16.mxu0 %v8343_v52  ;;  %v8420_v52 = vld [vmem:[%s11526_s1 + $0x1600] ss:$16 sps:$4 sm:$0xff]  }
 0x24f   :  { %5661 = vmatpush1.bf16.msra.mxu1 %v8344_v54  ;;  %v8426_v54 = vld [vmem:[%s11526_s1 + $0x1620] ss:$16 sps:$4 sm:$0xff]  }
 0x250   :  { %5251 = vmatpush1.bf16.msra.mxu0 %v8341_v53  ;;  %5662 = vmatprep.subr.bf16.mxu1 %v8352_v55  ;;  %v8428_v53 = vld [vmem:[%s11526_s1 + $0x1624] ss:$16 sps:$4 sm:$0xff]  }
 0x251   :  { %5252 = vmatprep.subr.bf16.mxu0 %v8349_v10  ;;  %v8429_v10 = vld [vmem:[%s11526_s1 + $0x1228] ss:$16 sps:$4 sm:$0xff]   ;;  %v8434_v55 = vld [vmem:[%s11526_s1 + $0x1644] ss:$16 sps:$4 sm:$0xff]  }
 0x253   :  { %5663 = vmatpush1.bf16.msra.mxu1 %v8350_v58  ;;  %v8435_v58 = vld [vmem:[%s11526_s1 + $0x1248] ss:$16 sps:$4 sm:$0xff]  }
 0x254   :  { %5253 = vmatpush1.bf16.msra.mxu0 %v8347_v57  ;;  %5664 = vmatprep.subr.bf16.mxu1 %v8358_v60  ;;  %v8432_v57 = vld [vmem:[%s11526_s1 + $0x1640] ss:$16 sps:$4 sm:$0xff]  }
 0x255   :  { %5254 = vmatprep.subr.bf16.mxu0 %v8355_v59  ;;  %v8440_v59 = vld [vmem:[%s11526_s1 + $0x1664] ss:$16 sps:$4 sm:$0xff]   ;;  %v8438_v60 = vld [vmem:[%s11526_s1 + $0x1660] ss:$16 sps:$4 sm:$0xff]  }
 0x257   :  { %5665 = vmatpush1.bf16.msra.mxu1 %v8356_v63  ;;  %v8446_v63 = vld [vmem:[%s11526_s1 + $0x1684] ss:$16 sps:$4 sm:$0xff]  }
 0x258   :  { %5255 = vmatpush1.bf16.msra.mxu0 %v8353_v62  ;;  %5666 = vmatprep.subr.bf16.mxu1 %v8364_v36  ;;  %v8441_v62 = vld [vmem:[%s11526_s1 + $0x1268] ss:$16 sps:$4 sm:$0xff]   ;;  %v8444_v36 = vld [vmem:[%s11526_s1 + $0x1680] ss:$16 sps:$4 sm:$0xff]  }
 0x259   :  { %5256 = vmatprep.subr.bf16.mxu0 %v8361_v1  ;;  %v8449_v1 = vld [vmem:[%s11526_s1 + $0x128c] ss:$16 sps:$4 sm:$0xff]  }
 0x25b   :  { %5667 = vmatpush1.bf16.msra.mxu1 %v8362_v39  ;;  %v8452_v39 = vld [vmem:[%s11526_s1 + $0x16a4] ss:$16 sps:$4 sm:$0xff]  }
 0x25c   :  { %5257 = vmatpush1.bf16.msra.mxu0 %v8359_v2  ;;  %5668 = vmatprep.subr.bf16.mxu1 %v8370_v27  ;;  %v8447_v2 = vld [vmem:[%s11526_s1 + $0x1288] ss:$16 sps:$4 sm:$0xff]   ;;  %v8450_v27 = vld [vmem:[%s11526_s1 + $0x16a0] ss:$16 sps:$4 sm:$0xff]  }
 0x25d   :  { %5258 = vmatprep.subr.bf16.mxu0 %v8367_v7  ;;  %v8455_v7 = vld [vmem:[%s11526_s1 + $0x12ac] ss:$16 sps:$4 sm:$0xff]  }
 0x25f   :  { %5669 = vmatpush1.bf16.msra.mxu1 %v8368_v13  ;;  %v8458_v13 = vld [vmem:[%s11526_s1 + $0x16c4] ss:$16 sps:$4 sm:$0xff]  }
 0x260   :  { %5259 = vmatpush1.bf16.msra.mxu0 %v8365_v9  ;;  %5670 = vmatprep.subr.bf16.mxu1 %v8376_v14  ;;  %v8453_v9 = vld [vmem:[%s11526_s1 + $0x12a8] ss:$16 sps:$4 sm:$0xff]   ;;  %v8456_v14 = vld [vmem:[%s11526_s1 + $0x16c0] ss:$16 sps:$4 sm:$0xff]  }
 0x261   :  { %5260 = vmatprep.subr.bf16.mxu0 %v8373_v45  ;;  %v8461_v45 = vld [vmem:[%s11526_s1 + $0x12cc] ss:$16 sps:$4 sm:$0xff]  }
 0x263   :  { %5671 = vmatpush1.bf16.msra.mxu1 %v8374_v16  ;;  %v8464_v16 = vld [vmem:[%s11526_s1 + $0x16e4] ss:$16 sps:$4 sm:$0xff]  }
 0x264   :  { %5261 = vmatpush1.bf16.msra.mxu0 %v8371_v15  ;;  %5672 = vmatprep.subr.bf16.mxu1 %v8382_v19  ;;  %v8459_v15 = vld [vmem:[%s11526_s1 + $0x12c8] ss:$16 sps:$4 sm:$0xff]   ;;  %v8462_v19 = vld [vmem:[%s11526_s1 + $0x16e0] ss:$16 sps:$4 sm:$0xff]  }
 0x265   :  { %5262 = vmatprep.subr.bf16.mxu0 %v8379_v17  ;;  %v8467_v17 = vld [vmem:[%s11526_s1 + $0x12ec] ss:$16 sps:$4 sm:$0xff]  }
 0x267   :  { %5673 = vmatpush1.bf16.msra.mxu1 %v8380_v21  ;;  %v8470_v21 = vld [vmem:[%s11526_s1 + $0x1704] ss:$16 sps:$4 sm:$0xff]  }
 0x268   :  { %5263 = vmatpush1.bf16.msra.mxu0 %v8377_v20  ;;  %5674 = vmatprep.subr.bf16.mxu1 %v8388_v26  ;;  %v8465_v20 = vld [vmem:[%s11526_s1 + $0x12e8] ss:$16 sps:$4 sm:$0xff]   ;;  %v8468_v26 = vld [vmem:[%s11526_s1 + $0x1700] ss:$16 sps:$4 sm:$0xff]  }
 0x269   :  { %5264 = vmatprep.subr.bf16.mxu0 %v8385_v25  ;;  %v8473_v25 = vld [vmem:[%s11526_s1 + $0x130c] ss:$16 sps:$4 sm:$0xff]  }
 0x26b   :  { %5675 = vmatpush1.bf16.msra.mxu1 %v8386_v56  ;;  %v8476_v56 = vld [vmem:[%s11526_s1 + $0x1724] ss:$16 sps:$4 sm:$0xff]  }
 0x26c   :  { %5265 = vmatpush1.bf16.msra.mxu0 %v8383_v28  ;;  %5676 = vmatprep.subr.bf16.mxu1 %v8394_v31  ;;  %v8471_v28 = vld [vmem:[%s11526_s1 + $0x1308] ss:$16 sps:$4 sm:$0xff]   ;;  %v8474_v31 = vld [vmem:[%s11526_s1 + $0x1720] ss:$16 sps:$4 sm:$0xff]  }
 0x26d   :  { %5266 = vmatprep.subr.bf16.mxu0 %v8391_v29  ;;  %v8479_v29 = vld [vmem:[%s11526_s1 + $0x132c] ss:$16 sps:$4 sm:$0xff]  }
 0x26f   :  { %5677 = vmatpush1.bf16.msra.mxu1 %v8392_v33  ;;  %v8482_v33 = vld [vmem:[%s11526_s1 + $0x1744] ss:$16 sps:$4 sm:$0xff]  }
 0x270   :  { %5267 = vmatpush1.bf16.msra.mxu0 %v8389_v61  ;;  %5678 = vmatprep.subr.bf16.mxu1 %v8400_v11  ;;  %v8477_v61 = vld [vmem:[%s11526_s1 + $0x1328] ss:$16 sps:$4 sm:$0xff]   ;;  %v8480_v11 = vld [vmem:[%s11526_s1 + $0x1740] ss:$16 sps:$4 sm:$0xff]  }
 0x271   :  { %5268 = vmatprep.subr.bf16.mxu0 %v8397_v12  ;;  %v8485_v12 = vld [vmem:[%s11526_s1 + $0x134c] ss:$16 sps:$4 sm:$0xff]  }
 0x273   :  { %5679 = vmatpush1.bf16.msra.mxu1 %v8398_v6  ;;  %v8488_v6 = vld [vmem:[%s11526_s1 + $0x1764] ss:$16 sps:$4 sm:$0xff]  }
 0x274   :  { %5269 = vmatpush1.bf16.msra.mxu0 %v8395_v35  ;;  %5680 = vmatprep.subr.bf16.mxu1 %v8406_v3  ;;  %v8483_v35 = vld [vmem:[%s11526_s1 + $0x1348] ss:$16 sps:$4 sm:$0xff]   ;;  %v8486_v3 = vld [vmem:[%s11526_s1 + $0x1760] ss:$16 sps:$4 sm:$0xff]  }
 0x275   :  { %5270 = vmatprep.subr.bf16.mxu0 %v8403_v37  ;;  %v8491_v37 = vld [vmem:[%s11526_s1 + $0x136c] ss:$16 sps:$4 sm:$0xff]  }
 0x277   :  { %5681 = vmatpush1.bf16.msra.mxu1 %v8404_v40  ;;  %v8494_v40 = vld [vmem:[%s11526_s1 + $0x1784] ss:$16 sps:$4 sm:$0xff]  }
 0x278   :  { %5271 = vmatpush1.bf16.msra.mxu0 %v8401_v38  ;;  %5682 = vmatprep.subr.bf16.mxu1 %v8412_v43  ;;  %v8489_v38 = vld [vmem:[%s11526_s1 + $0x1368] ss:$16 sps:$4 sm:$0xff]   ;;  %v8492_v43 = vld [vmem:[%s11526_s1 + $0x1780] ss:$16 sps:$4 sm:$0xff]  }
 0x279   :  { %5272 = vmatprep.subr.bf16.mxu0 %v8409_v41  ;;  %v8497_v41 = vld [vmem:[%s11526_s1 + $0x138c] ss:$16 sps:$4 sm:$0xff]  }
 0x27b   :  { %5683 = vmatpush1.bf16.msra.mxu1 %v8410_v44  ;;  %v8500_v44 = vld [vmem:[%s11526_s1 + $0x17a4] ss:$16 sps:$4 sm:$0xff]  }
 0x27c   :  { %5273 = vmatpush1.bf16.msra.mxu0 %v8407_v18  ;;  %5684 = vmatprep.subr.bf16.mxu1 %v8418_v47  ;;  %v8495_v18 = vld [vmem:[%s11526_s1 + $0x1388] ss:$16 sps:$4 sm:$0xff]   ;;  %v8498_v47 = vld [vmem:[%s11526_s1 + $0x17a0] ss:$16 sps:$4 sm:$0xff]  }
 0x27d   :  { %5274 = vmatprep.subr.bf16.mxu0 %v8415_v46  ;;  %v8503_v46 = vld [vmem:[%s11526_s1 + $0x13ac] ss:$16 sps:$4 sm:$0xff]  }
 0x27f   :  { %5685 = vmatpush1.bf16.msra.mxu1 %v8416_v50  ;;  %v8506_v50 = vld [vmem:[%s11526_s1 + $0x17c4] ss:$16 sps:$4 sm:$0xff]  }
 0x280   :  { %5275 = vmatpush1.bf16.msra.mxu0 %v8413_v48  ;;  %5695 = vmatprep.subr.bf16.mxu1 %v8425_v51  ;;  %v8501_v48 = vld [vmem:[%s11526_s1 + $0x13a8] ss:$16 sps:$4 sm:$0xff]   ;;  %v8504_v51 = vld [vmem:[%s11526_s1 + $0x17c0] ss:$16 sps:$4 sm:$0xff]  }
 0x281   :  { %5285 = vmatprep.subr.bf16.mxu0 %v8422_v30  ;;  %v8509_v30 = vld [vmem:[%s11526_s1 + $0x13cc] ss:$16 sps:$4 sm:$0xff]  }
 0x282   :  { %5687 = vmatmul.mubr.bf16.vlgmr.msra.gmra.mrb[4].mxu1 %v10442_v32  ;;  %v8437_v32 = vld [vmem:[%s11526_s1 + $0x124c] ss:$16 sps:$4 sm:$0xff]  }
 0x283   :  { %5277 = vmatmul.mubr.bf16.vlgmr.msra.gmra.mrb[0].mxu0 %v10856_v24  ;;  %5696 = vmatpush1.bf16.msra.mxu1 %v8423_v23  ;;  %v8512_v23 = vld [vmem:[%s11526_s1 + $0x17e4] ss:$16 sps:$4 sm:$0xff]  }
 0x284   :  { %5286 = vmatpush1.bf16.msra.mxu0 %v8420_v52  ;;  %5697 = vmatprep.subr.bf16.mxu1 %v8431_v49  ;;  %v8507_v52 = vld [vmem:[%s11526_s1 + $0x13c8] ss:$16 sps:$4 sm:$0xff]   ;;  %v8510_v49 = vld [vmem:[%s11526_s1 + $0x17e0] ss:$16 sps:$4 sm:$0xff]  }
 0x285   :  { %5287 = vmatprep.subr.bf16.mxu0 %v8428_v53  ;;  %5317 = vmatprep.mubr.bf16.mxu0 %v10872_v0  ;;  %v8515_v53 = vld [vmem:[%s11526_s1 + $0x13ec] ss:$16 sps:$4 sm:$0xff]  }
 0x286   :  { %5727 = vmatprep.mubr.bf16.mxu1 %v10458_v34  ;;  %v8443_v34 = vld [vmem:[%s11526_s1 + $0x126c] ss:$16 sps:$4 sm:$0xff]  }
 0x287   :  { %5698 = vmatpush1.bf16.msra.mxu1 %v8429_v10  ;;  %v8518_v10 = vld [vmem:[%s11526_s1 + $0x140c] ss:$16 sps:$4 sm:$0xff]  }
 0x288   :  { %5288 = vmatpush1.bf16.msra.mxu0 %v8426_v54  ;;  %5699 = vmatprep.subr.bf16.mxu1 %v8437_v32  ;;  %v8513_v54 = vld [vmem:[%s11526_s1 + $0x13e8] ss:$16 sps:$4 sm:$0xff]  }
 0x289   :  { %5289 = vmatprep.subr.bf16.mxu0 %v8434_v55  ;;  %v11057_v55 = vcombine.high %v10856_v24, %v10856_v24  ;;  %v8516_v32 = vld [vmem:[%s11526_s1 + $0x1408] ss:$16 sps:$4 sm:$0xff]  }
 0x28b   :  { %5700 = vmatpush1.bf16.msra.mxu1 %v8435_v58  ;;  %v8519_v58 = vld [vmem:[%s11526_s1 + $0x1428] ss:$16 sps:$4 sm:$0xff]  }
 0x28c   :  { %5290 = vmatpush1.bf16.msra.mxu0 %v8432_v57  ;;  %5701 = vmatprep.subr.bf16.mxu1 %v8443_v34  ;;  %v8521_v57 = vld [vmem:[%s11526_s1 + $0x142c] ss:$16 sps:$4 sm:$0xff]   ;;  %v8612_v34 = vld [vmem:[%s11528_s3] ss:$8 sps:$4 sm:$0xff]  }
 0x28d   :  { %5291 = vmatprep.subr.bf16.mxu0 %v8440_v59  ;;  %v8524_v59 = vld [vmem:[%s11526_s1 + $0x144c] ss:$16 sps:$4 sm:$0xff]  }
 0x28f   :  { %5702 = vmatpush1.bf16.msra.mxu1 %v8441_v62  ;;  %v8522_v62 = vld [vmem:[%s11526_s1 + $0x1448] ss:$16 sps:$4 sm:$0xff]  }
 0x290   :  { %5292 = vmatpush1.bf16.msra.mxu0 %v8438_v60  ;;  %5703 = vmatprep.subr.bf16.mxu1 %v8449_v1  ;;  %v8617_v60 = vld [vmem:[%s11528_s3 + $0x14] ss:$8 sps:$4 sm:$0xff]   ;;  %v8620_v1 = vld [vmem:[%s11528_s3 + $0x24] ss:$8 sps:$4 sm:$0xff]  }
 0x291   :  { %5293 = vmatprep.subr.bf16.mxu0 %v8446_v63  ;;  %v8615_v63 = vld [vmem:[%s11528_s3 + $0x10] ss:$8 sps:$4 sm:$0xff]  }
 0x293   :  { %5704 = vmatpush1.bf16.msra.mxu1 %v8447_v2  ;;  %v8530_v2 = vld [vmem:[%s11526_s1 + $0x148c] ss:$16 sps:$4 sm:$0xff]  }
 0x294   :  { %5294 = vmatpush1.bf16.msra.mxu0 %v8444_v36  ;;  %5705 = vmatprep.subr.bf16.mxu1 %v8455_v7  ;;  %v8525_v36 = vld [vmem:[%s11526_s1 + $0x1468] ss:$16 sps:$4 sm:$0xff]   ;;  %v8623_v7 = vld [vmem:[%s11528_s3 + $0x34] ss:$8 sps:$4 sm:$0xff]  }
 0x295   :  { %5295 = vmatprep.subr.bf16.mxu0 %v8452_v39  ;;  %v8618_v39 = vld [vmem:[%s11528_s3 + $0x20] ss:$8 sps:$4 sm:$0xff]  }
 0x297   :  { %5706 = vmatpush1.bf16.msra.mxu1 %v8453_v9  ;;  %v8533_v9 = vld [vmem:[%s11526_s1 + $0x14ac] ss:$16 sps:$4 sm:$0xff]  }
 0x298   :  { %5296 = vmatpush1.bf16.msra.mxu0 %v8450_v27  ;;  %5707 = vmatprep.subr.bf16.mxu1 %v8461_v45  ;;  %v8528_v27 = vld [vmem:[%s11526_s1 + $0x1488] ss:$16 sps:$4 sm:$0xff]   ;;  %v8626_v45 = vld [vmem:[%s11528_s3 + $0x44] ss:$8 sps:$4 sm:$0xff]  }
 0x299   :  { %5297 = vmatprep.subr.bf16.mxu0 %v8458_v13  ;;  %v8621_v13 = vld [vmem:[%s11528_s3 + $0x30] ss:$8 sps:$4 sm:$0xff]  }
 0x29b   :  { %5708 = vmatpush1.bf16.msra.mxu1 %v8459_v15  ;;  %v8536_v15 = vld [vmem:[%s11526_s1 + $0x14cc] ss:$16 sps:$4 sm:$0xff]  }
 0x29c   :  { %5298 = vmatpush1.bf16.msra.mxu0 %v8456_v14  ;;  %5709 = vmatprep.subr.bf16.mxu1 %v8467_v17  ;;  %v8531_v14 = vld [vmem:[%s11526_s1 + $0x14a8] ss:$16 sps:$4 sm:$0xff]   ;;  %v8629_v17 = vld [vmem:[%s11528_s3 + $0x54] ss:$8 sps:$4 sm:$0xff]  }
 0x29d   :  { %5299 = vmatprep.subr.bf16.mxu0 %v8464_v16  ;;  %v8624_v16 = vld [vmem:[%s11528_s3 + $0x40] ss:$8 sps:$4 sm:$0xff]  }
 0x29f   :  { %5710 = vmatpush1.bf16.msra.mxu1 %v8465_v20  ;;  %v8627_v20 = vld [vmem:[%s11528_s3 + $0x50] ss:$8 sps:$4 sm:$0xff]  }
 0x2a0   :  { %5300 = vmatpush1.bf16.msra.mxu0 %v8462_v19  ;;  %5711 = vmatprep.subr.bf16.mxu1 %v8473_v25  ;;  %v8534_v19 = vld [vmem:[%s11526_s1 + $0x14c8] ss:$16 sps:$4 sm:$0xff]   ;;  %v8632_v25 = vld [vmem:[%s11528_s3 + $0x64] ss:$8 sps:$4 sm:$0xff]  }
 0x2a1   :  { %5301 = vmatprep.subr.bf16.mxu0 %v8470_v21  ;;  %v8539_v21 = vld [vmem:[%s11526_s1 + $0x14ec] ss:$16 sps:$4 sm:$0xff]  }
 0x2a3   :  { %5712 = vmatpush1.bf16.msra.mxu1 %v8471_v28  ;;  %v8630_v28 = vld [vmem:[%s11528_s3 + $0x60] ss:$8 sps:$4 sm:$0xff]  }
 0x2a4   :  { %5302 = vmatpush1.bf16.msra.mxu0 %v8468_v26  ;;  %5713 = vmatprep.subr.bf16.mxu1 %v8479_v29  ;;  %v8537_v26 = vld [vmem:[%s11526_s1 + $0x14e8] ss:$16 sps:$4 sm:$0xff]   ;;  %v8635_v29 = vld [vmem:[%s11528_s3 + $0x74] ss:$8 sps:$4 sm:$0xff]  }
 0x2a5   :  { %5303 = vmatprep.subr.bf16.mxu0 %v8476_v56  ;;  %v8542_v56 = vld [vmem:[%s11526_s1 + $0x150c] ss:$16 sps:$4 sm:$0xff]  }
 0x2a7   :  { %5714 = vmatpush1.bf16.msra.mxu1 %v8477_v61  ;;  %v8633_v61 = vld [vmem:[%s11528_s3 + $0x70] ss:$8 sps:$4 sm:$0xff]  }
 0x2a8   :  { %5304 = vmatpush1.bf16.msra.mxu0 %v8474_v31  ;;  %5715 = vmatprep.subr.bf16.mxu1 %v8485_v12  ;;  %v8540_v31 = vld [vmem:[%s11526_s1 + $0x1508] ss:$16 sps:$4 sm:$0xff]   ;;  %v8638_v12 = vld [vmem:[%s11528_s3 + $0x84] ss:$8 sps:$4 sm:$0xff]  }
 0x2a9   :  { %5305 = vmatprep.subr.bf16.mxu0 %v8482_v33  ;;  %v8545_v33 = vld [vmem:[%s11526_s1 + $0x152c] ss:$16 sps:$4 sm:$0xff]  }
 0x2ab   :  { %5716 = vmatpush1.bf16.msra.mxu1 %v8483_v35  ;;  %v8636_v35 = vld [vmem:[%s11528_s3 + $0x80] ss:$8 sps:$4 sm:$0xff]  }
 0x2ac   :  { %5306 = vmatpush1.bf16.msra.mxu0 %v8480_v11  ;;  %5717 = vmatprep.subr.bf16.mxu1 %v8491_v37  ;;  %v8543_v11 = vld [vmem:[%s11526_s1 + $0x1528] ss:$16 sps:$4 sm:$0xff]   ;;  %v8641_v37 = vld [vmem:[%s11528_s3 + $0x94] ss:$8 sps:$4 sm:$0xff]  }
 0x2ad   :  { %5307 = vmatprep.subr.bf16.mxu0 %v8488_v6  ;;  %v8548_v6 = vld [vmem:[%s11526_s1 + $0x154c] ss:$16 sps:$4 sm:$0xff]  }
 0x2af   :  { %5718 = vmatpush1.bf16.msra.mxu1 %v8489_v38  ;;  %v8639_v38 = vld [vmem:[%s11528_s3 + $0x90] ss:$8 sps:$4 sm:$0xff]  }
 0x2b0   :  { %5308 = vmatpush1.bf16.msra.mxu0 %v8486_v3  ;;  %5719 = vmatprep.subr.bf16.mxu1 %v8497_v41  ;;  %v8546_v3 = vld [vmem:[%s11526_s1 + $0x1548] ss:$16 sps:$4 sm:$0xff]   ;;  %v8644_v41 = vld [vmem:[%s11528_s3 + $0xa4] ss:$8 sps:$4 sm:$0xff]  }
 0x2b1   :  { %5309 = vmatprep.subr.bf16.mxu0 %v8494_v40  ;;  %v8551_v40 = vld [vmem:[%s11526_s1 + $0x156c] ss:$16 sps:$4 sm:$0xff]  }
 0x2b3   :  { %5720 = vmatpush1.bf16.msra.mxu1 %v8495_v18  ;;  %v8642_v18 = vld [vmem:[%s11528_s3 + $0xa0] ss:$8 sps:$4 sm:$0xff]  }
 0x2b4   :  { %5310 = vmatpush1.bf16.msra.mxu0 %v8492_v43  ;;  %5721 = vmatprep.subr.bf16.mxu1 %v8503_v46  ;;  %v8549_v43 = vld [vmem:[%s11526_s1 + $0x1568] ss:$16 sps:$4 sm:$0xff]   ;;  %v8647_v46 = vld [vmem:[%s11528_s3 + $0xb4] ss:$8 sps:$4 sm:$0xff]  }
 0x2b5   :  { %5311 = vmatprep.subr.bf16.mxu0 %v8500_v44  ;;  %v8554_v44 = vld [vmem:[%s11526_s1 + $0x158c] ss:$16 sps:$4 sm:$0xff]  }
 0x2b7   :  { %5722 = vmatpush1.bf16.msra.mxu1 %v8501_v48  ;;  %v8645_v48 = vld [vmem:[%s11528_s3 + $0xb0] ss:$8 sps:$4 sm:$0xff]  }
 0x2b8   :  { %5312 = vmatpush1.bf16.msra.mxu0 %v8498_v47  ;;  %5723 = vmatprep.subr.bf16.mxu1 %v8509_v30  ;;  %v8552_v47 = vld [vmem:[%s11526_s1 + $0x1588] ss:$16 sps:$4 sm:$0xff]   ;;  %v8650_v30 = vld [vmem:[%s11528_s3 + $0xc4] ss:$8 sps:$4 sm:$0xff]  }
 0x2b9   :  { %5313 = vmatprep.subr.bf16.mxu0 %v8506_v50  ;;  %v8557_v50 = vld [vmem:[%s11526_s1 + $0x15ac] ss:$16 sps:$4 sm:$0xff]  }
 0x2bb   :  { %5724 = vmatpush1.bf16.msra.mxu1 %v8507_v52  ;;  %v8648_v52 = vld [vmem:[%s11528_s3 + $0xc0] ss:$8 sps:$4 sm:$0xff]  }
 0x2bc   :  { %5314 = vmatpush1.bf16.msra.mxu0 %v8504_v51  ;;  %5725 = vmatprep.subr.bf16.mxu1 %v8515_v53  ;;  %v8555_v51 = vld [vmem:[%s11526_s1 + $0x15a8] ss:$16 sps:$4 sm:$0xff]   ;;  %v8653_v53 = vld [vmem:[%s11528_s3 + $0xd4] ss:$8 sps:$4 sm:$0xff]  }
 0x2bd   :  { %5315 = vmatprep.subr.bf16.mxu0 %v8512_v23  ;;  %v8560_v23 = vld [vmem:[%s11526_s1 + $0x15cc] ss:$16 sps:$4 sm:$0xff]  }
 0x2bf   :  { %5726 = vmatpush1.bf16.msra.mxu1 %v8513_v54  ;;  %v8651_v54 = vld [vmem:[%s11528_s3 + $0xd0] ss:$8 sps:$4 sm:$0xff]  }
 0x2c0   :  { %5316 = vmatpush1.bf16.msra.mxu0 %v8510_v49  ;;  %5736 = vmatprep.subr.bf16.mxu1 %v8518_v10  ;;  %v8558_v49 = vld [vmem:[%s11526_s1 + $0x15c8] ss:$16 sps:$4 sm:$0xff]   ;;  %v8563_v10 = vld [vmem:[%s11526_s1 + $0x15ec] ss:$16 sps:$4 sm:$0xff]  }
 0x2c2   :  { %5728 = vmatmul.mubr.bf16.vlgmr.msra.gmra.mrb[4].mxu1 %v10653_v8  ;;  %v8614_v8 = vld [vmem:[%s11528_s3 + $0x4] ss:$8 sps:$4 sm:$0xff]  }
 0x2c3   :  { %5318 = vmatmul.mubr.bf16.vlgmr.msra.gmra.mrb[0].mxu0 %v11057_v55  ;;  %5737 = vmatpush1.bf16.msra.mxu1 %v8516_v32  ;;  %v8561_v32 = vld [vmem:[%s11526_s1 + $0x15e8] ss:$16 sps:$4 sm:$0xff]  }
 0x2c4   :  { %5768 = vmatprep.mubr.bf16.mxu1 %v10668_v22  ;;  %5738 = vmatprep.subr.bf16.mxu1 %v8521_v57  ;;  %v8527_v22 = vld [vmem:[%s11526_s1 + $0x146c] ss:$16 sps:$4 sm:$0xff]  }
 0x2c5   :  { %6222 = vmatprep.subr.bf16.mxu0 %v8614_v8  ;;  %v8566_v57 = vld [vmem:[%s11526_s1 + $0x160c] ss:$16 sps:$4 sm:$0xff]  }
 0x2c6   :  { %6223 = vmatpush1.bf16.msra.mxu0 %v8612_v34  ;;  %v8567_v34 = vld [vmem:[%s11526_s1 + $0x1628] ss:$16 sps:$4 sm:$0xff]   ;;  %v8572_v8 = vld [vmem:[%s11526_s1 + $0x164c] ss:$16 sps:$4 sm:$0xff]  }
 0x2c7   :  { %5739 = vmatpush1.bf16.msra.mxu1 %v8519_v58  ;;  %6224 = vmatprep.subr.bf16.mxu0 %v8617_v60  ;;  %v8564_v58 = vld [vmem:[%s11526_s1 + $0x1608] ss:$16 sps:$4 sm:$0xff]  }
 0x2c8   :  { %5740 = vmatprep.subr.bf16.mxu1 %v8524_v59  ;;  %v8569_v59 = vld [vmem:[%s11526_s1 + $0x162c] ss:$16 sps:$4 sm:$0xff]   ;;  %v8570_v60 = vld [vmem:[%s11526_s1 + $0x1648] ss:$16 sps:$4 sm:$0xff]  }
 0x2ca   :  { %6225 = vmatpush1.bf16.msra.mxu0 %v8615_v63  ;;  %v8581_v63 = vld [vmem:[%s11526_s1 + $0x16ac] ss:$16 sps:$4 sm:$0xff]  }
 0x2cb   :  { %5741 = vmatpush1.bf16.msra.mxu1 %v8522_v62  ;;  %6226 = vmatprep.subr.bf16.mxu0 %v8620_v1  ;;  %v8578_v62 = vld [vmem:[%s11526_s1 + $0x168c] ss:$16 sps:$4 sm:$0xff]   ;;  %v8579_v1 = vld [vmem:[%s11526_s1 + $0x16a8] ss:$16 sps:$4 sm:$0xff]  }
 0x2cc   :  { %5742 = vmatprep.subr.bf16.mxu1 %v8527_v22  ;;  %v8576_v22 = vld [vmem:[%s11526_s1 + $0x1688] ss:$16 sps:$4 sm:$0xff]  }
 0x2ce   :  { %6227 = vmatpush1.bf16.msra.mxu0 %v8618_v39  ;;  %v8654_v39 = vld [vmem:[%s11528_s3 + $0xe0] ss:$8 sps:$4 sm:$0xff]  }
 0x2cf   :  { %5743 = vmatpush1.bf16.msra.mxu1 %v8525_v36  ;;  %6228 = vmatprep.subr.bf16.mxu0 %v8623_v7  ;;  %v8584_v36 = vld [vmem:[%s11526_s1 + $0x16cc] ss:$16 sps:$4 sm:$0xff]   ;;  %v8582_v7 = vld [vmem:[%s11526_s1 + $0x16c8] ss:$16 sps:$4 sm:$0xff]  }
 0x2d0   :  { %5744 = vmatprep.subr.bf16.mxu1 %v8530_v2  ;;  %v8656_v2 = vld [vmem:[%s11528_s3 + $0xe4] ss:$8 sps:$4 sm:$0xff]  }
 0x2d2   :  { %6229 = vmatpush1.bf16.msra.mxu0 %v8621_v13  ;;  %v8657_v13 = vld [vmem:[%s11528_s3 + $0xf0] ss:$8 sps:$4 sm:$0xff]  }
 0x2d3   :  { %5745 = vmatpush1.bf16.msra.mxu1 %v8528_v27  ;;  %6230 = vmatprep.subr.bf16.mxu0 %v8626_v45  ;;  %v8587_v27 = vld [vmem:[%s11526_s1 + $0x16ec] ss:$16 sps:$4 sm:$0xff]   ;;  %v8585_v45 = vld [vmem:[%s11526_s1 + $0x16e8] ss:$16 sps:$4 sm:$0xff]  }
 0x2d4   :  { %5746 = vmatprep.subr.bf16.mxu1 %v8533_v9  ;;  %v8659_v9 = vld [vmem:[%s11528_s3 + $0xf4] ss:$8 sps:$4 sm:$0xff]  }
 0x2d6   :  { %6231 = vmatpush1.bf16.msra.mxu0 %v8624_v16  ;;  %v8588_v16 = vld [vmem:[%s11526_s1 + $0x1708] ss:$16 sps:$4 sm:$0xff]  }
 0x2d7   :  { %5747 = vmatpush1.bf16.msra.mxu1 %v8531_v14  ;;  %6232 = vmatprep.subr.bf16.mxu0 %v8629_v17  ;;  %v8590_v14 = vld [vmem:[%s11526_s1 + $0x170c] ss:$16 sps:$4 sm:$0xff]  }
 0x2d8   :  { %5748 = vmatprep.subr.bf16.mxu1 %v8536_v15  ;;  %v8662_v15 = vld [vmem:[%s11528_s3 + $0x104] ss:$8 sps:$4 sm:$0xff]  }
 0x2d9   :  { %v8593_v17 = vld [vmem:[%s11526_s1 + $0x172c] ss:$16 sps:$4 sm:$0xff]  }
 0x2da   :  { %6233 = vmatpush1.bf16.msra.mxu0 %v8627_v20  ;;  %v8596_v20 = vld [vmem:[%s11526_s1 + $0x174c] ss:$16 sps:$4 sm:$0xff]  }
 0x2db   :  { %5749 = vmatpush1.bf16.msra.mxu1 %v8534_v19  ;;  %6234 = vmatprep.subr.bf16.mxu0 %v8632_v25  ;;  %v8591_v19 = vld [vmem:[%s11526_s1 + $0x1728] ss:$16 sps:$4 sm:$0xff]   ;;  %v8599_v25 = vld [vmem:[%s11526_s1 + $0x176c] ss:$16 sps:$4 sm:$0xff]  }
 0x2dc   :  { %5750 = vmatprep.subr.bf16.mxu1 %v8539_v21  ;;  %v8594_v21 = vld [vmem:[%s11526_s1 + $0x1748] ss:$16 sps:$4 sm:$0xff]  }
 0x2de   :  { %6235 = vmatpush1.bf16.msra.mxu0 %v8630_v28  ;;  %v8602_v28 = vld [vmem:[%s11526_s1 + $0x178c] ss:$16 sps:$4 sm:$0xff]  }
 0x2df   :  { %5751 = vmatpush1.bf16.msra.mxu1 %v8537_v26  ;;  %6236 = vmatprep.subr.bf16.mxu0 %v8635_v29  ;;  %v8597_v26 = vld [vmem:[%s11526_s1 + $0x1768] ss:$16 sps:$4 sm:$0xff]   ;;  %v8605_v29 = vld [vmem:[%s11526_s1 + $0x17ac] ss:$16 sps:$4 sm:$0xff]  }
 0x2e0   :  { %5752 = vmatprep.subr.bf16.mxu1 %v8542_v56  ;;  %v8600_v56 = vld [vmem:[%s11526_s1 + $0x1788] ss:$16 sps:$4 sm:$0xff]  }
 0x2e2   :  { %6237 = vmatpush1.bf16.msra.mxu0 %v8633_v61  ;;  %v8608_v61 = vld [vmem:[%s11526_s1 + $0x17cc] ss:$16 sps:$4 sm:$0xff]  }
 0x2e3   :  { %5753 = vmatpush1.bf16.msra.mxu1 %v8540_v31  ;;  %6238 = vmatprep.subr.bf16.mxu0 %v8638_v12  ;;  %v8603_v31 = vld [vmem:[%s11526_s1 + $0x17a8] ss:$16 sps:$4 sm:$0xff]   ;;  %v8611_v12 = vld [vmem:[%s11526_s1 + $0x17ec] ss:$16 sps:$4 sm:$0xff]  }
 0x2e4   :  { %5754 = vmatprep.subr.bf16.mxu1 %v8545_v33  ;;  %v8606_v33 = vld [vmem:[%s11526_s1 + $0x17c8] ss:$16 sps:$4 sm:$0xff]  }
 0x2e6   :  { %6239 = vmatpush1.bf16.msra.mxu0 %v8636_v35  ;;  %v802_v35 = vsub.s32 0, %v8882_v42 }
 0x2e7   :  { %5755 = vmatpush1.bf16.msra.mxu1 %v8543_v11  ;;  %6240 = vmatprep.subr.bf16.mxu0 %v8641_v37  ;;  %v8609_v11 = vld [vmem:[%s11526_s1 + $0x17e8] ss:$16 sps:$4 sm:$0xff]   ;;  %v806_v37 = vsub.s32 1, %v8882_v42 }
 0x2e8   :  { %5756 = vmatprep.subr.bf16.mxu1 %v8548_v6  ;;  %v11357_v6 = vld [vmem:[%s11529_s2] sm:$0xf] }
 0x2ea   :  { %6241 = vmatpush1.bf16.msra.mxu0 %v8639_v38  ;;  %v807_v38 = vrot.slane %v11357_v6, %v806_v37 }
 0x2eb   :  { %5757 = vmatpush1.bf16.msra.mxu1 %v8546_v3  ;;  %6242 = vmatprep.subr.bf16.mxu0 %v8644_v41  ;;  %v803_v3 = vrot.slane %v11357_v6, %v802_v35 }
 0x2ec   :  { %5758 = vmatprep.subr.bf16.mxu1 %v8551_v40 }
 0x2ed   :  { %v4869_v40 = vadd.f32 %v9688_v4, %v803_v3  ;;  %v8665_v4 = vld [vmem:[%s11528_s3 + $0x114] ss:$8 sps:$4 sm:$0xff]  }
 0x2ee   :  { %6243 = vmatpush1.bf16.msra.mxu0 %v8642_v18 }
 0x2ef   :  { %5759 = vmatpush1.bf16.msra.mxu1 %v8549_v43  ;;  %6244 = vmatprep.subr.bf16.mxu0 %v8647_v46 }
 0x2f0   :  { %5760 = vmatprep.subr.bf16.mxu1 %v8554_v44 }
 0x2f2   :  { %6245 = vmatpush1.bf16.msra.mxu0 %v8645_v48 }
 0x2f3   :  { %5761 = vmatpush1.bf16.msra.mxu1 %v8552_v47  ;;  %6246 = vmatprep.subr.bf16.mxu0 %v8650_v30 }
 0x2f4   :  { %5762 = vmatprep.subr.bf16.mxu1 %v8557_v50 }
 0x2f6   :  { %6247 = vmatpush1.bf16.msra.mxu0 %v8648_v52 }
 0x2f7   :  { %5763 = vmatpush1.bf16.msra.mxu1 %v8555_v51  ;;  %6248 = vmatprep.subr.bf16.mxu0 %v8653_v53  ;;  %v8660_v51 = vld [vmem:[%s11528_s3 + $0x100] ss:$8 sps:$4 sm:$0xff]  }
 0x2f8   :  { %5764 = vmatprep.subr.bf16.mxu1 %v8560_v23  ;;  %v8668_v23 = vld [vmem:[%s11528_s3 + $0x124] ss:$8 sps:$4 sm:$0xff]  }
 0x2f9   :  { %v8708_v53 = vld [vmem:[%s11530_s5 + $0x40] sm:$0xff]  }
 0x2fa   :  { %6249 = vmatpush1.bf16.msra.mxu0 %v8651_v54  ;;  %v8666_v54 = vld [vmem:[%s11528_s3 + $0x120] ss:$8 sps:$4 sm:$0xff]  }
 0x2fb   :  { %5765 = vmatpush1.bf16.msra.mxu1 %v8558_v49  ;;  %6250 = vmatprep.subr.bf16.mxu0 %v8656_v2  ;;  %v8709_v49 = vld [vmem:[%s11530_s5] sm:$0xff]  }
 0x2fc   :  { %5766 = vmatprep.subr.bf16.mxu1 %v8563_v10  ;;  %v8710_v10 = vld [vmem:[%s11530_s5 + $0x48] sm:$0xff]  }
 0x2fd   :  { %v8680_v2 = vld [vmem:[%s11528_s3 + $0x164] ss:$8 sps:$4 sm:$0xff]  }
 0x2fe   :  { %6251 = vmatpush1.bf16.msra.mxu0 %v8654_v39  ;;  %v8719_v39 = vld [vmem:[%s11530_s5 + $0x28] sm:$0xff]  }
 0x2ff   :  { %5767 = vmatpush1.bf16.msra.mxu1 %v8561_v32  ;;  %6252 = vmatprep.subr.bf16.mxu0 %v8659_v9  ;;  %v8711_v32 = vld [vmem:[%s11530_s5 + $0x8] sm:$0xff]   ;;  %v8681_v9 = vld [vmem:[%s11528_s3 + $0x170] ss:$8 sps:$4 sm:$0xff]  }
 0x300   :  { %5777 = vmatprep.subr.bf16.mxu1 %v8566_v57  ;;  %v8712_v57 = vld [vmem:[%s11530_s5 + $0x50] sm:$0xff]  }
 0x302   :  { %5769 = vmatmul.mubr.bf16.vlgmr.msra.gmra.mrb[4].mxu1 %v10856_v24  ;;  %v8575_v24 = vld [vmem:[%s11526_s1 + $0x166c] ss:$16 sps:$4 sm:$0xff]   ;;  %6253 = vmatpush1.bf16.msra.mxu0 %v8657_v13 }
 0x303   :  { %5778 = vmatpush1.bf16.msra.mxu1 %v8564_v58  ;;  %5809 = vmatprep.mubr.bf16.mxu1 %v10872_v0  ;;  %v8573_v0 = vld [vmem:[%s11526_s1 + $0x1668] ss:$16 sps:$4 sm:$0xff]   ;;  %v8671_v58 = vld [vmem:[%s11528_s3 + $0x134] ss:$8 sps:$4 sm:$0xff]   ;;  %v8686_v13 = vld [vmem:[%s11528_s3 + $0x184] ss:$8 sps:$4 sm:$0xff]  }
 0x304   :  { %5779 = vmatprep.subr.bf16.mxu1 %v8569_v59  ;;  %6263 = vmatprep.subr.bf16.mxu0 %v8662_v15  ;;  %v8669_v59 = vld [vmem:[%s11528_s3 + $0x130] ss:$8 sps:$4 sm:$0xff]  }
 0x305   :  { %v8687_v15 = vld [vmem:[%s11528_s3 + $0x190] ss:$8 sps:$4 sm:$0xff]  }
 0x307   :  { %5780 = vmatpush1.bf16.msra.mxu1 %v8567_v34  ;;  %v8713_v34 = vld [vmem:[%s11530_s5 + $0x10] sm:$0xff]  }
 0x308   :  { %5781 = vmatprep.subr.bf16.mxu1 %v8572_v8  ;;  %v8714_v8 = vld [vmem:[%s11530_s5 + $0x58] sm:$0xff]  }
 0x30b   :  { %5782 = vmatpush1.bf16.msra.mxu1 %v8570_v60  ;;  %v8674_v60 = vld [vmem:[%s11528_s3 + $0x144] ss:$8 sps:$4 sm:$0xff]  }
 0x30c   :  { %5783 = vmatprep.subr.bf16.mxu1 %v8575_v24  ;;  %v8672_v24 = vld [vmem:[%s11528_s3 + $0x140] ss:$8 sps:$4 sm:$0xff]  }
 0x30f   :  { %5784 = vmatpush1.bf16.msra.mxu1 %v8573_v0  ;;  %v8677_v0 = vld [vmem:[%s11528_s3 + $0x154] ss:$8 sps:$4 sm:$0xff]  }
 0x310   :  { %5785 = vmatprep.subr.bf16.mxu1 %v8578_v62  ;;  %v8715_v62 = vld [vmem:[%s11530_s5 + $0x18] sm:$0xff]  }
 0x313   :  { %5786 = vmatpush1.bf16.msra.mxu1 %v8576_v22  ;;  %v8716_v22 = vld [vmem:[%s11530_s5 + $0x60] sm:$0xff]  }
 0x314   :  { %5787 = vmatprep.subr.bf16.mxu1 %v8581_v63  ;;  %v8717_v63 = vld [vmem:[%s11530_s5 + $0x20] sm:$0xff]  }
 0x317   :  { %5788 = vmatpush1.bf16.msra.mxu1 %v8579_v1  ;;  %v8675_v1 = vld [vmem:[%s11528_s3 + $0x150] ss:$8 sps:$4 sm:$0xff]  }
 0x318   :  { %5789 = vmatprep.subr.bf16.mxu1 %v8584_v36  ;;  %v8718_v36 = vld [vmem:[%s11530_s5 + $0x68] sm:$0xff]  }
 0x31b   :  { %5790 = vmatpush1.bf16.msra.mxu1 %v8582_v7  ;;  %v8678_v7 = vld [vmem:[%s11528_s3 + $0x160] ss:$8 sps:$4 sm:$0xff]  }
 0x31c   :  { %5791 = vmatprep.subr.bf16.mxu1 %v8587_v27  ;;  %v8683_v27 = vld [vmem:[%s11528_s3 + $0x174] ss:$8 sps:$4 sm:$0xff]  }
 0x31f   :  { %5792 = vmatpush1.bf16.msra.mxu1 %v8585_v45  ;;  %v8684_v45 = vld [vmem:[%s11528_s3 + $0x180] ss:$8 sps:$4 sm:$0xff]  }
 0x320   :  { %5793 = vmatprep.subr.bf16.mxu1 %v8590_v14  ;;  %v8689_v14 = vld [vmem:[%s11528_s3 + $0x194] ss:$8 sps:$4 sm:$0xff]  }
 0x323   :  { %5794 = vmatpush1.bf16.msra.mxu1 %v8588_v16  ;;  %v8692_v16 = vld [vmem:[%s11528_s3 + $0x1a4] ss:$8 sps:$4 sm:$0xff]  }
 0x324   :  { %5795 = vmatprep.subr.bf16.mxu1 %v8593_v17  ;;  %v8690_v17 = vld [vmem:[%s11528_s3 + $0x1a0] ss:$8 sps:$4 sm:$0xff]  }
 0x327   :  { %5796 = vmatpush1.bf16.msra.mxu1 %v8591_v19  ;;  %v8695_v19 = vld [vmem:[%s11528_s3 + $0x1b4] ss:$8 sps:$4 sm:$0xff]  }
 0x328   :  { %5797 = vmatprep.subr.bf16.mxu1 %v8596_v20  ;;  %v8693_v20 = vld [vmem:[%s11528_s3 + $0x1b0] ss:$8 sps:$4 sm:$0xff]  }
 0x32b   :  { %5798 = vmatpush1.bf16.msra.mxu1 %v8594_v21  ;;  %v8698_v21 = vld [vmem:[%s11528_s3 + $0x1c4] ss:$8 sps:$4 sm:$0xff]  }
 0x32c   :  { %5799 = vmatprep.subr.bf16.mxu1 %v8599_v25  ;;  %v8696_v25 = vld [vmem:[%s11528_s3 + $0x1c0] ss:$8 sps:$4 sm:$0xff]  }
 0x32f   :  { %5800 = vmatpush1.bf16.msra.mxu1 %v8597_v26  ;;  %v8701_v26 = vld [vmem:[%s11528_s3 + $0x1d4] ss:$8 sps:$4 sm:$0xff]  }
 0x330   :  { %5801 = vmatprep.subr.bf16.mxu1 %v8602_v28  ;;  %v8699_v28 = vld [vmem:[%s11528_s3 + $0x1d0] ss:$8 sps:$4 sm:$0xff]  }
 0x333   :  { %5802 = vmatpush1.bf16.msra.mxu1 %v8600_v56  ;;  %v8704_v56 = vld [vmem:[%s11528_s3 + $0x1e4] ss:$8 sps:$4 sm:$0xff]  }
 0x334   :  { %5803 = vmatprep.subr.bf16.mxu1 %v8605_v29  ;;  %v8702_v29 = vld [vmem:[%s11528_s3 + $0x1e0] ss:$8 sps:$4 sm:$0xff]  }
 0x337   :  { %5804 = vmatpush1.bf16.msra.mxu1 %v8603_v31  ;;  %v8707_v31 = vld [vmem:[%s11528_s3 + $0x1f4] ss:$8 sps:$4 sm:$0xff]  }
 0x338   :  { %5805 = vmatprep.subr.bf16.mxu1 %v8608_v61  ;;  %v8705_v61 = vld [vmem:[%s11528_s3 + $0x1f0] ss:$8 sps:$4 sm:$0xff]  }
 0x33b   :  { %5806 = vmatpush1.bf16.msra.mxu1 %v8606_v33  ;;  %v810_v33 = vsub.s32 2, %v8882_v42 }
 0x33c   :  { %5807 = vmatprep.subr.bf16.mxu1 %v8611_v12  ;;  %v814_v12 = vsub.s32 3, %v8882_v42 }
 0x33e   :  { %v815_v3 = vrot.slane %v11357_v6, %v814_v12 }
 0x33f   :  { %5808 = vmatpush1.bf16.msra.mxu1 %v8609_v11  ;;  %v811_v11 = vrot.slane %v11357_v6, %v810_v33  ;;  %v8721_v6 = vld [vmem:[%s11530_s5 + $0x30] sm:$0xff]  }
 0x340   :  { %7338 = vmatprep.subr.bf16.mxu1 %v8708_v53 }
 0x342   :  { %5810 = vmatmul.mubr.bf16.vlgmr.msra.gmra.mrb[4].mxu1 %v11057_v55  ;;  %v4871_v55 = vadd.f32 %v9690_v5, %v807_v38  ;;  %v8663_v5 = vld [vmem:[%s11528_s3 + $0x110] ss:$8 sps:$4 sm:$0xff]  }
 0x343   :  { %7339 = vmatpush3.bf16.msra.mxu1 %v8709_v49 }
 0x344   :  { %7340 = vmatprep.subr.bf16.mxu1 %v8710_v10 }
 0x347   :  { %7341 = vmatpush3.bf16.msra.mxu1 %v8711_v32 }
 0x348   :  { %7342 = vmatprep.subr.bf16.mxu1 %v8712_v57 }
 0x34b   :  { %7343 = vmatpush3.bf16.msra.mxu1 %v8713_v34 }
 0x34c   :  { %7344 = vmatprep.subr.bf16.mxu1 %v8714_v8 }
 0x34f   :  { %7345 = vmatpush3.bf16.msra.mxu1 %v8715_v62 }
 0x350   :  { %7346 = vmatprep.subr.bf16.mxu1 %v8716_v22 }
 0x353   :  { %7347 = vmatpush3.bf16.msra.mxu1 %v8717_v63 }
 0x354   :  { %7348 = vmatprep.subr.bf16.mxu1 %v8718_v36 }
 0x357   :  { %7349 = vmatpush3.bf16.msra.mxu1 %v8719_v39 }
 0x396   :  { %v5319_v41 = vpop.f32.mrb[0].mxu0 }
 0x397   :  { %v7361_v43 = vadd.f32 %v5319_v41, %v4869_v40  ;;  %v5321_v18 = vpop.f32.mrb[1].mxu0 }
 0x398   :  { %v7363_v44 = vadd.f32 %v5321_v18, %v4871_v55  ;;  %v5323_v46 = vpop.f32.mrb[2].mxu0 }
 0x399   :  { %v5818_v47 = vmax.f32 %v7361_v43, 0.0  ;;  %v5324_v48 = vpop.f32.mrb[3].mxu0 }
 0x39a   :  { %v5819_v50 = vmax.f32 %v7363_v44, 0.0 }
 0x39b   :  { %v5822_v52 = vpack.c.bf16 %v5818_v47, %v5818_v47 }
 0x39c   :  { %v5823_v30 = vpack.c.bf16 %v5819_v50, %v5819_v50  ;;  %v8720_v50 = vld [vmem:[%s11530_s5 + $0x70] sm:$0xff]  }
 0x39d   :  { %7350 = vmatprep.subr.bf16.mxu1 %v8720_v50 }
 0x39e   :  { %6254 = vmatprep.mubr.bf16.mxu0 %v5823_v30  ;;  %7351 = vmatpush3.bf16.msra.mxu1 %v8721_v6  ;;  %v8722_v30 = vld [vmem:[%s11530_s5 + $0x78] sm:$0xff]  }
 0x39f   :  { %6255 = vmatmul.mubr.bf16.vlgmr.msra.gmra.mrb[4].mxu0 %v5822_v52  ;;  %7352 = vmatprep.subr.bf16.mxu1 %v8722_v30  ;;  %v5890_v52 = vld [vmem:[%s11531_s4] sm:$0x3] }
 0x3a0   :  { %6264 = vmatpush1.bf16.msra.mxu0 %v8660_v51  ;;  %v8723_v51 = vld [vmem:[%s11530_s5 + $0x38] sm:$0xff]  }
 0x3a1   :  { %6265 = vmatprep.subr.bf16.mxu0 %v8665_v4  ;;  %v5895_v4 = vrot.slane %v5890_v52, %v802_v35  ;;  %v7321_v35 = vld [vmem:[%s11532_s6] ss:$0 sm:$0xff] }
 0x3a2   :  { %7353 = vmatpush3.bf16.msra.mxu1 %v8723_v51 }
 0x3a4   :  { %6266 = vmatpush1.bf16.msra.mxu0 %v8663_v5  ;;  %v5899_v5 = vrot.slane %v5890_v52, %v806_v37 }
 0x3a5   :  { %6267 = vmatprep.subr.bf16.mxu0 %v8668_v23 }
 0x3a8   :  { %6268 = vmatpush1.bf16.msra.mxu0 %v8666_v54 }
 0x3a9   :  { %6269 = vmatprep.subr.bf16.mxu0 %v8671_v58 }
 0x3ac   :  { %6270 = vmatpush1.bf16.msra.mxu0 %v8669_v59 }
 0x3ad   :  { %6271 = vmatprep.subr.bf16.mxu0 %v8674_v60 }
 0x3b0   :  { %6272 = vmatpush1.bf16.msra.mxu0 %v8672_v24 }
 0x3b1   :  { %6273 = vmatprep.subr.bf16.mxu0 %v8677_v0 }
 0x3b4   :  { %6274 = vmatpush1.bf16.msra.mxu0 %v8675_v1 }
 0x3b5   :  { %6275 = vmatprep.subr.bf16.mxu0 %v8680_v2 }
 0x3b8   :  { %6276 = vmatpush1.bf16.msra.mxu0 %v8678_v7 }
 0x3b9   :  { %6277 = vmatprep.subr.bf16.mxu0 %v8683_v27 }
 0x3bc   :  { %6278 = vmatpush1.bf16.msra.mxu0 %v8681_v9 }
 0x3bd   :  { %6279 = vmatprep.subr.bf16.mxu0 %v8686_v13 }
 0x3c0   :  { %6280 = vmatpush1.bf16.msra.mxu0 %v8684_v45 }
 0x3c1   :  { %6281 = vmatprep.subr.bf16.mxu0 %v8689_v14 }
 0x3c4   :  { %6282 = vmatpush1.bf16.msra.mxu0 %v8687_v15 }
 0x3c5   :  { %6283 = vmatprep.subr.bf16.mxu0 %v8692_v16 }
 0x3c8   :  { %6284 = vmatpush1.bf16.msra.mxu0 %v8690_v17 }
 0x3c9   :  { %6285 = vmatprep.subr.bf16.mxu0 %v8695_v19 }
 0x3cc   :  { %6286 = vmatpush1.bf16.msra.mxu0 %v8693_v20 }
 0x3cd   :  { %6287 = vmatprep.subr.bf16.mxu0 %v8698_v21 }
 0x3d0   :  { %6288 = vmatpush1.bf16.msra.mxu0 %v8696_v25 }
 0x3d1   :  { %6289 = vmatprep.subr.bf16.mxu0 %v8701_v26 }
 0x3d4   :  { %6290 = vmatpush1.bf16.msra.mxu0 %v8699_v28 }
 0x3d5   :  { %6291 = vmatprep.subr.bf16.mxu0 %v8704_v56 }
 0x3d8   :  { %6292 = vmatpush1.bf16.msra.mxu0 %v8702_v29 }
 0x3d9   :  { %6293 = vmatprep.subr.bf16.mxu0 %v8707_v31 }
 0x3dc   :  { %6294 = vmatpush1.bf16.msra.mxu0 %v8705_v61 }
 0x415   :  { %v5811_v38 = vpop.f32.mrb[4].mxu1 }
 0x416   :  { %v7364_v40 = vadd.f32 %v5811_v38, %v811_v11  ;;  %v5813_v55 = vpop.f32.mrb[5].mxu1 }
 0x417   :  { %v7365_v41 = vadd.f32 %v5813_v55, %v815_v3  ;;  %v5815_v43 = vpop.f32.mrb[6].mxu1 }
 0x418   :  { %v5820_v18 = vmax.f32 %v7364_v40, 0.0  ;;  %v5816_v44 = vpop.f32.mrb[7].mxu1 }
 0x419   :  { %v5821_v46 = vmax.f32 %v7365_v41, 0.0 }
 0x41a   :  { %v5824_v48 = vpack.c.bf16 %v5820_v18, %v5820_v18 }
 0x41b   :  { %v5825_v47 = vpack.c.bf16 %v5821_v46, %v5821_v46 }
 0x41d   :  { %6295 = vmatprep.mubr.bf16.mxu0 %v5825_v47 }
 0x41e   :  { %6296 = vmatmul.mubr.bf16.vlgmr.msra.gmra.mrb[4].mxu0 %v5824_v48 }
 0x4f1   :  { %v6297_v23 = vpop.f32.mrb[4].mxu0 }
 0x4f2   :  { %v7366_v53 = vadd.f32 %v6297_v23, %v5895_v4  ;;  %v6299_v49 = vpop.f32.mrb[5].mxu0 }
 0x4f3   :  { %v7367_v54 = vadd.f32 %v6299_v49, %v5899_v5  ;;  %v6301_v10 = vpop.f32.mrb[6].mxu0 }
 0x4f4   :  { %v6304_v32 = vmax.f32 %v7366_v53, 0.0  ;;  %v6302_v57 = vpop.f32.mrb[7].mxu0 }
 0x4f5   :  { %v6305_v58 = vmax.f32 %v7367_v54, 0.0 }
 0x4f6   :  { %v6306_v34 = vpack.c.bf16 %v6304_v32, %v6304_v32 }
 0x4f7   :  { %v6307_v59 = vpack.c.bf16 %v6305_v58, %v6305_v58 }
 0x4f9   :  { %6475 = vmatprep.mubr.bf16.mxu1 %v6307_v59 }
 0x4fa   :  { %6476 = vmatmul.mubr.bf16.vlgmr.msra.gmra.mrb[8].mxu1 %v6306_v34 }
 0x5cd   :  { %v7354_v8 = vpop.f32.mrb[8].mxu1 }
 0x5ce   :  { %v7355_v60 = vpop.f32.mrb[9].mxu1 }
 0x5cf   :  { %v7356_v42 = vadd.f32 %v7355_v60, %v7354_v8  ;;  %v7357_v37 = vpop.f32.mrb[10].mxu1 }
 0x5d0   :  { %v7358_v24 = vpop.f32.mrb[11].mxu1 }
 0x5d1   :  { %v6478_v0 = vadd.f32 %v7356_v42, %v7321_v35 }
 0x5d3   :  { %6484 = vst.msk [vmem:[%s11533_s7] sm:$0x3] %vm6483_vm0, %v6478_v0 }

</bundles_post_ra>
